<compile_context>
chip_gen: v7x
topology: tpu7x:2x2x1
jax: 0.10.0
libtpu: 0.0.40
codegen_flags: <defaults>
</compile_context>

<pallas_src>
import functools
import math

import jax
import jax.numpy as jnp
from jax.experimental import pallas as pl
from jax.experimental.pallas import tpu as pltpu


_PARALLEL_BATCH = pltpu.CompilerParams(dimension_semantics=("parallel",))


# ----------------------------------------------------------------------------
# Pallas kernels
# ----------------------------------------------------------------------------

def _dist_kernel(x_ref, o_ref):
    """Squared pairwise distance: -2*x@x.T + |x|^2 (col) + |x|^2 (row).

    Both squared-norm terms are recomputed in-kernel (the row term via a tiny
    dot_general against a ones row, avoiding any in-kernel transpose)."""
    x = x_ref[...]                                               # (V, 3)
    xx = x * x
    inner = jax.lax.dot_general(
        x, x, (((1,), (1,)), ((), ())),
        preferred_element_type=jnp.float32)                      # (V, V)
    qcol = jnp.sum(xx, axis=1, keepdims=True)                    # (V, 1)
    ones_row = jnp.ones((1, 3), jnp.float32)
    qrow = jax.lax.dot_general(
        ones_row, xx, (((1,), (1,)), ((), ())),
        preferred_element_type=jnp.float32)                      # (1, V)
    o_ref[...] = -2.0 * inner + qcol + qrow


def _theta_relu(ndn, sdn):
    """relu(ndn @ sdn) for contraction depth 3, done as 3 VPU broadcast FMAs
    (outer-product accumulation) instead of a depth-3 MXU matmul."""
    t = ndn[:, 0:1] * sdn[0:1, :]
    t = t + ndn[:, 1:2] * sdn[1:2, :]
    t = t + ndn[:, 2:3] * sdn[2:3, :]
    return jnp.maximum(t, 0.0)


def _conv_surface_kernel(ndn_ref, sdn_ref, o_ref, *, V, N, S, OUT):
    """Conv_surface: theta = relu(ndn @ dirs); max over neighbors; sum over
    supports. Rows of ndn are neighbor-major (row = n*V + v). The trailing
    F.relu is fused into the store (numeric no-op since theta >= 0)."""
    theta = _theta_relu(ndn_ref[...], sdn_ref[...])              # (N*V, S*OUT)
    m = theta[0:V, :]
    for ni in range(1, N):
        m = jnp.maximum(m, theta[ni * V:(ni + 1) * V, :])        # (V, S*OUT)
    acc = m[:, 0:OUT]
    for si in range(1, S):
        acc = acc + m[:, si * OUT:(si + 1) * OUT]                # (V, OUT)
    o_ref[...] = jnp.maximum(acc, 0.0)


def _conv_layer_kernel(ndn_ref, sdn_ref, nbr_ref, feat_ref, wc_ref, ws_ref,
                       bc_ref, bsup_ref, o_ref, *, V, N, S, OUT, apply_relu):
    """Fused Conv_layer:
        center = feat @ w_center + b_center                        (V, OUT)
        fs     = gathered_nbr_input @ w_support + b_support        (N*V, S*OUT)
                 (projection-after-gather == gather-after-projection)
        theta  = relu(ndn @ support_dirs)                          (N*V, S*OUT)
        out    = relu?( sum_S( max_N(theta * fs) ) + center )
    Rows of ndn / nbr are neighbor-major (row = n*V + v); support columns are
    support-major with out-channel fastest, matching the PyTorch view order."""
    theta = _theta_relu(ndn_ref[...], sdn_ref[...])              # (N*V, S*OUT)
    fs = jnp.dot(nbr_ref[...], ws_ref[...],
                 preferred_element_type=jnp.float32) + bsup_ref[...]
    act = theta * fs                                             # (N*V, S*OUT)
    m = act[0:V, :]
    for ni in range(1, N):
        m = jnp.maximum(m, act[ni * V:(ni + 1) * V, :])          # (V, S*OUT)
    acc = m[:, 0:OUT]
    for si in range(1, S):
        acc = acc + m[:, si * OUT:(si + 1) * OUT]                # (V, OUT)
    center = jnp.dot(feat_ref[...], wc_ref[...],
                     preferred_element_type=jnp.float32) + bc_ref[...]
    out = acc + center
    if apply_relu:                                               # fused F.relu
        out = jnp.maximum(out, 0.0)
    o_ref[...] = out


def _neighbor_max_kernel(x_ref, o_ref, *, V, K):
    """Max over K neighbors; rows laid out neighbor-major (row = k*V + v)."""
    m = x_ref[pl.ds(0, V), :]
    for k in range(1, K):
        m = jnp.maximum(m, x_ref[pl.ds(k * V, V), :])
    o_ref[...] = m


def _classifier_kernel(fm_ref, w1_ref, b1_ref, g_ref, be_ref, w2_ref, b2_ref,
                       o_ref, *, VF):
    """Global max over vertices + Linear + (Dropout=id) + BN(eval) + ReLU +
    Linear (output padded to a lane-dense 128 columns)."""
    x = fm_ref[...]                                              # (bs, VF, 1024)
    feat = x[:, 0, :]
    for i in range(1, VF):
        feat = jnp.maximum(feat, x[:, i, :])                     # (bs, 1024)
    h = jnp.dot(feat, w1_ref[...], preferred_element_type=jnp.float32) + b1_ref[...]
    # Dropout(0.3): identity in eval mode.
    # BatchNorm1d eval, running_mean=0, running_var=1, eps=1e-5:
    h = h * (g_ref[...] / jnp.sqrt(1.0 + 1e-5)) + be_ref[...]
    h = jnp.maximum(h, 0.0)
    o_ref[...] = jnp.dot(h, w2_ref[...], preferred_element_type=jnp.float32) + b2_ref[...]


# ----------------------------------------------------------------------------
# Pallas-call wrappers
# ----------------------------------------------------------------------------

def pairwise_distance(vertices):
    """(bs, V, 3) -> (bs, V, V) squared distances (matches torch formula)."""
    bs, v, _ = vertices.shape
    return pl.pallas_call(
        _dist_kernel,
        out_shape=jax.ShapeDtypeStruct((bs, v, v), jnp.float32),
        grid=(bs,),
        in_specs=[pl.BlockSpec((None, v, 3), lambda b: (b, 0, 0))],
        out_specs=pl.BlockSpec((None, v, v), lambda b: (b, 0, 0)),
        compiler_params=_PARALLEL_BATCH,
    )(vertices)


def conv_surface(idx_t, vertices, directions, kernel_num, support_num):
    """First GCN layer (no feature input). idx_t: (bs, N, V) neighbor-major."""
    bs, n, v = idx_t.shape
    ndn = get_neighbor_direction_norm_t(vertices, idx_t).reshape(bs, n * v, 3)
    sdn = normalize_cols(directions)                             # (3, S*K)
    sout = support_num * kernel_num
    kern = functools.partial(_conv_surface_kernel, V=v, N=n, S=support_num,
                             OUT=kernel_num)
    return pl.pallas_call(
        kern,
        out_shape=jax.ShapeDtypeStruct((bs, v, kernel_num), jnp.float32),
        grid=(bs,),
        in_specs=[pl.BlockSpec((None, n * v, 3), lambda b: (b, 0, 0)),
                  pl.BlockSpec((3, sout), lambda b: (0, 0))],
        out_specs=pl.BlockSpec((None, v, kernel_num), lambda b: (b, 0, 0)),
        compiler_params=_PARALLEL_BATCH,
    )(ndn, sdn)


def conv_layer(idx_t, vertices, feature_map, layer_params, out_channel,
               support_num, apply_relu):
    """Fused Conv_layer. idx_t: (bs, N, V) neighbor-major int32 indices."""
    w, bias, directions = layer_params
    bs, n, v = idx_t.shape
    cin = feature_map.shape[-1]
    sout = support_num * out_channel
    ndn = get_neighbor_direction_norm_t(vertices, idx_t).reshape(bs, n * v, 3)
    sdn = normalize_cols(directions)                             # (3, S*OUT)
    # Gather the narrow *input* features of each neighbor (Cin wide) and do
    # the support projection in-kernel -- identical math to projecting then
    # gathering, with far less gather traffic and one fewer HBM round trip.
    nbr = indexing_neighbor(feature_map, idx_t).reshape(bs, n * v, cin)
    w_c = w[:, :out_channel]
    w_s = w[:, out_channel:]
    b_c = bias[:out_channel].reshape(1, out_channel)
    b_s = bias[out_channel:].reshape(1, sout)
    kern = functools.partial(_conv_layer_kernel, V=v, N=n, S=support_num,
                             OUT=out_channel, apply_relu=apply_relu)
    return pl.pallas_call(
        kern,
        out_shape=jax.ShapeDtypeStruct((bs, v, out_channel), jnp.float32),
        grid=(bs,),
        in_specs=[pl.BlockSpec((None, n * v, 3), lambda b: (b, 0, 0)),
                  pl.BlockSpec((3, sout), lambda b: (0, 0)),
                  pl.BlockSpec((None, n * v, cin), lambda b: (b, 0, 0)),
                  pl.BlockSpec((None, v, cin), lambda b: (b, 0, 0)),
                  pl.BlockSpec((cin, out_channel), lambda b: (0, 0)),
                  pl.BlockSpec((cin, sout), lambda b: (0, 0)),
                  pl.BlockSpec((1, out_channel), lambda b: (0, 0)),
                  pl.BlockSpec((1, sout), lambda b: (0, 0))],
        out_specs=pl.BlockSpec((None, v, out_channel), lambda b: (b, 0, 0)),
        compiler_params=_PARALLEL_BATCH,
    )(ndn, sdn, nbr, feature_map, w_c, w_s, b_c, b_s)


def neighbor_max(nbr_flat, v, k):
    """nbr_flat: (bs, K*V, C) neighbor-major -> (bs, V, C) max over K."""
    bs = nbr_flat.shape[0]
    c = nbr_flat.shape[-1]
    return pl.pallas_call(
        functools.partial(_neighbor_max_kernel, V=v, K=k),
        out_shape=jax.ShapeDtypeStruct((bs, v, c), jnp.float32),
        grid=(bs,),
        in_specs=[pl.BlockSpec((None, k * v, c), lambda b: (b, 0, 0))],
        out_specs=pl.BlockSpec((None, v, c), lambda b: (b, 0, 0)),
        compiler_params=_PARALLEL_BATCH,
    )(nbr_flat)


def classifier_head(fm4, w1, b1, gamma, beta, w2, b2):
    bs, vf, c = fm4.shape
    nout = w2.shape[1]
    npad = ((nout + 127) // 128) * 128          # lane-dense final store
    w2p = jnp.pad(w2, ((0, 0), (0, npad - nout)))
    b2p = jnp.pad(b2, ((0, npad - nout),)).reshape(1, npad)
    out = pl.pallas_call(
        functools.partial(_classifier_kernel, VF=vf),
        out_shape=jax.ShapeDtypeStruct((bs, npad), jnp.float32),
        grid=(1,),
        in_specs=[pl.BlockSpec((bs, vf, c), lambda i: (0, 0, 0)),
                  pl.BlockSpec(w1.shape, lambda i: (0, 0)),
                  pl.BlockSpec((1, b1.shape[0]), lambda i: (0, 0)),
                  pl.BlockSpec((1, gamma.shape[0]), lambda i: (0, 0)),
                  pl.BlockSpec((1, beta.shape[0]), lambda i: (0, 0)),
                  pl.BlockSpec(w2p.shape, lambda i: (0, 0)),
                  pl.BlockSpec((1, npad), lambda i: (0, 0))],
        out_specs=pl.BlockSpec((bs, npad), lambda i: (0, 0)),
    )(fm4, w1, b1.reshape(1, -1), gamma.reshape(1, -1), beta.reshape(1, -1),
      w2p, b2p)
    return out[:, :nout]


# ----------------------------------------------------------------------------
# Glue (gathers / normalization / top-k) in plain JAX
# ----------------------------------------------------------------------------

def indexing_neighbor(tensor, index):
    """tensor: (bs, V, C), index: (bs, ...) int -> gathered rows (bs, ..., C)."""
    return jax.vmap(lambda t, i: t[i])(tensor, index)


def get_neighbor_index_t(vertices, neighbor_num):
    """kNN indices, returned neighbor-major: (bs, neighbor_num, V)."""
    dist = pairwise_distance(vertices)                           # Pallas
    # TODO(synk): top-k selection has no clean Pallas TPU equivalent; JAX top_k.
    _, idx = jax.lax.top_k(-dist, neighbor_num + 1)
    idx = idx[:, :, 1:]            # drop self (same caveat as torch reference)
    # Transpose the *tiny* int32 index (not the big feature maps) so all
    # downstream gathers natively produce neighbor-major layouts.
    return jnp.transpose(idx, (0, 2, 1))


def get_neighbor_direction_norm_t(vertices, idx_t):
    """Unit direction vectors, neighbor-major: (bs, N, V, 3)."""
    neighbors = indexing_neighbor(vertices, idx_t)               # (bs, N, V, 3)
    direction = neighbors - vertices[:, None, :, :]
    norm = jnp.sqrt(jnp.sum(direction * direction, axis=-1, keepdims=True))
    return direction / jnp.maximum(norm, 1e-12)                  # F.normalize


def normalize_cols(d):
    norm = jnp.sqrt(jnp.sum(d * d, axis=0, keepdims=True))
    return d / jnp.maximum(norm, 1e-12)


def pool_layer(vertices, feature_map, pooling_rate, neighbor_num, key):
    bs, v, _ = vertices.shape
    c = feature_map.shape[-1]
    idx_t = get_neighbor_index_t(vertices, neighbor_num)         # (bs, K, V)
    nbr = indexing_neighbor(feature_map, idx_t).reshape(bs, neighbor_num * v, c)
    pooled = neighbor_max(nbr, v, neighbor_num)                  # Pallas max
    pool_num = v // pooling_rate
    # TODO(synk): torch.randperm replaced by a deterministic JAX permutation.
    sample_idx = jax.random.permutation(key, v)[:pool_num]
    return vertices[:, sample_idx, :], pooled[:, sample_idx, :]


# ----------------------------------------------------------------------------
# Full GCN3D forward
# ----------------------------------------------------------------------------

def gcn3d_forward(params, vertices, support_num, neighbor_num):
    idx_t = get_neighbor_index_t(vertices, neighbor_num)
    fm0 = conv_surface(idx_t, vertices, params["conv0_dir"], 32, support_num)
    fm1 = conv_layer(idx_t, vertices, fm0, params["conv1"], 64, support_num,
                     apply_relu=True)
    vertices, fm1 = pool_layer(vertices, fm1, 4, 4, jax.random.PRNGKey(100))
    idx_t = get_neighbor_index_t(vertices, neighbor_num)
    fm2 = conv_layer(idx_t, vertices, fm1, params["conv2"], 128, support_num,
                     apply_relu=True)
    fm3 = conv_layer(idx_t, vertices, fm2, params["conv3"], 256, support_num,
                     apply_relu=True)
    vertices, fm3 = pool_layer(vertices, fm3, 4, 4, jax.random.PRNGKey(101))
    idx_t = get_neighbor_index_t(vertices, neighbor_num)
    fm4 = conv_layer(idx_t, vertices, fm3, params["conv4"], 1024, support_num,
                     apply_relu=False)
    return classifier_head(fm4, params["cls_w1"], params["cls_b1"],
                           params["bn_g"], params["bn_b"],
                           params["cls_w2"], params["cls_b2"])


def init_params(key, support_num):
    keys = jax.random.split(key, 20)

    def u(k, shape, stdv):
        return jax.random.uniform(k, shape, jnp.float32, -stdv, stdv)

    params = {}
    # Conv_surface(kernel_num=32): directions (3, support*32)
    s0 = 1.0 / math.sqrt(support_num * 32)
    params["conv0_dir"] = u(keys[0], (3, support_num * 32), s0)

    def conv_layer_params(kw, kb, kd, cin, cout):
        stdv = 1.0 / math.sqrt(cout * (support_num + 1))
        return (u(kw, (cin, (support_num + 1) * cout), stdv),
                u(kb, ((support_num + 1) * cout,), stdv),
                u(kd, (3, support_num * cout), stdv))

    params["conv1"] = conv_layer_params(keys[1], keys[2], keys[3], 32, 64)
    params["conv2"] = conv_layer_params(keys[4], keys[5], keys[6], 64, 128)
    params["conv3"] = conv_layer_params(keys[7], keys[8], keys[9], 128, 256)
    params["conv4"] = conv_layer_params(keys[10], keys[11], keys[12], 256, 1024)

    b1 = 1.0 / math.sqrt(1024)
    params["cls_w1"] = u(keys[13], (1024, 256), b1)
    params["cls_b1"] = u(keys[14], (256,), b1)
    params["bn_g"] = jnp.ones((256,), jnp.float32)
    params["bn_b"] = jnp.zeros((256,), jnp.float32)
    b2 = 1.0 / math.sqrt(256)
    params["cls_w2"] = u(keys[15], (256, 40), b2)
    params["cls_b2"] = u(keys[16], (40,), b2)
    return params


if __name__ == "__main__":
    support_num = 2
    neighbor_num = 3          # kNN graph size
    bs, vnum = 2, 64          # 64 vertices -> pool to 16 -> pool to 4

    key = jax.random.PRNGKey(0)
    pkey, vkey = jax.random.split(key)
    params = init_params(pkey, support_num)
    vertices = jax.random.normal(vkey, (bs, vnum, 3), jnp.float32)

    fwd = jax.jit(functools.partial(gcn3d_forward, support_num=support_num,
                                    neighbor_num=neighbor_num))
    pred = jax.block_until_ready(fwd(params, vertices))
    assert pred.shape == (bs, 40) and pred.dtype == jnp.float32
    print("KERNEL_OK")
</pallas_src>

<mosaic_0001>
module attributes {stable_mosaic.version = 11 : i64} {
  func.func @_dist_kernel(%arg0: i32, %arg1: memref<1x16x3xf32, #tpu.memory_space<vmem>>, %arg2: memref<1x16x16xf32, #tpu.memory_space<vmem>>) attributes {dimension_semantics = [#tpu.dimension_semantics<parallel>], iteration_bounds = array<i64: 2>, scalar_prefetch = 0 : i64, scratch_operands = 0 : i64, tpu.core_type = #tpu.core_type<tc>, window_params = [{transform_indices = @transform_0, window_bounds = array<i64: 1, 16, 3>}, {transform_indices = @transform_1, window_bounds = array<i64: 1, 16, 16>}]} {
    %c0 = arith.constant 0 : index
    %c0_0 = arith.constant 0 : index
    %c0_1 = arith.constant 0 : index
    %0 = vector.load %arg1[%c0, %c0_0, %c0_1] : memref<1x16x3xf32, #tpu.memory_space<vmem>>, vector<1x16x3xf32>
    %1 = vector.shape_cast %0 : vector<1x16x3xf32> to vector<16x3xf32>
    %2 = arith.mulf %1, %1 : vector<16x3xf32>
    %cst = arith.constant dense<0.000000e+00> : vector<16x16xf32>
    %3 = tpu.matmul %1, %1, %cst {dimension_numbers = #tpu.dot_dimension_numbers<[1], [1], [0], [0], [0, 0, 1, 0], [], []>} : vector<16x3xf32>, vector<16x3xf32>, vector<16x16xf32> -> vector<16x16xf32>
    %cst_2 = arith.constant dense<0.000000e+00> : vector<16xf32>
    %4 = vector.multi_reduction <add>, %2, %cst_2 [1] : vector<16x3xf32> to vector<16xf32>
    %5 = vector.shape_cast %4 : vector<16xf32> to vector<16x1xf32>
    %cst_3 = arith.constant 1.000000e+00 : f32
    %6 = vector.broadcast %cst_3 : f32 to vector<1x3xf32>
    %cst_4 = arith.constant dense<0.000000e+00> : vector<1x16xf32>
    %7 = tpu.matmul %6, %2, %cst_4 {dimension_numbers = #tpu.dot_dimension_numbers<[1], [1], [0], [0], [0, 0, 1, 0], [], []>} : vector<1x3xf32>, vector<16x3xf32>, vector<1x16xf32> -> vector<1x16xf32>
    %cst_5 = arith.constant -2.000000e+00 : f32
    %8 = vector.broadcast %cst_5 : f32 to vector<16x16xf32>
    %9 = arith.mulf %8, %3 : vector<16x16xf32>
    %10 = vector.broadcast %5 : vector<16x1xf32> to vector<16x16xf32>
    %11 = arith.addf %9, %10 : vector<16x16xf32>
    %12 = vector.broadcast %7 : vector<1x16xf32> to vector<16x16xf32>
    %13 = arith.addf %11, %12 : vector<16x16xf32>
    %c0_6 = arith.constant 0 : index
    %c0_7 = arith.constant 0 : index
    %c0_8 = arith.constant 0 : index
    %14 = vector.load %arg2[%c0_6, %c0_7, %c0_8] : memref<1x16x16xf32, #tpu.memory_space<vmem>>, vector<1x16x16xf32>
    %15 = vector.shape_cast %14 : vector<1x16x16xf32> to vector<16x16xf32>
    %16 = vector.shape_cast %13 : vector<16x16xf32> to vector<1x16x16xf32>
    tpu.vector_store %arg2[%c0_6, %c0_7, %c0_8], %16 {strides = array<i32>} : memref<1x16x16xf32, #tpu.memory_space<vmem>>, vector<1x16x16xf32>,
    return
  }
  func.func @transform_0(%arg0: i32) -> (i32, i32, i32) {
    %c0_i32 = arith.constant 0 : i32
    %c0_i32_0 = arith.constant 0 : i32
    %c0_i32_1 = arith.constant 0 : i32
    return %arg0, %c0_i32, %c0_i32_0 : i32, i32, i32
  }
  func.func @transform_1(%arg0: i32) -> (i32, i32, i32) {
    %c0_i32 = arith.constant 0 : i32
    %c0_i32_0 = arith.constant 0 : i32
    %c0_i32_1 = arith.constant 0 : i32
    return %arg0, %c0_i32, %c0_i32_0 : i32, i32, i32
  }
}

module attributes {stable_mosaic.version = 11 : i64} {
  func.func @_dist_kernel(%arg0: i32, %arg1: memref<1x64x3xf32, #tpu.memory_space<vmem>>, %arg2: memref<1x64x64xf32, #tpu.memory_space<vmem>>) attributes {dimension_semantics = [#tpu.dimension_semantics<parallel>], iteration_bounds = array<i64: 2>, scalar_prefetch = 0 : i64, scratch_operands = 0 : i64, tpu.core_type = #tpu.core_type<tc>, window_params = [{transform_indices = @transform_0, window_bounds = array<i64: 1, 64, 3>}, {transform_indices = @transform_1, window_bounds = array<i64: 1, 64, 64>}]} {
    %c0 = arith.constant 0 : index
    %c0_0 = arith.constant 0 : index
    %c0_1 = arith.constant 0 : index
    %0 = vector.load %arg1[%c0, %c0_0, %c0_1] : memref<1x64x3xf32, #tpu.memory_space<vmem>>, vector<1x64x3xf32>
    %1 = vector.shape_cast %0 : vector<1x64x3xf32> to vector<64x3xf32>
    %2 = arith.mulf %1, %1 : vector<64x3xf32>
    %cst = arith.constant dense<0.000000e+00> : vector<64x64xf32>
    %3 = tpu.matmul %1, %1, %cst {dimension_numbers = #tpu.dot_dimension_numbers<[1], [1], [0], [0], [0, 0, 1, 0], [], []>} : vector<64x3xf32>, vector<64x3xf32>, vector<64x64xf32> -> vector<64x64xf32>
    %cst_2 = arith.constant dense<0.000000e+00> : vector<64xf32>
    %4 = vector.multi_reduction <add>, %2, %cst_2 [1] : vector<64x3xf32> to vector<64xf32>
    %5 = vector.shape_cast %4 : vector<64xf32> to vector<64x1xf32>
    %cst_3 = arith.constant 1.000000e+00 : f32
    %6 = vector.broadcast %cst_3 : f32 to vector<1x3xf32>
    %cst_4 = arith.constant dense<0.000000e+00> : vector<1x64xf32>
    %7 = tpu.matmul %6, %2, %cst_4 {dimension_numbers = #tpu.dot_dimension_numbers<[1], [1], [0], [0], [0, 0, 1, 0], [], []>} : vector<1x3xf32>, vector<64x3xf32>, vector<1x64xf32> -> vector<1x64xf32>
    %cst_5 = arith.constant -2.000000e+00 : f32
    %8 = vector.broadcast %cst_5 : f32 to vector<64x64xf32>
    %9 = arith.mulf %8, %3 : vector<64x64xf32>
    %10 = vector.broadcast %5 : vector<64x1xf32> to vector<64x64xf32>
    %11 = arith.addf %9, %10 : vector<64x64xf32>
    %12 = vector.broadcast %7 : vector<1x64xf32> to vector<64x64xf32>
    %13 = arith.addf %11, %12 : vector<64x64xf32>
    %c0_6 = arith.constant 0 : index
    %c0_7 = arith.constant 0 : index
    %c0_8 = arith.constant 0 : index
    %14 = vector.load %arg2[%c0_6, %c0_7, %c0_8] : memref<1x64x64xf32, #tpu.memory_space<vmem>>, vector<1x64x64xf32>
    %15 = vector.shape_cast %14 : vector<1x64x64xf32> to vector<64x64xf32>
    %16 = vector.shape_cast %13 : vector<64x64xf32> to vector<1x64x64xf32>
    tpu.vector_store %arg2[%c0_6, %c0_7, %c0_8], %16 {strides = array<i32>} : memref<1x64x64xf32, #tpu.memory_space<vmem>>, vector<1x64x64xf32>,
    return
  }
  func.func @transform_0(%arg0: i32) -> (i32, i32, i32) {
    %c0_i32 = arith.constant 0 : i32
    %c0_i32_0 = arith.constant 0 : i32
    %c0_i32_1 = arith.constant 0 : i32
    return %arg0, %c0_i32, %c0_i32_0 : i32, i32, i32
  }
  func.func @transform_1(%arg0: i32) -> (i32, i32, i32) {
    %c0_i32 = arith.constant 0 : i32
    %c0_i32_0 = arith.constant 0 : i32
    %c0_i32_1 = arith.constant 0 : i32
    return %arg0, %c0_i32, %c0_i32_0 : i32, i32, i32
  }
}

module attributes {stable_mosaic.version = 11 : i64} {
  func.func @_conv_surface_kernel(%arg0: i32, %arg1: memref<1x192x3xf32, #tpu.memory_space<vmem>>, %arg2: memref<3x64xf32, #tpu.memory_space<vmem>>, %arg3: memref<1x64x32xf32, #tpu.memory_space<vmem>>) attributes {dimension_semantics = [#tpu.dimension_semantics<parallel>], iteration_bounds = array<i64: 2>, scalar_prefetch = 0 : i64, scratch_operands = 0 : i64, tpu.core_type = #tpu.core_type<tc>, window_params = [{transform_indices = @transform_0, window_bounds = array<i64: 1, 192, 3>}, {pipeline_mode = #tpu.pipeline_mode<synchronous>, transform_indices = @transform_1, window_bounds = array<i64: 3, 64>}, {transform_indices = @transform_2, window_bounds = array<i64: 1, 64, 32>}]} {
    %c0 = arith.constant 0 : index
    %c0_0 = arith.constant 0 : index
    %c0_1 = arith.constant 0 : index
    %0 = vector.load %arg1[%c0, %c0_0, %c0_1] : memref<1x192x3xf32, #tpu.memory_space<vmem>>, vector<1x192x3xf32>
    %1 = vector.shape_cast %0 : vector<1x192x3xf32> to vector<192x3xf32>
    %c0_2 = arith.constant 0 : index
    %c0_3 = arith.constant 0 : index
    %2 = vector.load %arg2[%c0_2, %c0_3] : memref<3x64xf32, #tpu.memory_space<vmem>>, vector<3x64xf32>
    %3 = vector.extract_strided_slice %1 {offsets = [0, 0], sizes = [192, 1], strides = [1, 1]} : vector<192x3xf32> to vector<192x1xf32>
    %4 = vector.extract_strided_slice %2 {offsets = [0, 0], sizes = [1, 64], strides = [1, 1]} : vector<3x64xf32> to vector<1x64xf32>
    %5 = vector.broadcast %3 : vector<192x1xf32> to vector<192x64xf32>
    %6 = vector.broadcast %4 : vector<1x64xf32> to vector<192x64xf32>
    %7 = arith.mulf %5, %6 : vector<192x64xf32>
    %8 = vector.extract_strided_slice %1 {offsets = [0, 1], sizes = [192, 1], strides = [1, 1]} : vector<192x3xf32> to vector<192x1xf32>
    %9 = vector.extract_strided_slice %2 {offsets = [1, 0], sizes = [1, 64], strides = [1, 1]} : vector<3x64xf32> to vector<1x64xf32>
    %10 = vector.broadcast %8 : vector<192x1xf32> to vector<192x64xf32>
    %11 = vector.broadcast %9 : vector<1x64xf32> to vector<192x64xf32>
    %12 = arith.mulf %10, %11 : vector<192x64xf32>
    %13 = arith.addf %7, %12 : vector<192x64xf32>
    %14 = vector.extract_strided_slice %1 {offsets = [0, 2], sizes = [192, 1], strides = [1, 1]} : vector<192x3xf32> to vector<192x1xf32>
    %15 = vector.extract_strided_slice %2 {offsets = [2, 0], sizes = [1, 64], strides = [1, 1]} : vector<3x64xf32> to vector<1x64xf32>
    %16 = vector.broadcast %14 : vector<192x1xf32> to vector<192x64xf32>
    %17 = vector.broadcast %15 : vector<1x64xf32> to vector<192x64xf32>
    %18 = arith.mulf %16, %17 : vector<192x64xf32>
    %19 = arith.addf %13, %18 : vector<192x64xf32>
    %cst = arith.constant 0.000000e+00 : f32
    %20 = vector.broadcast %cst : f32 to vector<192x64xf32>
    %21 = arith.maximumf %19, %20 : vector<192x64xf32>
    %22 = vector.extract_strided_slice %21 {offsets = [0, 0], sizes = [64, 64], strides = [1, 1]} : vector<192x64xf32> to vector<64x64xf32>
    %23 = vector.extract_strided_slice %21 {offsets = [64, 0], sizes = [64, 64], strides = [1, 1]} : vector<192x64xf32> to vector<64x64xf32>
    %24 = arith.maximumf %22, %23 : vector<64x64xf32>
    %25 = vector.extract_strided_slice %21 {offsets = [128, 0], sizes = [64, 64], strides = [1, 1]} : vector<192x64xf32> to vector<64x64xf32>
    %26 = arith.maximumf %24, %25 : vector<64x64xf32>
    %27 = vector.extract_strided_slice %26 {offsets = [0, 0], sizes = [64, 32], strides = [1, 1]} : vector<64x64xf32> to vector<64x32xf32>
    %28 = vector.extract_strided_slice %26 {offsets = [0, 32], sizes = [64, 32], strides = [1, 1]} : vector<64x64xf32> to vector<64x32xf32>
    %29 = arith.addf %27, %28 : vector<64x32xf32>
    %cst_4 = arith.constant 0.000000e+00 : f32
    %30 = vector.broadcast %cst_4 : f32 to vector<64x32xf32>
    %31 = arith.maximumf %29, %30 : vector<64x32xf32>
    %c0_5 = arith.constant 0 : index
    %c0_6 = arith.constant 0 : index
    %c0_7 = arith.constant 0 : index
    %32 = vector.load %arg3[%c0_5, %c0_6, %c0_7] : memref<1x64x32xf32, #tpu.memory_space<vmem>>, vector<1x64x32xf32>
    %33 = vector.shape_cast %32 : vector<1x64x32xf32> to vector<64x32xf32>
    %34 = vector.shape_cast %31 : vector<64x32xf32> to vector<1x64x32xf32>
    tpu.vector_store %arg3[%c0_5, %c0_6, %c0_7], %34 {strides = array<i32>} : memref<1x64x32xf32, #tpu.memory_space<vmem>>, vector<1x64x32xf32>,
    return
  }
  func.func @transform_0(%arg0: i32) -> (i32, i32, i32) {
    %c0_i32 = arith.constant 0 : i32
    %c0_i32_0 = arith.constant 0 : i32
    %c0_i32_1 = arith.constant 0 : i32
    return %arg0, %c0_i32, %c0_i32_0 : i32, i32, i32
  }
  func.func @transform_1(%arg0: i32) -> (i32, i32) {
    %c0_i32 = arith.constant 0 : i32
    %c0_i32_0 = arith.constant 0 : i32
    %c0_i32_1 = arith.constant 0 : i32
    return %c0_i32, %c0_i32_0 : i32, i32
  }
  func.func @transform_2(%arg0: i32) -> (i32, i32, i32) {
    %c0_i32 = arith.constant 0 : i32
    %c0_i32_0 = arith.constant 0 : i32
    %c0_i32_1 = arith.constant 0 : i32
    return %arg0, %c0_i32, %c0_i32_0 : i32, i32, i32
  }
}

module attributes {stable_mosaic.version = 11 : i64} {
  func.func @_conv_layer_kernel(%arg0: i32, %arg1: memref<1x192x3xf32, #tpu.memory_space<vmem>>, %arg2: memref<3x128xf32, #tpu.memory_space<vmem>>, %arg3: memref<1x192x32xf32, #tpu.memory_space<vmem>>, %arg4: memref<1x64x32xf32, #tpu.memory_space<vmem>>, %arg5: memref<32x64xf32, #tpu.memory_space<vmem>>, %arg6: memref<32x128xf32, #tpu.memory_space<vmem>>, %arg7: memref<1x64xf32, #tpu.memory_space<vmem>>, %arg8: memref<1x128xf32, #tpu.memory_space<vmem>>, %arg9: memref<1x64x64xf32, #tpu.memory_space<vmem>>) attributes {dimension_semantics = [#tpu.dimension_semantics<parallel>], iteration_bounds = array<i64: 2>, scalar_prefetch = 0 : i64, scratch_operands = 0 : i64, tpu.core_type = #tpu.core_type<tc>, window_params = [{transform_indices = @transform_0, window_bounds = array<i64: 1, 192, 3>}, {pipeline_mode = #tpu.pipeline_mode<synchronous>, transform_indices = @transform_1, window_bounds = array<i64: 3, 128>}, {transform_indices = @transform_2, window_bounds = array<i64: 1, 192, 32>}, {transform_indices = @transform_3, window_bounds = array<i64: 1, 64, 32>}, {pipeline_mode = #tpu.pipeline_mode<synchronous>, transform_indices = @transform_4, window_bounds = array<i64: 32, 64>}, {pipeline_mode = #tpu.pipeline_mode<synchronous>, transform_indices = @transform_5, window_bounds = array<i64: 32, 128>}, {pipeline_mode = #tpu.pipeline_mode<synchronous>, transform_indices = @transform_6, window_bounds = array<i64: 1, 64>}, {pipeline_mode = #tpu.pipeline_mode<synchronous>, transform_indices = @transform_7, window_bounds = array<i64: 1, 128>}, {transform_indices = @transform_8, window_bounds = array<i64: 1, 64, 64>}]} {
    %c0 = arith.constant 0 : index
    %c0_0 = arith.constant 0 : index
    %c0_1 = arith.constant 0 : index
    %0 = vector.load %arg1[%c0, %c0_0, %c0_1] : memref<1x192x3xf32, #tpu.memory_space<vmem>>, vector<1x192x3xf32>
    %1 = vector.shape_cast %0 : vector<1x192x3xf32> to vector<192x3xf32>
    %c0_2 = arith.constant 0 : index
    %c0_3 = arith.constant 0 : index
    %2 = vector.load %arg2[%c0_2, %c0_3] : memref<3x128xf32, #tpu.memory_space<vmem>>, vector<3x128xf32>
    %3 = vector.extract_strided_slice %1 {offsets = [0, 0], sizes = [192, 1], strides = [1, 1]} : vector<192x3xf32> to vector<192x1xf32>
    %4 = vector.extract_strided_slice %2 {offsets = [0, 0], sizes = [1, 128], strides = [1, 1]} : vector<3x128xf32> to vector<1x128xf32>
    %5 = vector.broadcast %3 : vector<192x1xf32> to vector<192x128xf32>
    %6 = vector.broadcast %4 : vector<1x128xf32> to vector<192x128xf32>
    %7 = arith.mulf %5, %6 : vector<192x128xf32>
    %8 = vector.extract_strided_slice %1 {offsets = [0, 1], sizes = [192, 1], strides = [1, 1]} : vector<192x3xf32> to vector<192x1xf32>
    %9 = vector.extract_strided_slice %2 {offsets = [1, 0], sizes = [1, 128], strides = [1, 1]} : vector<3x128xf32> to vector<1x128xf32>
    %10 = vector.broadcast %8 : vector<192x1xf32> to vector<192x128xf32>
    %11 = vector.broadcast %9 : vector<1x128xf32> to vector<192x128xf32>
    %12 = arith.mulf %10, %11 : vector<192x128xf32>
    %13 = arith.addf %7, %12 : vector<192x128xf32>
    %14 = vector.extract_strided_slice %1 {offsets = [0, 2], sizes = [192, 1], strides = [1, 1]} : vector<192x3xf32> to vector<192x1xf32>
    %15 = vector.extract_strided_slice %2 {offsets = [2, 0], sizes = [1, 128], strides = [1, 1]} : vector<3x128xf32> to vector<1x128xf32>
    %16 = vector.broadcast %14 : vector<192x1xf32> to vector<192x128xf32>
    %17 = vector.broadcast %15 : vector<1x128xf32> to vector<192x128xf32>
    %18 = arith.mulf %16, %17 : vector<192x128xf32>
    %19 = arith.addf %13, %18 : vector<192x128xf32>
    %cst = arith.constant 0.000000e+00 : f32
    %20 = vector.broadcast %cst : f32 to vector<192x128xf32>
    %21 = arith.maximumf %19, %20 : vector<192x128xf32>
    %c0_4 = arith.constant 0 : index
    %c0_5 = arith.constant 0 : index
    %c0_6 = arith.constant 0 : index
    %22 = vector.load %arg3[%c0_4, %c0_5, %c0_6] : memref<1x192x32xf32, #tpu.memory_space<vmem>>, vector<1x192x32xf32>
    %23 = vector.shape_cast %22 : vector<1x192x32xf32> to vector<192x32xf32>
    %c0_7 = arith.constant 0 : index
    %c0_8 = arith.constant 0 : index
    %24 = vector.load %arg6[%c0_7, %c0_8] : memref<32x128xf32, #tpu.memory_space<vmem>>, vector<32x128xf32>
    %cst_9 = arith.constant dense<0.000000e+00> : vector<192x128xf32>
    %25 = tpu.matmul %23, %24, %cst_9 {dimension_numbers = #tpu.dot_dimension_numbers<[1], [0], [0], [1], [0, 0, 1, 1], [], []>} : vector<192x32xf32>, vector<32x128xf32>, vector<192x128xf32> -> vector<192x128xf32>
    %c0_10 = arith.constant 0 : index
    %c0_11 = arith.constant 0 : index
    %26 = vector.load %arg8[%c0_10, %c0_11] : memref<1x128xf32, #tpu.memory_space<vmem>>, vector<1x128xf32>
    %27 = vector.broadcast %26 : vector<1x128xf32> to vector<192x128xf32>
    %28 = arith.addf %25, %27 : vector<192x128xf32>
    %29 = arith.mulf %21, %28 : vector<192x128xf32>
    %30 = vector.extract_strided_slice %29 {offsets = [0, 0], sizes = [64, 128], strides = [1, 1]} : vector<192x128xf32> to vector<64x128xf32>
    %31 = vector.extract_strided_slice %29 {offsets = [64, 0], sizes = [64, 128], strides = [1, 1]} : vector<192x128xf32> to vector<64x128xf32>
    %32 = arith.maximumf %30, %31 : vector<64x128xf32>
    %33 = vector.extract_strided_slice %29 {offsets = [128, 0], sizes = [64, 128], strides = [1, 1]} : vector<192x128xf32> to vector<64x128xf32>
    %34 = arith.maximumf %32, %33 : vector<64x128xf32>
    %35 = vector.extract_strided_slice %34 {offsets = [0, 0], sizes = [64, 64], strides = [1, 1]} : vector<64x128xf32> to vector<64x64xf32>
    %36 = vector.extract_strided_slice %34 {offsets = [0, 64], sizes = [64, 64], strides = [1, 1]} : vector<64x128xf32> to vector<64x64xf32>
    %37 = arith.addf %35, %36 : vector<64x64xf32>
    %c0_12 = arith.constant 0 : index
    %c0_13 = arith.constant 0 : index
    %c0_14 = arith.constant 0 : index
    %38 = vector.load %arg4[%c0_12, %c0_13, %c0_14] : memref<1x64x32xf32, #tpu.memory_space<vmem>>, vector<1x64x32xf32>
    %39 = vector.shape_cast %38 : vector<1x64x32xf32> to vector<64x32xf32>
    %c0_15 = arith.constant 0 : index
    %c0_16 = arith.constant 0 : index
    %40 = vector.load %arg5[%c0_15, %c0_16] : memref<32x64xf32, #tpu.memory_space<vmem>>, vector<32x64xf32>
    %cst_17 = arith.constant dense<0.000000e+00> : vector<64x64xf32>
    %41 = tpu.matmul %39, %40, %cst_17 {dimension_numbers = #tpu.dot_dimension_numbers<[1], [0], [0], [1], [0, 0, 1, 1], [], []>} : vector<64x32xf32>, vector<32x64xf32>, vector<64x64xf32> -> vector<64x64xf32>
    %c0_18 = arith.constant 0 : index
    %c0_19 = arith.constant 0 : index
    %42 = vector.load %arg7[%c0_18, %c0_19] : memref<1x64xf32, #tpu.memory_space<vmem>>, vector<1x64xf32>
    %43 = vector.broadcast %42 : vector<1x64xf32> to vector<64x64xf32>
    %44 = arith.addf %41, %43 : vector<64x64xf32>
    %45 = arith.addf %37, %44 : vector<64x64xf32>
    %cst_20 = arith.constant 0.000000e+00 : f32
    %46 = vector.broadcast %cst_20 : f32 to vector<64x64xf32>
    %47 = arith.maximumf %45, %46 : vector<64x64xf32>
    %c0_21 = arith.constant 0 : index
    %c0_22 = arith.constant 0 : index
    %c0_23 = arith.constant 0 : index
    %48 = vector.load %arg9[%c0_21, %c0_22, %c0_23] : memref<1x64x64xf32, #tpu.memory_space<vmem>>, vector<1x64x64xf32>
    %49 = vector.shape_cast %48 : vector<1x64x64xf32> to vector<64x64xf32>
    %50 = vector.shape_cast %47 : vector<64x64xf32> to vector<1x64x64xf32>
    tpu.vector_store %arg9[%c0_21, %c0_22, %c0_23], %50 {strides = array<i32>} : memref<1x64x64xf32, #tpu.memory_space<vmem>>, vector<1x64x64xf32>,
    return
  }
  func.func @transform_0(%arg0: i32) -> (i32, i32, i32) {
    %c0_i32 = arith.constant 0 : i32
    %c0_i32_0 = arith.constant 0 : i32
    %c0_i32_1 = arith.constant 0 : i32
    return %arg0, %c0_i32, %c0_i32_0 : i32, i32, i32
  }
  func.func @transform_1(%arg0: i32) -> (i32, i32) {
    %c0_i32 = arith.constant 0 : i32
    %c0_i32_0 = arith.constant 0 : i32
    %c0_i32_1 = arith.constant 0 : i32
    return %c0_i32, %c0_i32_0 : i32, i32
  }
  func.func @transform_2(%arg0: i32) -> (i32, i32, i32) {
    %c0_i32 = arith.constant 0 : i32
    %c0_i32_0 = arith.constant 0 : i32
    %c0_i32_1 = arith.constant 0 : i32
    return %arg0, %c0_i32, %c0_i32_0 : i32, i32, i32
  }
  func.func @transform_3(%arg0: i32) -> (i32, i32, i32) {
    %c0_i32 = arith.constant 0 : i32
    %c0_i32_0 = arith.constant 0 : i32
    %c0_i32_1 = arith.constant 0 : i32
    return %arg0, %c0_i32, %c0_i32_0 : i32, i32, i32
  }
  func.func @transform_4(%arg0: i32) -> (i32, i32) {
    %c0_i32 = arith.constant 0 : i32
    %c0_i32_0 = arith.constant 0 : i32
    %c0_i32_1 = arith.constant 0 : i32
    return %c0_i32, %c0_i32_0 : i32, i32
  }
  func.func @transform_5(%arg0: i32) -> (i32, i32) {
    %c0_i32 = arith.constant 0 : i32
    %c0_i32_0 = arith.constant 0 : i32
    %c0_i32_1 = arith.constant 0 : i32
    return %c0_i32, %c0_i32_0 : i32, i32
  }
  func.func @transform_6(%arg0: i32) -> (i32, i32) {
    %c0_i32 = arith.constant 0 : i32
    %c0_i32_0 = arith.constant 0 : i32
    %c0_i32_1 = arith.constant 0 : i32
    return %c0_i32, %c0_i32_0 : i32, i32
  }
  func.func @transform_7(%arg0: i32) -> (i32, i32) {
    %c0_i32 = arith.constant 0 : i32
    %c0_i32_0 = arith.constant 0 : i32
    %c0_i32_1 = arith.constant 0 : i32
    return %c0_i32, %c0_i32_0 : i32, i32
  }
  func.func @transform_8(%arg0: i32) -> (i32, i32, i32) {
    %c0_i32 = arith.constant 0 : i32
    %c0_i32_0 = arith.constant 0 : i32
    %c0_i32_1 = arith.constant 0 : i32
    return %arg0, %c0_i32, %c0_i32_0 : i32, i32, i32
  }
}

module attributes {stable_mosaic.version = 11 : i64} {
  func.func @_neighbor_max_kernel(%arg0: i32, %arg1: memref<1x256x64xf32, #tpu.memory_space<vmem>>, %arg2: memref<1x64x64xf32, #tpu.memory_space<vmem>>) attributes {dimension_semantics = [#tpu.dimension_semantics<parallel>], iteration_bounds = array<i64: 2>, scalar_prefetch = 0 : i64, scratch_operands = 0 : i64, tpu.core_type = #tpu.core_type<tc>, window_params = [{transform_indices = @transform_0, window_bounds = array<i64: 1, 256, 64>}, {transform_indices = @transform_1, window_bounds = array<i64: 1, 64, 64>}]} {
    %c0 = arith.constant 0 : index
    %c0_0 = arith.constant 0 : index
    %c0_1 = arith.constant 0 : index
    %0 = vector.load %arg1[%c0, %c0_0, %c0_1] : memref<1x256x64xf32, #tpu.memory_space<vmem>>, vector<1x64x64xf32>
    %1 = vector.shape_cast %0 : vector<1x64x64xf32> to vector<64x64xf32>
    %c0_2 = arith.constant 0 : index
    %c64 = arith.constant 64 : index
    %c0_3 = arith.constant 0 : index
    %2 = vector.load %arg1[%c0_2, %c64, %c0_3] : memref<1x256x64xf32, #tpu.memory_space<vmem>>, vector<1x64x64xf32>
    %3 = vector.shape_cast %2 : vector<1x64x64xf32> to vector<64x64xf32>
    %4 = arith.maximumf %1, %3 : vector<64x64xf32>
    %c0_4 = arith.constant 0 : index
    %c128 = arith.constant 128 : index
    %c0_5 = arith.constant 0 : index
    %5 = vector.load %arg1[%c0_4, %c128, %c0_5] : memref<1x256x64xf32, #tpu.memory_space<vmem>>, vector<1x64x64xf32>
    %6 = vector.shape_cast %5 : vector<1x64x64xf32> to vector<64x64xf32>
    %7 = arith.maximumf %4, %6 : vector<64x64xf32>
    %c0_6 = arith.constant 0 : index
    %c192 = arith.constant 192 : index
    %c0_7 = arith.constant 0 : index
    %8 = vector.load %arg1[%c0_6, %c192, %c0_7] : memref<1x256x64xf32, #tpu.memory_space<vmem>>, vector<1x64x64xf32>
    %9 = vector.shape_cast %8 : vector<1x64x64xf32> to vector<64x64xf32>
    %10 = arith.maximumf %7, %9 : vector<64x64xf32>
    %c0_8 = arith.constant 0 : index
    %c0_9 = arith.constant 0 : index
    %c0_10 = arith.constant 0 : index
    %11 = vector.load %arg2[%c0_8, %c0_9, %c0_10] : memref<1x64x64xf32, #tpu.memory_space<vmem>>, vector<1x64x64xf32>
    %12 = vector.shape_cast %11 : vector<1x64x64xf32> to vector<64x64xf32>
    %13 = vector.shape_cast %10 : vector<64x64xf32> to vector<1x64x64xf32>
    tpu.vector_store %arg2[%c0_8, %c0_9, %c0_10], %13 {strides = array<i32>} : memref<1x64x64xf32, #tpu.memory_space<vmem>>, vector<1x64x64xf32>,
    return
  }
  func.func @transform_0(%arg0: i32) -> (i32, i32, i32) {
    %c0_i32 = arith.constant 0 : i32
    %c0_i32_0 = arith.constant 0 : i32
    %c0_i32_1 = arith.constant 0 : i32
    return %arg0, %c0_i32, %c0_i32_0 : i32, i32, i32
  }
  func.func @transform_1(%arg0: i32) -> (i32, i32, i32) {
    %c0_i32 = arith.constant 0 : i32
    %c0_i32_0 = arith.constant 0 : i32
    %c0_i32_1 = arith.constant 0 : i32
    return %arg0, %c0_i32, %c0_i32_0 : i32, i32, i32
  }
}

module attributes {stable_mosaic.version = 11 : i64} {
  func.func @_conv_layer_kernel(%arg0: i32, %arg1: memref<1x48x3xf32, #tpu.memory_space<vmem>>, %arg2: memref<3x256xf32, #tpu.memory_space<vmem>>, %arg3: memref<1x48x64xf32, #tpu.memory_space<vmem>>, %arg4: memref<1x16x64xf32, #tpu.memory_space<vmem>>, %arg5: memref<64x128xf32, #tpu.memory_space<vmem>>, %arg6: memref<64x256xf32, #tpu.memory_space<vmem>>, %arg7: memref<1x128xf32, #tpu.memory_space<vmem>>, %arg8: memref<1x256xf32, #tpu.memory_space<vmem>>, %arg9: memref<1x16x128xf32, #tpu.memory_space<vmem>>) attributes {dimension_semantics = [#tpu.dimension_semantics<parallel>], iteration_bounds = array<i64: 2>, scalar_prefetch = 0 : i64, scratch_operands = 0 : i64, tpu.core_type = #tpu.core_type<tc>, window_params = [{transform_indices = @transform_0, window_bounds = array<i64: 1, 48, 3>}, {pipeline_mode = #tpu.pipeline_mode<synchronous>, transform_indices = @transform_1, window_bounds = array<i64: 3, 256>}, {transform_indices = @transform_2, window_bounds = array<i64: 1, 48, 64>}, {transform_indices = @transform_3, window_bounds = array<i64: 1, 16, 64>}, {pipeline_mode = #tpu.pipeline_mode<synchronous>, transform_indices = @transform_4, window_bounds = array<i64: 64, 128>}, {pipeline_mode = #tpu.pipeline_mode<synchronous>, transform_indices = @transform_5, window_bounds = array<i64: 64, 256>}, {pipeline_mode = #tpu.pipeline_mode<synchronous>, transform_indices = @transform_6, window_bounds = array<i64: 1, 128>}, {pipeline_mode = #tpu.pipeline_mode<synchronous>, transform_indices = @transform_7, window_bounds = array<i64: 1, 256>}, {transform_indices = @transform_8, window_bounds = array<i64: 1, 16, 128>}]} {
    %c0 = arith.constant 0 : index
    %c0_0 = arith.constant 0 : index
    %c0_1 = arith.constant 0 : index
    %0 = vector.load %arg1[%c0, %c0_0, %c0_1] : memref<1x48x3xf32, #tpu.memory_space<vmem>>, vector<1x48x3xf32>
    %1 = vector.shape_cast %0 : vector<1x48x3xf32> to vector<48x3xf32>
    %c0_2 = arith.constant 0 : index
    %c0_3 = arith.constant 0 : index
    %2 = vector.load %arg2[%c0_2, %c0_3] : memref<3x256xf32, #tpu.memory_space<vmem>>, vector<3x256xf32>
    %3 = vector.extract_strided_slice %1 {offsets = [0, 0], sizes = [48, 1], strides = [1, 1]} : vector<48x3xf32> to vector<48x1xf32>
    %4 = vector.extract_strided_slice %2 {offsets = [0, 0], sizes = [1, 256], strides = [1, 1]} : vector<3x256xf32> to vector<1x256xf32>
    %5 = vector.broadcast %3 : vector<48x1xf32> to vector<48x256xf32>
    %6 = vector.broadcast %4 : vector<1x256xf32> to vector<48x256xf32>
    %7 = arith.mulf %5, %6 : vector<48x256xf32>
    %8 = vector.extract_strided_slice %1 {offsets = [0, 1], sizes = [48, 1], strides = [1, 1]} : vector<48x3xf32> to vector<48x1xf32>
    %9 = vector.extract_strided_slice %2 {offsets = [1, 0], sizes = [1, 256], strides = [1, 1]} : vector<3x256xf32> to vector<1x256xf32>
    %10 = vector.broadcast %8 : vector<48x1xf32> to vector<48x256xf32>
    %11 = vector.broadcast %9 : vector<1x256xf32> to vector<48x256xf32>
    %12 = arith.mulf %10, %11 : vector<48x256xf32>
    %13 = arith.addf %7, %12 : vector<48x256xf32>
    %14 = vector.extract_strided_slice %1 {offsets = [0, 2], sizes = [48, 1], strides = [1, 1]} : vector<48x3xf32> to vector<48x1xf32>
    %15 = vector.extract_strided_slice %2 {offsets = [2, 0], sizes = [1, 256], strides = [1, 1]} : vector<3x256xf32> to vector<1x256xf32>
    %16 = vector.broadcast %14 : vector<48x1xf32> to vector<48x256xf32>
    %17 = vector.broadcast %15 : vector<1x256xf32> to vector<48x256xf32>
    %18 = arith.mulf %16, %17 : vector<48x256xf32>
    %19 = arith.addf %13, %18 : vector<48x256xf32>
    %cst = arith.constant 0.000000e+00 : f32
    %20 = vector.broadcast %cst : f32 to vector<48x256xf32>
    %21 = arith.maximumf %19, %20 : vector<48x256xf32>
    %c0_4 = arith.constant 0 : index
    %c0_5 = arith.constant 0 : index
    %c0_6 = arith.constant 0 : index
    %22 = vector.load %arg3[%c0_4, %c0_5, %c0_6] : memref<1x48x64xf32, #tpu.memory_space<vmem>>, vector<1x48x64xf32>
    %23 = vector.shape_cast %22 : vector<1x48x64xf32> to vector<48x64xf32>
    %c0_7 = arith.constant 0 : index
    %c0_8 = arith.constant 0 : index
    %24 = vector.load %arg6[%c0_7, %c0_8] : memref<64x256xf32, #tpu.memory_space<vmem>>, vector<64x256xf32>
    %cst_9 = arith.constant dense<0.000000e+00> : vector<48x256xf32>
    %25 = tpu.matmul %23, %24, %cst_9 {dimension_numbers = #tpu.dot_dimension_numbers<[1], [0], [0], [1], [0, 0, 1, 1], [], []>} : vector<48x64xf32>, vector<64x256xf32>, vector<48x256xf32> -> vector<48x256xf32>
    %c0_10 = arith.constant 0 : index
    %c0_11 = arith.constant 0 : index
    %26 = vector.load %arg8[%c0_10, %c0_11] : memref<1x256xf32, #tpu.memory_space<vmem>>, vector<1x256xf32>
    %27 = vector.broadcast %26 : vector<1x256xf32> to vector<48x256xf32>
    %28 = arith.addf %25, %27 : vector<48x256xf32>
    %29 = arith.mulf %21, %28 : vector<48x256xf32>
    %30 = vector.extract_strided_slice %29 {offsets = [0, 0], sizes = [16, 256], strides = [1, 1]} : vector<48x256xf32> to vector<16x256xf32>
    %31 = vector.extract_strided_slice %29 {offsets = [16, 0], sizes = [16, 256], strides = [1, 1]} : vector<48x256xf32> to vector<16x256xf32>
    %32 = arith.maximumf %30, %31 : vector<16x256xf32>
    %33 = vector.extract_strided_slice %29 {offsets = [32, 0], sizes = [16, 256], strides = [1, 1]} : vector<48x256xf32> to vector<16x256xf32>
    %34 = arith.maximumf %32, %33 : vector<16x256xf32>
    %35 = vector.extract_strided_slice %34 {offsets = [0, 0], sizes = [16, 128], strides = [1, 1]} : vector<16x256xf32> to vector<16x128xf32>
    %36 = vector.extract_strided_slice %34 {offsets = [0, 128], sizes = [16, 128], strides = [1, 1]} : vector<16x256xf32> to vector<16x128xf32>
    %37 = arith.addf %35, %36 : vector<16x128xf32>
    %c0_12 = arith.constant 0 : index
    %c0_13 = arith.constant 0 : index
    %c0_14 = arith.constant 0 : index
    %38 = vector.load %arg4[%c0_12, %c0_13, %c0_14] : memref<1x16x64xf32, #tpu.memory_space<vmem>>, vector<1x16x64xf32>
    %39 = vector.shape_cast %38 : vector<1x16x64xf32> to vector<16x64xf32>
    %c0_15 = arith.constant 0 : index
    %c0_16 = arith.constant 0 : index
    %40 = vector.load %arg5[%c0_15, %c0_16] : memref<64x128xf32, #tpu.memory_space<vmem>>, vector<64x128xf32>
    %cst_17 = arith.constant dense<0.000000e+00> : vector<16x128xf32>
    %41 = tpu.matmul %39, %40, %cst_17 {dimension_numbers = #tpu.dot_dimension_numbers<[1], [0], [0], [1], [0, 0, 1, 1], [], []>} : vector<16x64xf32>, vector<64x128xf32>, vector<16x128xf32> -> vector<16x128xf32>
    %c0_18 = arith.constant 0 : index
    %c0_19 = arith.constant 0 : index
    %42 = vector.load %arg7[%c0_18, %c0_19] : memref<1x128xf32, #tpu.memory_space<vmem>>, vector<1x128xf32>
    %43 = vector.broadcast %42 : vector<1x128xf32> to vector<16x128xf32>
    %44 = arith.addf %41, %43 : vector<16x128xf32>
    %45 = arith.addf %37, %44 : vector<16x128xf32>
    %cst_20 = arith.constant 0.000000e+00 : f32
    %46 = vector.broadcast %cst_20 : f32 to vector<16x128xf32>
    %47 = arith.maximumf %45, %46 : vector<16x128xf32>
    %c0_21 = arith.constant 0 : index
    %c0_22 = arith.constant 0 : index
    %c0_23 = arith.constant 0 : index
    %48 = vector.load %arg9[%c0_21, %c0_22, %c0_23] : memref<1x16x128xf32, #tpu.memory_space<vmem>>, vector<1x16x128xf32>
    %49 = vector.shape_cast %48 : vector<1x16x128xf32> to vector<16x128xf32>
    %50 = vector.shape_cast %47 : vector<16x128xf32> to vector<1x16x128xf32>
    tpu.vector_store %arg9[%c0_21, %c0_22, %c0_23], %50 {strides = array<i32>} : memref<1x16x128xf32, #tpu.memory_space<vmem>>, vector<1x16x128xf32>,
    return
  }
  func.func @transform_0(%arg0: i32) -> (i32, i32, i32) {
    %c0_i32 = arith.constant 0 : i32
    %c0_i32_0 = arith.constant 0 : i32
    %c0_i32_1 = arith.constant 0 : i32
    return %arg0, %c0_i32, %c0_i32_0 : i32, i32, i32
  }
  func.func @transform_1(%arg0: i32) -> (i32, i32) {
    %c0_i32 = arith.constant 0 : i32
    %c0_i32_0 = arith.constant 0 : i32
    %c0_i32_1 = arith.constant 0 : i32
    return %c0_i32, %c0_i32_0 : i32, i32
  }
  func.func @transform_2(%arg0: i32) -> (i32, i32, i32) {
    %c0_i32 = arith.constant 0 : i32
    %c0_i32_0 = arith.constant 0 : i32
    %c0_i32_1 = arith.constant 0 : i32
    return %arg0, %c0_i32, %c0_i32_0 : i32, i32, i32
  }
  func.func @transform_3(%arg0: i32) -> (i32, i32, i32) {
    %c0_i32 = arith.constant 0 : i32
    %c0_i32_0 = arith.constant 0 : i32
    %c0_i32_1 = arith.constant 0 : i32
    return %arg0, %c0_i32, %c0_i32_0 : i32, i32, i32
  }
  func.func @transform_4(%arg0: i32) -> (i32, i32) {
    %c0_i32 = arith.constant 0 : i32
    %c0_i32_0 = arith.constant 0 : i32
    %c0_i32_1 = arith.constant 0 : i32
    return %c0_i32, %c0_i32_0 : i32, i32
  }
  func.func @transform_5(%arg0: i32) -> (i32, i32) {
    %c0_i32 = arith.constant 0 : i32
    %c0_i32_0 = arith.constant 0 : i32
    %c0_i32_1 = arith.constant 0 : i32
    return %c0_i32, %c0_i32_0 : i32, i32
  }
  func.func @transform_6(%arg0: i32) -> (i32, i32) {
    %c0_i32 = arith.constant 0 : i32
    %c0_i32_0 = arith.constant 0 : i32
    %c0_i32_1 = arith.constant 0 : i32
    return %c0_i32, %c0_i32_0 : i32, i32
  }
  func.func @transform_7(%arg0: i32) -> (i32, i32) {
    %c0_i32 = arith.constant 0 : i32
    %c0_i32_0 = arith.constant 0 : i32
    %c0_i32_1 = arith.constant 0 : i32
    return %c0_i32, %c0_i32_0 : i32, i32
  }
  func.func @transform_8(%arg0: i32) -> (i32, i32, i32) {
    %c0_i32 = arith.constant 0 : i32
    %c0_i32_0 = arith.constant 0 : i32
    %c0_i32_1 = arith.constant 0 : i32
    return %arg0, %c0_i32, %c0_i32_0 : i32, i32, i32
  }
}

module attributes {stable_mosaic.version = 11 : i64} {
  func.func @_conv_layer_kernel(%arg0: i32, %arg1: memref<1x48x3xf32, #tpu.memory_space<vmem>>, %arg2: memref<3x512xf32, #tpu.memory_space<vmem>>, %arg3: memref<1x48x128xf32, #tpu.memory_space<vmem>>, %arg4: memref<1x16x128xf32, #tpu.memory_space<vmem>>, %arg5: memref<128x256xf32, #tpu.memory_space<vmem>>, %arg6: memref<128x512xf32, #tpu.memory_space<vmem>>, %arg7: memref<1x256xf32, #tpu.memory_space<vmem>>, %arg8: memref<1x512xf32, #tpu.memory_space<vmem>>, %arg9: memref<1x16x256xf32, #tpu.memory_space<vmem>>) attributes {dimension_semantics = [#tpu.dimension_semantics<parallel>], iteration_bounds = array<i64: 2>, scalar_prefetch = 0 : i64, scratch_operands = 0 : i64, tpu.core_type = #tpu.core_type<tc>, window_params = [{transform_indices = @transform_0, window_bounds = array<i64: 1, 48, 3>}, {pipeline_mode = #tpu.pipeline_mode<synchronous>, transform_indices = @transform_1, window_bounds = array<i64: 3, 512>}, {transform_indices = @transform_2, window_bounds = array<i64: 1, 48, 128>}, {transform_indices = @transform_3, window_bounds = array<i64: 1, 16, 128>}, {pipeline_mode = #tpu.pipeline_mode<synchronous>, transform_indices = @transform_4, window_bounds = array<i64: 128, 256>}, {pipeline_mode = #tpu.pipeline_mode<synchronous>, transform_indices = @transform_5, window_bounds = array<i64: 128, 512>}, {pipeline_mode = #tpu.pipeline_mode<synchronous>, transform_indices = @transform_6, window_bounds = array<i64: 1, 256>}, {pipeline_mode = #tpu.pipeline_mode<synchronous>, transform_indices = @transform_7, window_bounds = array<i64: 1, 512>}, {transform_indices = @transform_8, window_bounds = array<i64: 1, 16, 256>}]} {
    %c0 = arith.constant 0 : index
    %c0_0 = arith.constant 0 : index
    %c0_1 = arith.constant 0 : index
    %0 = vector.load %arg1[%c0, %c0_0, %c0_1] : memref<1x48x3xf32, #tpu.memory_space<vmem>>, vector<1x48x3xf32>
    %1 = vector.shape_cast %0 : vector<1x48x3xf32> to vector<48x3xf32>
    %c0_2 = arith.constant 0 : index
    %c0_3 = arith.constant 0 : index
    %2 = vector.load %arg2[%c0_2, %c0_3] : memref<3x512xf32, #tpu.memory_space<vmem>>, vector<3x512xf32>
    %3 = vector.extract_strided_slice %1 {offsets = [0, 0], sizes = [48, 1], strides = [1, 1]} : vector<48x3xf32> to vector<48x1xf32>
    %4 = vector.extract_strided_slice %2 {offsets = [0, 0], sizes = [1, 512], strides = [1, 1]} : vector<3x512xf32> to vector<1x512xf32>
    %5 = vector.broadcast %3 : vector<48x1xf32> to vector<48x512xf32>
    %6 = vector.broadcast %4 : vector<1x512xf32> to vector<48x512xf32>
    %7 = arith.mulf %5, %6 : vector<48x512xf32>
    %8 = vector.extract_strided_slice %1 {offsets = [0, 1], sizes = [48, 1], strides = [1, 1]} : vector<48x3xf32> to vector<48x1xf32>
    %9 = vector.extract_strided_slice %2 {offsets = [1, 0], sizes = [1, 512], strides = [1, 1]} : vector<3x512xf32> to vector<1x512xf32>
    %10 = vector.broadcast %8 : vector<48x1xf32> to vector<48x512xf32>
    %11 = vector.broadcast %9 : vector<1x512xf32> to vector<48x512xf32>
    %12 = arith.mulf %10, %11 : vector<48x512xf32>
    %13 = arith.addf %7, %12 : vector<48x512xf32>
    %14 = vector.extract_strided_slice %1 {offsets = [0, 2], sizes = [48, 1], strides = [1, 1]} : vector<48x3xf32> to vector<48x1xf32>
    %15 = vector.extract_strided_slice %2 {offsets = [2, 0], sizes = [1, 512], strides = [1, 1]} : vector<3x512xf32> to vector<1x512xf32>
    %16 = vector.broadcast %14 : vector<48x1xf32> to vector<48x512xf32>
    %17 = vector.broadcast %15 : vector<1x512xf32> to vector<48x512xf32>
    %18 = arith.mulf %16, %17 : vector<48x512xf32>
    %19 = arith.addf %13, %18 : vector<48x512xf32>
    %cst = arith.constant 0.000000e+00 : f32
    %20 = vector.broadcast %cst : f32 to vector<48x512xf32>
    %21 = arith.maximumf %19, %20 : vector<48x512xf32>
    %c0_4 = arith.constant 0 : index
    %c0_5 = arith.constant 0 : index
    %c0_6 = arith.constant 0 : index
    %22 = vector.load %arg3[%c0_4, %c0_5, %c0_6] : memref<1x48x128xf32, #tpu.memory_space<vmem>>, vector<1x48x128xf32>
    %23 = vector.shape_cast %22 : vector<1x48x128xf32> to vector<48x128xf32>
    %c0_7 = arith.constant 0 : index
    %c0_8 = arith.constant 0 : index
    %24 = vector.load %arg6[%c0_7, %c0_8] : memref<128x512xf32, #tpu.memory_space<vmem>>, vector<128x512xf32>
    %cst_9 = arith.constant dense<0.000000e+00> : vector<48x512xf32>
    %25 = tpu.matmul %23, %24, %cst_9 {dimension_numbers = #tpu.dot_dimension_numbers<[1], [0], [0], [1], [0, 0, 1, 1], [], []>} : vector<48x128xf32>, vector<128x512xf32>, vector<48x512xf32> -> vector<48x512xf32>
    %c0_10 = arith.constant 0 : index
    %c0_11 = arith.constant 0 : index
    %26 = vector.load %arg8[%c0_10, %c0_11] : memref<1x512xf32, #tpu.memory_space<vmem>>, vector<1x512xf32>
    %27 = vector.broadcast %26 : vector<1x512xf32> to vector<48x512xf32>
    %28 = arith.addf %25, %27 : vector<48x512xf32>
    %29 = arith.mulf %21, %28 : vector<48x512xf32>
    %30 = vector.extract_strided_slice %29 {offsets = [0, 0], sizes = [16, 512], strides = [1, 1]} : vector<48x512xf32> to vector<16x512xf32>
    %31 = vector.extract_strided_slice %29 {offsets = [16, 0], sizes = [16, 512], strides = [1, 1]} : vector<48x512xf32> to vector<16x512xf32>
    %32 = arith.maximumf %30, %31 : vector<16x512xf32>
    %33 = vector.extract_strided_slice %29 {offsets = [32, 0], sizes = [16, 512], strides = [1, 1]} : vector<48x512xf32> to vector<16x512xf32>
    %34 = arith.maximumf %32, %33 : vector<16x512xf32>
    %35 = vector.extract_strided_slice %34 {offsets = [0, 0], sizes = [16, 256], strides = [1, 1]} : vector<16x512xf32> to vector<16x256xf32>
    %36 = vector.extract_strided_slice %34 {offsets = [0, 256], sizes = [16, 256], strides = [1, 1]} : vector<16x512xf32> to vector<16x256xf32>
    %37 = arith.addf %35, %36 : vector<16x256xf32>
    %c0_12 = arith.constant 0 : index
    %c0_13 = arith.constant 0 : index
    %c0_14 = arith.constant 0 : index
    %38 = vector.load %arg4[%c0_12, %c0_13, %c0_14] : memref<1x16x128xf32, #tpu.memory_space<vmem>>, vector<1x16x128xf32>
    %39 = vector.shape_cast %38 : vector<1x16x128xf32> to vector<16x128xf32>
    %c0_15 = arith.constant 0 : index
    %c0_16 = arith.constant 0 : index
    %40 = vector.load %arg5[%c0_15, %c0_16] : memref<128x256xf32, #tpu.memory_space<vmem>>, vector<128x256xf32>
    %cst_17 = arith.constant dense<0.000000e+00> : vector<16x256xf32>
    %41 = tpu.matmul %39, %40, %cst_17 {dimension_numbers = #tpu.dot_dimension_numbers<[1], [0], [0], [1], [0, 0, 1, 1], [], []>} : vector<16x128xf32>, vector<128x256xf32>, vector<16x256xf32> -> vector<16x256xf32>
    %c0_18 = arith.constant 0 : index
    %c0_19 = arith.constant 0 : index
    %42 = vector.load %arg7[%c0_18, %c0_19] : memref<1x256xf32, #tpu.memory_space<vmem>>, vector<1x256xf32>
    %43 = vector.broadcast %42 : vector<1x256xf32> to vector<16x256xf32>
    %44 = arith.addf %41, %43 : vector<16x256xf32>
    %45 = arith.addf %37, %44 : vector<16x256xf32>
    %cst_20 = arith.constant 0.000000e+00 : f32
    %46 = vector.broadcast %cst_20 : f32 to vector<16x256xf32>
    %47 = arith.maximumf %45, %46 : vector<16x256xf32>
    %c0_21 = arith.constant 0 : index
    %c0_22 = arith.constant 0 : index
    %c0_23 = arith.constant 0 : index
    %48 = vector.load %arg9[%c0_21, %c0_22, %c0_23] : memref<1x16x256xf32, #tpu.memory_space<vmem>>, vector<1x16x256xf32>
    %49 = vector.shape_cast %48 : vector<1x16x256xf32> to vector<16x256xf32>
    %50 = vector.shape_cast %47 : vector<16x256xf32> to vector<1x16x256xf32>
    tpu.vector_store %arg9[%c0_21, %c0_22, %c0_23], %50 {strides = array<i32>} : memref<1x16x256xf32, #tpu.memory_space<vmem>>, vector<1x16x256xf32>,
    return
  }
  func.func @transform_0(%arg0: i32) -> (i32, i32, i32) {
    %c0_i32 = arith.constant 0 : i32
    %c0_i32_0 = arith.constant 0 : i32
    %c0_i32_1 = arith.constant 0 : i32
    return %arg0, %c0_i32, %c0_i32_0 : i32, i32, i32
  }
  func.func @transform_1(%arg0: i32) -> (i32, i32) {
    %c0_i32 = arith.constant 0 : i32
    %c0_i32_0 = arith.constant 0 : i32
    %c0_i32_1 = arith.constant 0 : i32
    return %c0_i32, %c0_i32_0 : i32, i32
  }
  func.func @transform_2(%arg0: i32) -> (i32, i32, i32) {
    %c0_i32 = arith.constant 0 : i32
    %c0_i32_0 = arith.constant 0 : i32
    %c0_i32_1 = arith.constant 0 : i32
    return %arg0, %c0_i32, %c0_i32_0 : i32, i32, i32
  }
  func.func @transform_3(%arg0: i32) -> (i32, i32, i32) {
    %c0_i32 = arith.constant 0 : i32
    %c0_i32_0 = arith.constant 0 : i32
    %c0_i32_1 = arith.constant 0 : i32
    return %arg0, %c0_i32, %c0_i32_0 : i32, i32, i32
  }
  func.func @transform_4(%arg0: i32) -> (i32, i32) {
    %c0_i32 = arith.constant 0 : i32
    %c0_i32_0 = arith.constant 0 : i32
    %c0_i32_1 = arith.constant 0 : i32
    return %c0_i32, %c0_i32_0 : i32, i32
  }
  func.func @transform_5(%arg0: i32) -> (i32, i32) {
    %c0_i32 = arith.constant 0 : i32
    %c0_i32_0 = arith.constant 0 : i32
    %c0_i32_1 = arith.constant 0 : i32
    return %c0_i32, %c0_i32_0 : i32, i32
  }
  func.func @transform_6(%arg0: i32) -> (i32, i32) {
    %c0_i32 = arith.constant 0 : i32
    %c0_i32_0 = arith.constant 0 : i32
    %c0_i32_1 = arith.constant 0 : i32
    return %c0_i32, %c0_i32_0 : i32, i32
  }
  func.func @transform_7(%arg0: i32) -> (i32, i32) {
    %c0_i32 = arith.constant 0 : i32
    %c0_i32_0 = arith.constant 0 : i32
    %c0_i32_1 = arith.constant 0 : i32
    return %c0_i32, %c0_i32_0 : i32, i32
  }
  func.func @transform_8(%arg0: i32) -> (i32, i32, i32) {
    %c0_i32 = arith.constant 0 : i32
    %c0_i32_0 = arith.constant 0 : i32
    %c0_i32_1 = arith.constant 0 : i32
    return %arg0, %c0_i32, %c0_i32_0 : i32, i32, i32
  }
}

module attributes {stable_mosaic.version = 11 : i64} {
  func.func @_neighbor_max_kernel(%arg0: i32, %arg1: memref<1x64x256xf32, #tpu.memory_space<vmem>>, %arg2: memref<1x16x256xf32, #tpu.memory_space<vmem>>) attributes {dimension_semantics = [#tpu.dimension_semantics<parallel>], iteration_bounds = array<i64: 2>, scalar_prefetch = 0 : i64, scratch_operands = 0 : i64, tpu.core_type = #tpu.core_type<tc>, window_params = [{transform_indices = @transform_0, window_bounds = array<i64: 1, 64, 256>}, {transform_indices = @transform_1, window_bounds = array<i64: 1, 16, 256>}]} {
    %c0 = arith.constant 0 : index
    %c0_0 = arith.constant 0 : index
    %c0_1 = arith.constant 0 : index
    %0 = vector.load %arg1[%c0, %c0_0, %c0_1] : memref<1x64x256xf32, #tpu.memory_space<vmem>>, vector<1x16x256xf32>
    %1 = vector.shape_cast %0 : vector<1x16x256xf32> to vector<16x256xf32>
    %c0_2 = arith.constant 0 : index
    %c16 = arith.constant 16 : index
    %c0_3 = arith.constant 0 : index
    %2 = vector.load %arg1[%c0_2, %c16, %c0_3] : memref<1x64x256xf32, #tpu.memory_space<vmem>>, vector<1x16x256xf32>
    %3 = vector.shape_cast %2 : vector<1x16x256xf32> to vector<16x256xf32>
    %4 = arith.maximumf %1, %3 : vector<16x256xf32>
    %c0_4 = arith.constant 0 : index
    %c32 = arith.constant 32 : index
    %c0_5 = arith.constant 0 : index
    %5 = vector.load %arg1[%c0_4, %c32, %c0_5] : memref<1x64x256xf32, #tpu.memory_space<vmem>>, vector<1x16x256xf32>
    %6 = vector.shape_cast %5 : vector<1x16x256xf32> to vector<16x256xf32>
    %7 = arith.maximumf %4, %6 : vector<16x256xf32>
    %c0_6 = arith.constant 0 : index
    %c48 = arith.constant 48 : index
    %c0_7 = arith.constant 0 : index
    %8 = vector.load %arg1[%c0_6, %c48, %c0_7] : memref<1x64x256xf32, #tpu.memory_space<vmem>>, vector<1x16x256xf32>
    %9 = vector.shape_cast %8 : vector<1x16x256xf32> to vector<16x256xf32>
    %10 = arith.maximumf %7, %9 : vector<16x256xf32>
    %c0_8 = arith.constant 0 : index
    %c0_9 = arith.constant 0 : index
    %c0_10 = arith.constant 0 : index
    %11 = vector.load %arg2[%c0_8, %c0_9, %c0_10] : memref<1x16x256xf32, #tpu.memory_space<vmem>>, vector<1x16x256xf32>
    %12 = vector.shape_cast %11 : vector<1x16x256xf32> to vector<16x256xf32>
    %13 = vector.shape_cast %10 : vector<16x256xf32> to vector<1x16x256xf32>
    tpu.vector_store %arg2[%c0_8, %c0_9, %c0_10], %13 {strides = array<i32>} : memref<1x16x256xf32, #tpu.memory_space<vmem>>, vector<1x16x256xf32>,
    return
  }
  func.func @transform_0(%arg0: i32) -> (i32, i32, i32) {
    %c0_i32 = arith.constant 0 : i32
    %c0_i32_0 = arith.constant 0 : i32
    %c0_i32_1 = arith.constant 0 : i32
    return %arg0, %c0_i32, %c0_i32_0 : i32, i32, i32
  }
  func.func @transform_1(%arg0: i32) -> (i32, i32, i32) {
    %c0_i32 = arith.constant 0 : i32
    %c0_i32_0 = arith.constant 0 : i32
    %c0_i32_1 = arith.constant 0 : i32
    return %arg0, %c0_i32, %c0_i32_0 : i32, i32, i32
  }
}

module attributes {stable_mosaic.version = 11 : i64} {
  func.func @_dist_kernel(%arg0: i32, %arg1: memref<1x4x3xf32, #tpu.memory_space<vmem>>, %arg2: memref<1x4x4xf32, #tpu.memory_space<vmem>>) attributes {dimension_semantics = [#tpu.dimension_semantics<parallel>], iteration_bounds = array<i64: 2>, scalar_prefetch = 0 : i64, scratch_operands = 0 : i64, tpu.core_type = #tpu.core_type<tc>, window_params = [{transform_indices = @transform_0, window_bounds = array<i64: 1, 4, 3>}, {transform_indices = @transform_1, window_bounds = array<i64: 1, 4, 4>}]} {
    %c0 = arith.constant 0 : index
    %c0_0 = arith.constant 0 : index
    %c0_1 = arith.constant 0 : index
    %0 = vector.load %arg1[%c0, %c0_0, %c0_1] : memref<1x4x3xf32, #tpu.memory_space<vmem>>, vector<1x4x3xf32>
    %1 = vector.shape_cast %0 : vector<1x4x3xf32> to vector<4x3xf32>
    %2 = arith.mulf %1, %1 : vector<4x3xf32>
    %cst = arith.constant dense<0.000000e+00> : vector<4x4xf32>
    %3 = tpu.matmul %1, %1, %cst {dimension_numbers = #tpu.dot_dimension_numbers<[1], [1], [0], [0], [0, 0, 1, 0], [], []>} : vector<4x3xf32>, vector<4x3xf32>, vector<4x4xf32> -> vector<4x4xf32>
    %cst_2 = arith.constant dense<0.000000e+00> : vector<4xf32>
    %4 = vector.multi_reduction <add>, %2, %cst_2 [1] : vector<4x3xf32> to vector<4xf32>
    %5 = vector.shape_cast %4 : vector<4xf32> to vector<4x1xf32>
    %cst_3 = arith.constant 1.000000e+00 : f32
    %6 = vector.broadcast %cst_3 : f32 to vector<1x3xf32>
    %cst_4 = arith.constant dense<0.000000e+00> : vector<1x4xf32>
    %7 = tpu.matmul %6, %2, %cst_4 {dimension_numbers = #tpu.dot_dimension_numbers<[1], [1], [0], [0], [0, 0, 1, 0], [], []>} : vector<1x3xf32>, vector<4x3xf32>, vector<1x4xf32> -> vector<1x4xf32>
    %cst_5 = arith.constant -2.000000e+00 : f32
    %8 = vector.broadcast %cst_5 : f32 to vector<4x4xf32>
    %9 = arith.mulf %8, %3 : vector<4x4xf32>
    %10 = vector.broadcast %5 : vector<4x1xf32> to vector<4x4xf32>
    %11 = arith.addf %9, %10 : vector<4x4xf32>
    %12 = vector.broadcast %7 : vector<1x4xf32> to vector<4x4xf32>
    %13 = arith.addf %11, %12 : vector<4x4xf32>
    %c0_6 = arith.constant 0 : index
    %c0_7 = arith.constant 0 : index
    %c0_8 = arith.constant 0 : index
    %14 = vector.load %arg2[%c0_6, %c0_7, %c0_8] : memref<1x4x4xf32, #tpu.memory_space<vmem>>, vector<1x4x4xf32>
    %15 = vector.shape_cast %14 : vector<1x4x4xf32> to vector<4x4xf32>
    %16 = vector.shape_cast %13 : vector<4x4xf32> to vector<1x4x4xf32>
    tpu.vector_store %arg2[%c0_6, %c0_7, %c0_8], %16 {strides = array<i32>} : memref<1x4x4xf32, #tpu.memory_space<vmem>>, vector<1x4x4xf32>,
    return
  }
  func.func @transform_0(%arg0: i32) -> (i32, i32, i32) {
    %c0_i32 = arith.constant 0 : i32
    %c0_i32_0 = arith.constant 0 : i32
    %c0_i32_1 = arith.constant 0 : i32
    return %arg0, %c0_i32, %c0_i32_0 : i32, i32, i32
  }
  func.func @transform_1(%arg0: i32) -> (i32, i32, i32) {
    %c0_i32 = arith.constant 0 : i32
    %c0_i32_0 = arith.constant 0 : i32
    %c0_i32_1 = arith.constant 0 : i32
    return %arg0, %c0_i32, %c0_i32_0 : i32, i32, i32
  }
}

module attributes {stable_mosaic.version = 11 : i64} {
  func.func @_conv_layer_kernel(%arg0: i32, %arg1: memref<1x12x3xf32, #tpu.memory_space<vmem>>, %arg2: memref<3x2048xf32, #tpu.memory_space<vmem>>, %arg3: memref<1x12x256xf32, #tpu.memory_space<vmem>>, %arg4: memref<1x4x256xf32, #tpu.memory_space<vmem>>, %arg5: memref<256x1024xf32, #tpu.memory_space<vmem>>, %arg6: memref<256x2048xf32, #tpu.memory_space<vmem>>, %arg7: memref<1x1024xf32, #tpu.memory_space<vmem>>, %arg8: memref<1x2048xf32, #tpu.memory_space<vmem>>, %arg9: memref<1x4x1024xf32, #tpu.memory_space<vmem>>) attributes {dimension_semantics = [#tpu.dimension_semantics<parallel>], iteration_bounds = array<i64: 2>, scalar_prefetch = 0 : i64, scratch_operands = 0 : i64, tpu.core_type = #tpu.core_type<tc>, window_params = [{transform_indices = @transform_0, window_bounds = array<i64: 1, 12, 3>}, {pipeline_mode = #tpu.pipeline_mode<synchronous>, transform_indices = @transform_1, window_bounds = array<i64: 3, 2048>}, {transform_indices = @transform_2, window_bounds = array<i64: 1, 12, 256>}, {transform_indices = @transform_3, window_bounds = array<i64: 1, 4, 256>}, {pipeline_mode = #tpu.pipeline_mode<synchronous>, transform_indices = @transform_4, window_bounds = array<i64: 256, 1024>}, {pipeline_mode = #tpu.pipeline_mode<synchronous>, transform_indices = @transform_5, window_bounds = array<i64: 256, 2048>}, {pipeline_mode = #tpu.pipeline_mode<synchronous>, transform_indices = @transform_6, window_bounds = array<i64: 1, 1024>}, {pipeline_mode = #tpu.pipeline_mode<synchronous>, transform_indices = @transform_7, window_bounds = array<i64: 1, 2048>}, {transform_indices = @transform_8, window_bounds = array<i64: 1, 4, 1024>}]} {
    %c0 = arith.constant 0 : index
    %c0_0 = arith.constant 0 : index
    %c0_1 = arith.constant 0 : index
    %0 = vector.load %arg1[%c0, %c0_0, %c0_1] : memref<1x12x3xf32, #tpu.memory_space<vmem>>, vector<1x12x3xf32>
    %1 = vector.shape_cast %0 : vector<1x12x3xf32> to vector<12x3xf32>
    %c0_2 = arith.constant 0 : index
    %c0_3 = arith.constant 0 : index
    %2 = vector.load %arg2[%c0_2, %c0_3] : memref<3x2048xf32, #tpu.memory_space<vmem>>, vector<3x2048xf32>
    %3 = vector.extract_strided_slice %1 {offsets = [0, 0], sizes = [12, 1], strides = [1, 1]} : vector<12x3xf32> to vector<12x1xf32>
    %4 = vector.extract_strided_slice %2 {offsets = [0, 0], sizes = [1, 2048], strides = [1, 1]} : vector<3x2048xf32> to vector<1x2048xf32>
    %5 = vector.broadcast %3 : vector<12x1xf32> to vector<12x2048xf32>
    %6 = vector.broadcast %4 : vector<1x2048xf32> to vector<12x2048xf32>
    %7 = arith.mulf %5, %6 : vector<12x2048xf32>
    %8 = vector.extract_strided_slice %1 {offsets = [0, 1], sizes = [12, 1], strides = [1, 1]} : vector<12x3xf32> to vector<12x1xf32>
    %9 = vector.extract_strided_slice %2 {offsets = [1, 0], sizes = [1, 2048], strides = [1, 1]} : vector<3x2048xf32> to vector<1x2048xf32>
    %10 = vector.broadcast %8 : vector<12x1xf32> to vector<12x2048xf32>
    %11 = vector.broadcast %9 : vector<1x2048xf32> to vector<12x2048xf32>
    %12 = arith.mulf %10, %11 : vector<12x2048xf32>
    %13 = arith.addf %7, %12 : vector<12x2048xf32>
    %14 = vector.extract_strided_slice %1 {offsets = [0, 2], sizes = [12, 1], strides = [1, 1]} : vector<12x3xf32> to vector<12x1xf32>
    %15 = vector.extract_strided_slice %2 {offsets = [2, 0], sizes = [1, 2048], strides = [1, 1]} : vector<3x2048xf32> to vector<1x2048xf32>
    %16 = vector.broadcast %14 : vector<12x1xf32> to vector<12x2048xf32>
    %17 = vector.broadcast %15 : vector<1x2048xf32> to vector<12x2048xf32>
    %18 = arith.mulf %16, %17 : vector<12x2048xf32>
    %19 = arith.addf %13, %18 : vector<12x2048xf32>
    %cst = arith.constant 0.000000e+00 : f32
    %20 = vector.broadcast %cst : f32 to vector<12x2048xf32>
    %21 = arith.maximumf %19, %20 : vector<12x2048xf32>
    %c0_4 = arith.constant 0 : index
    %c0_5 = arith.constant 0 : index
    %c0_6 = arith.constant 0 : index
    %22 = vector.load %arg3[%c0_4, %c0_5, %c0_6] : memref<1x12x256xf32, #tpu.memory_space<vmem>>, vector<1x12x256xf32>
    %23 = vector.shape_cast %22 : vector<1x12x256xf32> to vector<12x256xf32>
    %c0_7 = arith.constant 0 : index
    %c0_8 = arith.constant 0 : index
    %24 = vector.load %arg6[%c0_7, %c0_8] : memref<256x2048xf32, #tpu.memory_space<vmem>>, vector<256x2048xf32>
    %cst_9 = arith.constant dense<0.000000e+00> : vector<12x2048xf32>
    %25 = tpu.matmul %23, %24, %cst_9 {dimension_numbers = #tpu.dot_dimension_numbers<[1], [0], [0], [1], [0, 0, 1, 1], [], []>} : vector<12x256xf32>, vector<256x2048xf32>, vector<12x2048xf32> -> vector<12x2048xf32>
    %c0_10 = arith.constant 0 : index
    %c0_11 = arith.constant 0 : index
    %26 = vector.load %arg8[%c0_10, %c0_11] : memref<1x2048xf32, #tpu.memory_space<vmem>>, vector<1x2048xf32>
    %27 = vector.broadcast %26 : vector<1x2048xf32> to vector<12x2048xf32>
    %28 = arith.addf %25, %27 : vector<12x2048xf32>
    %29 = arith.mulf %21, %28 : vector<12x2048xf32>
    %30 = vector.extract_strided_slice %29 {offsets = [0, 0], sizes = [4, 2048], strides = [1, 1]} : vector<12x2048xf32> to vector<4x2048xf32>
    %31 = vector.extract_strided_slice %29 {offsets = [4, 0], sizes = [4, 2048], strides = [1, 1]} : vector<12x2048xf32> to vector<4x2048xf32>
    %32 = arith.maximumf %30, %31 : vector<4x2048xf32>
    %33 = vector.extract_strided_slice %29 {offsets = [8, 0], sizes = [4, 2048], strides = [1, 1]} : vector<12x2048xf32> to vector<4x2048xf32>
    %34 = arith.maximumf %32, %33 : vector<4x2048xf32>
    %35 = vector.extract_strided_slice %34 {offsets = [0, 0], sizes = [4, 1024], strides = [1, 1]} : vector<4x2048xf32> to vector<4x1024xf32>
    %36 = vector.extract_strided_slice %34 {offsets = [0, 1024], sizes = [4, 1024], strides = [1, 1]} : vector<4x2048xf32> to vector<4x1024xf32>
    %37 = arith.addf %35, %36 : vector<4x1024xf32>
    %c0_12 = arith.constant 0 : index
    %c0_13 = arith.constant 0 : index
    %c0_14 = arith.constant 0 : index
    %38 = vector.load %arg4[%c0_12, %c0_13, %c0_14] : memref<1x4x256xf32, #tpu.memory_space<vmem>>, vector<1x4x256xf32>
    %39 = vector.shape_cast %38 : vector<1x4x256xf32> to vector<4x256xf32>
    %c0_15 = arith.constant 0 : index
    %c0_16 = arith.constant 0 : index
    %40 = vector.load %arg5[%c0_15, %c0_16] : memref<256x1024xf32, #tpu.memory_space<vmem>>, vector<256x1024xf32>
    %cst_17 = arith.constant dense<0.000000e+00> : vector<4x1024xf32>
    %41 = tpu.matmul %39, %40, %cst_17 {dimension_numbers = #tpu.dot_dimension_numbers<[1], [0], [0], [1], [0, 0, 1, 1], [], []>} : vector<4x256xf32>, vector<256x1024xf32>, vector<4x1024xf32> -> vector<4x1024xf32>
    %c0_18 = arith.constant 0 : index
    %c0_19 = arith.constant 0 : index
    %42 = vector.load %arg7[%c0_18, %c0_19] : memref<1x1024xf32, #tpu.memory_space<vmem>>, vector<1x1024xf32>
    %43 = vector.broadcast %42 : vector<1x1024xf32> to vector<4x1024xf32>
    %44 = arith.addf %41, %43 : vector<4x1024xf32>
    %45 = arith.addf %37, %44 : vector<4x1024xf32>
    %c0_20 = arith.constant 0 : index
    %c0_21 = arith.constant 0 : index
    %c0_22 = arith.constant 0 : index
    %46 = vector.load %arg9[%c0_20, %c0_21, %c0_22] : memref<1x4x1024xf32, #tpu.memory_space<vmem>>, vector<1x4x1024xf32>
    %47 = vector.shape_cast %46 : vector<1x4x1024xf32> to vector<4x1024xf32>
    %48 = vector.shape_cast %45 : vector<4x1024xf32> to vector<1x4x1024xf32>
    tpu.vector_store %arg9[%c0_20, %c0_21, %c0_22], %48 {strides = array<i32>} : memref<1x4x1024xf32, #tpu.memory_space<vmem>>, vector<1x4x1024xf32>,
    return
  }
  func.func @transform_0(%arg0: i32) -> (i32, i32, i32) {
    %c0_i32 = arith.constant 0 : i32
    %c0_i32_0 = arith.constant 0 : i32
    %c0_i32_1 = arith.constant 0 : i32
    return %arg0, %c0_i32, %c0_i32_0 : i32, i32, i32
  }
  func.func @transform_1(%arg0: i32) -> (i32, i32) {
    %c0_i32 = arith.constant 0 : i32
    %c0_i32_0 = arith.constant 0 : i32
    %c0_i32_1 = arith.constant 0 : i32
    return %c0_i32, %c0_i32_0 : i32, i32
  }
  func.func @transform_2(%arg0: i32) -> (i32, i32, i32) {
    %c0_i32 = arith.constant 0 : i32
    %c0_i32_0 = arith.constant 0 : i32
    %c0_i32_1 = arith.constant 0 : i32
    return %arg0, %c0_i32, %c0_i32_0 : i32, i32, i32
  }
  func.func @transform_3(%arg0: i32) -> (i32, i32, i32) {
    %c0_i32 = arith.constant 0 : i32
    %c0_i32_0 = arith.constant 0 : i32
    %c0_i32_1 = arith.constant 0 : i32
    return %arg0, %c0_i32, %c0_i32_0 : i32, i32, i32
  }
  func.func @transform_4(%arg0: i32) -> (i32, i32) {
    %c0_i32 = arith.constant 0 : i32
    %c0_i32_0 = arith.constant 0 : i32
    %c0_i32_1 = arith.constant 0 : i32
    return %c0_i32, %c0_i32_0 : i32, i32
  }
  func.func @transform_5(%arg0: i32) -> (i32, i32) {
    %c0_i32 = arith.constant 0 : i32
    %c0_i32_0 = arith.constant 0 : i32
    %c0_i32_1 = arith.constant 0 : i32
    return %c0_i32, %c0_i32_0 : i32, i32
  }
  func.func @transform_6(%arg0: i32) -> (i32, i32) {
    %c0_i32 = arith.constant 0 : i32
    %c0_i32_0 = arith.constant 0 : i32
    %c0_i32_1 = arith.constant 0 : i32
    return %c0_i32, %c0_i32_0 : i32, i32
  }
  func.func @transform_7(%arg0: i32) -> (i32, i32) {
    %c0_i32 = arith.constant 0 : i32
    %c0_i32_0 = arith.constant 0 : i32
    %c0_i32_1 = arith.constant 0 : i32
    return %c0_i32, %c0_i32_0 : i32, i32
  }
  func.func @transform_8(%arg0: i32) -> (i32, i32, i32) {
    %c0_i32 = arith.constant 0 : i32
    %c0_i32_0 = arith.constant 0 : i32
    %c0_i32_1 = arith.constant 0 : i32
    return %arg0, %c0_i32, %c0_i32_0 : i32, i32, i32
  }
}

module attributes {stable_mosaic.version = 11 : i64} {
  func.func @_classifier_kernel(%arg0: i32, %arg1: memref<2x4x1024xf32, #tpu.memory_space<vmem>>, %arg2: memref<1024x256xf32, #tpu.memory_space<vmem>>, %arg3: memref<1x256xf32, #tpu.memory_space<vmem>>, %arg4: memref<1x256xf32, #tpu.memory_space<vmem>>, %arg5: memref<1x256xf32, #tpu.memory_space<vmem>>, %arg6: memref<256x128xf32, #tpu.memory_space<vmem>>, %arg7: memref<1x128xf32, #tpu.memory_space<vmem>>, %arg8: memref<2x128xf32, #tpu.memory_space<vmem>>) attributes {dimension_semantics = [#tpu.dimension_semantics<arbitrary>], iteration_bounds = array<i64: 1>, scalar_prefetch = 0 : i64, scratch_operands = 0 : i64, tpu.core_type = #tpu.core_type<tc>, window_params = [{pipeline_mode = #tpu.pipeline_mode<synchronous>, transform_indices = @transform_0, window_bounds = array<i64: 2, 4, 1024>}, {pipeline_mode = #tpu.pipeline_mode<synchronous>, transform_indices = @transform_1, window_bounds = array<i64: 1024, 256>}, {pipeline_mode = #tpu.pipeline_mode<synchronous>, transform_indices = @transform_2, window_bounds = array<i64: 1, 256>}, {pipeline_mode = #tpu.pipeline_mode<synchronous>, transform_indices = @transform_3, window_bounds = array<i64: 1, 256>}, {pipeline_mode = #tpu.pipeline_mode<synchronous>, transform_indices = @transform_4, window_bounds = array<i64: 1, 256>}, {pipeline_mode = #tpu.pipeline_mode<synchronous>, transform_indices = @transform_5, window_bounds = array<i64: 256, 128>}, {pipeline_mode = #tpu.pipeline_mode<synchronous>, transform_indices = @transform_6, window_bounds = array<i64: 1, 128>}, {pipeline_mode = #tpu.pipeline_mode<synchronous>, transform_indices = @transform_7, window_bounds = array<i64: 2, 128>}]} {
    %c0 = arith.constant 0 : index
    %c0_0 = arith.constant 0 : index
    %c0_1 = arith.constant 0 : index
    %0 = vector.load %arg1[%c0, %c0_0, %c0_1] : memref<2x4x1024xf32, #tpu.memory_space<vmem>>, vector<2x4x1024xf32>
    %1 = vector.extract_strided_slice %0 {offsets = [0, 0, 0], sizes = [2, 1, 1024], strides = [1, 1, 1]} : vector<2x4x1024xf32> to vector<2x1x1024xf32>
    %2 = vector.shape_cast %1 : vector<2x1x1024xf32> to vector<2x1024xf32>
    %3 = vector.extract_strided_slice %0 {offsets = [0, 1, 0], sizes = [2, 1, 1024], strides = [1, 1, 1]} : vector<2x4x1024xf32> to vector<2x1x1024xf32>
    %4 = vector.shape_cast %3 : vector<2x1x1024xf32> to vector<2x1024xf32>
    %5 = arith.maximumf %2, %4 : vector<2x1024xf32>
    %6 = vector.extract_strided_slice %0 {offsets = [0, 2, 0], sizes = [2, 1, 1024], strides = [1, 1, 1]} : vector<2x4x1024xf32> to vector<2x1x1024xf32>
    %7 = vector.shape_cast %6 : vector<2x1x1024xf32> to vector<2x1024xf32>
    %8 = arith.maximumf %5, %7 : vector<2x1024xf32>
    %9 = vector.extract_strided_slice %0 {offsets = [0, 3, 0], sizes = [2, 1, 1024], strides = [1, 1, 1]} : vector<2x4x1024xf32> to vector<2x1x1024xf32>
    %10 = vector.shape_cast %9 : vector<2x1x1024xf32> to vector<2x1024xf32>
    %11 = arith.maximumf %8, %10 : vector<2x1024xf32>
    %c0_2 = arith.constant 0 : index
    %c0_3 = arith.constant 0 : index
    %12 = vector.load %arg2[%c0_2, %c0_3] : memref<1024x256xf32, #tpu.memory_space<vmem>>, vector<1024x256xf32>
    %cst = arith.constant dense<0.000000e+00> : vector<2x256xf32>
    %13 = tpu.matmul %11, %12, %cst {dimension_numbers = #tpu.dot_dimension_numbers<[1], [0], [0], [1], [0, 0, 1, 1], [], []>} : vector<2x1024xf32>, vector<1024x256xf32>, vector<2x256xf32> -> vector<2x256xf32>
    %c0_4 = arith.constant 0 : index
    %c0_5 = arith.constant 0 : index
    %14 = vector.load %arg3[%c0_4, %c0_5] : memref<1x256xf32, #tpu.memory_space<vmem>>, vector<1x256xf32>
    %15 = vector.broadcast %14 : vector<1x256xf32> to vector<2x256xf32>
    %16 = arith.addf %13, %15 : vector<2x256xf32>
    %c0_6 = arith.constant 0 : index
    %c0_7 = arith.constant 0 : index
    %17 = vector.load %arg4[%c0_6, %c0_7] : memref<1x256xf32, #tpu.memory_space<vmem>>, vector<1x256xf32>
    %cst_8 = arith.constant 1.000010e+00 : f32
    %18 = math.sqrt %cst_8 : f32
    %19 = vector.broadcast %18 : f32 to vector<1x256xf32>
    %20 = arith.divf %17, %19 : vector<1x256xf32>
    %21 = vector.broadcast %20 : vector<1x256xf32> to vector<2x256xf32>
    %22 = arith.mulf %16, %21 : vector<2x256xf32>
    %c0_9 = arith.constant 0 : index
    %c0_10 = arith.constant 0 : index
    %23 = vector.load %arg5[%c0_9, %c0_10] : memref<1x256xf32, #tpu.memory_space<vmem>>, vector<1x256xf32>
    %24 = vector.broadcast %23 : vector<1x256xf32> to vector<2x256xf32>
    %25 = arith.addf %22, %24 : vector<2x256xf32>
    %cst_11 = arith.constant 0.000000e+00 : f32
    %26 = vector.broadcast %cst_11 : f32 to vector<2x256xf32>
    %27 = arith.maximumf %25, %26 : vector<2x256xf32>
    %c0_12 = arith.constant 0 : index
    %c0_13 = arith.constant 0 : index
    %28 = vector.load %arg6[%c0_12, %c0_13] : memref<256x128xf32, #tpu.memory_space<vmem>>, vector<256x128xf32>
    %cst_14 = arith.constant dense<0.000000e+00> : vector<2x128xf32>
    %29 = tpu.matmul %27, %28, %cst_14 {dimension_numbers = #tpu.dot_dimension_numbers<[1], [0], [0], [1], [0, 0, 1, 1], [], []>} : vector<2x256xf32>, vector<256x128xf32>, vector<2x128xf32> -> vector<2x128xf32>
    %c0_15 = arith.constant 0 : index
    %c0_16 = arith.constant 0 : index
    %30 = vector.load %arg7[%c0_15, %c0_16] : memref<1x128xf32, #tpu.memory_space<vmem>>, vector<1x128xf32>
    %31 = vector.broadcast %30 : vector<1x128xf32> to vector<2x128xf32>
    %32 = arith.addf %29, %31 : vector<2x128xf32>
    %c0_17 = arith.constant 0 : index
    %c0_18 = arith.constant 0 : index
    %33 = vector.load %arg8[%c0_17, %c0_18] : memref<2x128xf32, #tpu.memory_space<vmem>>, vector<2x128xf32>
    tpu.vector_store %arg8[%c0_17, %c0_18], %32 {strides = array<i32>} : memref<2x128xf32, #tpu.memory_space<vmem>>, vector<2x128xf32>,
    return
  }
  func.func @transform_0(%arg0: i32) -> (i32, i32, i32) {
    %c0_i32 = arith.constant 0 : i32
    %c0_i32_0 = arith.constant 0 : i32
    %c0_i32_1 = arith.constant 0 : i32
    %c0_i32_2 = arith.constant 0 : i32
    return %c0_i32, %c0_i32_0, %c0_i32_1 : i32, i32, i32
  }
  func.func @transform_1(%arg0: i32) -> (i32, i32) {
    %c0_i32 = arith.constant 0 : i32
    %c0_i32_0 = arith.constant 0 : i32
    %c0_i32_1 = arith.constant 0 : i32
    return %c0_i32, %c0_i32_0 : i32, i32
  }
  func.func @transform_2(%arg0: i32) -> (i32, i32) {
    %c0_i32 = arith.constant 0 : i32
    %c0_i32_0 = arith.constant 0 : i32
    %c0_i32_1 = arith.constant 0 : i32
    return %c0_i32, %c0_i32_0 : i32, i32
  }
  func.func @transform_3(%arg0: i32) -> (i32, i32) {
    %c0_i32 = arith.constant 0 : i32
    %c0_i32_0 = arith.constant 0 : i32
    %c0_i32_1 = arith.constant 0 : i32
    return %c0_i32, %c0_i32_0 : i32, i32
  }
  func.func @transform_4(%arg0: i32) -> (i32, i32) {
    %c0_i32 = arith.constant 0 : i32
    %c0_i32_0 = arith.constant 0 : i32
    %c0_i32_1 = arith.constant 0 : i32
    return %c0_i32, %c0_i32_0 : i32, i32
  }
  func.func @transform_5(%arg0: i32) -> (i32, i32) {
    %c0_i32 = arith.constant 0 : i32
    %c0_i32_0 = arith.constant 0 : i32
    %c0_i32_1 = arith.constant 0 : i32
    return %c0_i32, %c0_i32_0 : i32, i32
  }
  func.func @transform_6(%arg0: i32) -> (i32, i32) {
    %c0_i32 = arith.constant 0 : i32
    %c0_i32_0 = arith.constant 0 : i32
    %c0_i32_1 = arith.constant 0 : i32
    return %c0_i32, %c0_i32_0 : i32, i32
  }
  func.func @transform_7(%arg0: i32) -> (i32, i32) {
    %c0_i32 = arith.constant 0 : i32
    %c0_i32_0 = arith.constant 0 : i32
    %c0_i32_1 = arith.constant 0 : i32
    return %c0_i32, %c0_i32_0 : i32, i32
  }
}

</mosaic_0001>

<bundles_post_ra>
// kernel: neg.7
= control target key start
LH: loop header
LB: loop body
LE: loop exit
PB: predicated region body
PF: predicated region fallthrough
CT: control target
= control target key end

     0   :  { %s72_s0 = inlined_call_operand.vmem [shape: f32[2,16,16], index: 0, kind: input, shape index: {}]   ;;  %s73_s1 = inlined_call_operand.vmem [shape: f32[2,16,16], index: 1, kind: output, shape index: {}]  }
   0x1   :  { %v2_v0 = vld [vmem:[%s72_s0] sm:$0xff]  ;;  %v32_v1 = vld [vmem:[%s72_s0 + $0x10] sm:$0xff]  ;;  %v34_v2 = vld [vmem:[%s72_s0 + $0x8] sm:$0xff] }
   0x2   :  { %v5_v3 = vxor.u32 2147483648, %v2_v0  ;;  %v12_v4 = vxor.u32 2147483648, %v32_v1  ;;  %v20_v5 = vxor.u32 2147483648, %v34_v2  ;;  %v36_v6 = vld [vmem:[%s72_s0 + $0x18] sm:$0xff] }
   0x3   :  { %v28_v7 = vxor.u32 2147483648, %v36_v6 }
   0x4   :  { %7 = vst [vmem:[%s73_s1] sm:$0xff] %v5_v3  ;;  %33 = vst [vmem:[%s73_s1 + $0x10] sm:$0xff] %v12_v4 }
   0x5   :  { %35 = vst [vmem:[%s73_s1 + $0x8] sm:$0xff] %v20_v5  ;;  %37 = vst [vmem:[%s73_s1 + $0x18] sm:$0xff] %v28_v7 }

// kernel: neg.5
= control target key start
LH: loop header
LB: loop body
LE: loop exit
PB: predicated region body
PF: predicated region fallthrough
CT: control target
= control target key end

     0   :  { %s264_s0 = inlined_call_operand.vmem [shape: f32[2,64,64], index: 0, kind: input, shape index: {}]   ;;  %s265_s1 = inlined_call_operand.vmem [shape: f32[2,64,64], index: 1, kind: output, shape index: {}]  }
   0x1   :  { %v2_v0 = vld [vmem:[%s264_s0] sm:$0xff]  ;;  %v130_v2 = vld [vmem:[%s264_s0 + $0x8] sm:$0xff]  ;;  %v134_v7 = vld [vmem:[%s264_s0 + $0x10] sm:$0xff] }
   0x2   :  { %v128_v1 = vld [vmem:[%s264_s0 + $0x40] sm:$0xff]  ;;  %v5_v3 = vxor.u32 2147483648, %v2_v0  ;;  %v20_v5 = vxor.u32 2147483648, %v130_v2  ;;  %v132_v6 = vld [vmem:[%s264_s0 + $0x48] sm:$0xff]  ;;  %v136_v8 = vld [vmem:[%s264_s0 + $0x50] sm:$0xff]  ;;  %v36_v10 = vxor.u32 2147483648, %v134_v7 }
   0x3   :  { %v12_v4 = vxor.u32 2147483648, %v128_v1  ;;  %v28_v9 = vxor.u32 2147483648, %v132_v6  ;;  %v44_v11 = vxor.u32 2147483648, %v136_v8  ;;  %v138_v12 = vld [vmem:[%s264_s0 + $0x18] sm:$0xff]  ;;  %v142_v14 = vld [vmem:[%s264_s0 + $0x20] sm:$0xff]  ;;  %v146_v19 = vld [vmem:[%s264_s0 + $0x28] sm:$0xff] }
   0x4   :  { %v140_v13 = vld [vmem:[%s264_s0 + $0x58] sm:$0xff]  ;;  %7 = vst [vmem:[%s265_s1] sm:$0xff] %v5_v3  ;;  %131 = vst [vmem:[%s265_s1 + $0x8] sm:$0xff] %v20_v5  ;;  %v52_v15 = vxor.u32 2147483648, %v138_v12  ;;  %v68_v17 = vxor.u32 2147483648, %v142_v14  ;;  %v144_v18 = vld [vmem:[%s264_s0 + $0x60] sm:$0xff]  ;;  %v84_v22 = vxor.u32 2147483648, %v146_v19 }
   0x5   :  { %129 = vst [vmem:[%s265_s1 + $0x40] sm:$0xff] %v12_v4  ;;  %v60_v16 = vxor.u32 2147483648, %v140_v13  ;;  %v148_v20 = vld [vmem:[%s264_s0 + $0x68] sm:$0xff]  ;;  %133 = vst [vmem:[%s265_s1 + $0x48] sm:$0xff] %v28_v9  ;;  %v76_v21 = vxor.u32 2147483648, %v144_v18  ;;  %v150_v24 = vld [vmem:[%s264_s0 + $0x30] sm:$0xff] }
   0x6   :  { %135 = vst [vmem:[%s265_s1 + $0x10] sm:$0xff] %v36_v10  ;;  %137 = vst [vmem:[%s265_s1 + $0x50] sm:$0xff] %v44_v11  ;;  %v92_v23 = vxor.u32 2147483648, %v148_v20  ;;  %v152_v25 = vld [vmem:[%s264_s0 + $0x70] sm:$0xff]  ;;  %v154_v26 = vld [vmem:[%s264_s0 + $0x38] sm:$0xff]  ;;  %v100_v27 = vxor.u32 2147483648, %v150_v24 }
   0x7   :  { %139 = vst [vmem:[%s265_s1 + $0x18] sm:$0xff] %v52_v15  ;;  %141 = vst [vmem:[%s265_s1 + $0x58] sm:$0xff] %v60_v16  ;;  %v108_v28 = vxor.u32 2147483648, %v152_v25  ;;  %v116_v29 = vxor.u32 2147483648, %v154_v26  ;;  %v156_v30 = vld [vmem:[%s264_s0 + $0x78] sm:$0xff] }
   0x8   :  { %143 = vst [vmem:[%s265_s1 + $0x20] sm:$0xff] %v68_v17  ;;  %145 = vst [vmem:[%s265_s1 + $0x60] sm:$0xff] %v76_v21  ;;  %v124_v31 = vxor.u32 2147483648, %v156_v30 }
   0x9   :  { %147 = vst [vmem:[%s265_s1 + $0x28] sm:$0xff] %v84_v22  ;;  %149 = vst [vmem:[%s265_s1 + $0x68] sm:$0xff] %v92_v23 }
   0xa   :  { %151 = vst [vmem:[%s265_s1 + $0x30] sm:$0xff] %v100_v27  ;;  %153 = vst [vmem:[%s265_s1 + $0x70] sm:$0xff] %v108_v28 }
   0xb   :  { %155 = vst [vmem:[%s265_s1 + $0x38] sm:$0xff] %v116_v29  ;;  %157 = vst [vmem:[%s265_s1 + $0x78] sm:$0xff] %v124_v31 }

// kernel: gcn3d_forward.14
= control target key start
LH: loop header
LB: loop body
LE: loop exit
PB: predicated region body
PF: predicated region fallthrough
CT: control target
= control target key end

     0   :  { %s441_s6 = smov 0   ;;  %s472_s0 = inlined_call_operand.vmem [shape: f32[2,16,3], index: 0, kind: input, shape index: {}]   ;;  %s473_s1 = inlined_call_operand.vmem [shape: f32[2,16,16], index: 1, kind: output, shape index: {}]  }
   0x1 LB: > { %s356_s7 = sadd.s32 4294967295, %s425_s6   ;;  %p360_p0 = scmp.ge.s32.totalorder %s425_s6, 1  ;;  %s425_s6 = sphi %s441_s6, %s11_s6  }
   0x2   : > { %p87_p1 = scmp.lt.s32.totalorder %s425_s6, 3 }
   0x4   : > { %p88_p2 = pnand %p360_p0, %p87_p1 }
   0x5   : > { %p107_p3 = scmp.lt.s32.totalorder (!%p88_p2), %s356_s7, 1  ;;  %v427_v0 = vmov (!%p88_p2), 0.0|0.0   ;;  %vm428_vm0 = vmmov (!%p88_p2), 0   ;;  %v429_v1 = vmov (!%p88_p2), 0.0   ;;  %vm121_vm1 = vcmask (!%p88_p2), 23552  }
   0x6   : > { %91 = sbr.rel (%p88_p2) target bundleno = 247 (0xf7), region = 24  ;;  %403 = vmatprep.subr.bf16.mxu1 (!%p88_p2), %v427_v0  ;;  %394 = vmatprep.mubr.msk.f32.mxu1 (!%p88_p2), %vm428_vm0, %v429_v1  ;;  %vm398_vm2 = vmpackc.low (!%p88_p2), %vm121_vm1, %vm121_vm1  ;;  %v430_v10 = vmov (!%p88_p2), 1.0   ;;  %v292_v11 = vlaneseq (!%p88_p2)  ;;  %vm298_vm3 = vcmask (!%p88_p2), 130048  }
   0x8   : > { %v293_v13 = vshrl.u32 (!%p88_p2), %v292_v11, 7 }
   0xa   : > { %v294_v14 = vsub.s32 (!%p88_p2), 0, %v293_v13 }
   0xd   : > { %s475_s7 = smov (!%p107_p3, %s356_s7), 1 }
   0xe   : > { %s374_s8 = sshll.u32 %s475_s7, 4 }
   0xf   : > { %s111_s11 = scalar_lea.vmem %s472_s0, %s374_s8  ;;  %s116_s14 = scalar_lea.vmem %s473_s1, %s374_s8 }
  0x10   : > { %v117_v2 = vld [vmem:[%s111_s11] sm:$0xff]  ;;  %v118_v3 = vld [vmem:[%s111_s11 + $0x8] sm:$0xff] }
  0x11   : > { %v397_v4 = vpack.c.bf16 %v118_v3, %v117_v2  ;;  %v119_v5 = vmul.f32 %v117_v2, %v117_v2  ;;  %v120_v6 = vmul.f32 %v118_v3, %v118_v3  ;;  %387 = vmatprep.mubr.msk.f32.mxu0 %vm121_vm1, %v117_v2 }
  0x13   : > { %399 = vmatprep.subr.msk.bf16.mxu0 %vm398_vm2, %v397_v4  ;;  %v404_v7 = vpack.c.bf16 %v120_v6, %v119_v5  ;;  %v203_v8 = vsel %vm121_vm1, %v119_v5, 0.0  ;;  %v206_v9 = vsel %vm121_vm1, %v120_v6, 0.0 }
  0x14   : > { %402 = vmatpush3.bf16.xpose.msk.msra.mxu0 %vm398_vm2, %v397_v4  ;;  %204 = vadd.xlane.f32.xlu0 %v203_v8 }
  0x15   : > { %406 = vmatpush3.bf16.xpose.msk.msra.mxu1 %vm398_vm2, %v404_v7 }
  0x18   : > { %207 = vadd.xlane.f32.xlu0 %v206_v9 }
  0x1b   : > { %388 = vmatmul.mubr.msk.f32.vlgmr.msra.gmra.mrb[0].mxu0 %vm121_vm1, %v118_v3 }
  0x1c   : > { %395 = vmatmul.mubr.msk.f32.vlgmr.msra.gmra.mrb[0].mxu1 %vm121_vm1, %v430_v10 }
  0xa1   : > { %v205_v12 = vpop.xlane.xlu0 %204 }
  0xa5   : > { %v208_v16 = vpop.xlane.xlu0 %207 }
  0xee   : > { %v389_v15 = vpop.f32.mrb[0].mxu0 }
  0xef   : > { %v289_v17 = vmul.f32 -2.0, %v389_v15  ;;  %v194_v18 = vpop.f32.mrb[1].mxu0  ;;  %v284_v19 = vpop.f32.mrb[0].mxu1 }
  0xf0   : > { %v288_v20 = vmul.f32 -2.0, %v194_v18  ;;  %v295_v21 = vrot.slane %v284_v19, %v294_v14  ;;  %v396_v22 = vpop.f32.mrb[1].mxu1 }
  0xf1   : > { %v291_v23 = vadd.f32 %v289_v17, %v208_v16 }
  0xf2   : > { %v290_v24 = vadd.f32 %v288_v20, %v205_v12 }
  0xf3   : > { %v297_v25 = vadd.f32 %v295_v21, %v291_v23 }
  0xf4   : > { %v296_v26 = vadd.f32 %v295_v21, %v290_v24 }
  0xf5   : > { %300 = vst.msk [vmem:[%s116_s14 + $0x8] sm:$0xff] %vm298_vm3, %v297_v25 }
  0xf6   : > { %299 = vst.msk [vmem:[%s116_s14] sm:$0xff] %vm298_vm3, %v296_v26 }
  0xf7 PF: > { %s11_s6 = sadd.s32 1, %s425_s6  }
  0xf8   : > { %p8_p4 = scmp.ge.s32.totalorder %s11_s6, 4  }
  0xfa   :  { %10 = sbr.rel (!%p8_p4) target bundleno = 1 (0x1), region = 54 }

// kernel: gcn3d_forward.15
= control target key start
LH: loop header
LB: loop body
LE: loop exit
PB: predicated region body
PF: predicated region fallthrough
CT: control target
= control target key end

     0   :  { %s660_s6 = smov 0   ;;  %s759_s0 = inlined_call_operand.vmem [shape: f32[2,64,3], index: 0, kind: input, shape index: {}]   ;;  %s760_s1 = inlined_call_operand.vmem [shape: f32[2,64,64], index: 1, kind: output, shape index: {}]  }
   0x1 LB: > { %s476_s7 = sadd.s32 4294967295, %s644_s6   ;;  %p480_p0 = scmp.ge.s32.totalorder %s644_s6, 1  ;;  %s644_s6 = sphi %s660_s6, %s11_s6  }
   0x2   : > { %p87_p1 = scmp.lt.s32.totalorder %s644_s6, 3 }
   0x4   : > { %p88_p2 = pnand %p480_p0, %p87_p1 }
   0x5   : > { %p107_p3 = scmp.lt.s32.totalorder (!%p88_p2), %s476_s7, 1  ;;  %v646_v0 = vmov (!%p88_p2), 0.0|0.0   ;;  %vm647_vm0 = vmmov (!%p88_p2), 0   ;;  %v648_v1 = vmov (!%p88_p2), 0.0   ;;  %vm133_vm1 = vcmask (!%p88_p2), 23552  }
   0x6   : > { %91 = sbr.rel (%p88_p2) target bundleno = 283 (0x11b), region = 24  ;;  %610 = vmatprep.subr.bf16.mxu1 (!%p88_p2), %v646_v0  ;;  %583 = vmatprep.mubr.msk.f32.mxu1 (!%p88_p2), %vm647_vm0, %v648_v1  ;;  %vm680_vm2 = vmpackc.low (!%p88_p2), %vm133_vm1, %vm133_vm1  ;;  %v649_v35 = vmov (!%p88_p2), 1.0   ;;  %v400_v36 = vlaneseq (!%p88_p2)  ;;  %vm412_vm3 = vcmask (!%p88_p2), 523264  }
   0x8   : > { %v401_v39 = vshrl.u32 (!%p88_p2), %v400_v36, 7 }
   0xa   : > { %v402_v40 = vsub.s32 (!%p88_p2), 0, %v401_v39 }
   0xd   : > { %s764_s7 = smov (!%p107_p3, %s476_s7), 1 }
   0xe   : > { %s512_s8 = sshll.u32 %s764_s7, 6 }
   0xf   : > { %s676_s11 = scalar_lea.vmem %s759_s0, %s512_s8  ;;  %s738_s14 = scalar_lea.vmem %s760_s1, %s512_s8 }
  0x10   : > { %v117_v3 = vld [vmem:[%s676_s11] sm:$0xff]  ;;  %v118_v4 = vld [vmem:[%s676_s11 + $0x8] sm:$0xff]  ;;  %v119_v5 = vld [vmem:[%s676_s11 + $0x10] sm:$0xff] }
  0x11   : > { %v586_v6 = vpack.c.bf16 %v118_v4, %v117_v3  ;;  %v125_v7 = vmul.f32 %v117_v3, %v117_v3  ;;  %v126_v8 = vmul.f32 %v118_v4, %v118_v4  ;;  %v120_v9 = vld [vmem:[%s676_s11 + $0x18] sm:$0xff]  ;;  %555 = vmatprep.mubr.msk.f32.mxu0 %vm133_vm1, %v117_v3  ;;  %v127_v11 = vmul.f32 %v119_v5, %v119_v5  ;;  %v121_v16 = vld [vmem:[%s676_s11 + $0x20] sm:$0xff]  ;;  %v122_v17 = vld [vmem:[%s676_s11 + $0x28] sm:$0xff] }
  0x12   : > { %v592_v10 = vpack.c.bf16 %v120_v9, %v119_v5  ;;  %v128_v15 = vmul.f32 %v120_v9, %v120_v9  ;;  %v598_v21 = vpack.c.bf16 %v122_v17, %v121_v16  ;;  %v129_v22 = vmul.f32 %v121_v16, %v121_v16  ;;  %v123_v24 = vld [vmem:[%s676_s11 + $0x30] sm:$0xff]  ;;  %v124_v25 = vld [vmem:[%s676_s11 + $0x38] sm:$0xff] }
  0x13   : > { %588 = vmatprep.subr.msk.bf16.mxu0 %vm680_vm2, %v586_v6  ;;  %v611_v12 = vpack.c.bf16 %v126_v8, %v125_v7  ;;  %v263_v13 = vsel %vm133_vm1, %v125_v7, 0.0  ;;  %v269_v14 = vsel %vm133_vm1, %v127_v11, 0.0  ;;  %v266_v18 = vsel %vm133_vm1, %v126_v8, 0.0 }
  0x14   : > { %591 = vmatpush3.bf16.xpose.msk.msra.mxu0 %vm680_vm2, %v586_v6  ;;  %264 = vadd.xlane.f32.xlu0 %v263_v13  ;;  %v272_v19 = vsel %vm133_vm1, %v128_v15, 0.0  ;;  %v615_v20 = vpack.c.bf16 %v128_v15, %v127_v11  ;;  %v130_v23 = vmul.f32 %v122_v17, %v122_v17  ;;  %v275_v26 = vsel %vm133_vm1, %v129_v22, 0.0 }
  0x15   : > { %613 = vmatpush3.bf16.xpose.msk.msra.mxu1 %vm680_vm2, %v611_v12  ;;  %594 = vmatprep.subr.msk.bf16.mxu0 %vm680_vm2, %v592_v10  ;;  %v131_v28 = vmul.f32 %v123_v24, %v123_v24  ;;  %v132_v29 = vmul.f32 %v124_v25, %v124_v25  ;;  %v604_v33 = vpack.c.bf16 %v124_v25, %v123_v24 }
  0x16   : > { %614 = vmatprep.subr.bf16.mxu1 %v646_v0  ;;  %270 = vadd.xlane.f32.xlu1 %v269_v14  ;;  %v278_v27 = vsel %vm133_vm1, %v130_v23, 0.0  ;;  %v619_v32 = vpack.c.bf16 %v130_v23, %v129_v22 }
  0x17   : > { %v281_v30 = vsel %vm133_vm1, %v131_v28, 0.0  ;;  %v284_v31 = vsel %vm133_vm1, %v132_v29, 0.0  ;;  %v623_v34 = vpack.c.bf16 %v132_v29, %v131_v28 }
  0x18   : > { %267 = vadd.xlane.f32.xlu0 %v266_v18 }
  0x1a   : > { %273 = vadd.xlane.f32.xlu1 %v272_v19 }
  0x1c   : > { %597 = vmatpush3.bf16.xpose.msk.msra.mxu0 %vm680_vm2, %v592_v10  ;;  %276 = vadd.xlane.f32.xlu0 %v275_v26 }
  0x1d   : > { %617 = vmatpush3.bf16.xpose.msk.msra.mxu1 %vm680_vm2, %v615_v20  ;;  %600 = vmatprep.subr.msk.bf16.mxu0 %vm680_vm2, %v598_v21 }
  0x1e   : > { %618 = vmatprep.subr.bf16.mxu1 %v646_v0  ;;  %279 = vadd.xlane.f32.xlu1 %v278_v27 }
  0x20   : > { %282 = vadd.xlane.f32.xlu0 %v281_v30 }
  0x22   : > { %285 = vadd.xlane.f32.xlu1 %v284_v31 }
  0x24   : > { %603 = vmatpush3.bf16.xpose.msk.msra.mxu0 %vm680_vm2, %v598_v21 }
  0x25   : > { %621 = vmatpush3.bf16.xpose.msk.msra.mxu1 %vm680_vm2, %v619_v32  ;;  %606 = vmatprep.subr.msk.bf16.mxu0 %vm680_vm2, %v604_v33 }
  0x26   : > { %622 = vmatprep.subr.bf16.mxu1 %v646_v0 }
  0x2c   : > { %609 = vmatpush3.bf16.xpose.msk.msra.mxu0 %vm680_vm2, %v604_v33 }
  0x2d   : > { %625 = vmatpush3.bf16.xpose.msk.msra.mxu1 %vm680_vm2, %v623_v34 }
  0x33   : > { %556 = vmatmul.mubr.msk.f32.vlgmr.msra.gmra.mrb[0].mxu0 %vm133_vm1, %v118_v4 }
  0x34   : > { %584 = vmatmul.mubr.msk.f32.vlgmr.msra.gmra.mrb[0].mxu1 %vm133_vm1, %v649_v35  ;;  %558 = vmatprep.mubr.msk.f32.mxu0 %vm133_vm1, %v119_v5 }
  0x37   : > { %559 = vmatmul.mubr.msk.f32.gmra.mrb[2].mxu0 %vm133_vm1, %v120_v9 }
  0x38   : > { %561 = vmatprep.mubr.msk.f32.mxu0 %vm133_vm1, %v121_v16 }
  0x3b   : > { %562 = vmatmul.mubr.msk.f32.gmra.mrb[4].mxu0 %vm133_vm1, %v122_v17 }
  0x3c   : > { %564 = vmatprep.mubr.msk.f32.mxu0 %vm133_vm1, %v123_v24 }
  0x3f   : > { %565 = vmatmul.mubr.msk.f32.gmra.mrb[6].mxu0 %vm133_vm1, %v124_v25 }
  0xa1   : > { %v265_v37 = vpop.xlane.xlu0 %264 }
  0xa3   : > { %v271_v38 = vpop.xlane.xlu1 %270 }
  0xa5   : > { %v268_v41 = vpop.xlane.xlu0 %267 }
  0xa7   : > { %v274_v43 = vpop.xlane.xlu1 %273 }
  0xa9   : > { %v277_v60 = vpop.xlane.xlu0 %276 }
  0xab   : > { %v280_v58 = vpop.xlane.xlu1 %279 }
  0xad   : > { %v283_v11 = vpop.xlane.xlu0 %282 }
  0xaf   : > { %v286_v7 = vpop.xlane.xlu1 %285 }
 0x106   : > { %v557_v42 = vpop.f32.mrb[0].mxu0 }
 0x107   : > { %v385_v44 = vmul.f32 -2.0, %v557_v42  ;;  %v224_v45 = vpop.f32.mrb[1].mxu0  ;;  %v380_v46 = vpop.f32.mrb[0].mxu1 }
 0x108   : > { %v384_v47 = vmul.f32 -2.0, %v224_v45  ;;  %v403_v48 = vrot.slane %v380_v46, %v402_v40  ;;  %v585_v49 = vpop.f32.mrb[1].mxu1 }
 0x109   : > { %v393_v50 = vadd.f32 %v385_v44, %v268_v41 }
 0x10a   : > { %v392_v51 = vadd.f32 %v384_v47, %v265_v37  ;;  %v560_v52 = vpop.f32.mrb[2].mxu0 }
 0x10b   : > { %v405_v53 = vadd.f32 %v403_v48, %v393_v50  ;;  %v387_v54 = vmul.f32 -2.0, %v560_v52  ;;  %v234_v55 = vpop.f32.mrb[3].mxu0 }
 0x10c   : > { %v404_v56 = vadd.f32 %v403_v48, %v392_v51  ;;  %v386_v57 = vmul.f32 -2.0, %v234_v55 }
 0x10d   : > { %414 = vst.msk [vmem:[%s738_s14 + $0x8] sm:$0xff] %vm412_vm3, %v405_v53  ;;  %v395_v59 = vadd.f32 %v387_v54, %v274_v43 }
 0x10e   : > { %413 = vst.msk [vmem:[%s738_s14] sm:$0xff] %vm412_vm3, %v404_v56  ;;  %v394_v61 = vadd.f32 %v386_v57, %v271_v38  ;;  %v563_v62 = vpop.f32.mrb[4].mxu0 }
 0x10f   : > { %v407_v63 = vadd.f32 %v403_v48, %v395_v59  ;;  %v389_v0 = vmul.f32 -2.0, %v563_v62  ;;  %v244_v1 = vpop.f32.mrb[5].mxu0 }
 0x110   : > { %v406_v2 = vadd.f32 %v403_v48, %v394_v61  ;;  %v388_v3 = vmul.f32 -2.0, %v244_v1 }
 0x111   : > { %416 = vst.msk [vmem:[%s738_s14 + $0x18] sm:$0xff] %vm412_vm3, %v407_v63  ;;  %v397_v4 = vadd.f32 %v389_v0, %v280_v58 }
 0x112   : > { %415 = vst.msk [vmem:[%s738_s14 + $0x10] sm:$0xff] %vm412_vm3, %v406_v2  ;;  %v396_v5 = vadd.f32 %v388_v3, %v277_v60  ;;  %v566_v6 = vpop.f32.mrb[6].mxu0 }
 0x113   : > { %v409_v8 = vadd.f32 %v403_v48, %v397_v4  ;;  %v391_v9 = vmul.f32 -2.0, %v566_v6  ;;  %v254_v10 = vpop.f32.mrb[7].mxu0 }
 0x114   : > { %v408_v12 = vadd.f32 %v403_v48, %v396_v5  ;;  %v390_v13 = vmul.f32 -2.0, %v254_v10 }
 0x115   : > { %418 = vst.msk [vmem:[%s738_s14 + $0x28] sm:$0xff] %vm412_vm3, %v409_v8  ;;  %v399_v14 = vadd.f32 %v391_v9, %v286_v7 }
 0x116   : > { %417 = vst.msk [vmem:[%s738_s14 + $0x20] sm:$0xff] %vm412_vm3, %v408_v12  ;;  %v398_v15 = vadd.f32 %v390_v13, %v283_v11 }
 0x117   : > { %v411_v16 = vadd.f32 %v403_v48, %v399_v14 }
 0x118   : > { %v410_v17 = vadd.f32 %v403_v48, %v398_v15 }
 0x119   : > { %420 = vst.msk [vmem:[%s738_s14 + $0x38] sm:$0xff] %vm412_vm3, %v411_v16 }
 0x11a   : > { %419 = vst.msk [vmem:[%s738_s14 + $0x30] sm:$0xff] %vm412_vm3, %v410_v17 }
 0x11b PF: > { %s11_s6 = sadd.s32 1, %s644_s6  }
 0x11c   : > { %p8_p4 = scmp.ge.s32.totalorder %s11_s6, 4  }
 0x11e   :  { %10 = sbr.rel (!%p8_p4) target bundleno = 1 (0x1), region = 54 }

// kernel: gcn3d_forward.16
= control target key start
LH: loop header
LB: loop body
LE: loop exit
PB: predicated region body
PF: predicated region fallthrough
CT: control target
= control target key end

     0   :  { %s822_s9 = smov 0   ;;  %s1198_s0 = inlined_call_operand.vmem [shape: f32[2,192,3], index: 0, kind: input, shape index: {}]   ;;  %s1199_s1 = inlined_call_operand.vmem [shape: f32[3,64], index: 1, kind: input, shape index: {}]   ;;  %s1200_s2 = inlined_call_operand.vmem [shape: f32[2,64,32], index: 2, kind: output, shape index: {}]  }
   0x1 LB: > { %s765_s10 = sadd.s32 4294967295, %s801_s9   ;;  %p769_p0 = scmp.ge.s32.totalorder %s801_s9, 1  ;;  %s801_s9 = sphi %s822_s9, %s12_s9  }
   0x2   : > { %p112_p1 = scmp.lt.s32.totalorder %s801_s9, 3 }
   0x4   : > { %p113_p2 = pnand %p769_p0, %p112_p1 }
   0x5   : > { %p134_p3 = scmp.lt.s32.totalorder (!%p113_p2), %s765_s10, 1  ;;  %v803_v0 = vmov (!%p113_p2), 0   ;;  %v804_v25 = vmov (!%p113_p2), 1   ;;  %v805_v26 = vmov (!%p113_p2), 2   ;;  %v289_v45 = vlaneseq (!%p113_p2)  ;;  %v992_v55 = vld [vmem:[%s1199_s1] sm:$0x7] (!%p113_p2) }
   0x6   : > { %116 = sbr.rel (%p113_p2) target bundleno = 420 (0x1a4), region = 28  ;;  %790 = vset.pattern.permute.xlu1 (!%p113_p2), %v803_v0  ;;  %789 = vset.pattern.permute.xlu0 (!%p113_p2), %v803_v0  ;;  %s806_s17 = smov (!%p113_p2), 96   ;;  %vm701_vm0 = vcmask (!%p113_p2), 261120  }
   0x7   : > { %v977_v48 = vshrl.u32 (!%p113_p2), %v289_v45, 7 }
   0x9   : > { %v415_v51 = vsub.s32 (!%p113_p2), 1, %v977_v48  ;;  %v291_v52 = vsub.s32 (!%p113_p2), 0, %v977_v48 }
   0xb   : > { %v995_v56 = vrot.slane (!%p113_p2), %v992_v55, %v415_v51  ;;  %v998_v57 = vrot.slane (!%p113_p2), %v992_v55, %v291_v52 }
   0xd   : > { %s1202_s10 = smov (!%p134_p3, %s765_s10), 1 }
   0xe   : > { %s776_s11 = smul.u32 192, %s1202_s10  ;;  %s775_s18 = sshll.u32 %s1202_s10, 6 }
   0xf   : > { %s1177_s21 = scalar_lea.vmem %s1200_s2, %s775_s18 }
  0x10   : > { %s836_s14 = scalar_lea.vmem %s1198_s0, %s776_s11 }
  0x11   : > { %v839_v1 = vld [vmem:[%s836_s14 + $0x10] sm:$0xff]  ;;  %v842_v2 = vld [vmem:[%s836_s14] sm:$0xff]  ;;  %v847_v3 = vld [vmem:[%s836_s14 + $0x18] sm:$0xff] }
  0x12   : > { %181 = vperm.xlu1 %790, %v839_v1   ;;  %171 = vperm.xlu0 %789, %v842_v2   ;;  %v850_v4 = vld [vmem:[%s836_s14 + $0x8] sm:$0xff]  ;;  %v858_v6 = vld [vmem:[%s836_s14 + $0x20] sm:$0xff]  ;;  %v863_v7 = vld [vmem:[%s836_s14 + $0x38] sm:$0xff] }
  0x13   : > { %v855_v5 = vld [vmem:[%s836_s14 + $0x28] sm:$0xff]  ;;  %v866_v8 = vld [vmem:[%s836_s14 + $0x30] sm:$0xff]  ;;  %v874_v10 = vld [vmem:[%s836_s14 + $0x40] sm:$0xff] }
  0x14   : > { %v871_v9 = vld [vmem:[%s836_s14 + $0x48] sm:$0xff]  ;;  %v879_v11 = vld [vmem:[%s836_s14 + $0x58] sm:$0xff]  ;;  %v882_v12 = vld [vmem:[%s836_s14 + $0x50] sm:$0xff] }
  0x15   : > { %v887_v13 = vld [vmem:[%s836_s14 + $0x68] sm:$0xff]  ;;  %v890_v14 = vld [vmem:[%s836_s14 + $0x60] sm:$0xff]  ;;  %v895_v15 = vld [vmem:[%s836_s14 + $0x78] sm:$0xff] }
  0x16   : > { %186 = vperm.xlu1 %790, %v847_v3   ;;  %176 = vperm.xlu0 %789, %v850_v4   ;;  %v158_v16 = vld [vmem:[%s836_s14 + $0x70] sm:$0xff]  ;;  %v900_v17 = vld [vmem:[%s836_s14 + $0x88] sm:$0xff]  ;;  %v160_v18 = vld [vmem:[%s836_s14 + $0x80] sm:$0xff] }
  0x17   : > { %v905_v19 = vld [vmem:[%s836_s14 + $0x98] sm:$0xff]  ;;  %v162_v20 = vld [vmem:[%s836_s14 + $0x90] sm:$0xff]  ;;  %v910_v21 = vld [vmem:[%s836_s14 + $0xa8] sm:$0xff] }
  0x18   : > { %v164_v22 = vld [vmem:[%s836_s14 + $0xa0] sm:$0xff]  ;;  %v915_v23 = vld [vmem:[%s836_s14 + $0xb8] sm:$0xff]  ;;  %v166_v24 = vld [vmem:[%s836_s14 + $0xb0] sm:$0xff] }
  0x1a   : > { %196 = vperm.xlu1 %790, %v855_v5   ;;  %191 = vperm.xlu0 %789, %v858_v6  }
  0x1e   : > { %206 = vperm.xlu1 %790, %v863_v7   ;;  %201 = vperm.xlu0 %789, %v866_v8  }
  0x22   : > { %216 = vperm.xlu1 %790, %v871_v9   ;;  %211 = vperm.xlu0 %789, %v874_v10  }
  0x26   : > { %226 = vperm.xlu1 %790, %v879_v11   ;;  %221 = vperm.xlu0 %789, %v882_v12  }
  0x2a   : > { %236 = vperm.xlu1 %790, %v887_v13   ;;  %231 = vperm.xlu0 %789, %v890_v14  }
  0x2e   : > { %246 = vperm.xlu1 %790, %v895_v15   ;;  %241 = vperm.xlu0 %789, %v158_v16  }
  0x32   : > { %256 = vperm.xlu1 %790, %v900_v17   ;;  %251 = vperm.xlu0 %789, %v160_v18  }
  0x36   : > { %266 = vperm.xlu1 %790, %v905_v19   ;;  %261 = vperm.xlu0 %789, %v162_v20  }
  0x3a   : > { %276 = vperm.xlu1 %790, %v910_v21   ;;  %271 = vperm.xlu0 %789, %v164_v22  }
  0x3e   : > { %286 = vperm.xlu1 %790, %v915_v23   ;;  %281 = vperm.xlu0 %789, %v166_v24  }
  0x42   : > { %792 = vset.pattern.permute.xlu1 %v804_v25  ;;  %791 = vset.pattern.permute.xlu0 %v804_v25 }
  0x43   : > { %322 = vperm.xlu1 %792, %v850_v4   ;;  %318 = vperm.xlu0 %791, %v842_v2  }
  0x47   : > { %326 = vperm.xlu1 %792, %v839_v1   ;;  %330 = vperm.xlu0 %791, %v847_v3  }
  0x4b   : > { %334 = vperm.xlu1 %792, %v858_v6   ;;  %338 = vperm.xlu0 %791, %v855_v5  }
  0x4f   : > { %342 = vperm.xlu1 %792, %v866_v8   ;;  %346 = vperm.xlu0 %791, %v863_v7  }
  0x53   : > { %350 = vperm.xlu1 %792, %v874_v10   ;;  %354 = vperm.xlu0 %791, %v871_v9  }
  0x57   : > { %358 = vperm.xlu1 %792, %v882_v12   ;;  %362 = vperm.xlu0 %791, %v879_v11  }
  0x5b   : > { %366 = vperm.xlu1 %792, %v890_v14   ;;  %370 = vperm.xlu0 %791, %v887_v13  }
  0x5f   : > { %374 = vperm.xlu1 %792, %v158_v16   ;;  %378 = vperm.xlu0 %791, %v895_v15  }
  0x63   : > { %382 = vperm.xlu1 %792, %v160_v18   ;;  %386 = vperm.xlu0 %791, %v900_v17  }
  0x67   : > { %390 = vperm.xlu1 %792, %v162_v20   ;;  %394 = vperm.xlu0 %791, %v905_v19  }
  0x6b   : > { %398 = vperm.xlu1 %792, %v164_v22   ;;  %402 = vperm.xlu0 %791, %v910_v21  }
  0x6f   : > { %406 = vperm.xlu1 %792, %v166_v24   ;;  %410 = vperm.xlu0 %791, %v915_v23  }
  0x73   : > { %793 = vset.pattern.permute.xlu1 %v805_v26  ;;  %794 = vset.pattern.permute.xlu0 %v805_v26 }
  0x74   : > { %466 = vperm.xlu1 %793, %v842_v2   ;;  %470 = vperm.xlu0 %794, %v850_v4  }
  0x78   : > { %474 = vperm.xlu1 %793, %v839_v1   ;;  %482 = vperm.xlu0 %794, %v858_v6  }
  0x7c   : > { %478 = vperm.xlu1 %793, %v847_v3   ;;  %490 = vperm.xlu0 %794, %v866_v8  }
  0x80   : > { %486 = vperm.xlu1 %793, %v855_v5   ;;  %498 = vperm.xlu0 %794, %v874_v10  }
  0x84   : > { %494 = vperm.xlu1 %793, %v863_v7   ;;  %506 = vperm.xlu0 %794, %v882_v12  }
  0x88   : > { %502 = vperm.xlu1 %793, %v871_v9   ;;  %514 = vperm.xlu0 %794, %v890_v14  }
  0x8c   : > { %510 = vperm.xlu1 %793, %v879_v11   ;;  %522 = vperm.xlu0 %794, %v158_v16  }
  0x90   : > { %518 = vperm.xlu1 %793, %v887_v13   ;;  %530 = vperm.xlu0 %794, %v160_v18  }
  0x91   : > { %v182_v27 = vpop.permute.xlu1 %181  ;;  %v172_v28 = vpop.permute.xlu0 %171 }
  0x92   : > { %v293_v60 = vmul.f32 %v998_v57, %v172_v28  ;;  %v295_v4 = vmul.f32 %v998_v57, %v182_v27 }
  0x94   : > { %526 = vperm.xlu1 %793, %v895_v15   ;;  %538 = vperm.xlu0 %794, %v162_v20  }
  0x95   : > { %v187_v29 = vpop.permute.xlu1 %186  ;;  %v177_v30 = vpop.permute.xlu0 %176 }
  0x96   : > { %v294_v61 = vmul.f32 %v998_v57, %v177_v30  ;;  %v296_v5 = vmul.f32 %v998_v57, %v187_v29 }
  0x98   : > { %534 = vperm.xlu1 %793, %v900_v17   ;;  %546 = vperm.xlu0 %794, %v164_v22  }
  0x99   : > { %v197_v31 = vpop.permute.xlu1 %196  ;;  %v192_v32 = vpop.permute.xlu0 %191 }
  0x9a   : > { %v298_v12 = vmul.f32 %v998_v57, %v197_v31  ;;  %v297_v13 = vmul.f32 %v998_v57, %v192_v32 }
  0x9c   : > { %542 = vperm.xlu1 %793, %v905_v19   ;;  %554 = vperm.xlu0 %794, %v166_v24  }
  0x9d   : > { %v207_v33 = vpop.permute.xlu1 %206  ;;  %v202_v34 = vpop.permute.xlu0 %201 }
  0x9e   : > { %v300_v20 = vmul.f32 %v998_v57, %v207_v33 }
  0xa0   : > { %550 = vperm.xlu1 %793, %v910_v21   ;;  %v299_v21 = vmul.f32 %v998_v57, %v202_v34 }
  0xa1   : > { %v217_v35 = vpop.permute.xlu1 %216  ;;  %v956_v36 = vpop.permute.xlu0 %211 }
  0xa2   : > { %v302_v28 = vmul.f32 %v998_v57, %v217_v35 }
  0xa4   : > { %558 = vperm.xlu1 %793, %v915_v23  }
  0xa5   : > { %v227_v37 = vpop.permute.xlu1 %226  ;;  %v959_v38 = vpop.permute.xlu0 %221 }
  0xa6   : > { %v304_v33 = vmul.f32 %v998_v57, %v227_v37 }
  0xa9   : > { %v961_v39 = vpop.permute.xlu1 %236  ;;  %v963_v40 = vpop.permute.xlu0 %231 }
  0xad   : > { %v965_v41 = vpop.permute.xlu1 %246  ;;  %v967_v42 = vpop.permute.xlu0 %241 }
  0xb1   : > { %v969_v43 = vpop.permute.xlu1 %256  ;;  %v971_v44 = vpop.permute.xlu0 %251 }
  0xb5   : > { %v973_v46 = vpop.permute.xlu1 %266  ;;  %v975_v47 = vpop.permute.xlu0 %261 }
  0xb9   : > { %v979_v49 = vpop.permute.xlu1 %276  ;;  %v981_v50 = vpop.permute.xlu0 %271 }
  0xbd   : > { %v985_v53 = vpop.permute.xlu1 %286  ;;  %v987_v54 = vpop.permute.xlu0 %281 }
  0xc2   : > { %v323_v58 = vpop.permute.xlu1 %322  ;;  %v319_v59 = vpop.permute.xlu0 %318 }
  0xc3   : > { %v418_v62 = vmul.f32 %v995_v56, %v323_v58  ;;  %v417_v63 = vmul.f32 %v995_v56, %v319_v59  ;;  %v306_v58 = vmul.f32 %v998_v57, %v961_v39 }
  0xc5   : > { %v1004_v0 = vadd.f32 %v418_v62, %v294_v61  ;;  %v1006_v1 = vadd.f32 %v417_v63, %v293_v60  ;;  %v308_v62 = vmul.f32 %v998_v57, %v965_v41 }
  0xc6   : > { %v327_v2 = vpop.permute.xlu1 %326  ;;  %v331_v3 = vpop.permute.xlu0 %330 }
  0xc7   : > { %v419_v6 = vmul.f32 %v995_v56, %v327_v2  ;;  %v420_v7 = vmul.f32 %v995_v56, %v331_v3 }
  0xc9   : > { %v1012_v8 = vadd.f32 %v419_v6, %v295_v4  ;;  %v1014_v9 = vadd.f32 %v420_v7, %v296_v5 }
  0xca   : > { %v335_v10 = vpop.permute.xlu1 %334  ;;  %v339_v11 = vpop.permute.xlu0 %338 }
  0xcb   : > { %v421_v14 = vmul.f32 %v995_v56, %v335_v10  ;;  %v422_v15 = vmul.f32 %v995_v56, %v339_v11 }
  0xcd   : > { %v1020_v16 = vadd.f32 %v421_v14, %v297_v13  ;;  %v1022_v17 = vadd.f32 %v422_v15, %v298_v12  ;;  %v563_v12 = vsub.s32 2, %v977_v48 }
  0xce   : > { %v343_v18 = vpop.permute.xlu1 %342  ;;  %v347_v19 = vpop.permute.xlu0 %346 }
  0xcf   : > { %v423_v22 = vmul.f32 %v995_v56, %v343_v18  ;;  %v424_v23 = vmul.f32 %v995_v56, %v347_v19  ;;  %v1066_v15 = vrot.slane %v992_v55, %v563_v12 }
  0xd1   : > { %v1028_v24 = vadd.f32 %v423_v22, %v299_v21  ;;  %v1030_v25 = vadd.f32 %v424_v23, %v300_v20  ;;  %v301_v22 = vmul.f32 %v998_v57, %v956_v36 }
  0xd2   : > { %v351_v26 = vpop.permute.xlu1 %350  ;;  %v355_v27 = vpop.permute.xlu0 %354 }
  0xd3   : > { %v426_v29 = vmul.f32 %v995_v56, %v355_v27  ;;  %v425_v20 = vmul.f32 %v995_v56, %v351_v26 }
  0xd5   : > { %v1034_v30 = vadd.f32 %v426_v29, %v302_v28  ;;  %v449_v29 = vadd.f32 %v425_v20, %v301_v22 }
  0xd6   : > { %v359_v31 = vpop.permute.xlu1 %358  ;;  %v363_v32 = vpop.permute.xlu0 %362 }
  0xd7   : > { %v428_v34 = vmul.f32 %v995_v56, %v363_v32  ;;  %v427_v23 = vmul.f32 %v995_v56, %v359_v31 }
  0xd9   : > { %v1038_v45 = vadd.f32 %v428_v34, %v304_v33  ;;  %v303_v33 = vmul.f32 %v998_v57, %v959_v38 }
  0xda   : > { %v367_v51 = vpop.permute.xlu1 %366  ;;  %v371_v52 = vpop.permute.xlu0 %370 }
  0xdb   : > { %v430_v59 = vmul.f32 %v995_v56, %v371_v52  ;;  %v451_v52 = vadd.f32 %v427_v23, %v303_v33  ;;  %v429_v36 = vmul.f32 %v995_v56, %v367_v51 }
  0xdd   : > { %v1043_v35 = vadd.f32 %v430_v59, %v306_v58 }
  0xde   : > { %v375_v60 = vpop.permute.xlu1 %374  ;;  %v379_v61 = vpop.permute.xlu0 %378 }
  0xdf   : > { %v432_v37 = vmul.f32 %v995_v56, %v379_v61  ;;  %v431_v38 = vmul.f32 %v995_v56, %v375_v60 }
  0xe1   : > { %v1048_v63 = vadd.f32 %v432_v37, %v308_v62 }
  0xe2   : > { %v383_v2 = vpop.permute.xlu1 %382  ;;  %v1050_v3 = vpop.permute.xlu0 %386 }
  0xe6   : > { %v1052_v4 = vpop.permute.xlu1 %390  ;;  %v1054_v5 = vpop.permute.xlu0 %394 }
  0xea   : > { %v1056_v39 = vpop.permute.xlu1 %398  ;;  %v1058_v6 = vpop.permute.xlu0 %402 }
  0xee   : > { %v1060_v7 = vpop.permute.xlu1 %406  ;;  %v1062_v10 = vpop.permute.xlu0 %410 }
  0xf3   : > { %v467_v41 = vpop.permute.xlu1 %466  ;;  %v471_v11 = vpop.permute.xlu0 %470 }
  0xf4   : > { %v565_v21 = vmul.f32 %v1066_v15, %v467_v41  ;;  %v566_v26 = vmul.f32 %v1066_v15, %v471_v11  ;;  %v305_v41 = vmul.f32 %v998_v57, %v963_v40  ;;  %v307_v11 = vmul.f32 %v998_v57, %v967_v42 }
  0xf6   : > { %v589_v48 = vadd.f32 %v565_v21, %v1006_v1  ;;  %v590_v51 = vadd.f32 %v566_v26, %v1004_v0  ;;  %v309_v0 = vmul.f32 %v998_v57, %v971_v44 }
  0xf7   : > { %v475_v13 = vpop.permute.xlu1 %474  ;;  %v483_v14 = vpop.permute.xlu0 %482 }
  0xf8   : > { %v567_v32 = vmul.f32 %v1066_v15, %v475_v13  ;;  %v569_v31 = vmul.f32 %v1066_v15, %v483_v14  ;;  %v613_v61 = vmax.f32 %v589_v48, 0.0  ;;  %v453_v14 = vadd.f32 %v429_v36, %v305_v41 }
  0xf9   : > { %v433_v48 = vmul.f32 %v995_v56, %v383_v2 }
  0xfa   : > { %v591_v1 = vadd.f32 %v567_v32, %v1012_v8  ;;  %v593_v20 = vadd.f32 %v569_v31, %v1020_v16  ;;  %v614_v32 = vmax.f32 %v590_v51, 0.0 }
  0xfb   : > { %v479_v18 = vpop.permute.xlu1 %478  ;;  %v491_v19 = vpop.permute.xlu0 %490 }
  0xfc   : > { %v568_v8 = vmul.f32 %v1066_v15, %v479_v18  ;;  %v571_v21 = vmul.f32 %v1066_v15, %v491_v19  ;;  %v615_v40 = vmax.f32 %v591_v1, 0.0 }
  0xfe   : > { %v592_v33 = vadd.f32 %v568_v8, %v1014_v9  ;;  %v595_v26 = vadd.f32 %v571_v21, %v1028_v24  ;;  %v310_v8 = vmul.f32 %v998_v57, %v969_v43  ;;  %v434_v21 = vmul.f32 %v995_v56, %v1050_v3 }
  0xff   : > { %v487_v27 = vpop.permute.xlu1 %486  ;;  %v499_v28 = vpop.permute.xlu0 %498 }
 0x100   : > { %v573_v55 = vmul.f32 %v1066_v15, %v499_v28 }
 0x102   : > { %v597_v34 = vadd.f32 %v573_v55, %v449_v29  ;;  %v455_v29 = vadd.f32 %v431_v38, %v307_v11  ;;  %v617_v55 = vmax.f32 %v593_v20, 0.0 }
 0x103   : > { %v495_v58 = vpop.permute.xlu1 %494  ;;  %v507_v59 = vpop.permute.xlu0 %506 }
 0x104   : > { %v621_v62 = vmax.f32 %v597_v34, 0.0  ;;  %v575_v37 = vmul.f32 %v1066_v15, %v507_v59  ;;  %v570_v34 = vmul.f32 %v1066_v15, %v487_v27  ;;  %v616_v27 = vmax.f32 %v592_v33, 0.0 }
 0x105   : > { %v572_v38 = vmul.f32 %v1066_v15, %v495_v58 }
 0x106   : > { %v1089_v12 = vmax.f32 %v613_v61, %v621_v62  ;;  %v599_v13 = vadd.f32 %v575_v37, %v451_v52  ;;  %v457_v61 = vadd.f32 %v433_v48, %v309_v0  ;;  %v619_v37 = vmax.f32 %v595_v26, 0.0 }
 0x107   : > { %v503_v22 = vpop.permute.xlu1 %502  ;;  %v515_v23 = vpop.permute.xlu0 %514  ;;  %v594_v41 = vadd.f32 %v570_v34, %v1022_v17  ;;  %v596_v43 = vadd.f32 %v572_v38, %v1030_v25  ;;  %v436_v25 = vmul.f32 %v995_v56, %v1054_v5  ;;  %v439_v26 = vmul.f32 %v995_v56, %v1060_v7 }
 0x108   : > { %v623_v28 = vmax.f32 %v599_v13, 0.0  ;;  %v574_v60 = vmul.f32 %v1066_v15, %v503_v22  ;;  %v577_v42 = vmul.f32 %v1066_v15, %v515_v23  ;;  %v315_v5 = vmul.f32 %v998_v57, %v987_v54 }
 0x109   : > { %v620_v34 = vmax.f32 %v596_v43, 0.0  ;;  %v314_v54 = vmul.f32 %v998_v57, %v979_v49  ;;  %v316_v49 = vmul.f32 %v998_v57, %v985_v53 }
 0x10a   : > { %v1099_v16 = vmax.f32 %v615_v40, %v623_v28  ;;  %v598_v18 = vadd.f32 %v574_v60, %v1034_v30  ;;  %v601_v19 = vadd.f32 %v577_v42, %v453_v14  ;;  %v435_v30 = vmul.f32 %v995_v56, %v1052_v4 }
 0x10b   : > { %v511_v52 = vpop.permute.xlu1 %510  ;;  %v523_v36 = vpop.permute.xlu0 %522  ;;  %v437_v28 = vmul.f32 %v995_v56, %v1056_v39  ;;  %v618_v60 = vmax.f32 %v594_v41, 0.0 }
 0x10c   : > { %v622_v31 = vmax.f32 %v598_v18, 0.0  ;;  %v625_v44 = vmax.f32 %v601_v19, 0.0  ;;  %v576_v59 = vmul.f32 %v1066_v15, %v511_v52  ;;  %v579_v2 = vmul.f32 %v1066_v15, %v523_v36 }
 0x10e   : > { %v1109_v1 = vmax.f32 %v614_v32, %v622_v31  ;;  %v1111_v62 = vmax.f32 %v617_v55, %v625_v44  ;;  %v600_v9 = vadd.f32 %v576_v59, %v1038_v45  ;;  %v603_v24 = vadd.f32 %v579_v2, %v455_v29 }
 0x10f   : > { %v519_v11 = vpop.permute.xlu1 %518  ;;  %v531_v51 = vpop.permute.xlu0 %530  ;;  %v311_v45 = vmul.f32 %v998_v57, %v975_v47  ;;  %v313_v32 = vmul.f32 %v998_v57, %v981_v50 }
 0x110   : > { %v624_v13 = vmax.f32 %v600_v9, 0.0  ;;  %v627_v14 = vmax.f32 %v603_v24, 0.0  ;;  %v578_v20 = vmul.f32 %v1066_v15, %v519_v11  ;;  %v581_v4 = vmul.f32 %v1066_v15, %v531_v51 }
 0x111   : > { %v459_v40 = vadd.f32 %v435_v30, %v311_v45  ;;  %v461_v33 = vadd.f32 %v437_v28, %v313_v32  ;;  %v438_v9 = vmul.f32 %v995_v56, %v1058_v6  ;;  %v463_v24 = vadd.f32 %v439_v26, %v315_v5 }
 0x112   : > { %v1124_v17 = vmax.f32 %v616_v27, %v624_v13  ;;  %v1126_v58 = vmax.f32 %v619_v37, %v627_v14  ;;  %v602_v22 = vadd.f32 %v578_v20, %v1043_v35  ;;  %v605_v23 = vadd.f32 %v581_v4, %v457_v61 }
 0x113   : > { %v527_v42 = vpop.permute.xlu1 %526  ;;  %v539_v0 = vpop.permute.xlu0 %538  ;;  %v458_v35 = vadd.f32 %v434_v21, %v310_v8  ;;  %v462_v14 = vadd.f32 %v438_v9, %v314_v54  ;;  %v440_v4 = vmul.f32 %v995_v56, %v1062_v10 }
 0x114   : > { %v626_v47 = vmax.f32 %v602_v22, 0.0  ;;  %v629_v29 = vmax.f32 %v605_v23, 0.0  ;;  %v580_v3 = vmul.f32 %v1066_v15, %v527_v42  ;;  %v583_v48 = vmul.f32 %v1066_v15, %v539_v0 }
 0x116   : > { %v642_v18 = vmax.f32 %v618_v60, %v626_v47  ;;  %v604_v19 = vadd.f32 %v580_v3, %v1048_v63  ;;  %v607_v55 = vadd.f32 %v583_v48, %v459_v40  ;;  %v645_v39 = vmax.f32 %v1089_v12, %v629_v29 }
 0x117   : > { %v535_v52 = vpop.permute.xlu1 %534  ;;  %v547_v36 = vpop.permute.xlu0 %546  ;;  %v312_v63 = vmul.f32 %v998_v57, %v973_v46  ;;  %v464_v40 = vadd.f32 %v440_v4, %v316_v49 }
 0x118   : > { %v628_v31 = vmax.f32 %v604_v19, 0.0  ;;  %v631_v44 = vmax.f32 %v607_v55, 0.0  ;;  %v582_v50 = vmul.f32 %v1066_v15, %v535_v52  ;;  %v585_v59 = vmul.f32 %v1066_v15, %v547_v36  ;;  %661 = vrot.lane.b32.xlu0 %v645_v39, %s806_s17 }
 0x119   : > { %v460_v30 = vadd.f32 %v436_v25, %v312_v63 }
 0x11a   : > { %v644_v12 = vmax.f32 %v620_v34, %v628_v31  ;;  %v606_v7 = vadd.f32 %v582_v50, %v458_v35  ;;  %v609_v2 = vadd.f32 %v585_v59, %v461_v33  ;;  %v647_v61 = vmax.f32 %v1099_v16, %v631_v44 }
 0x11b   : > { %v543_v27 = vpop.permute.xlu1 %542  ;;  %v555_v37 = vpop.permute.xlu0 %554 }
 0x11c   : > { %v630_v41 = vmax.f32 %v606_v7, 0.0  ;;  %v633_v38 = vmax.f32 %v609_v2, 0.0  ;;  %v584_v11 = vmul.f32 %v1066_v15, %v543_v27  ;;  %v587_v46 = vmul.f32 %v1066_v15, %v555_v37  ;;  %665 = vrot.lane.b32.xlu0 %v647_v61, %s806_s17 }
 0x11e   : > { %v608_v51 = vadd.f32 %v584_v11, %v460_v30  ;;  %v611_v16 = vadd.f32 %v587_v46, %v463_v24  ;;  %v646_v13 = vmax.f32 %v1109_v1, %v630_v41  ;;  %v649_v6 = vmax.f32 %v1111_v62, %v633_v38 }
 0x11f   : > { %v551_v20 = vpop.permute.xlu1 %550 }
 0x120   : > { %v632_v8 = vmax.f32 %v608_v51, 0.0  ;;  %v635_v45 = vmax.f32 %v611_v16, 0.0  ;;  %v586_v21 = vmul.f32 %v1066_v15, %v551_v20  ;;  %663 = vrot.lane.b32.xlu1 %v646_v13, %s806_s17  ;;  %669 = vrot.lane.b32.xlu0 %v649_v6, %s806_s17 }
 0x122   : > { %v610_v1 = vadd.f32 %v586_v21, %v462_v14  ;;  %v648_v62 = vmax.f32 %v1124_v17, %v632_v8  ;;  %v651_v22 = vmax.f32 %v1126_v58, %v635_v45 }
 0x123   : > { %v559_v23 = vpop.permute.xlu1 %558 }
 0x124   : > { %v634_v56 = vmax.f32 %v610_v1, 0.0  ;;  %v588_v10 = vmul.f32 %v1066_v15, %v559_v23  ;;  %667 = vrot.lane.b32.xlu1 %v648_v62, %s806_s17  ;;  %673 = vrot.lane.b32.xlu0 %v651_v22, %s806_s17 }
 0x126   : > { %v612_v28 = vadd.f32 %v588_v10, %v464_v40  ;;  %v650_v60 = vmax.f32 %v642_v18, %v634_v56 }
 0x128   : > { %v636_v43 = vmax.f32 %v612_v28, 0.0  ;;  %671 = vrot.lane.b32.xlu1 %v650_v60, %s806_s17 }
 0x12a   : > { %v652_v53 = vmax.f32 %v644_v12, %v636_v43 }
 0x12c   : > { %675 = vrot.lane.b32.xlu1 %v652_v53, %s806_s17 }
 0x18a   : > { %v662_v57 = vpop.permute.xlu0 %661 }
 0x18b   : > { %v685_v17 = vadd.f32 %v662_v57, %v645_v39 }
 0x18d   : > { %v693_v15 = vmax.f32 %v685_v17, 0.0 }
 0x18e   : > { %v666_v58 = vpop.permute.xlu0 %665 }
 0x18f   : > { %702 = vst.msk [vmem:[%s1177_s21] sm:$0xff] %vm701_vm0, %v693_v15  ;;  %v687_v42 = vadd.f32 %v666_v58, %v647_v61 }
 0x191   : > { %v695_v0 = vmax.f32 %v687_v42, 0.0 }
 0x192   : > { %v664_v47 = vpop.permute.xlu1 %663  ;;  %v670_v29 = vpop.permute.xlu0 %669 }
 0x193   : > { %704 = vst.msk [vmem:[%s1177_s21 + $0x10] sm:$0xff] %vm701_vm0, %v695_v0  ;;  %v686_v3 = vadd.f32 %v664_v47, %v646_v13  ;;  %v689_v48 = vadd.f32 %v670_v29, %v649_v6 }
 0x195   : > { %v694_v32 = vmax.f32 %v686_v3, 0.0  ;;  %v697_v35 = vmax.f32 %v689_v48, 0.0 }
 0x196   : > { %v668_v18 = vpop.permute.xlu1 %667  ;;  %v674_v19 = vpop.permute.xlu0 %673 }
 0x197   : > { %703 = vst.msk [vmem:[%s1177_s21 + $0x8] sm:$0xff] %vm701_vm0, %v694_v32  ;;  %706 = vst.msk [vmem:[%s1177_s21 + $0x20] sm:$0xff] %vm701_vm0, %v697_v35  ;;  %v688_v55 = vadd.f32 %v668_v18, %v648_v62  ;;  %v691_v39 = vadd.f32 %v674_v19, %v651_v22 }
 0x199   : > { %v696_v25 = vmax.f32 %v688_v55, 0.0  ;;  %v699_v33 = vmax.f32 %v691_v39, 0.0 }
 0x19a   : > { %v672_v26 = vpop.permute.xlu1 %671 }
 0x19b   : > { %705 = vst.msk [vmem:[%s1177_s21 + $0x18] sm:$0xff] %vm701_vm0, %v696_v25  ;;  %708 = vst.msk [vmem:[%s1177_s21 + $0x30] sm:$0xff] %vm701_vm0, %v699_v33  ;;  %v690_v34 = vadd.f32 %v672_v26, %v650_v60 }
 0x19d   : > { %v698_v52 = vmax.f32 %v690_v34, 0.0 }
 0x19e   : > { %v676_v36 = vpop.permute.xlu1 %675 }
 0x19f   : > { %707 = vst.msk [vmem:[%s1177_s21 + $0x28] sm:$0xff] %vm701_vm0, %v698_v52  ;;  %v692_v31 = vadd.f32 %v676_v36, %v652_v53 }
 0x1a1   : > { %v700_v44 = vmax.f32 %v692_v31, 0.0 }
 0x1a3   : > { %709 = vst.msk [vmem:[%s1177_s21 + $0x38] sm:$0xff] %vm701_vm0, %v700_v44 }
 0x1a4 PF: > { %s12_s9 = sadd.s32 1, %s801_s9  }
 0x1a5   : > { %p9_p4 = scmp.ge.s32.totalorder %s12_s9, 4  }
 0x1a7   :  { %11 = sbr.rel (!%p9_p4) target bundleno = 1 (0x1), region = 58 }

// kernel: gcn3d_forward.17
= control target key start
LH: loop header
LB: loop body
LE: loop exit
PB: predicated region body
PF: predicated region fallthrough
CT: control target
= control target key end

     0   :  { %s1713_s27 = smov 0   ;;  %s2368_s0 = inlined_call_operand.vmem [shape: f32[2,192,3], index: 0, kind: input, shape index: {}]   ;;  %s2369_s1 = inlined_call_operand.vmem [shape: f32[3,128], index: 1, kind: input, shape index: {}]   ;;  %s2370_s2 = inlined_call_operand.vmem [shape: f32[2,192,32], index: 2, kind: input, shape index: {}]   ;;  %s2371_s3 = inlined_call_operand.vmem [shape: f32[2,64,32], index: 3, kind: input, shape index: {}]   ;;  %s2372_s4 = inlined_call_operand.vmem [shape: f32[32,64], index: 4, kind: input, shape index: {}]   ;;  %s2373_s5 = inlined_call_operand.vmem [shape: f32[32,128], index: 5, kind: input, shape index: {}]   ;;  %s2374_s6 = inlined_call_operand.vmem [shape: f32[1,64], index: 6, kind: input, shape index: {}]   ;;  %s2375_s7 = inlined_call_operand.vmem [shape: f32[1,128], index: 7, kind: input, shape index: {}]   ;;  %s2376_s8 = inlined_call_operand.vmem [shape: f32[2,64,64], index: 8, kind: output, shape index: {}]  }
   0x1 LB: > { %s1464_s28 = sadd.s32 4294967295, %s1662_s27   ;;  %p1468_p0 = scmp.ge.s32.totalorder %s1662_s27, 1  ;;  %s1662_s27 = sphi %s1713_s27, %s18_s27  }
   0x2   : > { %p282_p1 = scmp.lt.s32.totalorder %s1662_s27, 3 }
   0x4   : > { %p283_p2 = pnand %p1468_p0, %p282_p1 }
   0x6   : > { %286 = sbr.rel (%p283_p2) target bundleno = 426 (0x1aa), region = 52 }
   0xd   : > { %p326_p3 = scmp.lt.s32.totalorder %s1464_s28, 1  ;;  %v863_v0 = vld [vmem:[%s2373_s5] sm:$0xff]  ;;  %v864_v1 = vld [vmem:[%s2373_s5 + $0x8] sm:$0xff]  ;;  %v865_v2 = vld [vmem:[%s2373_s5 + $0x10] sm:$0xff]  ;;  %v1664_v3 = vmov 0   ;;  %vm874_vm0 = vcmask 261120  }
   0xe   : > { %1651 = vset.pattern.permute.xlu1 %v1664_v3  ;;  %1650 = vset.pattern.permute.xlu0 %v1664_v3  ;;  %v1617_v4 = vpack.c.bf16 %v864_v1, %v863_v0  ;;  %v866_v5 = vld [vmem:[%s2373_s5 + $0x18] sm:$0xff]  ;;  %v1220_v46 = vld [vmem:[%s2372_s4] sm:$0xff]  ;;  %v1221_v47 = vld [vmem:[%s2372_s4 + $0x8] sm:$0xff]  ;;  %v1665_v3 = vmov 1   ;;  %vm1376_vm1 = vcmask 523264  }
   0xf   : > { %s2390_s28 = smov (!%p326_p3, %s1464_s28), 1  ;;  %v1621_v6 = vpack.c.bf16 %v866_v5, %v865_v2  ;;  %v1625_v48 = vpack.c.bf16 %v1221_v47, %v1220_v46  ;;  %v1222_v52 = vld [vmem:[%s2372_s4 + $0x10] sm:$0xff]  ;;  %v1223_v53 = vld [vmem:[%s2372_s4 + $0x18] sm:$0xff] }
  0x10   : > { %1618 = vmatprep.subr.bf16.mxu0 %v1617_v4  ;;  %1633 = vmatprep.subr.bf16.mxu1 %v1617_v4  ;;  %s1637_s15 = smul.u32 192, %s2390_s28  ;;  %v1629_v54 = vpack.c.bf16 %v1223_v53, %v1222_v52  ;;  %s1511_s10 = sshll.u32 %s2390_s28, 6 }
  0x11   : > { %1620 = vmatpush3.bf16.msra.mxu0 %v1617_v4  ;;  %1635 = vmatpush3.bf16.msra.mxu1 %v1617_v4  ;;  %s340_s13 = scalar_lea.vmem %s2371_s3, %s1511_s10  ;;  %s2340_s23 = scalar_lea.vmem %s2376_s8, %s1511_s10 }
  0x12   : > { %1622 = vmatprep.subr.bf16.mxu0 %v1621_v6  ;;  %1634 = vmatprep.subr.bf16.mxu1 %v1621_v6  ;;  %s1739_s18 = scalar_lea.vmem %s2368_s0, %s1637_s15  ;;  %s1744_s21 = scalar_lea.vmem %s2370_s2, %s1637_s15  ;;  %v1212_v57 = vld [vmem:[%s340_s13] sm:$0xff]  ;;  %v1213_v58 = vld [vmem:[%s340_s13 + $0x8] sm:$0xff]  ;;  %v1214_v61 = vld [vmem:[%s340_s13 + $0x10] sm:$0xff] }
  0x13   : > { %v1747_v7 = vld [vmem:[%s1739_s18 + $0x10] sm:$0xff]  ;;  %v1750_v8 = vld [vmem:[%s1739_s18] sm:$0xff]  ;;  %v1755_v9 = vld [vmem:[%s1739_s18 + $0x18] sm:$0xff] }
  0x14   : > { %383 = vperm.xlu1 %1651, %v1747_v7   ;;  %373 = vperm.xlu0 %1650, %v1750_v8   ;;  %v1758_v10 = vld [vmem:[%s1739_s18 + $0x8] sm:$0xff]  ;;  %v839_v11 = vld [vmem:[%s1744_s21] sm:$0xff]  ;;  %v841_v13 = vld [vmem:[%s1744_s21 + $0x10] sm:$0xff] }
  0x15   : > { %1624 = vmatpush3.bf16.msra.mxu0 %v1621_v6  ;;  %1636 = vmatpush3.bf16.msra.mxu1 %v1621_v6  ;;  %v840_v12 = vld [vmem:[%s1744_s21 + $0x8] sm:$0xff]  ;;  %v1770_v15 = vld [vmem:[%s1739_s18 + $0x20] sm:$0xff]  ;;  %v842_v16 = vld [vmem:[%s1744_s21 + $0x18] sm:$0xff]  ;;  %v1666_v6 = vmov 2  }
  0x16   : > { %1561 = vmatprep.mubr.msk.f32.mxu0 %vm874_vm0, %v839_v11  ;;  %v1767_v14 = vld [vmem:[%s1739_s18 + $0x28] sm:$0xff]  ;;  %v843_v17 = vld [vmem:[%s1744_s21 + $0x20] sm:$0xff]  ;;  %v1779_v18 = vld [vmem:[%s1739_s18 + $0x38] sm:$0xff]  ;;  %1626 = vmatprep.subr.bf16.mxu1 %v1625_v48 }
  0x17   : > { %v1782_v19 = vld [vmem:[%s1739_s18 + $0x30] sm:$0xff]  ;;  %v844_v20 = vld [vmem:[%s1744_s21 + $0x28] sm:$0xff]  ;;  %v855_v22 = vld [vmem:[%s1744_s21 + $0x80] sm:$0xff] }
  0x18   : > { %388 = vperm.xlu1 %1651, %v1755_v9   ;;  %378 = vperm.xlu0 %1650, %v1758_v10   ;;  %v845_v21 = vld [vmem:[%s1744_s21 + $0x30] sm:$0xff]  ;;  %v856_v23 = vld [vmem:[%s1744_s21 + $0x88] sm:$0xff]  ;;  %v1796_v25 = vld [vmem:[%s1739_s18 + $0x40] sm:$0xff] }
  0x19   : > { %1562 = vmatmul.mubr.msk.f32.vlgmr.msra.gmra.mrb[0].mxu0 %vm874_vm0, %v840_v12  ;;  %v1793_v24 = vld [vmem:[%s1739_s18 + $0x48] sm:$0xff]  ;;  %1585 = vmatprep.mubr.msk.f32.mxu1 %vm874_vm0, %v855_v22  ;;  %v857_v26 = vld [vmem:[%s1744_s21 + $0x90] sm:$0xff]  ;;  %v846_v27 = vld [vmem:[%s1744_s21 + $0x38] sm:$0xff] }
  0x1a   : > { %1564 = vmatprep.mubr.msk.f32.mxu0 %vm874_vm0, %v841_v13  ;;  %1586 = vmatmul.mubr.msk.f32.vlgmr.msra.gmra.mrb[0].mxu1 %vm874_vm0, %v856_v23  ;;  %v847_v28 = vld [vmem:[%s1744_s21 + $0x40] sm:$0xff]  ;;  %v858_v29 = vld [vmem:[%s1744_s21 + $0x98] sm:$0xff]  ;;  %v1814_v32 = vld [vmem:[%s1739_s18 + $0x50] sm:$0xff] }
  0x1b   : > { %1588 = vmatprep.mubr.msk.f32.mxu1 %vm874_vm0, %v857_v26  ;;  %v859_v30 = vld [vmem:[%s1744_s21 + $0xa0] sm:$0xff]  ;;  %v1811_v31 = vld [vmem:[%s1739_s18 + $0x58] sm:$0xff]  ;;  %v848_v33 = vld [vmem:[%s1744_s21 + $0x48] sm:$0xff]  ;;  %1628 = vmatpush3.bf16.msra.mxu1 %v1625_v48 }
  0x1c   : > { %398 = vperm.xlu1 %1651, %v1767_v14   ;;  %393 = vperm.xlu0 %1650, %v1770_v15   ;;  %v849_v34 = vld [vmem:[%s1744_s21 + $0x50] sm:$0xff]  ;;  %v860_v35 = vld [vmem:[%s1744_s21 + $0xa8] sm:$0xff]  ;;  %v1830_v38 = vld [vmem:[%s1739_s18 + $0x60] sm:$0xff] }
  0x1d   : > { %1565 = vmatmul.mubr.msk.f32.gmra.mrb[2].mxu0 %vm874_vm0, %v842_v16  ;;  %v861_v36 = vld [vmem:[%s1744_s21 + $0xb0] sm:$0xff]  ;;  %v1827_v37 = vld [vmem:[%s1739_s18 + $0x68] sm:$0xff]  ;;  %v850_v39 = vld [vmem:[%s1744_s21 + $0x58] sm:$0xff]  ;;  %1630 = vmatprep.subr.bf16.mxu1 %v1629_v54 }
  0x1e   : > { %1567 = vmatprep.mubr.msk.f32.mxu0 %vm874_vm0, %v843_v17  ;;  %1589 = vmatmul.mubr.msk.f32.gmra.mrb[2].mxu1 %vm874_vm0, %v858_v29  ;;  %v851_v40 = vld [vmem:[%s1744_s21 + $0x60] sm:$0xff]  ;;  %v862_v41 = vld [vmem:[%s1744_s21 + $0xb8] sm:$0xff]  ;;  %v1845_v43 = vld [vmem:[%s1739_s18 + $0x70] sm:$0xff] }
  0x1f   : > { %1591 = vmatprep.mubr.msk.f32.mxu1 %vm874_vm0, %v859_v30  ;;  %v1842_v42 = vld [vmem:[%s1739_s18 + $0x78] sm:$0xff]  ;;  %v852_v44 = vld [vmem:[%s1744_s21 + $0x68] sm:$0xff]  ;;  %v853_v45 = vld [vmem:[%s1744_s21 + $0x70] sm:$0xff]  ;;  %1632 = vmatpush3.bf16.msra.mxu1 %v1629_v54 }
  0x20   : > { %408 = vperm.xlu1 %1651, %v1779_v18   ;;  %403 = vperm.xlu0 %1650, %v1782_v19   ;;  %v1861_v49 = vld [vmem:[%s1739_s18 + $0x88] sm:$0xff]  ;;  %v1864_v50 = vld [vmem:[%s1739_s18 + $0x80] sm:$0xff]  ;;  %v854_v51 = vld [vmem:[%s1744_s21 + $0x78] sm:$0xff] }
  0x21   : > { %1568 = vmatmul.mubr.msk.f32.gmra.mrb[4].mxu0 %vm874_vm0, %v844_v20  ;;  %v1878_v55 = vld [vmem:[%s1739_s18 + $0x98] sm:$0xff]  ;;  %v1881_v56 = vld [vmem:[%s1739_s18 + $0x90] sm:$0xff]  ;;  %v1893_v59 = vld [vmem:[%s1739_s18 + $0xa8] sm:$0xff] }
  0x22   : > { %1570 = vmatprep.mubr.msk.f32.mxu0 %vm874_vm0, %v845_v21  ;;  %1592 = vmatmul.mubr.msk.f32.gmra.mrb[4].mxu1 %vm874_vm0, %v860_v35  ;;  %v1896_v60 = vld [vmem:[%s1739_s18 + $0xa0] sm:$0xff]  ;;  %v1215_v62 = vld [vmem:[%s340_s13 + $0x18] sm:$0xff]  ;;  %v1906_v0 = vld [vmem:[%s1739_s18 + $0xb0] sm:$0xff] }
  0x23   : > { %1594 = vmatprep.mubr.msk.f32.mxu1 %vm874_vm0, %v861_v36  ;;  %v1903_v63 = vld [vmem:[%s1739_s18 + $0xb8] sm:$0xff]  ;;  %v1216_v1 = vld [vmem:[%s340_s13 + $0x20] sm:$0xff]  ;;  %v1217_v2 = vld [vmem:[%s340_s13 + $0x28] sm:$0xff]  ;;  %s1667_s18 = smov 64  }
  0x24   : > { %418 = vperm.xlu1 %1651, %v1793_v24   ;;  %413 = vperm.xlu0 %1650, %v1796_v25   ;;  %v1218_v4 = vld [vmem:[%s340_s13 + $0x30] sm:$0xff]  ;;  %v1219_v5 = vld [vmem:[%s340_s13 + $0x38] sm:$0xff]  ;;  %v1999_v35 = vld [vmem:[%s2369_s1] sm:$0x7] }
  0x25   : > { %1571 = vmatmul.mubr.msk.f32.gmra.mrb[6].mxu0 %vm874_vm0, %v846_v27 }
  0x26   : > { %1573 = vmatprep.mubr.msk.f32.mxu0 %vm874_vm0, %v847_v28  ;;  %1595 = vmatmul.mubr.msk.f32.gmra.mrb[6].mxu1 %vm874_vm0, %v862_v41 }
  0x27   : > { %1605 = vmatprep.mubr.msk.f32.mxu1 %vm874_vm0, %v1212_v57 }
  0x28   : > { %428 = vperm.xlu1 %1651, %v1811_v31   ;;  %423 = vperm.xlu0 %1650, %v1814_v32  }
  0x29   : > { %1574 = vmatmul.mubr.msk.f32.gmra.mrb[8].mxu0 %vm874_vm0, %v848_v33 }
  0x2a   : > { %1576 = vmatprep.mubr.msk.f32.mxu0 %vm874_vm0, %v849_v34  ;;  %1606 = vmatmul.mubr.msk.f32.vlgmr.msra.gmra.mrb[8].mxu1 %vm874_vm0, %v1213_v58 }
  0x2b   : > { %1608 = vmatprep.mubr.msk.f32.mxu1 %vm874_vm0, %v1214_v61 }
  0x2c   : > { %438 = vperm.xlu1 %1651, %v1827_v37   ;;  %433 = vperm.xlu0 %1650, %v1830_v38  }
  0x2d   : > { %1577 = vmatmul.mubr.msk.f32.gmra.mrb[10].mxu0 %vm874_vm0, %v850_v39 }
  0x2e   : > { %1579 = vmatprep.mubr.msk.f32.mxu0 %vm874_vm0, %v851_v40  ;;  %1609 = vmatmul.mubr.msk.f32.gmra.mrb[10].mxu1 %vm874_vm0, %v1215_v62 }
  0x2f   : > { %1611 = vmatprep.mubr.msk.f32.mxu1 %vm874_vm0, %v1216_v1 }
  0x30   : > { %448 = vperm.xlu1 %1651, %v1842_v42   ;;  %443 = vperm.xlu0 %1650, %v1845_v43  }
  0x31   : > { %1580 = vmatmul.mubr.msk.f32.gmra.mrb[12].mxu0 %vm874_vm0, %v852_v44 }
  0x32   : > { %1582 = vmatprep.mubr.msk.f32.mxu0 %vm874_vm0, %v853_v45  ;;  %1612 = vmatmul.mubr.msk.f32.gmra.mrb[12].mxu1 %vm874_vm0, %v1217_v2 }
  0x33   : > { %1614 = vmatprep.mubr.msk.f32.mxu1 %vm874_vm0, %v1218_v4 }
  0x34   : > { %458 = vperm.xlu1 %1651, %v1861_v49   ;;  %453 = vperm.xlu0 %1650, %v1864_v50  }
  0x35   : > { %1583 = vmatmul.mubr.msk.f32.gmra.mrb[14].mxu0 %vm874_vm0, %v854_v51 }
  0x36   : > { %1615 = vmatmul.mubr.msk.f32.gmra.mrb[14].mxu1 %vm874_vm0, %v1219_v5 }
  0x38   : > { %468 = vperm.xlu1 %1651, %v1878_v55   ;;  %463 = vperm.xlu0 %1650, %v1881_v56  }
  0x3c   : > { %478 = vperm.xlu1 %1651, %v1893_v59   ;;  %473 = vperm.xlu0 %1650, %v1896_v60  }
  0x40   : > { %488 = vperm.xlu1 %1651, %v1903_v63   ;;  %483 = vperm.xlu0 %1650, %v1906_v0  }
  0x44   : > { %1653 = vset.pattern.permute.xlu1 %v1665_v3  ;;  %1652 = vset.pattern.permute.xlu0 %v1665_v3 }
  0x45   : > { %524 = vperm.xlu1 %1653, %v1758_v10   ;;  %520 = vperm.xlu0 %1652, %v1750_v8  }
  0x49   : > { %528 = vperm.xlu1 %1653, %v1747_v7   ;;  %532 = vperm.xlu0 %1652, %v1755_v9  }
  0x4d   : > { %536 = vperm.xlu1 %1653, %v1770_v15   ;;  %540 = vperm.xlu0 %1652, %v1767_v14  }
  0x51   : > { %544 = vperm.xlu1 %1653, %v1782_v19   ;;  %548 = vperm.xlu0 %1652, %v1779_v18  }
  0x55   : > { %552 = vperm.xlu1 %1653, %v1796_v25   ;;  %556 = vperm.xlu0 %1652, %v1793_v24  }
  0x59   : > { %560 = vperm.xlu1 %1653, %v1814_v32   ;;  %564 = vperm.xlu0 %1652, %v1811_v31  }
  0x5d   : > { %568 = vperm.xlu1 %1653, %v1830_v38   ;;  %572 = vperm.xlu0 %1652, %v1827_v37  }
  0x61   : > { %576 = vperm.xlu1 %1653, %v1845_v43   ;;  %580 = vperm.xlu0 %1652, %v1842_v42  }
  0x65   : > { %584 = vperm.xlu1 %1653, %v1864_v50   ;;  %588 = vperm.xlu0 %1652, %v1861_v49  }
  0x69   : > { %592 = vperm.xlu1 %1653, %v1881_v56   ;;  %596 = vperm.xlu0 %1652, %v1878_v55  }
  0x6d   : > { %600 = vperm.xlu1 %1653, %v1896_v60   ;;  %604 = vperm.xlu0 %1652, %v1893_v59  }
  0x71   : > { %608 = vperm.xlu1 %1653, %v1906_v0   ;;  %612 = vperm.xlu0 %1652, %v1903_v63  }
  0x75   : > { %1654 = vset.pattern.permute.xlu1 %v1666_v6  ;;  %1655 = vset.pattern.permute.xlu0 %v1666_v6 }
  0x76   : > { %668 = vperm.xlu1 %1654, %v1750_v8   ;;  %672 = vperm.xlu0 %1655, %v1758_v10  }
  0x7a   : > { %676 = vperm.xlu1 %1654, %v1747_v7   ;;  %684 = vperm.xlu0 %1655, %v1770_v15  }
  0x7e   : > { %680 = vperm.xlu1 %1654, %v1755_v9   ;;  %692 = vperm.xlu0 %1655, %v1782_v19  }
  0x82   : > { %688 = vperm.xlu1 %1654, %v1767_v14   ;;  %700 = vperm.xlu0 %1655, %v1796_v25   ;;  %v491_v25 = vlaneseq }
  0x84   : > { %v1984_v28 = vshrl.u32 %v491_v25, 7 }
  0x86   : > { %696 = vperm.xlu1 %1654, %v1779_v18   ;;  %708 = vperm.xlu0 %1655, %v1814_v32   ;;  %v493_v32 = vsub.s32 0, %v1984_v28 }
  0x8a   : > { %704 = vperm.xlu1 %1654, %v1793_v24   ;;  %716 = vperm.xlu0 %1655, %v1830_v38  }
  0x8e   : > { %712 = vperm.xlu1 %1654, %v1811_v31   ;;  %724 = vperm.xlu0 %1655, %v1845_v43   ;;  %v617_v31 = vsub.s32 1, %v1984_v28 }
  0x90   : > { %v2002_v36 = vrot.slane %v1999_v35, %v617_v31 }
  0x92   : > { %720 = vperm.xlu1 %1654, %v1827_v37   ;;  %732 = vperm.xlu0 %1655, %v1864_v50   ;;  %v2005_v37 = vrot.slane %v1999_v35, %v493_v32 }
  0x93   : > { %v384_v7 = vpop.permute.xlu1 %383  ;;  %v374_v8 = vpop.permute.xlu0 %373 }
  0x94   : > { %v495_v40 = vmul.f32 %v2005_v37, %v374_v8  ;;  %v497_v48 = vmul.f32 %v2005_v37, %v384_v7 }
  0x96   : > { %728 = vperm.xlu1 %1654, %v1842_v42   ;;  %740 = vperm.xlu0 %1655, %v1881_v56  }
  0x97   : > { %v389_v9 = vpop.permute.xlu1 %388  ;;  %v379_v10 = vpop.permute.xlu0 %378 }
  0x98   : > { %v496_v41 = vmul.f32 %v2005_v37, %v379_v10 }
  0x9a   : > { %736 = vperm.xlu1 %1654, %v1861_v49   ;;  %748 = vperm.xlu0 %1655, %v1896_v60   ;;  %v498_v49 = vmul.f32 %v2005_v37, %v389_v9 }
  0x9b   : > { %v399_v11 = vpop.permute.xlu1 %398  ;;  %v394_v12 = vpop.permute.xlu0 %393 }
  0x9c   : > { %v500_v56 = vmul.f32 %v2005_v37, %v399_v11  ;;  %v499_v57 = vmul.f32 %v2005_v37, %v394_v12 }
  0x9e   : > { %744 = vperm.xlu1 %1654, %v1878_v55   ;;  %756 = vperm.xlu0 %1655, %v1906_v0  }
  0x9f   : > { %v409_v13 = vpop.permute.xlu1 %408  ;;  %v404_v14 = vpop.permute.xlu0 %403 }
  0xa0   : > { %v502_v0 = vmul.f32 %v2005_v37, %v409_v13  ;;  %v501_v1 = vmul.f32 %v2005_v37, %v404_v14 }
  0xa2   : > { %752 = vperm.xlu1 %1654, %v1893_v59  }
  0xa3   : > { %v419_v15 = vpop.permute.xlu1 %418  ;;  %v1963_v16 = vpop.permute.xlu0 %413 }
  0xa4   : > { %v504_v8 = vmul.f32 %v2005_v37, %v419_v15 }
  0xa6   : > { %760 = vperm.xlu1 %1654, %v1903_v63  }
  0xa7   : > { %v429_v17 = vpop.permute.xlu1 %428  ;;  %v1966_v18 = vpop.permute.xlu0 %423 }
  0xa8   : > { %v506_v13 = vmul.f32 %v2005_v37, %v429_v17 }
  0xab   : > { %v1968_v19 = vpop.permute.xlu1 %438  ;;  %v1970_v20 = vpop.permute.xlu0 %433 }
  0xaf   : > { %v1972_v21 = vpop.permute.xlu1 %448  ;;  %v1974_v22 = vpop.permute.xlu0 %443 }
  0xb0   : > { %v510_v17 = vmul.f32 %v2005_v37, %v1972_v21 }
  0xb3   : > { %v1976_v23 = vpop.permute.xlu1 %458  ;;  %v1978_v24 = vpop.permute.xlu0 %453 }
  0xb7   : > { %v1980_v26 = vpop.permute.xlu1 %468  ;;  %v1982_v27 = vpop.permute.xlu0 %463 }
  0xbb   : > { %v1986_v29 = vpop.permute.xlu1 %478  ;;  %v1988_v30 = vpop.permute.xlu0 %473 }
  0xbf   : > { %v1992_v33 = vpop.permute.xlu1 %488  ;;  %v1994_v34 = vpop.permute.xlu0 %483 }
  0xc0   : > { %2377 = vst [vmem:[#allocation2_spill] sm:$0xff] %v1992_v33 }
  0xc4   : > { %v525_v38 = vpop.permute.xlu1 %524  ;;  %v521_v39 = vpop.permute.xlu0 %520 }
  0xc5   : > { %v620_v42 = vmul.f32 %v2002_v36, %v525_v38  ;;  %v619_v43 = vmul.f32 %v2002_v36, %v521_v39  ;;  %v508_v38 = vmul.f32 %v2005_v37, %v1968_v19 }
  0xc7   : > { %v2011_v44 = vadd.f32 %v620_v42, %v496_v41  ;;  %v2013_v45 = vadd.f32 %v619_v43, %v495_v40 }
  0xc8   : > { %v529_v46 = vpop.permute.xlu1 %528  ;;  %v533_v47 = vpop.permute.xlu0 %532 }
  0xc9   : > { %v621_v50 = vmul.f32 %v2002_v36, %v529_v46  ;;  %v622_v51 = vmul.f32 %v2002_v36, %v533_v47 }
  0xcb   : > { %v2019_v52 = vadd.f32 %v621_v50, %v497_v48  ;;  %v2021_v53 = vadd.f32 %v622_v51, %v498_v49 }
  0xcc   : > { %v537_v54 = vpop.permute.xlu1 %536  ;;  %v541_v55 = vpop.permute.xlu0 %540 }
  0xcd   : > { %v623_v58 = vmul.f32 %v2002_v36, %v537_v54  ;;  %v624_v59 = vmul.f32 %v2002_v36, %v541_v55  ;;  %v765_v54 = vsub.s32 2, %v1984_v28 }
  0xcf   : > { %v2027_v60 = vadd.f32 %v623_v58, %v499_v57  ;;  %v2029_v61 = vadd.f32 %v624_v59, %v500_v56  ;;  %v2083_v58 = vrot.slane %v1999_v35, %v765_v54 }
  0xd0   : > { %v545_v62 = vpop.permute.xlu1 %544  ;;  %v549_v63 = vpop.permute.xlu0 %548 }
  0xd1   : > { %v625_v2 = vmul.f32 %v2002_v36, %v545_v62  ;;  %v626_v3 = vmul.f32 %v2002_v36, %v549_v63 }
  0xd3   : > { %v2035_v4 = vadd.f32 %v625_v2, %v501_v1  ;;  %v2037_v5 = vadd.f32 %v626_v3, %v502_v0  ;;  %v2088_v1 = vld [vmem:[%s2375_s7] ss:$0 sm:$0xff] }
  0xd4   : > { %v2039_v6 = vpop.permute.xlu1 %552  ;;  %v557_v7 = vpop.permute.xlu0 %556 }
  0xd5   : > { %v628_v9 = vmul.f32 %v2002_v36, %v557_v7 }
  0xd7   : > { %v2043_v10 = vadd.f32 %v628_v9, %v504_v8 }
  0xd8   : > { %v2045_v11 = vpop.permute.xlu1 %560  ;;  %v565_v12 = vpop.permute.xlu0 %564 }
  0xd9   : > { %v630_v14 = vmul.f32 %v2002_v36, %v565_v12 }
  0xdb   : > { %v2049_v25 = vadd.f32 %v630_v14, %v506_v13 }
  0xdc   : > { %v2051_v31 = vpop.permute.xlu1 %568  ;;  %v573_v32 = vpop.permute.xlu0 %572 }
  0xdd   : > { %v632_v15 = vmul.f32 %v2002_v36, %v573_v32 }
  0xdf   : > { %v2056_v39 = vadd.f32 %v632_v15, %v508_v38 }
  0xe0   : > { %v2058_v40 = vpop.permute.xlu1 %576  ;;  %v581_v41 = vpop.permute.xlu0 %580 }
  0xe1   : > { %v634_v42 = vmul.f32 %v2002_v36, %v581_v41 }
  0xe3   : > { %v2063_v43 = vadd.f32 %v634_v42, %v510_v17 }
  0xe4   : > { %v2065_v46 = vpop.permute.xlu1 %584  ;;  %v2067_v47 = vpop.permute.xlu0 %588 }
  0xe8   : > { %v2069_v48 = vpop.permute.xlu1 %592  ;;  %v2071_v19 = vpop.permute.xlu0 %596 }
  0xec   : > { %v2073_v49 = vpop.permute.xlu1 %600  ;;  %v2075_v50 = vpop.permute.xlu0 %604 }
  0xed   : > { %2378 = vst [vmem:[#allocation3_spill] sm:$0xff] %v2075_v50  ;;  %v1563_v51 = vpop.f32.mrb[0].mxu0  ;;  %v2092_v7 = vpop.f32.mrb[0].mxu1 }
  0xee   : > { %v1013_v21 = vpop.f32.mrb[1].mxu0  ;;  %v2094_v8 = vpop.f32.mrb[1].mxu1  ;;  %v1019_v12 = vadd.f32 %v1563_v51, %v2088_v1 }
  0xef   : > { %v1014_v13 = vadd.f32 %v2088_v1, %v1013_v21 }
  0xf0   : > { %v2078_v55 = vpop.permute.xlu1 %608  ;;  %v2080_v56 = vpop.permute.xlu0 %612 }
  0xf1   : > { %2379 = vst [vmem:[#allocation4_spill] sm:$0xff] %v2080_v56  ;;  %v1566_v57 = vpop.f32.mrb[2].mxu0 }
  0xf2   : > { %v1023_v59 = vpop.f32.mrb[3].mxu0 }
  0xf4   : > { %v1569_v62 = vpop.f32.mrb[4].mxu0 }
  0xf5   : > { %v669_v63 = vpop.permute.xlu1 %668  ;;  %v673_v0 = vpop.permute.xlu0 %672 }
  0xf6   : > { %v767_v28 = vmul.f32 %v2083_v58, %v669_v63  ;;  %v768_v2 = vmul.f32 %v2083_v58, %v673_v0  ;;  %v1033_v3 = vpop.f32.mrb[5].mxu0  ;;  %v2104_v63 = vpop.f32.mrb[2].mxu1 }
  0xf7   : > { %2380 = vst [vmem:[#allocation5_spill] sm:$0xff] %v2104_v63  ;;  %v2108_v51 = vpop.f32.mrb[3].mxu1 }
  0xf8   : > { %v791_v35 = vadd.f32 %v767_v28, %v2013_v45  ;;  %v792_v9 = vadd.f32 %v768_v2, %v2011_v44  ;;  %v2100_v14 = vpop.f32.mrb[6].mxu0  ;;  %v1024_v45 = vadd.f32 %v2088_v1, %v1023_v59  ;;  %v1034_v44 = vadd.f32 %v2088_v1, %v1033_v3 }
  0xf9   : > { %v677_v32 = vpop.permute.xlu1 %676  ;;  %v685_v38 = vpop.permute.xlu0 %684 }
  0xfa   : > { %v815_v15 = vmax.f32 %v791_v35, 0.0  ;;  %v816_v41 = vmax.f32 %v792_v9, 0.0  ;;  %v769_v17 = vmul.f32 %v2083_v58, %v677_v32  ;;  %v771_v42 = vmul.f32 %v2083_v58, %v685_v38  ;;  %v1043_v54 = vpop.f32.mrb[7].mxu0 }
  0xfb   : > { %v627_v9 = vmul.f32 %v2002_v36, %v2039_v6 }
  0xfc   : > { %v2110_v21 = vmul.f32 %v1019_v12, %v816_v41  ;;  %v2112_v0 = vmul.f32 %v1014_v13, %v815_v15  ;;  %v793_v28 = vadd.f32 %v769_v17, %v2019_v52  ;;  %v795_v2 = vadd.f32 %v771_v42, %v2027_v60  ;;  %v2116_v35 = vpop.f32.mrb[8].mxu0  ;;  %v2122_v13 = vpop.f32.mrb[4].mxu1 }
  0xfd   : > { %v681_v32 = vpop.permute.xlu1 %680  ;;  %v693_v38 = vpop.permute.xlu0 %692  ;;  %2381 = vst [vmem:[#allocation6_spill] sm:$0xff] %v2122_v13  ;;  %v503_v52 = vmul.f32 %v2005_v37, %v1963_v16  ;;  %v1029_v60 = vadd.f32 %v1566_v57, %v2088_v1  ;;  %v1044_v15 = vadd.f32 %v2088_v1, %v1043_v54  ;;  %v629_v16 = vmul.f32 %v2002_v36, %v2045_v11 }
  0xfe   : > { %v817_v59 = vmax.f32 %v793_v28, 0.0  ;;  %v819_v33 = vmax.f32 %v795_v2, 0.0  ;;  %v770_v3 = vmul.f32 %v2083_v58, %v681_v32  ;;  %v773_v12 = vmul.f32 %v2083_v58, %v693_v38  ;;  %v1053_v41 = vpop.f32.mrb[9].mxu0  ;;  %v2128_v17 = vpop.f32.mrb[5].mxu1 }
  0xff   : > { %v651_v38 = vadd.f32 %v627_v9, %v503_v52  ;;  %v1054_v9 = vadd.f32 %v2088_v1, %v1053_v41 }
 0x100   : > { %v2130_v6 = vmul.f32 %v1024_v45, %v817_v59  ;;  %v2132_v42 = vmul.f32 %v1034_v44, %v819_v33  ;;  %v794_v28 = vadd.f32 %v770_v3, %v2021_v53  ;;  %v797_v2 = vadd.f32 %v773_v12, %v2035_v4  ;;  %v2136_v32 = vpop.f32.mrb[10].mxu0  ;;  %v2142_v44 = vpop.f32.mrb[6].mxu1 }
 0x101   : > { %v689_v13 = vpop.permute.xlu1 %688  ;;  %v701_v57 = vpop.permute.xlu0 %700  ;;  %2382 = vst [vmem:[#allocation7_spill] sm:$0xff] %v2142_v44  ;;  %v505_v53 = vmul.f32 %v2005_v37, %v1966_v18  ;;  %v1039_v4 = vadd.f32 %v1569_v62, %v2088_v1 }
 0x102   : > { %v818_v56 = vmax.f32 %v794_v28, 0.0  ;;  %v821_v54 = vmax.f32 %v797_v2, 0.0  ;;  %v772_v63 = vmul.f32 %v2083_v58, %v689_v13  ;;  %v775_v45 = vmul.f32 %v2083_v58, %v701_v57  ;;  %v1063_v33 = vpop.f32.mrb[11].mxu0  ;;  %v2148_v59 = vpop.f32.mrb[7].mxu1 }
 0x103   : > { %v653_v28 = vadd.f32 %v629_v16, %v505_v53 }
 0x104   : > { %v2150_v11 = vmul.f32 %v1029_v60, %v818_v56  ;;  %v2152_v3 = vmul.f32 %v1044_v15, %v821_v54  ;;  %v796_v12 = vadd.f32 %v772_v63, %v2029_v61  ;;  %v799_v13 = vadd.f32 %v775_v45, %v651_v38  ;;  %v2155_v52 = vpop.f32.mrb[12].mxu0 }
 0x105   : > { %v697_v2 = vpop.permute.xlu1 %696  ;;  %v709_v57 = vpop.permute.xlu0 %708  ;;  %v631_v56 = vmul.f32 %v2002_v36, %v2051_v31  ;;  %v1049_v60 = vadd.f32 %v2100_v14, %v2088_v1  ;;  %v1064_v61 = vadd.f32 %v2088_v1, %v1063_v33  ;;  %v507_v45 = vmul.f32 %v2005_v37, %v1970_v20 }
 0x106   : > { %v820_v44 = vmax.f32 %v796_v12, 0.0  ;;  %v823_v18 = vmax.f32 %v799_v13, 0.0  ;;  %v774_v62 = vmul.f32 %v2083_v58, %v697_v2  ;;  %v777_v41 = vmul.f32 %v2083_v58, %v709_v57  ;;  %v1073_v50 = vpop.f32.mrb[13].mxu0 }
 0x107   : > { %v509_v31 = vmul.f32 %v2005_v37, %v1974_v22  ;;  %v633_v14 = vmul.f32 %v2002_v36, %v2058_v40  ;;  %v512_v13 = vmul.f32 %v2005_v37, %v1976_v23  ;;  %v511_v20 = vmul.f32 %v2005_v37, %v1978_v24 }
 0x108   : > { %v2164_v63 = vmul.f32 %v1039_v4, %v820_v44  ;;  %v2166_v15 = vmul.f32 %v1054_v9, %v823_v18  ;;  %v798_v38 = vadd.f32 %v774_v62, %v2037_v5  ;;  %v801_v16 = vadd.f32 %v777_v41, %v653_v28  ;;  %v2169_v54 = vpop.f32.mrb[14].mxu0 }
 0x109   : > { %v705_v53 = vpop.permute.xlu1 %704  ;;  %v717_v33 = vpop.permute.xlu0 %716  ;;  %v655_v22 = vadd.f32 %v631_v56, %v507_v45  ;;  %v1059_v40 = vadd.f32 %v2116_v35, %v2088_v1  ;;  %v657_v62 = vadd.f32 %v633_v14, %v509_v31  ;;  %v635_v41 = vmul.f32 %v2002_v36, %v2065_v46 }
 0x10a   : > { %v1156_v44 = vmax.f32 %v2112_v0, %v2166_v15  ;;  %v822_v4 = vmax.f32 %v798_v38, 0.0  ;;  %v825_v9 = vmax.f32 %v801_v16, 0.0  ;;  %v776_v5 = vmul.f32 %v2083_v58, %v705_v53  ;;  %v1083_v12 = vpop.f32.mrb[15].mxu0  ;;  %v2383_v15 = vld [vmem:[#allocation3_spill] sm:$0xff] }
 0x10b   : > { %v779_v28 = vmul.f32 %v2083_v58, %v717_v33  ;;  %v1074_v38 = vadd.f32 %v2088_v1, %v1073_v50  ;;  %v513_v46 = vmul.f32 %v2005_v37, %v1982_v27  ;;  %v1069_v50 = vadd.f32 %v2136_v32, %v2088_v1 }
 0x10c   : > { %v2187_v2 = vmul.f32 %v1049_v60, %v822_v4  ;;  %v2189_v57 = vmul.f32 %v1064_v61, %v825_v9  ;;  %v800_v18 = vadd.f32 %v776_v5, %v2043_v10  ;;  %v2199_v61 = vpop.f32.mrb[8].mxu1  ;;  %v2203_v10 = vmul.f32 %v2005_v37, %v1980_v26 }
 0x10d   : > { %v803_v23 = vadd.f32 %v779_v28, %v655_v22  ;;  %v713_v24 = vpop.permute.xlu1 %712  ;;  %v725_v56 = vpop.permute.xlu0 %724  ;;  %v1084_v9 = vadd.f32 %v2088_v1, %v1083_v12  ;;  %v659_v5 = vadd.f32 %v635_v41, %v511_v20  ;;  %v636_v26 = vmul.f32 %v2002_v36, %v2067_v47 }
 0x10e   : > { %v1158_v16 = vmax.f32 %v2130_v6, %v2189_v57  ;;  %v824_v45 = vmax.f32 %v800_v18, 0.0  ;;  %v778_v35 = vmul.f32 %v2083_v58, %v713_v24  ;;  %v781_v60 = vmul.f32 %v2083_v58, %v725_v56  ;;  %v2209_v14 = vpop.f32.mrb[9].mxu1 }
 0x10f   : > { %v827_v31 = vmax.f32 %v803_v23, 0.0  ;;  %v637_v27 = vmul.f32 %v2002_v36, %v2069_v48  ;;  %v1079_v12 = vadd.f32 %v2155_v52, %v2088_v1  ;;  %v1094_v48 = vadd.f32 %v2088_v1, %v2094_v8 }
 0x110   : > { %v2211_v53 = vmul.f32 %v1059_v40, %v824_v45  ;;  %v802_v33 = vadd.f32 %v778_v35, %v2049_v25  ;;  %v805_v4 = vadd.f32 %v781_v60, %v657_v62  ;;  %v2223_v62 = vpop.f32.mrb[10].mxu1  ;;  %v516_v52 = vmul.f32 %v2005_v37, %v1986_v29 }
 0x111   : > { %v2219_v22 = vmul.f32 %v1074_v38, %v827_v31  ;;  %v721_v32 = vpop.permute.xlu1 %720  ;;  %v733_v28 = vpop.permute.xlu0 %732  ;;  %v515_v35 = vmul.f32 %v2005_v37, %v1988_v30  ;;  %v660_v60 = vadd.f32 %v636_v26, %v512_v13  ;;  %v639_v8 = vmul.f32 %v2002_v36, %v2073_v49 }
 0x112   : > { %v826_v18 = vmax.f32 %v802_v33, 0.0  ;;  %v829_v23 = vmax.f32 %v805_v4, 0.0  ;;  %v780_v40 = vmul.f32 %v2083_v58, %v721_v32  ;;  %v783_v25 = vmul.f32 %v2083_v58, %v733_v28  ;;  %v2233_v41 = vpop.f32.mrb[11].mxu1 }
 0x113   : > { %v1160_v47 = vmax.f32 %v2132_v42, %v2219_v22  ;;  %v1157_v20 = vmax.f32 %v2110_v21, %v2211_v53  ;;  %v661_v32 = vadd.f32 %v637_v27, %v513_v46  ;;  %v638_v29 = vmul.f32 %v2002_v36, %v2071_v19  ;;  %v2388_v22 = vld [vmem:[#allocation7_spill] sm:$0xff] }
 0x114   : > { %v2235_v38 = vmul.f32 %v1069_v50, %v826_v18  ;;  %v2237_v24 = vmul.f32 %v1084_v9, %v829_v23  ;;  %v804_v56 = vadd.f32 %v780_v40, %v2056_v39  ;;  %v807_v45 = vadd.f32 %v783_v25, %v659_v5  ;;  %v2249_v5 = vpop.f32.mrb[12].mxu1 }
 0x115   : > { %v729_v31 = vpop.permute.xlu1 %728  ;;  %v741_v33 = vpop.permute.xlu0 %740  ;;  %v1089_v26 = vadd.f32 %v2169_v54, %v2088_v1  ;;  %v663_v40 = vadd.f32 %v639_v8, %v515_v35  ;;  %v641_v46 = vmul.f32 %v2002_v36, %v2078_v55  ;;  %v1104_v27 = vadd.f32 %v2088_v1, %v2108_v51 }
 0x116   : > { %v1162_v50 = vmax.f32 %v2152_v3, %v2237_v24  ;;  %v828_v4 = vmax.f32 %v804_v56, 0.0  ;;  %v831_v9 = vmax.f32 %v807_v45, 0.0  ;;  %v782_v39 = vmul.f32 %v2083_v58, %v729_v31  ;;  %v2256_v13 = vpop.f32.mrb[13].mxu1  ;;  %v1500_v3 = vld [vmem:[%s2374_s6] ss:$0 sm:$0xff] }
 0x117   : > { %v785_v30 = vmul.f32 %v2083_v58, %v741_v33  ;;  %v1159_v49 = vmax.f32 %v2150_v11, %v2235_v38  ;;  %v517_v55 = vmul.f32 %v2005_v37, %v1994_v34  ;;  %v1099_v51 = vadd.f32 %v2092_v7, %v2088_v1 }
 0x118   : > { %v2260_v28 = vmul.f32 %v1079_v12, %v828_v4  ;;  %v1148_v18 = vmul.f32 %v1094_v48, %v831_v9  ;;  %v806_v23 = vadd.f32 %v782_v39, %v2063_v43  ;;  %v2274_v43 = vpop.f32.mrb[14].mxu1  ;;  %v1114_v0 = vadd.f32 %v2088_v1, %v2128_v17 }
 0x119   : > { %v809_v19 = vadd.f32 %v785_v30, %v661_v32  ;;  %v737_v25 = vpop.permute.xlu1 %736  ;;  %v749_v56 = vpop.permute.xlu0 %748  ;;  %v662_v34 = vadd.f32 %v638_v29, %v2203_v10  ;;  %v640_v7 = vmul.f32 %v2002_v36, %v2383_v15  ;;  %v1124_v10 = vadd.f32 %v2088_v1, %v2148_v59 }
 0x11a   : > { %v830_v45 = vmax.f32 %v806_v23, 0.0  ;;  %v784_v31 = vmul.f32 %v2083_v58, %v737_v25  ;;  %v787_v54 = vmul.f32 %v2083_v58, %v749_v56  ;;  %v2272_v12 = vmax.f32 %v1156_v44, %v1148_v18  ;;  %v2282_v8 = vpop.f32.mrb[15].mxu1  ;;  %v2384_v18 = vld [vmem:[#allocation5_spill] sm:$0xff]  ;;  %v2385_v56 = vld [vmem:[#allocation4_spill] sm:$0xff] }
 0x11b   : > { %v833_v48 = vmax.f32 %v809_v19, 0.0  ;;  %v1161_v35 = vmax.f32 %v2164_v63, %v2260_v28  ;;  %v665_v44 = vadd.f32 %v641_v46, %v517_v55  ;;  %v1109_v23 = vadd.f32 %v2384_v18, %v2088_v1 }
 0x11c   : > { %v1147_v33 = vmul.f32 %v1089_v26, %v830_v45  ;;  %v808_v4 = vadd.f32 %v784_v31, %v660_v60  ;;  %v811_v9 = vadd.f32 %v787_v54, %v663_v40  ;;  %1180 = vrot.lane.b32.xlu0 %v2272_v12, %s1667_s18  ;;  %v664_v25 = vadd.f32 %v640_v7, %v516_v52 }
 0x11d   : > { %v1150_v39 = vmul.f32 %v1104_v27, %v833_v48  ;;  %v745_v63 = vpop.permute.xlu1 %744  ;;  %v757_v32 = vpop.permute.xlu0 %756  ;;  %v642_v45 = vmul.f32 %v2002_v36, %v2385_v56  ;;  %v2387_v36 = vld [vmem:[#allocation6_spill] sm:$0xff] }
 0x11e   : > { %v832_v30 = vmax.f32 %v808_v4, 0.0  ;;  %v835_v26 = vmax.f32 %v811_v9, 0.0  ;;  %v786_v60 = vmul.f32 %v2083_v58, %v745_v63  ;;  %v789_v28 = vmul.f32 %v2083_v58, %v757_v32 }
 0x11f   : > { %v1166_v17 = vmax.f32 %v1158_v16, %v1150_v39  ;;  %v1163_v29 = vmax.f32 %v2187_v2, %v1147_v33  ;;  %v2386_v2 = vld [vmem:[#allocation2_spill] sm:$0xff]  ;;  %v1119_v52 = vadd.f32 %v2387_v36, %v2088_v1  ;;  %v1342_v39 = vadd.f32 %v1500_v3, %v2256_v13 }
 0x120   : > { %v1149_v40 = vmul.f32 %v1099_v51, %v832_v30  ;;  %v1152_v46 = vmul.f32 %v1114_v0, %v835_v26  ;;  %v810_v19 = vadd.f32 %v786_v60, %v662_v34  ;;  %v813_v27 = vadd.f32 %v789_v28, %v665_v44 }
 0x121   : > { %1184 = vrot.lane.b32.xlu0 %v1166_v17, %s1667_s18  ;;  %v753_v31 = vpop.permute.xlu1 %752  ;;  %v518_v57 = vmul.f32 %v2005_v37, %v2386_v2  ;;  %v1337_v28 = vadd.f32 %v2223_v62, %v1500_v3 }
 0x122   : > { %v834_v54 = vmax.f32 %v810_v19, 0.0  ;;  %v837_v55 = vmax.f32 %v813_v27, 0.0  ;;  %v788_v6 = vmul.f32 %v2083_v58, %v753_v31  ;;  %v1165_v59 = vmax.f32 %v1157_v20, %v1149_v40 }
 0x123   : > { %v1168_v16 = vmax.f32 %v1160_v47, %v1152_v46  ;;  %v666_v4 = vadd.f32 %v642_v45, %v518_v57  ;;  %v1129_v47 = vadd.f32 %v2388_v22, %v2088_v1  ;;  %v1322_v1 = vadd.f32 %v1500_v3, %v2209_v14 }
 0x124   : > { %v1151_v51 = vmul.f32 %v1109_v23, %v834_v54  ;;  %v1154_v48 = vmul.f32 %v1124_v10, %v837_v55  ;;  %v812_v33 = vadd.f32 %v788_v6, %v664_v25  ;;  %1182 = vrot.lane.b32.xlu1 %v1165_v59, %s1667_s18  ;;  %v1327_v14 = vadd.f32 %v2199_v61, %v1500_v3 }
 0x125   : > { %1188 = vrot.lane.b32.xlu0 %v1168_v16, %s1667_s18  ;;  %v761_v21 = vpop.permute.xlu1 %760  ;;  %v1352_v61 = vadd.f32 %v1500_v3, %v2282_v8  ;;  %v1347_v46 = vadd.f32 %v2249_v5, %v1500_v3  ;;  %v1357_v45 = vadd.f32 %v2274_v43, %v1500_v3 }
 0x126   : > { %v836_v53 = vmax.f32 %v812_v33, 0.0  ;;  %v790_v20 = vmul.f32 %v2083_v58, %v761_v21  ;;  %v1167_v37 = vmax.f32 %v1159_v49, %v1151_v51  ;;  %v1170_v42 = vmax.f32 %v1162_v50, %v1154_v48 }
 0x127   : > { %v1332_v49 = vadd.f32 %v1500_v3, %v2233_v41 }
 0x128   : > { %v1153_v9 = vmul.f32 %v1119_v52, %v836_v53  ;;  %v814_v0 = vadd.f32 %v790_v20, %v666_v4  ;;  %1186 = vrot.lane.b32.xlu1 %v1167_v37, %s1667_s18 }
 0x129   : > { %1192 = vrot.lane.b32.xlu0 %v1170_v42, %s1667_s18 }
 0x12a   : > { %v838_v34 = vmax.f32 %v814_v0, 0.0  ;;  %v1169_v58 = vmax.f32 %v1161_v35, %v1153_v9 }
 0x12c   : > { %v1155_v15 = vmul.f32 %v1129_v47, %v838_v34  ;;  %1190 = vrot.lane.b32.xlu1 %v1169_v58, %s1667_s18 }
 0x12e   : > { %v1171_v11 = vmax.f32 %v1163_v29, %v1155_v15 }
 0x130   : > { %1194 = vrot.lane.b32.xlu1 %v1171_v11, %s1667_s18 }
 0x18e   : > { %v1181_v38 = vpop.permute.xlu0 %1180 }
 0x18f   : > { %v1204_v24 = vadd.f32 %v1181_v38, %v2272_v12 }
 0x191   : > { %v1360_v50 = vadd.f32 %v1322_v1, %v1204_v24 }
 0x193   : > { %v1368_v35 = vmax.f32 %v1360_v50, 0.0  ;;  %v1185_v7 = vpop.permute.xlu0 %1184 }
 0x194   : > { %v1206_v44 = vadd.f32 %v1185_v7, %v1166_v17 }
 0x195   : > { %1377 = vst.msk [vmem:[%s2340_s23] sm:$0xff] %vm1376_vm1, %v1368_v35 }
 0x196   : > { %v1362_v12 = vadd.f32 %v1332_v49, %v1206_v44  ;;  %v1183_v63 = vpop.permute.xlu1 %1182 }
 0x197   : > { %v1205_v32 = vadd.f32 %v1183_v63, %v1165_v59  ;;  %v1189_v30 = vpop.permute.xlu0 %1188 }
 0x198   : > { %v1370_v26 = vmax.f32 %v1362_v12, 0.0  ;;  %v1208_v60 = vadd.f32 %v1189_v30, %v1168_v16 }
 0x199   : > { %v1361_v41 = vadd.f32 %v1327_v14, %v1205_v32 }
 0x19a   : > { %1379 = vst.msk [vmem:[%s2340_s23 + $0x10] sm:$0xff] %vm1376_vm1, %v1370_v26  ;;  %v1364_v18 = vadd.f32 %v1342_v39, %v1208_v60  ;;  %v1187_v23 = vpop.permute.xlu1 %1186 }
 0x19b   : > { %v1369_v17 = vmax.f32 %v1361_v41, 0.0  ;;  %v1207_v10 = vadd.f32 %v1187_v23, %v1167_v37  ;;  %v1193_v13 = vpop.permute.xlu0 %1192 }
 0x19c   : > { %v1372_v29 = vmax.f32 %v1364_v18, 0.0  ;;  %v1210_v40 = vadd.f32 %v1193_v13, %v1170_v42 }
 0x19d   : > { %1378 = vst.msk [vmem:[%s2340_s23 + $0x8] sm:$0xff] %vm1376_vm1, %v1369_v17  ;;  %v1363_v62 = vadd.f32 %v1337_v28, %v1207_v10 }
 0x19e   : > { %1381 = vst.msk [vmem:[%s2340_s23 + $0x20] sm:$0xff] %vm1376_vm1, %v1372_v29  ;;  %v1366_v19 = vadd.f32 %v1352_v61, %v1210_v40  ;;  %v1191_v27 = vpop.permute.xlu1 %1190 }
 0x19f   : > { %v1371_v8 = vmax.f32 %v1363_v62, 0.0  ;;  %v1209_v25 = vadd.f32 %v1191_v27, %v1169_v58 }
 0x1a0   : > { %v1374_v56 = vmax.f32 %v1366_v19, 0.0 }
 0x1a1   : > { %1380 = vst.msk [vmem:[%s2340_s23 + $0x18] sm:$0xff] %vm1376_vm1, %v1371_v8  ;;  %v1365_v31 = vadd.f32 %v1347_v46, %v1209_v25 }
 0x1a2   : > { %1383 = vst.msk [vmem:[%s2340_s23 + $0x30] sm:$0xff] %vm1376_vm1, %v1374_v56  ;;  %v1195_v5 = vpop.permute.xlu1 %1194 }
 0x1a3   : > { %v1373_v54 = vmax.f32 %v1365_v31, 0.0  ;;  %v1211_v55 = vadd.f32 %v1195_v5, %v1171_v11 }
 0x1a5   : > { %1382 = vst.msk [vmem:[%s2340_s23 + $0x28] sm:$0xff] %vm1376_vm1, %v1373_v54  ;;  %v1367_v6 = vadd.f32 %v1357_v45, %v1211_v55 }
 0x1a7   : > { %v1375_v59 = vmax.f32 %v1367_v6, 0.0 }
 0x1a9   : > { %1384 = vst.msk [vmem:[%s2340_s23 + $0x38] sm:$0xff] %vm1376_vm1, %v1375_v59 }
 0x1aa PF: > { %s18_s27 = sadd.s32 1, %s1662_s27  }
 0x1ab   : > { %p15_p4 = scmp.ge.s32.totalorder %s18_s27, 4  }
 0x1ad   :  { %17 = sbr.rel (!%p15_p4) target bundleno = 1 (0x1), region = 88 }

// kernel: gcn3d_forward.18
= control target key start
LH: loop header
LB: loop body
LE: loop exit
PB: predicated region body
PF: predicated region fallthrough
CT: control target
= control target key end

     0   :  { %s276_s6 = smov 0   ;;  %s345_s0 = inlined_call_operand.vmem [shape: f32[2,256,64], index: 0, kind: input, shape index: {}]   ;;  %s346_s1 = inlined_call_operand.vmem [shape: f32[2,64,64], index: 1, kind: output, shape index: {}]  }
   0x1 LB: > { %s237_s7 = sadd.s32 4294967295, %s264_s6   ;;  %p241_p0 = scmp.ge.s32.totalorder %s264_s6, 1  ;;  %s264_s6 = sphi %s276_s6, %s11_s6  }
   0x2   : > { %p87_p1 = scmp.lt.s32.totalorder %s264_s6, 3 }
   0x4   : > { %p88_p2 = pnand %p241_p0, %p87_p1 }
   0x5   : > { %p107_p3 = scmp.lt.s32.totalorder (!%p88_p2), %s237_s7, 1  ;;  %vm173_vm0 = vcmask (!%p88_p2), 523264  }
   0x6   : > { %91 = sbr.rel (%p88_p2) target bundleno = 34 (0x22), region = 24 }
   0xd   : > { %s348_s7 = smov (!%p107_p3, %s237_s7), 1 }
   0xe   : > { %s248_s8 = sshll.u32 %s348_s7, 8  ;;  %s249_s12 = sshll.u32 %s348_s7, 6 }
   0xf   : > { %s287_s11 = scalar_lea.vmem %s345_s0, %s248_s8  ;;  %s303_s15 = scalar_lea.vmem %s346_s1, %s249_s12 }
  0x10   : > { %v117_v0 = vld [vmem:[%s287_s11] sm:$0xff]  ;;  %v118_v4 = vld [vmem:[%s287_s11 + $0x8] sm:$0xff]  ;;  %v119_v9 = vld [vmem:[%s287_s11 + $0x10] sm:$0xff] }
  0x11   : > { %v125_v1 = vld [vmem:[%s287_s11 + $0x40] sm:$0xff]  ;;  %v126_v5 = vld [vmem:[%s287_s11 + $0x48] sm:$0xff]  ;;  %v127_v12 = vld [vmem:[%s287_s11 + $0x50] sm:$0xff] }
  0x12   : > { %v141_v2 = vld [vmem:[%s287_s11 + $0x80] sm:$0xff]  ;;  %v133_v3 = vmax.f32 %v117_v0, %v125_v1  ;;  %v134_v7 = vmax.f32 %v118_v4, %v126_v5  ;;  %v142_v8 = vld [vmem:[%s287_s11 + $0x88] sm:$0xff]  ;;  %v143_v13 = vld [vmem:[%s287_s11 + $0x90] sm:$0xff]  ;;  %v135_v15 = vmax.f32 %v119_v9, %v127_v12 }
  0x13   : > { %v157_v6 = vld [vmem:[%s287_s11 + $0xc0] sm:$0xff]  ;;  %v158_v11 = vld [vmem:[%s287_s11 + $0xc8] sm:$0xff]  ;;  %v120_v16 = vld [vmem:[%s287_s11 + $0x18] sm:$0xff] }
  0x14   : > { %v149_v10 = vmax.f32 %v133_v3, %v141_v2  ;;  %v150_v14 = vmax.f32 %v134_v7, %v142_v8  ;;  %v128_v17 = vld [vmem:[%s287_s11 + $0x58] sm:$0xff]  ;;  %v159_v20 = vld [vmem:[%s287_s11 + $0xd0] sm:$0xff]  ;;  %v121_v22 = vld [vmem:[%s287_s11 + $0x20] sm:$0xff]  ;;  %v151_v25 = vmax.f32 %v135_v15, %v143_v13 }
  0x15   : > { %v144_v18 = vld [vmem:[%s287_s11 + $0x98] sm:$0xff]  ;;  %v136_v21 = vmax.f32 %v120_v16, %v128_v17  ;;  %v129_v23 = vld [vmem:[%s287_s11 + $0x60] sm:$0xff]  ;;  %v122_v29 = vld [vmem:[%s287_s11 + $0x28] sm:$0xff] }
  0x16   : > { %v165_v19 = vmax.f32 %v149_v10, %v157_v6  ;;  %v166_v24 = vmax.f32 %v150_v14, %v158_v11  ;;  %v160_v26 = vld [vmem:[%s287_s11 + $0xd8] sm:$0xff]  ;;  %v137_v27 = vmax.f32 %v121_v22, %v129_v23  ;;  %v145_v28 = vld [vmem:[%s287_s11 + $0xa0] sm:$0xff]  ;;  %v130_v32 = vld [vmem:[%s287_s11 + $0x68] sm:$0xff]  ;;  %v167_v34 = vmax.f32 %v151_v25, %v159_v20 }
  0x17   : > { %v152_v30 = vmax.f32 %v136_v21, %v144_v18  ;;  %v161_v31 = vld [vmem:[%s287_s11 + $0xe0] sm:$0xff]  ;;  %v146_v33 = vld [vmem:[%s287_s11 + $0xa8] sm:$0xff]  ;;  %v138_v36 = vmax.f32 %v122_v29, %v130_v32  ;;  %v123_v37 = vld [vmem:[%s287_s11 + $0x30] sm:$0xff] }
  0x18   : > { %174 = vst.msk [vmem:[%s303_s15] sm:$0xff] %vm173_vm0, %v165_v19  ;;  %175 = vst.msk [vmem:[%s303_s15 + $0x8] sm:$0xff] %vm173_vm0, %v166_v24  ;;  %v153_v35 = vmax.f32 %v137_v27, %v145_v28  ;;  %v131_v38 = vld [vmem:[%s287_s11 + $0x70] sm:$0xff]  ;;  %v162_v41 = vld [vmem:[%s287_s11 + $0xe8] sm:$0xff] }
  0x19   : > { %v147_v39 = vld [vmem:[%s287_s11 + $0xb0] sm:$0xff]  ;;  %v168_v40 = vmax.f32 %v152_v30, %v160_v26  ;;  %v139_v42 = vmax.f32 %v123_v37, %v131_v38  ;;  %v124_v43 = vld [vmem:[%s287_s11 + $0x38] sm:$0xff]  ;;  %176 = vst.msk [vmem:[%s303_s15 + $0x10] sm:$0xff] %vm173_vm0, %v167_v34  ;;  %v154_v46 = vmax.f32 %v138_v36, %v146_v33 }
  0x1a   : > { %v132_v44 = vld [vmem:[%s287_s11 + $0x78] sm:$0xff]  ;;  %v169_v45 = vmax.f32 %v153_v35, %v161_v31  ;;  %v163_v47 = vld [vmem:[%s287_s11 + $0xf0] sm:$0xff] }
  0x1b   : > { %v140_v48 = vmax.f32 %v124_v43, %v132_v44  ;;  %v148_v49 = vld [vmem:[%s287_s11 + $0xb8] sm:$0xff]  ;;  %177 = vst.msk [vmem:[%s303_s15 + $0x18] sm:$0xff] %vm173_vm0, %v168_v40  ;;  %v155_v50 = vmax.f32 %v139_v42, %v147_v39  ;;  %v170_v52 = vmax.f32 %v154_v46, %v162_v41 }
  0x1c   : > { %v164_v51 = vld [vmem:[%s287_s11 + $0xf8] sm:$0xff]  ;;  %178 = vst.msk [vmem:[%s303_s15 + $0x20] sm:$0xff] %vm173_vm0, %v169_v45 }
  0x1d   : > { %v156_v53 = vmax.f32 %v140_v48, %v148_v49  ;;  %v171_v54 = vmax.f32 %v155_v50, %v163_v47  ;;  %179 = vst.msk [vmem:[%s303_s15 + $0x28] sm:$0xff] %vm173_vm0, %v170_v52 }
  0x1f   : > { %v172_v55 = vmax.f32 %v156_v53, %v164_v51  ;;  %180 = vst.msk [vmem:[%s303_s15 + $0x30] sm:$0xff] %vm173_vm0, %v171_v54 }
  0x21   : > { %181 = vst.msk [vmem:[%s303_s15 + $0x38] sm:$0xff] %vm173_vm0, %v172_v55 }
  0x22 PF: > { %s11_s6 = sadd.s32 1, %s264_s6  }
  0x23   : > { %p8_p4 = scmp.ge.s32.totalorder %s11_s6, 4  }
  0x25   :  { %10 = sbr.rel (!%p8_p4) target bundleno = 1 (0x1), region = 54 }

// kernel: gcn3d_forward.19
= control target key start
LH: loop header
LB: loop body
LE: loop exit
PB: predicated region body
PF: predicated region fallthrough
CT: control target
= control target key end

     0   :  { %s1080_s27 = smov 0   ;;  %s1274_s0 = inlined_call_operand.vmem [shape: f32[2,48,3], index: 0, kind: input, shape index: {}]   ;;  %s1275_s1 = inlined_call_operand.vmem [shape: f32[3,256], index: 1, kind: input, shape index: {}]   ;;  %s1276_s2 = inlined_call_operand.vmem [shape: f32[2,48,64], index: 2, kind: input, shape index: {}]   ;;  %s1277_s3 = inlined_call_operand.vmem [shape: f32[2,16,64], index: 3, kind: input, shape index: {}]   ;;  %s1278_s4 = inlined_call_operand.vmem [shape: f32[64,128], index: 4, kind: input, shape index: {}]   ;;  %s1279_s5 = inlined_call_operand.vmem [shape: f32[64,256], index: 5, kind: input, shape index: {}]   ;;  %s1280_s6 = inlined_call_operand.vmem [shape: f32[1,128], index: 6, kind: input, shape index: {}]   ;;  %s1281_s7 = inlined_call_operand.vmem [shape: f32[1,256], index: 7, kind: input, shape index: {}]   ;;  %s1282_s8 = inlined_call_operand.vmem [shape: f32[2,16,128], index: 8, kind: output, shape index: {}]  }
   0x1 LB: > { %s917_s28 = sadd.s32 4294967295, %s1029_s27   ;;  %p921_p0 = scmp.ge.s32.totalorder %s1029_s27, 1  ;;  %s1029_s27 = sphi %s1080_s27, %s18_s27  }
   0x2   : > { %p282_p1 = scmp.lt.s32.totalorder %s1029_s27, 3 }
   0x4   : > { %p283_p2 = pnand %p921_p0, %p282_p1 }
   0x5   : > { %v565_v0 = vld [vmem:[%s1279_s5 + $0x8] sm:$0xff] (!%p283_p2)  ;;  %v567_v1 = vld [vmem:[%s1279_s5 + $0x18] sm:$0xff] (!%p283_p2)  ;;  %v564_v2 = vld [vmem:[%s1279_s5] sm:$0xff] (!%p283_p2)  ;;  %p326_p3 = scmp.lt.s32.totalorder (!%p283_p2), %s917_s28, 1  ;;  %v1031_v7 = vmov (!%p283_p2), 0.0   ;;  %v1032_v13 = vmov (!%p283_p2), 0   ;;  %v384_v61 = vlaneseq (!%p283_p2) }
   0x6   : > { %286 = sbr.rel (%p283_p2) target bundleno = 271 (0x10f), region = 52  ;;  %v970_v3 = vpack.c.bf16 (!%p283_p2), %v567_v1, %v565_v0  ;;  %v566_v4 = vld [vmem:[%s1279_s5 + $0x10] sm:$0xff] (!%p283_p2)  ;;  %v569_v5 = vld [vmem:[%s1279_s5 + $0x28] sm:$0xff] (!%p283_p2)  ;;  %v571_v6 = vld [vmem:[%s1279_s5 + $0x38] sm:$0xff] (!%p283_p2)  ;;  %675 = vmatprep.mubr.f32.mxu0 (!%p283_p2), %v1031_v7  ;;  %1015 = vset.pattern.permute.xlu1 (!%p283_p2), %v1032_v13  ;;  %v1033_v14 = vmov (!%p283_p2), 1   ;;  %vm592_vm0 = vcmask (!%p283_p2), 523264  }
   0x7   : > { %v972_v8 = vpack.c.bf16 (!%p283_p2), %v566_v4, %v564_v2  ;;  %v974_v9 = vpack.c.bf16 (!%p283_p2), %v571_v6, %v569_v5  ;;  %v568_v10 = vld [vmem:[%s1279_s5 + $0x20] sm:$0xff] (!%p283_p2)  ;;  %v570_v11 = vld [vmem:[%s1279_s5 + $0x30] sm:$0xff] (!%p283_p2)  ;;  %v573_v12 = vld [vmem:[%s1279_s5 + $0x48] sm:$0xff] (!%p283_p2)  ;;  %1016 = vset.pattern.permute.xlu0 (!%p283_p2), %v1033_v14  ;;  %v1034_v52 = vmov (!%p283_p2), 2   ;;  %v385_v63 = vshrl.u32 (!%p283_p2), %v384_v61, 7 }
   0x8   : > { %971 = vmatprep.subr.bf16.mxu0 (!%p283_p2), %v970_v3  ;;  %v575_v15 = vld [vmem:[%s1279_s5 + $0x58] sm:$0xff] (!%p283_p2)  ;;  %v976_v16 = vpack.c.bf16 (!%p283_p2), %v570_v11, %v568_v10  ;;  %v572_v17 = vld [vmem:[%s1279_s5 + $0x40] sm:$0xff] (!%p283_p2)  ;;  %v574_v18 = vld [vmem:[%s1279_s5 + $0x50] sm:$0xff] (!%p283_p2) }
   0x9   : > { %973 = vmatpush1.bf16.msra.mxu0 (!%p283_p2), %v972_v8  ;;  %v978_v19 = vpack.c.bf16 (!%p283_p2), %v575_v15, %v573_v12  ;;  %v577_v20 = vld [vmem:[%s1279_s5 + $0x68] sm:$0xff] (!%p283_p2)  ;;  %v736_v21 = vld [vmem:[%s1278_s4] sm:$0xff] (!%p283_p2)  ;;  %v579_v23 = vld [vmem:[%s1279_s5 + $0x78] sm:$0xff] (!%p283_p2)  ;;  %v980_v29 = vpack.c.bf16 (!%p283_p2), %v574_v18, %v572_v17  ;;  %v386_v2 = vsub.s32 (!%p283_p2), 0, %v385_v63  ;;  %v390_v3 = vsub.s32 (!%p283_p2), 4, %v385_v63 }
   0xa   : > { %975 = vmatprep.subr.bf16.mxu0 (!%p283_p2), %v974_v9  ;;  %v737_v22 = vld [vmem:[%s1278_s4 + $0x8] sm:$0xff] (!%p283_p2)  ;;  %v738_v25 = vld [vmem:[%s1278_s4 + $0x10] sm:$0xff] (!%p283_p2)  ;;  %v739_v26 = vld [vmem:[%s1278_s4 + $0x18] sm:$0xff] (!%p283_p2)  ;;  %v982_v31 = vpack.c.bf16 (!%p283_p2), %v579_v23, %v577_v20  ;;  %v440_v4 = vsub.s32 (!%p283_p2), 1, %v385_v63  ;;  %v444_v5 = vsub.s32 (!%p283_p2), 5, %v385_v63 }
   0xb   : > { %v986_v24 = vpack.c.bf16 (!%p283_p2), %v737_v22, %v736_v21  ;;  %v990_v27 = vpack.c.bf16 (!%p283_p2), %v739_v26, %v738_v25  ;;  %v740_v28 = vld [vmem:[%s1278_s4 + $0x20] sm:$0xff] (!%p283_p2)  ;;  %v741_v30 = vld [vmem:[%s1278_s4 + $0x28] sm:$0xff] (!%p283_p2)  ;;  %v578_v33 = vld [vmem:[%s1279_s5 + $0x70] sm:$0xff] (!%p283_p2) }
   0xc   : > { %v576_v32 = vld [vmem:[%s1279_s5 + $0x60] sm:$0xff] (!%p283_p2)  ;;  %v994_v34 = vpack.c.bf16 (!%p283_p2), %v741_v30, %v740_v28  ;;  %v742_v37 = vld [vmem:[%s1278_s4 + $0x30] sm:$0xff] (!%p283_p2)  ;;  %v743_v38 = vld [vmem:[%s1278_s4 + $0x38] sm:$0xff] (!%p283_p2) }
   0xd   : > { %s1284_s28 = smov (!%p326_p3, %s917_s28), 1  ;;  %977 = vmatpush1.bf16.msra.mxu0 %v976_v16  ;;  %987 = vmatprep.subr.bf16.mxu1 %v986_v24  ;;  %v984_v40 = vpack.c.bf16 %v578_v33, %v576_v32  ;;  %v998_v42 = vpack.c.bf16 %v743_v38, %v742_v37  ;;  %v352_v6 = vld [vmem:[%s1275_s1] sm:$0x77] }
   0xe   : > { %s939_s11 = sshll.u32 %s1284_s28, 4  ;;  %s1002_s14 = smul.u32 48, %s1284_s28  ;;  %979 = vmatprep.subr.bf16.mxu0 %v978_v19  ;;  %989 = vmatpush3.bf16.msra.mxu1 %v986_v24  ;;  %v387_v8 = vrot.slane %v352_v6, %v386_v2  ;;  %v391_v9 = vrot.slane %v352_v6, %v390_v3  ;;  %v441_v10 = vrot.slane %v352_v6, %v440_v4  ;;  %v580_v23 = vld [vmem:[%s1281_s7] sm:$0x3] }
   0xf   : > { %s1157_s9 = scalar_lea.vmem %s1277_s3, %s939_s11  ;;  %991 = vmatprep.subr.bf16.mxu1 %v990_v27  ;;  %v445_v11 = vrot.slane %v352_v6, %v444_v5  ;;  %s345_s17 = scalar_lea.vmem %s1282_s8, %s939_s11 }
  0x10   : > { %s1164_s13 = scalar_lea.vmem %s1274_s0, %s1002_s14  ;;  %v734_v35 = vld [vmem:[%s1157_s9] sm:$0xff]  ;;  %s1191_s29 = scalar_lea.vmem %s1276_s2, %s1002_s14  ;;  %v735_v46 = vld [vmem:[%s1157_s9 + $0x8] sm:$0xff]  ;;  %v397_v15 = vrot.slane %v387_v8, %v386_v2  ;;  %v401_v16 = vrot.slane %v391_v9, %v386_v2  ;;  %v451_v17 = vrot.slane %v441_v10, %v440_v4 }
  0x11   : > { %v348_v36 = vld [vmem:[%s1164_s13 + $0x10] sm:$0xff]  ;;  %967 = vmatprep.mubr.msk.f32.mxu1 %vm592_vm0, %v734_v35  ;;  %v346_v39 = vld [vmem:[%s1164_s13] sm:$0xff]  ;;  %981 = vmatpush1.bf16.msra.mxu0 %v980_v29  ;;  %v349_v41 = vld [vmem:[%s1164_s13 + $0x18] sm:$0xff]  ;;  %v455_v18 = vrot.slane %v445_v11, %v440_v4  ;;  %v1231_v35 = vrot.slane %v580_v23, %v440_v4 }
  0x12   : > { %365 = vperm.xlu1 %1015, %v348_v36   ;;  %415 = vperm.xlu0 %1016, %v346_v39   ;;  %v558_v43 = vld [vmem:[%s1191_s29] sm:$0xff]  ;;  %v347_v44 = vld [vmem:[%s1164_s13 + $0x8] sm:$0xff]  ;;  %v560_v47 = vld [vmem:[%s1191_s29 + $0x10] sm:$0xff] }
  0x13   : > { %983 = vmatprep.subr.bf16.mxu0 %v982_v31  ;;  %993 = vmatpush3.bf16.msra.mxu1 %v990_v27  ;;  %v559_v45 = vld [vmem:[%s1191_s29 + $0x8] sm:$0xff]  ;;  %v350_v48 = vld [vmem:[%s1164_s13 + $0x20] sm:$0xff]  ;;  %v561_v50 = vld [vmem:[%s1191_s29 + $0x18] sm:$0xff] }
  0x14   : > { %995 = vmatprep.subr.bf16.mxu1 %v994_v34  ;;  %v351_v49 = vld [vmem:[%s1164_s13 + $0x28] sm:$0xff]  ;;  %v562_v51 = vld [vmem:[%s1191_s29 + $0x20] sm:$0xff] }
  0x15   : > { %985 = vmatpush1.bf16.msra.mxu0 %v984_v40  ;;  %v563_v53 = vld [vmem:[%s1191_s29 + $0x28] sm:$0xff] }
  0x16   : > { %370 = vperm.xlu1 %1015, %v349_v41   ;;  %427 = vperm.xlu0 %1016, %v349_v41  }
  0x17   : > { %997 = vmatpush3.bf16.msra.mxu1 %v994_v34  ;;  %v1229_v34 = vrot.slane %v580_v23, %v386_v2 }
  0x18   : > { %999 = vmatprep.subr.bf16.mxu1 %v998_v42  ;;  %928 = vmatmul.mubr.msk.f32.vlgmr.msra.gmra.mrb[0].mxu0 %vm592_vm0, %v558_v43 }
  0x19   : > { %681 = vmatprep.mubr.f32.mxu0 %v1031_v7 }
  0x1a   : > { %1017 = vset.pattern.permute.xlu1 %v1033_v14  ;;  %1018 = vset.pattern.permute.xlu0 %v1032_v13 }
  0x1b   : > { %419 = vperm.xlu1 %1017, %v347_v44   ;;  %1001 = vmatpush3.bf16.msra.mxu1 %v998_v42 }
  0x1c   : > { %355 = vperm.xlu0 %1018, %v346_v39   ;;  %929 = vmatmul.mubr.msk.f32.gmra.mrb[2].mxu0 %vm592_vm0, %v559_v45 }
  0x1d   : > { %687 = vmatprep.mubr.f32.mxu0 %v1031_v7 }
  0x1e   : > { %968 = vmatmul.mubr.msk.f32.vlgmr.msra.gmra.mrb[0].mxu1 %vm592_vm0, %v735_v46 }
  0x1f   : > { %423 = vperm.xlu1 %1017, %v348_v36  }
  0x20   : > { %360 = vperm.xlu0 %1018, %v347_v44   ;;  %930 = vmatmul.mubr.msk.f32.gmra.mrb[4].mxu0 %vm592_vm0, %v560_v47 }
  0x21   : > { %693 = vmatprep.mubr.f32.mxu0 %v1031_v7 }
  0x23   : > { %1019 = vset.pattern.permute.xlu1 %v1032_v13  ;;  %v506_v13 = vsub.s32 2, %v385_v63 }
  0x24   : > { %375 = vperm.xlu1 %1019, %v350_v48   ;;  %380 = vperm.xlu0 %1018, %v351_v49  }
  0x25   : > { %931 = vmatmul.mubr.msk.f32.gmra.mrb[6].mxu0 %vm592_vm0, %v561_v50  ;;  %v507_v20 = vrot.slane %v352_v6, %v506_v13 }
  0x26   : > { %699 = vmatprep.mubr.f32.mxu0 %v1031_v7 }
  0x27   : > { %v1225_v32 = vrot.slane %v507_v20, %v506_v13 }
  0x28   : > { %1020 = vset.pattern.permute.xlu1 %v1033_v14  ;;  %1021 = vset.pattern.permute.xlu0 %v1034_v52  ;;  %v510_v14 = vsub.s32 6, %v385_v63 }
  0x29   : > { %932 = vmatmul.mubr.msk.f32.gmra.mrb[8].mxu0 %vm592_vm0, %v562_v51  ;;  %431 = vperm.xlu1 %1020, %v350_v48  }
  0x2a   : > { %705 = vmatprep.mubr.f32.mxu0 %v1031_v7  ;;  %481 = vperm.xlu0 %1021, %v346_v39   ;;  %v511_v21 = vrot.slane %v352_v6, %v510_v14 }
  0x2c   : > { %v1227_v33 = vrot.slane %v511_v21, %v506_v13 }
  0x2d   : > { %933 = vmatmul.mubr.msk.f32.gmra.mrb[10].mxu0 %vm592_vm0, %v563_v53  ;;  %435 = vperm.xlu1 %1020, %v351_v49  }
  0x2e   : > { %493 = vperm.xlu0 %1021, %v349_v41  }
  0x31   : > { %1022 = vset.pattern.permute.xlu1 %v1034_v52 }
  0x32   : > { %485 = vperm.xlu1 %1022, %v347_v44   ;;  %501 = vperm.xlu0 %1021, %v351_v49  }
  0x36   : > { %489 = vperm.xlu1 %1022, %v348_v36  }
  0x3a   : > { %497 = vperm.xlu1 %1022, %v350_v48  }
  0x91   : > { %v366_v54 = vpop.permute.xlu1 %365  ;;  %v416_v56 = vpop.permute.xlu0 %415 }
  0x92   : > { %v456_v28 = vmul.f32 %v451_v17, %v416_v56  ;;  %v457_v29 = vmul.f32 %v455_v18, %v416_v56  ;;  %v406_v36 = vmul.f32 %v397_v15, %v366_v54  ;;  %v407_v37 = vmul.f32 %v401_v16, %v366_v54 }
  0x95   : > { %v371_v55 = vpop.permute.xlu1 %370  ;;  %v428_v58 = vpop.permute.xlu0 %427 }
  0x96   : > { %v408_v24 = vmul.f32 %v397_v15, %v371_v55  ;;  %v409_v25 = vmul.f32 %v401_v16, %v371_v55  ;;  %v462_v26 = vmul.f32 %v451_v17, %v428_v58  ;;  %v463_v27 = vmul.f32 %v455_v18, %v428_v58 }
  0x98   : > { %v474_v43 = vadd.f32 %v462_v26, %v408_v24  ;;  %v475_v44 = vadd.f32 %v463_v27, %v409_v25 }
  0x9a   : > { %v420_v57 = vpop.permute.xlu1 %419 }
  0x9b   : > { %v356_v60 = vpop.permute.xlu0 %355  ;;  %v458_v41 = vmul.f32 %v451_v17, %v420_v57  ;;  %v459_v42 = vmul.f32 %v455_v18, %v420_v57 }
  0x9c   : > { %v402_v30 = vmul.f32 %v397_v15, %v356_v60  ;;  %v403_v31 = vmul.f32 %v401_v16, %v356_v60 }
  0x9e   : > { %v424_v59 = vpop.permute.xlu1 %423  ;;  %v468_v46 = vadd.f32 %v456_v28, %v402_v30  ;;  %v469_v47 = vadd.f32 %v457_v29, %v403_v31 }
  0x9f   : > { %v361_v0 = vpop.permute.xlu0 %360  ;;  %v460_v38 = vmul.f32 %v451_v17, %v424_v59  ;;  %v461_v39 = vmul.f32 %v455_v18, %v424_v59 }
  0xa0   : > { %v404_v50 = vmul.f32 %v397_v15, %v361_v0  ;;  %v405_v51 = vmul.f32 %v401_v16, %v361_v0 }
  0xa1   : > { %v472_v55 = vadd.f32 %v460_v38, %v406_v36  ;;  %v473_v56 = vadd.f32 %v461_v39, %v407_v37 }
  0xa2   : > { %v470_v13 = vadd.f32 %v458_v41, %v404_v50  ;;  %v471_v14 = vadd.f32 %v459_v42, %v405_v51 }
  0xa3   : > { %v376_v62 = vpop.permute.xlu1 %375  ;;  %v381_v7 = vpop.permute.xlu0 %380 }
  0xa4   : > { %v410_v58 = vmul.f32 %v397_v15, %v376_v62  ;;  %v411_v60 = vmul.f32 %v401_v16, %v376_v62  ;;  %v412_v4 = vmul.f32 %v397_v15, %v381_v7  ;;  %v413_v8 = vmul.f32 %v401_v16, %v381_v7 }
  0xa8   : > { %v432_v1 = vpop.permute.xlu1 %431 }
  0xa9   : > { %v482_v19 = vpop.permute.xlu0 %481  ;;  %v464_v61 = vmul.f32 %v451_v17, %v432_v1  ;;  %v465_v63 = vmul.f32 %v455_v18, %v432_v1 }
  0xaa   : > { %v522_v48 = vmul.f32 %v1225_v32, %v482_v19  ;;  %v523_v49 = vmul.f32 %v1227_v33, %v482_v19 }
  0xab   : > { %v476_v1 = vadd.f32 %v464_v61, %v410_v58  ;;  %v477_v23 = vadd.f32 %v465_v63, %v411_v60 }
  0xac   : > { %v436_v12 = vpop.permute.xlu1 %435  ;;  %v534_v5 = vadd.f32 %v522_v48, %v468_v46  ;;  %v535_v0 = vadd.f32 %v523_v49, %v469_v47 }
  0xad   : > { %v494_v40 = vpop.permute.xlu0 %493  ;;  %v466_v3 = vmul.f32 %v451_v17, %v436_v12  ;;  %v467_v6 = vmul.f32 %v455_v18, %v436_v12 }
  0xae   : > { %v528_v52 = vmul.f32 %v1225_v32, %v494_v40  ;;  %v529_v53 = vmul.f32 %v1227_v33, %v494_v40  ;;  %v546_v12 = vmax.f32 %v534_v5, 0.0  ;;  %v547_v16 = vmax.f32 %v535_v0, 0.0 }
  0xaf   : > { %v478_v7 = vadd.f32 %v466_v3, %v412_v4  ;;  %v479_v26 = vadd.f32 %v467_v6, %v413_v8 }
  0xb0   : > { %v540_v9 = vadd.f32 %v528_v52, %v474_v43  ;;  %v541_v10 = vadd.f32 %v529_v53, %v475_v44 }
  0xb1   : > { %v486_v22 = vpop.permute.xlu1 %485  ;;  %v502_v29 = vpop.permute.xlu0 %501 }
  0xb2   : > { %v524_v19 = vmul.f32 %v1225_v32, %v486_v22  ;;  %v525_v17 = vmul.f32 %v1227_v33, %v486_v22  ;;  %v552_v27 = vmax.f32 %v540_v9, 0.0  ;;  %v553_v28 = vmax.f32 %v541_v10, 0.0 }
  0xb3   : > { %v532_v44 = vmul.f32 %v1225_v32, %v502_v29  ;;  %v533_v48 = vmul.f32 %v1227_v33, %v502_v29 }
  0xb4   : > { %v536_v36 = vadd.f32 %v524_v19, %v470_v13  ;;  %v537_v40 = vadd.f32 %v525_v17, %v471_v14  ;;  %v934_v19 = vld [vmem:[%s1280_s6] ss:$0 sm:$0xff] }
  0xb5   : > { %v490_v45 = vpop.permute.xlu1 %489  ;;  %v544_v5 = vadd.f32 %v532_v44, %v478_v7  ;;  %v545_v10 = vadd.f32 %v533_v48, %v479_v26 }
  0xb6   : > { %v526_v57 = vmul.f32 %v1225_v32, %v490_v45  ;;  %v527_v2 = vmul.f32 %v1227_v33, %v490_v45  ;;  %v548_v53 = vmax.f32 %v536_v36, 0.0 }
  0xb8   : > { %v538_v20 = vadd.f32 %v526_v57, %v472_v55  ;;  %v539_v15 = vadd.f32 %v527_v2, %v473_v56  ;;  %v549_v57 = vmax.f32 %v537_v40, 0.0 }
  0xb9   : > { %v498_v24 = vpop.permute.xlu1 %497 }
  0xba   : > { %v550_v37 = vmax.f32 %v538_v20, 0.0  ;;  %v530_v22 = vmul.f32 %v1225_v32, %v498_v24  ;;  %v551_v41 = vmax.f32 %v539_v15, 0.0  ;;  %v531_v42 = vmul.f32 %v1227_v33, %v498_v24 }
  0xbb   : > { %v557_v24 = vmax.f32 %v545_v10, 0.0 }
  0xeb   : > { %v677_v54 = vpop.f32.mrb[0].mxu0 }
  0xec   : > { %v679_v59 = vpop.f32.mrb[1].mxu0  ;;  %v678_v18 = vadd.f32 %v677_v54, %v1229_v34  ;;  %v542_v54 = vadd.f32 %v530_v22, %v476_v1  ;;  %v556_v1 = vmax.f32 %v544_v5, 0.0 }
  0xed   : > { %v680_v30 = vadd.f32 %v679_v59, %v1231_v35  ;;  %v543_v59 = vadd.f32 %v531_v42, %v477_v23 }
  0xee   : > { %v712_v45 = vmul.f32 %v678_v18, %v546_v12  ;;  %v554_v4 = vmax.f32 %v542_v54, 0.0 }
  0xef   : > { %v683_v11 = vpop.f32.mrb[2].mxu0  ;;  %v713_v49 = vmul.f32 %v680_v30, %v547_v16  ;;  %v555_v9 = vmax.f32 %v543_v59, 0.0 }
  0xf0   : > { %v685_v21 = vpop.f32.mrb[3].mxu0  ;;  %v684_v46 = vadd.f32 %v683_v11, %v1229_v34 }
  0xf1   : > { %v1240_v62 = vpop.f32.mrb[0].mxu1  ;;  %v686_v50 = vadd.f32 %v685_v21, %v1231_v35 }
  0xf2   : > { %v1243_v25 = vpop.f32.mrb[1].mxu1  ;;  %v714_v61 = vmul.f32 %v684_v46, %v548_v53  ;;  %v829_v30 = vadd.f32 %v1240_v62, %v934_v19 }
  0xf3   : > { %v689_v31 = vpop.f32.mrb[4].mxu0  ;;  %v715_v2 = vmul.f32 %v686_v50, %v549_v57  ;;  %v824_v16 = vadd.f32 %v934_v19, %v1243_v25 }
  0xf4   : > { %v690_v38 = vadd.f32 %v689_v31, %v1229_v34  ;;  %v691_v39 = vpop.f32.mrb[5].mxu0 }
  0xf5   : > { %v692_v43 = vadd.f32 %v691_v39, %v1231_v35 }
  0xf6   : > { %v716_v47 = vmul.f32 %v690_v38, %v550_v37 }
  0xf7   : > { %v717_v51 = vmul.f32 %v692_v43, %v551_v41 }
  0xf8   : > { %v695_v52 = vpop.f32.mrb[6].mxu0  ;;  %v724_v55 = vmax.f32 %v712_v45, %v716_v47 }
  0xf9   : > { %v696_v56 = vadd.f32 %v695_v52, %v1229_v34  ;;  %v697_v58 = vpop.f32.mrb[7].mxu0  ;;  %v725_v32 = vmax.f32 %v713_v49, %v717_v51 }
  0xfa   : > { %v698_v60 = vadd.f32 %v697_v58, %v1231_v35 }
  0xfb   : > { %v718_v63 = vmul.f32 %v696_v56, %v552_v27 }
  0xfc   : > { %v719_v33 = vmul.f32 %v698_v60, %v553_v28  ;;  %v701_v3 = vpop.f32.mrb[8].mxu0 }
  0xfd   : > { %v726_v0 = vmax.f32 %v714_v61, %v718_v63  ;;  %v702_v6 = vadd.f32 %v701_v3, %v1229_v34  ;;  %v703_v8 = vpop.f32.mrb[9].mxu0 }
  0xfe   : > { %v727_v11 = vmax.f32 %v715_v2, %v719_v33  ;;  %v704_v13 = vadd.f32 %v703_v8, %v1231_v35 }
  0xff   : > { %v720_v14 = vmul.f32 %v702_v6, %v554_v4 }
 0x100   : > { %v721_v20 = vmul.f32 %v704_v13, %v555_v9  ;;  %v707_v21 = vpop.f32.mrb[10].mxu0 }
 0x101   : > { %v728_v23 = vmax.f32 %v724_v55, %v720_v14  ;;  %v708_v17 = vadd.f32 %v707_v21, %v1229_v34  ;;  %v709_v15 = vpop.f32.mrb[11].mxu0 }
 0x102   : > { %v729_v7 = vmax.f32 %v725_v32, %v721_v20  ;;  %v710_v12 = vadd.f32 %v709_v15, %v1231_v35 }
 0x103   : > { %v722_v18 = vmul.f32 %v708_v17, %v556_v1 }
 0x104   : > { %v723_v26 = vmul.f32 %v710_v12, %v557_v24  ;;  %v732_v27 = vadd.f32 %v729_v7, %v728_v23 }
 0x105   : > { %v730_v28 = vmax.f32 %v726_v0, %v722_v18 }
 0x106   : > { %v731_v29 = vmax.f32 %v727_v11, %v723_v26  ;;  %v832_v31 = vadd.f32 %v824_v16, %v732_v27 }
 0x108   : > { %v733_v34 = vadd.f32 %v731_v29, %v730_v28  ;;  %v834_v36 = vmax.f32 %v832_v31, 0.0 }
 0x10a   : > { %v833_v37 = vadd.f32 %v829_v30, %v733_v34  ;;  %836 = vst [vmem:[%s345_s17] sm:$0xff] %v834_v36 }
 0x10c   : > { %v835_v35 = vmax.f32 %v833_v37, 0.0 }
 0x10e   : > { %837 = vst [vmem:[%s345_s17 + $0x8] sm:$0xff] %v835_v35 }
 0x10f PF: > { %s18_s27 = sadd.s32 1, %s1029_s27  }
 0x110   : > { %p15_p4 = scmp.ge.s32.totalorder %s18_s27, 4  }
 0x112   :  { %17 = sbr.rel (!%p15_p4) target bundleno = 1 (0x1), region = 88 }

// kernel: gcn3d_forward.20
= control target key start
LH: loop header
LB: loop body
LE: loop exit
PB: predicated region body
PF: predicated region fallthrough
CT: control target
= control target key end

     0   :  { %s1443_s27 = smov 0   ;;  %s2092_s0 = inlined_call_operand.vmem [shape: f32[2,48,3], index: 0, kind: input, shape index: {}]   ;;  %s2093_s1 = inlined_call_operand.vmem [shape: f32[3,512], index: 1, kind: input, shape index: {}]   ;;  %s2094_s2 = inlined_call_operand.vmem [shape: f32[2,48,128], index: 2, kind: input, shape index: {}]   ;;  %s2095_s3 = inlined_call_operand.vmem [shape: f32[2,16,128], index: 3, kind: input, shape index: {}]   ;;  %s2096_s4 = inlined_call_operand.vmem [shape: f32[128,256], index: 4, kind: input, shape index: {}]   ;;  %s2097_s5 = inlined_call_operand.vmem [shape: f32[128,512], index: 5, kind: input, shape index: {}]   ;;  %s2098_s6 = inlined_call_operand.vmem [shape: f32[1,256], index: 6, kind: input, shape index: {}]   ;;  %s2099_s7 = inlined_call_operand.vmem [shape: f32[1,512], index: 7, kind: input, shape index: {}]   ;;  %s2100_s8 = inlined_call_operand.vmem [shape: f32[2,16,256], index: 8, kind: output, shape index: {}]  }
   0x1 LB: > { %s1238_s28 = sadd.s32 4294967295, %s1392_s27   ;;  %p1242_p0 = scmp.ge.s32.totalorder %s1392_s27, 1  ;;  %s1392_s27 = sphi %s1443_s27, %s18_s27  }
   0x2   : > { %p282_p1 = scmp.lt.s32.totalorder %s1392_s27, 3 }
   0x4   : > { %p283_p2 = pnand %p1242_p0, %p282_p1 }
   0x6   : > { %286 = sbr.rel (%p283_p2) target bundleno = 302 (0x12e), region = 52 }
   0xd   : > { %v693_v0 = vld [vmem:[%s2097_s5 + $0x8] sm:$0xff]  ;;  %v695_v2 = vld [vmem:[%s2097_s5 + $0x18] sm:$0xff]  ;;  %v692_v5 = vld [vmem:[%s2097_s5] sm:$0xff]  ;;  %v1394_v7 = vmov 0.0   ;;  %v1395_v13 = vmov 0   ;;  %v1396_v14 = vmov 1  }
   0xe   : > { %v697_v1 = vld [vmem:[%s2097_s5 + $0x28] sm:$0xff]  ;;  %v699_v4 = vld [vmem:[%s2097_s5 + $0x38] sm:$0xff]  ;;  %v696_v6 = vld [vmem:[%s2097_s5 + $0x20] sm:$0xff]  ;;  %842 = vmatprep.mubr.f32.mxu0 %v1394_v7  ;;  %943 = vmatprep.mubr.f32.mxu1 %v1394_v7  ;;  %p1598_p3 = scmp.lt.s32.totalorder %s1238_s28, 1 }
   0xf   : > { %v1253_v3 = vpack.c.bf16 %v697_v1, %v693_v0  ;;  %v1285_v8 = vpack.c.bf16 %v699_v4, %v695_v2  ;;  %v1255_v9 = vpack.c.bf16 %v696_v6, %v692_v5  ;;  %v694_v10 = vld [vmem:[%s2097_s5 + $0x10] sm:$0xff]  ;;  %v701_v12 = vld [vmem:[%s2097_s5 + $0x48] sm:$0xff]  ;;  %1378 = vset.pattern.permute.xlu1 %v1395_v13  ;;  %1379 = vset.pattern.permute.xlu0 %v1396_v14  ;;  %v703_v17 = vld [vmem:[%s2097_s5 + $0x58] sm:$0xff] }
  0x10   : > { %v698_v11 = vld [vmem:[%s2097_s5 + $0x30] sm:$0xff]  ;;  %v705_v16 = vld [vmem:[%s2097_s5 + $0x68] sm:$0xff]  ;;  %v707_v18 = vld [vmem:[%s2097_s5 + $0x78] sm:$0xff]  ;;  %s2106_s28 = smov (!%p1598_p3, %s1238_s28), 1 }
  0x11   : > { %1254 = vmatprep.subr.bf16.mxu0 %v1253_v3  ;;  %v1287_v15 = vpack.c.bf16 %v698_v11, %v694_v10  ;;  %1286 = vmatprep.subr.bf16.mxu1 %v1285_v8  ;;  %v1257_v19 = vpack.c.bf16 %v705_v16, %v701_v12  ;;  %v1289_v20 = vpack.c.bf16 %v707_v18, %v703_v17  ;;  %v700_v21 = vld [vmem:[%s2097_s5 + $0x40] sm:$0xff]  ;;  %v702_v23 = vld [vmem:[%s2097_s5 + $0x50] sm:$0xff]  ;;  %v709_v26 = vld [vmem:[%s2097_s5 + $0x88] sm:$0xff]  ;;  %s1365_s14 = smul.u32 48, %s2106_s28  ;;  %s1251_s11 = sshll.u32 %s2106_s28, 4 }
  0x12   : > { %1256 = vmatpush1.bf16.msra.mxu0 %v1255_v9  ;;  %v704_v22 = vld [vmem:[%s2097_s5 + $0x60] sm:$0xff]  ;;  %v706_v25 = vld [vmem:[%s2097_s5 + $0x70] sm:$0xff]  ;;  %v713_v27 = vld [vmem:[%s2097_s5 + $0xa8] sm:$0xff]  ;;  %s340_s16 = scalar_lea.vmem %s2095_s3, %s1251_s11  ;;  %s1252_s25 = sshll.u32 %s2106_s28, 5 }
  0x13   : > { %1288 = vmatpush1.bf16.msra.mxu1 %v1287_v15  ;;  %v1259_v24 = vpack.c.bf16 %v704_v22, %v700_v21  ;;  %1258 = vmatprep.subr.bf16.mxu0 %v1257_v19  ;;  %v1291_v28 = vpack.c.bf16 %v706_v25, %v702_v23  ;;  %v1261_v29 = vpack.c.bf16 %v713_v27, %v709_v26  ;;  %v711_v30 = vld [vmem:[%s2097_s5 + $0x98] sm:$0xff]  ;;  %v708_v32 = vld [vmem:[%s2097_s5 + $0x80] sm:$0xff]  ;;  %v710_v35 = vld [vmem:[%s2097_s5 + $0x90] sm:$0xff]  ;;  %s1669_s24 = scalar_lea.vmem %s2094_s2, %s1365_s14  ;;  %s1686_s15 = scalar_lea.vmem %s2092_s0, %s1365_s14 }
  0x14   : > { %1290 = vmatprep.subr.bf16.mxu1 %v1289_v20  ;;  %v715_v31 = vld [vmem:[%s2097_s5 + $0xb8] sm:$0xff]  ;;  %v712_v34 = vld [vmem:[%s2097_s5 + $0xa0] sm:$0xff]  ;;  %v714_v36 = vld [vmem:[%s2097_s5 + $0xb0] sm:$0xff]  ;;  %s345_s21 = scalar_lea.vmem %s2100_s8, %s1252_s25 }
  0x15   : > { %v1293_v33 = vpack.c.bf16 %v715_v31, %v711_v30  ;;  %v1263_v37 = vpack.c.bf16 %v712_v34, %v708_v32  ;;  %v717_v38 = vld [vmem:[%s2097_s5 + $0xc8] sm:$0xff]  ;;  %v719_v40 = vld [vmem:[%s2097_s5 + $0xd8] sm:$0xff]  ;;  %v1295_v41 = vpack.c.bf16 %v714_v36, %v710_v35  ;;  %v716_v44 = vld [vmem:[%s2097_s5 + $0xc0] sm:$0xff] }
  0x16   : > { %1260 = vmatpush1.bf16.msra.mxu0 %v1259_v24  ;;  %v721_v39 = vld [vmem:[%s2097_s5 + $0xe8] sm:$0xff]  ;;  %v723_v43 = vld [vmem:[%s2097_s5 + $0xf8] sm:$0xff]  ;;  %v720_v45 = vld [vmem:[%s2097_s5 + $0xe0] sm:$0xff] }
  0x17   : > { %1292 = vmatpush1.bf16.msra.mxu1 %v1291_v28  ;;  %1262 = vmatprep.subr.bf16.mxu0 %v1261_v29  ;;  %v1265_v42 = vpack.c.bf16 %v721_v39, %v717_v38  ;;  %v1297_v46 = vpack.c.bf16 %v723_v43, %v719_v40  ;;  %v718_v47 = vld [vmem:[%s2097_s5 + $0xd0] sm:$0xff]  ;;  %v725_v49 = vld [vmem:[%s2097_s5 + $0x108] sm:$0xff]  ;;  %v727_v51 = vld [vmem:[%s2097_s5 + $0x118] sm:$0xff]  ;;  %v1267_v53 = vpack.c.bf16 %v720_v45, %v716_v44 }
  0x18   : > { %1294 = vmatprep.subr.bf16.mxu1 %v1293_v33  ;;  %v722_v48 = vld [vmem:[%s2097_s5 + $0xf0] sm:$0xff]  ;;  %v729_v50 = vld [vmem:[%s2097_s5 + $0x128] sm:$0xff]  ;;  %v731_v52 = vld [vmem:[%s2097_s5 + $0x138] sm:$0xff] }
  0x19   : > { %v1299_v54 = vpack.c.bf16 %v722_v48, %v718_v47  ;;  %v1269_v55 = vpack.c.bf16 %v729_v50, %v725_v49  ;;  %v724_v56 = vld [vmem:[%s2097_s5 + $0x100] sm:$0xff]  ;;  %v726_v58 = vld [vmem:[%s2097_s5 + $0x110] sm:$0xff]  ;;  %v1301_v59 = vpack.c.bf16 %v731_v52, %v727_v51  ;;  %v733_v61 = vld [vmem:[%s2097_s5 + $0x148] sm:$0xff] }
  0x1a   : > { %1264 = vmatpush1.bf16.msra.mxu0 %v1263_v37  ;;  %v728_v57 = vld [vmem:[%s2097_s5 + $0x120] sm:$0xff]  ;;  %v730_v60 = vld [vmem:[%s2097_s5 + $0x130] sm:$0xff]  ;;  %v737_v62 = vld [vmem:[%s2097_s5 + $0x168] sm:$0xff] }
  0x1b   : > { %1296 = vmatpush1.bf16.msra.mxu1 %v1295_v41  ;;  %1266 = vmatprep.subr.bf16.mxu0 %v1265_v42  ;;  %v735_v63 = vld [vmem:[%s2097_s5 + $0x158] sm:$0xff]  ;;  %v1271_v1 = vpack.c.bf16 %v728_v57, %v724_v56  ;;  %v1303_v2 = vpack.c.bf16 %v730_v60, %v726_v58  ;;  %v1273_v3 = vpack.c.bf16 %v737_v62, %v733_v61  ;;  %v732_v4 = vld [vmem:[%s2097_s5 + $0x140] sm:$0xff]  ;;  %v734_v6 = vld [vmem:[%s2097_s5 + $0x150] sm:$0xff] }
  0x1c   : > { %1298 = vmatprep.subr.bf16.mxu1 %v1297_v46  ;;  %v739_v0 = vld [vmem:[%s2097_s5 + $0x178] sm:$0xff]  ;;  %v736_v5 = vld [vmem:[%s2097_s5 + $0x160] sm:$0xff]  ;;  %v738_v9 = vld [vmem:[%s2097_s5 + $0x170] sm:$0xff] }
  0x1d   : > { %v1305_v8 = vpack.c.bf16 %v739_v0, %v735_v63  ;;  %v741_v10 = vld [vmem:[%s2097_s5 + $0x188] sm:$0xff]  ;;  %v743_v12 = vld [vmem:[%s2097_s5 + $0x198] sm:$0xff]  ;;  %v1275_v16 = vpack.c.bf16 %v736_v5, %v732_v4  ;;  %v1307_v17 = vpack.c.bf16 %v738_v9, %v734_v6  ;;  %v740_v19 = vld [vmem:[%s2097_s5 + $0x180] sm:$0xff] }
  0x1e   : > { %1268 = vmatpush1.bf16.msra.mxu0 %v1267_v53  ;;  %v745_v11 = vld [vmem:[%s2097_s5 + $0x1a8] sm:$0xff]  ;;  %v747_v15 = vld [vmem:[%s2097_s5 + $0x1b8] sm:$0xff]  ;;  %v744_v20 = vld [vmem:[%s2097_s5 + $0x1a0] sm:$0xff] }
  0x1f   : > { %1300 = vmatpush1.bf16.msra.mxu1 %v1299_v54  ;;  %1270 = vmatprep.subr.bf16.mxu0 %v1269_v55  ;;  %v1277_v18 = vpack.c.bf16 %v745_v11, %v741_v10  ;;  %v742_v21 = vld [vmem:[%s2097_s5 + $0x190] sm:$0xff]  ;;  %v1309_v22 = vpack.c.bf16 %v747_v15, %v743_v12  ;;  %v749_v24 = vld [vmem:[%s2097_s5 + $0x1c8] sm:$0xff]  ;;  %v751_v26 = vld [vmem:[%s2097_s5 + $0x1d8] sm:$0xff]  ;;  %v1279_v28 = vpack.c.bf16 %v744_v20, %v740_v19 }
  0x20   : > { %1302 = vmatprep.subr.bf16.mxu1 %v1301_v59  ;;  %v746_v23 = vld [vmem:[%s2097_s5 + $0x1b0] sm:$0xff]  ;;  %v753_v25 = vld [vmem:[%s2097_s5 + $0x1e8] sm:$0xff]  ;;  %v755_v27 = vld [vmem:[%s2097_s5 + $0x1f8] sm:$0xff] }
  0x21   : > { %v1311_v29 = vpack.c.bf16 %v746_v23, %v742_v21  ;;  %v1281_v30 = vpack.c.bf16 %v753_v25, %v749_v24  ;;  %v748_v31 = vld [vmem:[%s2097_s5 + $0x1c0] sm:$0xff]  ;;  %v750_v33 = vld [vmem:[%s2097_s5 + $0x1d0] sm:$0xff]  ;;  %v1313_v34 = vpack.c.bf16 %v755_v27, %v751_v26  ;;  %v1027_v36 = vld [vmem:[%s2096_s4 + $0x8] sm:$0xff] }
  0x22   : > { %1272 = vmatpush1.bf16.msra.mxu0 %v1271_v1  ;;  %v752_v32 = vld [vmem:[%s2097_s5 + $0x1e0] sm:$0xff]  ;;  %v754_v35 = vld [vmem:[%s2097_s5 + $0x1f0] sm:$0xff]  ;;  %v1029_v37 = vld [vmem:[%s2096_s4 + $0x18] sm:$0xff] }
  0x23   : > { %1304 = vmatpush1.bf16.msra.mxu1 %v1303_v2  ;;  %1274 = vmatprep.subr.bf16.mxu0 %v1273_v3  ;;  %v1283_v38 = vpack.c.bf16 %v752_v32, %v748_v31  ;;  %v1315_v39 = vpack.c.bf16 %v754_v35, %v750_v33  ;;  %v1317_v40 = vpack.c.bf16 %v1029_v37, %v1027_v36  ;;  %v1026_v41 = vld [vmem:[%s2096_s4] sm:$0xff]  ;;  %v1028_v42 = vld [vmem:[%s2096_s4 + $0x10] sm:$0xff]  ;;  %v1031_v43 = vld [vmem:[%s2096_s4 + $0x28] sm:$0xff] }
  0x24   : > { %1306 = vmatprep.subr.bf16.mxu1 %v1305_v8  ;;  %v1033_v44 = vld [vmem:[%s2096_s4 + $0x38] sm:$0xff]  ;;  %v686_v45 = vld [vmem:[%s1669_s24] sm:$0xff]  ;;  %v1319_v46 = vpack.c.bf16 %v1028_v42, %v1026_v41  ;;  %v1032_v48 = vld [vmem:[%s2096_s4 + $0x30] sm:$0xff] }
  0x25   : > { %v1030_v47 = vld [vmem:[%s2096_s4 + $0x20] sm:$0xff]  ;;  %v1321_v49 = vpack.c.bf16 %v1033_v44, %v1031_v43  ;;  %v1696_v50 = vld [vmem:[%s1686_s15 + $0x10] sm:$0xff]  ;;  %v1035_v51 = vld [vmem:[%s2096_s4 + $0x48] sm:$0xff] }
  0x26   : > { %1276 = vmatpush1.bf16.msra.mxu0 %v1275_v16  ;;  %v1037_v52 = vld [vmem:[%s2096_s4 + $0x58] sm:$0xff]  ;;  %366 = vperm.xlu1 %1378, %v1696_v50   ;;  %v687_v53 = vld [vmem:[%s1669_s24 + $0x8] sm:$0xff]  ;;  %v1323_v54 = vpack.c.bf16 %v1032_v48, %v1030_v47  ;;  %v1034_v55 = vld [vmem:[%s2096_s4 + $0x40] sm:$0xff] }
  0x27   : > { %1308 = vmatpush1.bf16.msra.mxu1 %v1307_v17  ;;  %1278 = vmatprep.subr.bf16.mxu0 %v1277_v18  ;;  %v1036_v56 = vld [vmem:[%s2096_s4 + $0x50] sm:$0xff]  ;;  %v1325_v57 = vpack.c.bf16 %v1037_v52, %v1035_v51  ;;  %v1039_v58 = vld [vmem:[%s2096_s4 + $0x68] sm:$0xff]  ;;  %v1041_v59 = vld [vmem:[%s2096_s4 + $0x78] sm:$0xff] }
  0x28   : > { %1310 = vmatprep.subr.bf16.mxu1 %v1309_v22  ;;  %v688_v60 = vld [vmem:[%s1669_s24 + $0x10] sm:$0xff]  ;;  %v1327_v61 = vpack.c.bf16 %v1036_v56, %v1034_v55  ;;  %v1038_v62 = vld [vmem:[%s2096_s4 + $0x60] sm:$0xff]  ;;  %v1329_v0 = vpack.c.bf16 %v1041_v59, %v1039_v58  ;;  %v1043_v1 = vld [vmem:[%s2096_s4 + $0x88] sm:$0xff] }
  0x29   : > { %v1040_v63 = vld [vmem:[%s2096_s4 + $0x70] sm:$0xff]  ;;  %v1045_v2 = vld [vmem:[%s2096_s4 + $0x98] sm:$0xff]  ;;  %v1042_v5 = vld [vmem:[%s2096_s4 + $0x80] sm:$0xff] }
  0x2a   : > { %1280 = vmatpush1.bf16.msra.mxu0 %v1279_v28  ;;  %v689_v3 = vld [vmem:[%s1669_s24 + $0x18] sm:$0xff]  ;;  %v1331_v4 = vpack.c.bf16 %v1040_v63, %v1038_v62  ;;  %v1044_v6 = vld [vmem:[%s2096_s4 + $0x90] sm:$0xff]  ;;  %v1333_v8 = vpack.c.bf16 %v1045_v2, %v1043_v1  ;;  %v1047_v9 = vld [vmem:[%s2096_s4 + $0xa8] sm:$0xff] }
  0x2b   : > { %1312 = vmatpush1.bf16.msra.mxu1 %v1311_v29  ;;  %1282 = vmatprep.subr.bf16.mxu0 %v1281_v30  ;;  %v1049_v10 = vld [vmem:[%s2096_s4 + $0xb8] sm:$0xff]  ;;  %v690_v11 = vld [vmem:[%s1669_s24 + $0x20] sm:$0xff]  ;;  %v1335_v12 = vpack.c.bf16 %v1044_v6, %v1042_v5  ;;  %v1048_v16 = vld [vmem:[%s2096_s4 + $0xb0] sm:$0xff] }
  0x2c   : > { %1314 = vmatprep.subr.bf16.mxu1 %v1313_v34  ;;  %v1046_v15 = vld [vmem:[%s2096_s4 + $0xa0] sm:$0xff]  ;;  %v1337_v17 = vpack.c.bf16 %v1049_v10, %v1047_v9  ;;  %v1051_v18 = vld [vmem:[%s2096_s4 + $0xc8] sm:$0xff]  ;;  %v1053_v19 = vld [vmem:[%s2096_s4 + $0xd8] sm:$0xff] }
  0x2d   : > { %v691_v20 = vld [vmem:[%s1669_s24 + $0x28] sm:$0xff]  ;;  %v1339_v21 = vpack.c.bf16 %v1048_v16, %v1046_v15  ;;  %v1341_v22 = vpack.c.bf16 %v1053_v19, %v1051_v18  ;;  %v1050_v23 = vld [vmem:[%s2096_s4 + $0xc0] sm:$0xff]  ;;  %v1052_v24 = vld [vmem:[%s2096_s4 + $0xd0] sm:$0xff] }
  0x2e   : > { %1284 = vmatpush1.bf16.msra.mxu0 %v1283_v38  ;;  %v1055_v25 = vld [vmem:[%s2096_s4 + $0xe8] sm:$0xff]  ;;  %v1057_v26 = vld [vmem:[%s2096_s4 + $0xf8] sm:$0xff]  ;;  %v1343_v27 = vpack.c.bf16 %v1052_v24, %v1050_v23  ;;  %v1054_v30 = vld [vmem:[%s2096_s4 + $0xe0] sm:$0xff]  ;;  %v1397_v38 = vmov 2  }
  0x2f   : > { %1316 = vmatpush1.bf16.msra.mxu1 %v1315_v39  ;;  %1318 = vmatprep.subr.bf16.mxu0 %v1317_v40  ;;  %v349_v28 = vld [vmem:[%s1686_s15 + $0x18] sm:$0xff]  ;;  %v1345_v29 = vpack.c.bf16 %v1057_v26, %v1055_v25  ;;  %v1056_v31 = vld [vmem:[%s2096_s4 + $0xf0] sm:$0xff]  ;;  %v346_v32 = vld [vmem:[%s1686_s15] sm:$0xff] }
  0x30   : > { %1349 = vmatprep.subr.bf16.mxu1 %v1317_v40  ;;  %371 = vperm.xlu1 %1378, %v349_v28   ;;  %v1347_v33 = vpack.c.bf16 %v1056_v31, %v1054_v30  ;;  %v347_v34 = vld [vmem:[%s1686_s15 + $0x8] sm:$0xff]  ;;  %v1024_v35 = vld [vmem:[%s340_s16] sm:$0xff]  ;;  %v386_v40 = vlaneseq }
  0x31   : > { %843 = vmatmul.mubr.f32.vlgmr.msra.gmra.mrb[0].mxu0 %v686_v45  ;;  %447 = vperm.xlu0 %1379, %v346_v32   ;;  %v350_v36 = vld [vmem:[%s1686_s15 + $0x20] sm:$0xff]  ;;  %v351_v37 = vld [vmem:[%s1686_s15 + $0x28] sm:$0xff] }
  0x32   : > { %944 = vmatmul.mubr.f32.vlgmr.msra.gmra.mrb[0].mxu1 %v686_v45  ;;  %1320 = vmatpush1.bf16.msra.mxu0 %v1319_v46  ;;  %v352_v44 = vld [vmem:[%s2093_s1] sm:$0x77] }
  0x33   : > { %1357 = vmatpush1.bf16.msra.mxu1 %v1319_v46  ;;  %848 = vmatprep.mubr.f32.mxu0 %v1394_v7 }
  0x34   : > { %949 = vmatprep.mubr.f32.mxu1 %v1394_v7  ;;  %1322 = vmatprep.subr.bf16.mxu0 %v1321_v49 }
  0x35   : > { %849 = vmatmul.mubr.f32.gmra.mrb[2].mxu0 %v687_v53  ;;  %1350 = vmatprep.subr.bf16.mxu1 %v1321_v49  ;;  %v353_v49 = vld [vmem:[%s2093_s1 + $0x8] sm:$0x77] }
  0x36   : > { %950 = vmatmul.mubr.f32.gmra.mrb[2].mxu1 %v687_v53  ;;  %1324 = vmatpush1.bf16.msra.mxu0 %v1323_v54 }
  0x37   : > { %1358 = vmatpush1.bf16.msra.mxu1 %v1323_v54  ;;  %854 = vmatprep.mubr.f32.mxu0 %v1394_v7 }
  0x38   : > { %955 = vmatprep.mubr.f32.mxu1 %v1394_v7  ;;  %1326 = vmatprep.subr.bf16.mxu0 %v1325_v57 }
  0x39   : > { %855 = vmatmul.mubr.f32.gmra.mrb[4].mxu0 %v688_v60  ;;  %1351 = vmatprep.subr.bf16.mxu1 %v1325_v57 }
  0x3a   : > { %956 = vmatmul.mubr.f32.gmra.mrb[4].mxu1 %v688_v60  ;;  %1328 = vmatpush1.bf16.msra.mxu0 %v1327_v61 }
  0x3b   : > { %1359 = vmatpush1.bf16.msra.mxu1 %v1327_v61  ;;  %860 = vmatprep.mubr.f32.mxu0 %v1394_v7 }
  0x3c   : > { %961 = vmatprep.mubr.f32.mxu1 %v1394_v7  ;;  %1330 = vmatprep.subr.bf16.mxu0 %v1329_v0 }
  0x3d   : > { %861 = vmatmul.mubr.f32.gmra.mrb[6].mxu0 %v689_v3  ;;  %1352 = vmatprep.subr.bf16.mxu1 %v1329_v0 }
  0x3e   : > { %962 = vmatmul.mubr.f32.gmra.mrb[6].mxu1 %v689_v3  ;;  %1332 = vmatpush1.bf16.msra.mxu0 %v1331_v4 }
  0x3f   : > { %1360 = vmatpush1.bf16.msra.mxu1 %v1331_v4  ;;  %866 = vmatprep.mubr.f32.mxu0 %v1394_v7  ;;  %v756_v4 = vld [vmem:[%s2099_s7] sm:$0xf] }
  0x40   : > { %967 = vmatprep.mubr.f32.mxu1 %v1394_v7  ;;  %1334 = vmatprep.subr.bf16.mxu0 %v1333_v8 }
  0x41   : > { %867 = vmatmul.mubr.f32.gmra.mrb[8].mxu0 %v690_v11  ;;  %1353 = vmatprep.subr.bf16.mxu1 %v1333_v8 }
  0x42   : > { %968 = vmatmul.mubr.f32.gmra.mrb[8].mxu1 %v690_v11  ;;  %1336 = vmatpush1.bf16.msra.mxu0 %v1335_v12 }
  0x43   : > { %1361 = vmatpush1.bf16.msra.mxu1 %v1335_v12  ;;  %872 = vmatprep.mubr.f32.mxu0 %v1394_v7 }
  0x44   : > { %973 = vmatprep.mubr.f32.mxu1 %v1394_v7  ;;  %1338 = vmatprep.subr.bf16.mxu0 %v1337_v17 }
  0x45   : > { %873 = vmatmul.mubr.f32.gmra.mrb[10].mxu0 %v691_v20  ;;  %1354 = vmatprep.subr.bf16.mxu1 %v1337_v17 }
  0x46   : > { %974 = vmatmul.mubr.f32.gmra.mrb[10].mxu1 %v691_v20  ;;  %1340 = vmatpush1.bf16.msra.mxu0 %v1339_v21 }
  0x47   : > { %1362 = vmatpush1.bf16.msra.mxu1 %v1339_v21  ;;  %1342 = vmatprep.subr.bf16.mxu0 %v1341_v22 }
  0x48   : > { %1355 = vmatprep.subr.bf16.mxu1 %v1341_v22  ;;  %1134 = vmatprep.mubr.f32.mxu0 %v1394_v7 }
  0x49   : > { %1140 = vmatprep.mubr.f32.mxu1 %v1394_v7  ;;  %1380 = vset.pattern.permute.xlu1 %v1396_v14  ;;  %v1025_v7 = vld [vmem:[%s340_s16 + $0x8] sm:$0xff] }
  0x4a   : > { %1344 = vmatpush1.bf16.msra.mxu0 %v1343_v27  ;;  %451 = vperm.xlu1 %1380, %v347_v34  }
  0x4b   : > { %1363 = vmatpush1.bf16.msra.mxu1 %v1343_v27  ;;  %1346 = vmatprep.subr.bf16.mxu0 %v1345_v29 }
  0x4c   : > { %1356 = vmatprep.subr.bf16.mxu1 %v1345_v29  ;;  %459 = vperm.xlu0 %1379, %v349_v28  }
  0x4e   : > { %1348 = vmatpush1.bf16.msra.mxu0 %v1347_v33  ;;  %455 = vperm.xlu1 %1380, %v1696_v50  }
  0x4f   : > { %1364 = vmatpush1.bf16.msra.mxu1 %v1347_v33 }
  0x50   : > { %1381 = vset.pattern.permute.xlu0 %v1395_v13 }
  0x51   : > { %1135 = vmatmul.mubr.f32.vlgmr.msra.gmra.mrb[12].mxu0 %v1024_v35  ;;  %356 = vperm.xlu0 %1381, %v346_v32  }
  0x52   : > { %1141 = vmatmul.mubr.f32.vlgmr.msra.gmra.mrb[12].mxu1 %v1025_v7  ;;  %1382 = vset.pattern.permute.xlu1 %v1395_v13 }
  0x53   : > { %376 = vperm.xlu1 %1382, %v350_v36  }
  0x55   : > { %361 = vperm.xlu0 %1381, %v347_v34  }
  0x57   : > { %1383 = vset.pattern.permute.xlu1 %v1396_v14  ;;  %v387_v14 = vshrl.u32 %v386_v40, 7 }
  0x58   : > { %463 = vperm.xlu1 %1383, %v350_v36  }
  0x59   : > { %381 = vperm.xlu0 %1381, %v351_v37   ;;  %v1805_v43 = vsub.s32 0, %v387_v14  ;;  %v392_v45 = vsub.s32 4, %v387_v14  ;;  %v1810_v46 = vsub.s32 1, %v387_v14  ;;  %v580_v51 = vsub.s32 2, %v387_v14 }
  0x5a   : > { %v584_v52 = vsub.s32 6, %v387_v14  ;;  %v772_v5 = vsub.s32 3, %v387_v14 }
  0x5b   : > { %2103 = vst [vmem:[#allocation2_spill] sm:$0xff] %v1810_v46  ;;  %v389_v53 = vrot.slane %v352_v44, %v1805_v43  ;;  %v393_v54 = vrot.slane %v352_v44, %v392_v45  ;;  %v397_v55 = vrot.slane %v353_v49, %v1805_v43  ;;  %v401_v56 = vrot.slane %v353_v49, %v392_v45 }
  0x5c   : > { %467 = vperm.xlu1 %1383, %v351_v37   ;;  %v473_v57 = vrot.slane %v352_v44, %v1810_v46  ;;  %v481_v59 = vrot.slane %v353_v49, %v1810_v46  ;;  %v581_v61 = vrot.slane %v352_v44, %v580_v51  ;;  %v585_v0 = vrot.slane %v352_v44, %v584_v52 }
  0x5d   : > { %1384 = vset.pattern.permute.xlu0 %v1397_v38  ;;  %v589_v1 = vrot.slane %v353_v49, %v580_v51  ;;  %v593_v2 = vrot.slane %v353_v49, %v584_v52  ;;  %v1822_v3 = vrot.slane %v389_v53, %v1805_v43  ;;  %v1828_v6 = vrot.slane %v393_v54, %v1805_v43 }
  0x5e   : > { %555 = vperm.xlu0 %1384, %v346_v32   ;;  %v1831_v8 = vrot.slane %v397_v55, %v1805_v43  ;;  %v1834_v9 = vrot.slane %v401_v56, %v1805_v43  ;;  %v1837_v10 = vrot.slane %v473_v57, %v1810_v46  ;;  %v1843_v12 = vrot.slane %v481_v59, %v1810_v46 }
  0x5f   : > { %v1848_v16 = vrot.slane %v581_v61, %v580_v51  ;;  %v1850_v17 = vrot.slane %v585_v0, %v580_v51  ;;  %v1852_v18 = vrot.slane %v589_v1, %v580_v51  ;;  %v1854_v19 = vrot.slane %v593_v2, %v580_v51 }
  0x60   : > { %1385 = vset.pattern.permute.xlu1 %v1397_v38  ;;  %v1857_v20 = vrot.slane %v756_v4, %v1805_v43  ;;  %v1860_v22 = vrot.slane %v756_v4, %v580_v51  ;;  %v1863_v23 = vrot.slane %v756_v4, %v1810_v46  ;;  %v1865_v24 = vrot.slane %v756_v4, %v772_v5 }
  0x61   : > { %559 = vperm.xlu1 %1385, %v347_v34  }
  0x62   : > { %567 = vperm.xlu0 %1384, %v349_v28  }
  0x65   : > { %563 = vperm.xlu1 %1385, %v1696_v50   ;;  %v476_v50 = vsub.s32 5, %v387_v14 }
  0x66   : > { %575 = vperm.xlu0 %1384, %v351_v37  }
  0x67   : > { %v477_v58 = vrot.slane %v352_v44, %v476_v50  ;;  %v485_v60 = vrot.slane %v353_v49, %v476_v50 }
  0x69   : > { %571 = vperm.xlu1 %1385, %v350_v36   ;;  %v1840_v11 = vrot.slane %v477_v58, %v1810_v46  ;;  %v1846_v15 = vrot.slane %v485_v60, %v1810_v46 }
  0xa5   : > { %v367_v39 = vpop.permute.xlu1 %366 }
  0xa6   : > { %v430_v21 = vmul.f32 %v1822_v3, %v367_v39  ;;  %v431_v25 = vmul.f32 %v1828_v6, %v367_v39  ;;  %v432_v26 = vmul.f32 %v1831_v8, %v367_v39  ;;  %v433_v27 = vmul.f32 %v1834_v9, %v367_v39 }
  0xaf   : > { %v372_v13 = vpop.permute.xlu1 %371 }
  0xb0   : > { %v448_v42 = vpop.permute.xlu0 %447  ;;  %v434_v28 = vmul.f32 %v1822_v3, %v372_v13  ;;  %v435_v31 = vmul.f32 %v1828_v6, %v372_v13  ;;  %v436_v32 = vmul.f32 %v1831_v8, %v372_v13  ;;  %v437_v33 = vmul.f32 %v1834_v9, %v372_v13 }
  0xb1   : > { %v506_v34 = vmul.f32 %v1837_v10, %v448_v42  ;;  %v507_v35 = vmul.f32 %v1840_v11, %v448_v42  ;;  %v508_v7 = vmul.f32 %v1843_v12, %v448_v42  ;;  %v509_v36 = vmul.f32 %v1846_v15, %v448_v42 }
  0xc9   : > { %v1803_v41 = vpop.permute.xlu1 %451 }
  0xca   : > { %v510_v38 = vmul.f32 %v1837_v10, %v1803_v41  ;;  %v511_v13 = vmul.f32 %v1840_v11, %v1803_v41  ;;  %v513_v53 = vmul.f32 %v1846_v15, %v1803_v41 }
  0xcb   : > { %v460_v48 = vpop.permute.xlu0 %459 }
  0xcc   : > { %v518_v37 = vmul.f32 %v1837_v10, %v460_v48  ;;  %v519_v39 = vmul.f32 %v1840_v11, %v460_v48  ;;  %v520_v40 = vmul.f32 %v1843_v12, %v460_v48  ;;  %v521_v14 = vmul.f32 %v1846_v15, %v460_v48 }
  0xcd   : > { %v456_v47 = vpop.permute.xlu1 %455  ;;  %v512_v48 = vmul.f32 %v1843_v12, %v1803_v41 }
  0xce   : > { %v514_v44 = vmul.f32 %v1837_v10, %v456_v47  ;;  %v515_v45 = vmul.f32 %v1840_v11, %v456_v47  ;;  %v516_v42 = vmul.f32 %v1843_v12, %v456_v47  ;;  %v517_v49 = vmul.f32 %v1846_v15, %v456_v47 }
  0xcf   : > { %v1898_v57 = vadd.f32 %v518_v37, %v434_v28  ;;  %v1901_v58 = vadd.f32 %v520_v40, %v436_v32  ;;  %v1903_v59 = vadd.f32 %v519_v39, %v435_v31  ;;  %v1905_v60 = vadd.f32 %v521_v14, %v437_v33 }
  0xd0   : > { %v357_v63 = vpop.permute.xlu0 %356  ;;  %v1908_v0 = vadd.f32 %v514_v44, %v430_v21  ;;  %v1910_v1 = vadd.f32 %v516_v42, %v432_v26  ;;  %v1912_v41 = vadd.f32 %v515_v45, %v431_v25  ;;  %v1914_v5 = vadd.f32 %v517_v49, %v433_v27 }
  0xd1   : > { %v422_v50 = vmul.f32 %v1822_v3, %v357_v63  ;;  %v423_v51 = vmul.f32 %v1828_v6, %v357_v63  ;;  %v424_v52 = vmul.f32 %v1831_v8, %v357_v63  ;;  %v425_v54 = vmul.f32 %v1834_v9, %v357_v63 }
  0xd2   : > { %v1819_v62 = vpop.permute.xlu1 %376 }
  0xd3   : > { %v530_v63 = vadd.f32 %v506_v34, %v422_v50  ;;  %v532_v2 = vadd.f32 %v508_v7, %v424_v52  ;;  %v531_v4 = vadd.f32 %v507_v35, %v423_v51  ;;  %v438_v28 = vmul.f32 %v1822_v3, %v1819_v62 }
  0xd4   : > { %v362_v30 = vpop.permute.xlu0 %361  ;;  %v439_v31 = vmul.f32 %v1828_v6, %v1819_v62  ;;  %v440_v32 = vmul.f32 %v1831_v8, %v1819_v62  ;;  %v533_v21 = vadd.f32 %v509_v36, %v425_v54  ;;  %v441_v26 = vmul.f32 %v1834_v9, %v1819_v62 }
  0xd5   : > { %v426_v47 = vmul.f32 %v1822_v3, %v362_v30  ;;  %v428_v61 = vmul.f32 %v1831_v8, %v362_v30  ;;  %v427_v25 = vmul.f32 %v1828_v6, %v362_v30  ;;  %v429_v33 = vmul.f32 %v1834_v9, %v362_v30 }
  0xd7   : > { %v464_v29 = vpop.permute.xlu1 %463  ;;  %v534_v34 = vadd.f32 %v510_v38, %v426_v47  ;;  %v536_v40 = vadd.f32 %v512_v48, %v428_v61  ;;  %v535_v51 = vadd.f32 %v511_v13, %v427_v25 }
  0xd8   : > { %v382_v56 = vpop.permute.xlu0 %381  ;;  %v522_v27 = vmul.f32 %v1837_v10, %v464_v29  ;;  %v523_v35 = vmul.f32 %v1840_v11, %v464_v29  ;;  %v524_v7 = vmul.f32 %v1843_v12, %v464_v29  ;;  %v525_v14 = vmul.f32 %v1846_v15, %v464_v29 }
  0xd9   : > { %v442_v36 = vmul.f32 %v1822_v3, %v382_v56  ;;  %v443_v62 = vmul.f32 %v1828_v6, %v382_v56  ;;  %v444_v44 = vmul.f32 %v1831_v8, %v382_v56  ;;  %v445_v38 = vmul.f32 %v1834_v9, %v382_v56 }
  0xda   : > { %v546_v52 = vadd.f32 %v522_v27, %v438_v28  ;;  %v548_v48 = vadd.f32 %v524_v7, %v440_v32  ;;  %v547_v54 = vadd.f32 %v523_v35, %v439_v31 }
  0xdb   : > { %v468_v55 = vpop.permute.xlu1 %467 }
  0xdc   : > { %v526_v30 = vmul.f32 %v1837_v10, %v468_v55  ;;  %v527_v49 = vmul.f32 %v1840_v11, %v468_v55  ;;  %v528_v50 = vmul.f32 %v1843_v12, %v468_v55  ;;  %v529_v29 = vmul.f32 %v1846_v15, %v468_v55 }
  0xdd   : > { %v556_v39 = vpop.permute.xlu0 %555  ;;  %v537_v10 = vadd.f32 %v513_v53, %v429_v33  ;;  %v549_v15 = vadd.f32 %v525_v14, %v441_v26 }
  0xde   : > { %v614_v45 = vmul.f32 %v1848_v16, %v556_v39  ;;  %v616_v42 = vmul.f32 %v1852_v18, %v556_v39  ;;  %v615_v3 = vmul.f32 %v1850_v17, %v556_v39  ;;  %v617_v8 = vmul.f32 %v1854_v19, %v556_v39 }
  0xdf   : > { %v1948_v55 = vadd.f32 %v526_v30, %v442_v36  ;;  %v1952_v46 = vadd.f32 %v528_v50, %v444_v44  ;;  %v1954_v13 = vadd.f32 %v527_v49, %v443_v62  ;;  %v1956_v53 = vadd.f32 %v529_v29, %v445_v38 }
  0xe0   : > { %v560_v37 = vpop.permute.xlu1 %559  ;;  %v1944_v11 = vadd.f32 %v614_v45, %v530_v63  ;;  %v1946_v12 = vadd.f32 %v616_v42, %v532_v2  ;;  %v1950_v61 = vadd.f32 %v615_v3, %v531_v4  ;;  %v1960_v32 = vadd.f32 %v617_v8, %v533_v21 }
  0xe1   : > { %v618_v6 = vmul.f32 %v1848_v16, %v560_v37  ;;  %v620_v9 = vmul.f32 %v1852_v18, %v560_v37  ;;  %v568_v47 = vpop.permute.xlu0 %567  ;;  %v619_v28 = vmul.f32 %v1850_v17, %v560_v37  ;;  %v621_v31 = vmul.f32 %v1854_v19, %v560_v37 }
  0xe2   : > { %v626_v2 = vmul.f32 %v1848_v16, %v568_v47  ;;  %v627_v26 = vmul.f32 %v1850_v17, %v568_v47  ;;  %v628_v4 = vmul.f32 %v1852_v18, %v568_v47  ;;  %v629_v27 = vmul.f32 %v1854_v19, %v568_v47 }
  0xe3   : > { %v1962_v63 = vadd.f32 %v618_v6, %v534_v34  ;;  %v1967_v25 = vadd.f32 %v620_v9, %v536_v40  ;;  %v662_v35 = vmax.f32 %v1944_v11, 0.0  ;;  %v664_v7 = vmax.f32 %v1946_v12, 0.0 }
  0xe4   : > { %v564_v56 = vpop.permute.xlu1 %563  ;;  %v663_v36 = vmax.f32 %v1950_v61, 0.0  ;;  %v665_v40 = vmax.f32 %v1960_v32, 0.0  ;;  %v1979_v44 = vadd.f32 %v619_v28, %v535_v51  ;;  %v1981_v30 = vadd.f32 %v621_v31, %v537_v10 }
  0xe5   : > { %v622_v33 = vmul.f32 %v1848_v16, %v564_v56  ;;  %v576_v37 = vpop.permute.xlu0 %575  ;;  %v623_v34 = vmul.f32 %v1850_v17, %v564_v56  ;;  %v624_v39 = vmul.f32 %v1852_v18, %v564_v56  ;;  %v625_v14 = vmul.f32 %v1854_v19, %v564_v56 }
  0xe6   : > { %v666_v62 = vmax.f32 %v1962_v63, 0.0  ;;  %v668_v45 = vmax.f32 %v1967_v25, 0.0  ;;  %v634_v42 = vmul.f32 %v1848_v16, %v576_v37  ;;  %v635_v49 = vmul.f32 %v1850_v17, %v576_v37 }
  0xe7   : > { %v646_v8 = vadd.f32 %v622_v33, %v1908_v0  ;;  %v636_v9 = vmul.f32 %v1852_v18, %v576_v37  ;;  %v648_v56 = vadd.f32 %v624_v39, %v1910_v1  ;;  %v647_v47 = vadd.f32 %v623_v34, %v1912_v41 }
  0xe8   : > { %v572_v21 = vpop.permute.xlu1 %571  ;;  %v1996_v61 = vmul.f32 %v1854_v19, %v576_v37  ;;  %v2000_v28 = vadd.f32 %v626_v2, %v1898_v57  ;;  %v2003_v0 = vadd.f32 %v628_v4, %v1901_v58  ;;  %v2007_v1 = vadd.f32 %v627_v26, %v1903_v59 }
  0xe9   : > { %v630_v38 = vmul.f32 %v1848_v16, %v572_v21  ;;  %v631_v29 = vmul.f32 %v1850_v17, %v572_v21  ;;  %v632_v3 = vmul.f32 %v1852_v18, %v572_v21  ;;  %v633_v6 = vmul.f32 %v1854_v19, %v572_v21 }
  0xea   : > { %v649_v16 = vadd.f32 %v625_v14, %v1914_v5  ;;  %v667_v17 = vmax.f32 %v1979_v44, 0.0  ;;  %v669_v18 = vmax.f32 %v1981_v30, 0.0  ;;  %v2010_v41 = vadd.f32 %v629_v27, %v1905_v60 }
  0xeb   : > { %v2012_v5 = vadd.f32 %v630_v38, %v546_v52  ;;  %v670_v31 = vmax.f32 %v646_v8, 0.0  ;;  %v2014_v33 = vadd.f32 %v632_v3, %v548_v48  ;;  %v2016_v21 = vadd.f32 %v631_v29, %v547_v54 }
  0xec   : > { %v2018_v57 = vadd.f32 %v633_v6, %v549_v15  ;;  %v672_v37 = vmax.f32 %v648_v56, 0.0  ;;  %v671_v59 = vmax.f32 %v647_v47, 0.0  ;;  %v673_v26 = vmax.f32 %v649_v16, 0.0 }
  0xed   : > { %v674_v34 = vmax.f32 %v2000_v28, 0.0  ;;  %v676_v48 = vmax.f32 %v2003_v0, 0.0  ;;  %v675_v15 = vmax.f32 %v2007_v1, 0.0  ;;  %v677_v39 = vmax.f32 %v2010_v41, 0.0 }
  0xee   : > { %v678_v14 = vmax.f32 %v2012_v5, 0.0  ;;  %v679_v29 = vmax.f32 %v2016_v21, 0.0  ;;  %v681_v3 = vmax.f32 %v2018_v57, 0.0  ;;  %v2033_v6 = vadd.f32 %v634_v42, %v1948_v55 }
  0xef   : > { %v2037_v47 = vadd.f32 %v636_v9, %v1952_v46  ;;  %v2040_v16 = vadd.f32 %v635_v49, %v1954_v13  ;;  %v661_v30 = vadd.f32 %v1996_v61, %v1956_v53 }
 0x104   : > { %v844_v50 = vpop.f32.mrb[0].mxu0 }
 0x105   : > { %v945_v51 = vpop.f32.mrb[0].mxu1  ;;  %v846_v10 = vpop.f32.mrb[1].mxu0  ;;  %v845_v58 = vadd.f32 %v844_v50, %v1857_v20  ;;  %v680_v50 = vmax.f32 %v2014_v33, 0.0 }
 0x106   : > { %v947_v11 = vpop.f32.mrb[1].mxu1  ;;  %v946_v60 = vadd.f32 %v945_v51, %v1860_v22  ;;  %v847_v52 = vadd.f32 %v846_v10, %v1863_v23 }
 0x107   : > { %v948_v54 = vadd.f32 %v947_v11, %v1865_v24  ;;  %v980_v8 = vmul.f32 %v845_v58, %v662_v35 }
 0x108   : > { %v850_v19 = vpop.f32.mrb[2].mxu0  ;;  %v982_v11 = vmul.f32 %v946_v60, %v664_v7  ;;  %v981_v28 = vmul.f32 %v847_v52, %v663_v36 }
 0x109   : > { %v951_v2 = vpop.f32.mrb[2].mxu1  ;;  %v852_v4 = vpop.f32.mrb[3].mxu0  ;;  %v983_v35 = vmul.f32 %v948_v54, %v665_v40  ;;  %v851_v1 = vadd.f32 %v850_v19, %v1857_v20 }
 0x10a   : > { %v953_v27 = vpop.f32.mrb[3].mxu1  ;;  %v952_v13 = vadd.f32 %v951_v2, %v1860_v22  ;;  %v853_v49 = vadd.f32 %v852_v4, %v1863_v23 }
 0x10b   : > { %v954_v9 = vadd.f32 %v953_v27, %v1865_v24  ;;  %v984_v4 = vmul.f32 %v851_v1, %v666_v62 }
 0x10c   : > { %v856_v38 = vpop.f32.mrb[4].mxu0  ;;  %v985_v27 = vmul.f32 %v853_v49, %v667_v17 }
 0x10d   : > { %v857_v51 = vadd.f32 %v856_v38, %v1857_v20  ;;  %v957_v10 = vpop.f32.mrb[4].mxu1  ;;  %v858_v56 = vpop.f32.mrb[5].mxu0 }
 0x10e   : > { %v958_v0 = vadd.f32 %v957_v10, %v1860_v22  ;;  %v859_v55 = vadd.f32 %v858_v56, %v1863_v23  ;;  %v959_v42 = vpop.f32.mrb[5].mxu1 }
 0x10f   : > { %v988_v41 = vmul.f32 %v857_v51, %v670_v31  ;;  %v960_v46 = vadd.f32 %v959_v42, %v1865_v24  ;;  %v987_v51 = vmul.f32 %v954_v9, %v669_v18  ;;  %v684_v42 = vmax.f32 %v2037_v47, 0.0 }
 0x110   : > { %v990_v12 = vmul.f32 %v958_v0, %v672_v37  ;;  %v989_v7 = vmul.f32 %v859_v55, %v671_v59  ;;  %v862_v36 = vpop.f32.mrb[6].mxu0  ;;  %v682_v0 = vmax.f32 %v2033_v6, 0.0  ;;  %v685_v47 = vmax.f32 %v661_v30, 0.0 }
 0x111   : > { %v1004_v5 = vmax.f32 %v980_v8, %v988_v41  ;;  %v991_v33 = vmul.f32 %v960_v46, %v673_v26  ;;  %v863_v21 = vadd.f32 %v862_v36, %v1857_v20  ;;  %v963_v32 = vpop.f32.mrb[6].mxu1  ;;  %v864_v40 = vpop.f32.mrb[7].mxu0  ;;  %v986_v26 = vmul.f32 %v952_v13, %v668_v45 }
 0x112   : > { %v1006_v58 = vmax.f32 %v982_v11, %v990_v12  ;;  %v1005_v19 = vmax.f32 %v981_v28, %v989_v7  ;;  %v964_v31 = vadd.f32 %v963_v32, %v1860_v22  ;;  %v865_v60 = vadd.f32 %v864_v40, %v1863_v23  ;;  %v965_v2 = vpop.f32.mrb[7].mxu1 }
 0x113   : > { %v1007_v37 = vmax.f32 %v983_v35, %v991_v33  ;;  %v992_v59 = vmul.f32 %v863_v21, %v674_v34  ;;  %v966_v52 = vadd.f32 %v965_v2, %v1865_v24 }
 0x114   : > { %v994_v54 = vmul.f32 %v964_v31, %v676_v48  ;;  %v993_v38 = vmul.f32 %v865_v60, %v675_v15  ;;  %v868_v8 = vpop.f32.mrb[8].mxu0 }
 0x115   : > { %v1008_v10 = vmax.f32 %v984_v4, %v992_v59  ;;  %v995_v56 = vmul.f32 %v966_v52, %v677_v39  ;;  %v869_v63 = vadd.f32 %v868_v8, %v1857_v20  ;;  %v969_v62 = vpop.f32.mrb[8].mxu1  ;;  %v870_v34 = vpop.f32.mrb[9].mxu0 }
 0x116   : > { %v1010_v11 = vmax.f32 %v986_v26, %v994_v54  ;;  %v1009_v28 = vmax.f32 %v985_v27, %v993_v38  ;;  %v970_v25 = vadd.f32 %v969_v62, %v1860_v22  ;;  %v871_v45 = vadd.f32 %v870_v34, %v1863_v23  ;;  %v971_v44 = vpop.f32.mrb[9].mxu1 }
 0x117   : > { %v1011_v17 = vmax.f32 %v987_v51, %v995_v56  ;;  %v996_v48 = vmul.f32 %v869_v63, %v678_v14  ;;  %v972_v15 = vadd.f32 %v971_v44, %v1865_v24  ;;  %v683_v14 = vmax.f32 %v2040_v16, 0.0 }
 0x118   : > { %v998_v18 = vmul.f32 %v970_v25, %v680_v50  ;;  %v997_v39 = vmul.f32 %v871_v45, %v679_v29  ;;  %v874_v55 = vpop.f32.mrb[10].mxu0 }
 0x119   : > { %v1012_v35 = vmax.f32 %v1004_v5, %v996_v48  ;;  %v999_v1 = vmul.f32 %v972_v15, %v681_v3  ;;  %v875_v41 = vadd.f32 %v874_v55, %v1857_v20  ;;  %v975_v46 = vpop.f32.mrb[10].mxu1  ;;  %v876_v13 = vpop.f32.mrb[11].mxu0 }
 0x11a   : > { %v1014_v49 = vmax.f32 %v1006_v58, %v998_v18  ;;  %v1013_v12 = vmax.f32 %v1005_v19, %v997_v39  ;;  %v976_v53 = vadd.f32 %v975_v46, %v1860_v22  ;;  %v877_v61 = vadd.f32 %v876_v13, %v1863_v23  ;;  %v977_v50 = vpop.f32.mrb[11].mxu1  ;;  %v1058_v22 = vld [vmem:[%s2098_s6] sm:$0x3] }
 0x11b   : > { %v1015_v29 = vmax.f32 %v1007_v37, %v999_v1  ;;  %v1000_v6 = vmul.f32 %v875_v41, %v682_v0  ;;  %v978_v7 = vadd.f32 %v977_v50, %v1865_v24  ;;  %v1063_v32 = vrot.slane %v1058_v22, %v1805_v43  ;;  %v2104_v58 = vld [vmem:[#allocation2_spill] sm:$0xff] }
 0x11c   : > { %v1002_v57 = vmul.f32 %v976_v53, %v684_v42  ;;  %v1001_v3 = vmul.f32 %v877_v61, %v683_v14  ;;  %v1020_v20 = vadd.f32 %v1014_v49, %v1012_v35  ;;  %v1067_v24 = vrot.slane %v1058_v22, %v2104_v58 }
 0x11d   : > { %v1016_v36 = vmax.f32 %v1008_v10, %v1000_v6  ;;  %v1003_v9 = vmul.f32 %v978_v7, %v685_v47  ;;  %v1021_v16 = vadd.f32 %v1015_v29, %v1013_v12 }
 0x11e   : > { %v1018_v5 = vmax.f32 %v1010_v11, %v1002_v57  ;;  %v1017_v33 = vmax.f32 %v1009_v28, %v1001_v3 }
 0x11f   : > { %v1019_v23 = vmax.f32 %v1011_v17, %v1003_v9 }
 0x120   : > { %v1022_v21 = vadd.f32 %v1018_v5, %v1016_v36 }
 0x121   : > { %v1023_v40 = vadd.f32 %v1019_v23, %v1017_v33 }
 0x124   : > { %v1136_v19 = vpop.f32.mrb[12].mxu0 }
 0x125   : > { %v1137_v31 = vadd.f32 %v1136_v19, %v1063_v32  ;;  %v1142_v60 = vpop.f32.mrb[12].mxu1  ;;  %v1138_v2 = vpop.f32.mrb[13].mxu0 }
 0x126   : > { %v1143_v4 = vadd.f32 %v1142_v60, %v1063_v32  ;;  %v1139_v37 = vadd.f32 %v1138_v2, %v1067_v24  ;;  %v1144_v59 = vpop.f32.mrb[13].mxu1 }
 0x127   : > { %v1147_v52 = vadd.f32 %v1137_v31, %v1020_v20  ;;  %v1145_v26 = vadd.f32 %v1144_v59, %v1067_v24 }
 0x128   : > { %v1149_v27 = vadd.f32 %v1143_v4, %v1022_v21  ;;  %v1148_v54 = vadd.f32 %v1139_v37, %v1021_v16 }
 0x129   : > { %v1151_v43 = vmax.f32 %v1147_v52, 0.0  ;;  %v1150_v38 = vadd.f32 %v1145_v26, %v1023_v40 }
 0x12a   : > { %v1153_v8 = vmax.f32 %v1149_v27, 0.0  ;;  %v1152_v51 = vmax.f32 %v1148_v54, 0.0 }
 0x12b   : > { %1155 = vst [vmem:[%s345_s21] sm:$0xff] %v1151_v43  ;;  %v1154_v10 = vmax.f32 %v1150_v38, 0.0 }
 0x12c   : > { %1157 = vst [vmem:[%s345_s21 + $0x10] sm:$0xff] %v1153_v8  ;;  %1156 = vst [vmem:[%s345_s21 + $0x8] sm:$0xff] %v1152_v51 }
 0x12d   : > { %1158 = vst [vmem:[%s345_s21 + $0x18] sm:$0xff] %v1154_v10 }
 0x12e PF: > { %s18_s27 = sadd.s32 1, %s1392_s27  }
 0x12f   : > { %p15_p4 = scmp.ge.s32.totalorder %s18_s27, 4  }
 0x131   :  { %17 = sbr.rel (!%p15_p4) target bundleno = 1 (0x1), region = 88 }

// kernel: gcn3d_forward.21
= control target key start
LH: loop header
LB: loop body
LE: loop exit
PB: predicated region body
PF: predicated region fallthrough
CT: control target
= control target key end

     0   :  { %s243_s6 = smov 0   ;;  %s260_s0 = inlined_call_operand.vmem [shape: f32[2,64,256], index: 0, kind: input, shape index: {}]   ;;  %s261_s1 = inlined_call_operand.vmem [shape: f32[2,16,256], index: 1, kind: output, shape index: {}]  }
   0x1 LB: > { %s204_s7 = sadd.s32 4294967295, %s231_s6   ;;  %p208_p0 = scmp.ge.s32.totalorder %s231_s6, 1  ;;  %s231_s6 = sphi %s243_s6, %s11_s6  }
   0x2   : > { %p87_p1 = scmp.lt.s32.totalorder %s231_s6, 3 }
   0x4   : > { %p88_p2 = pnand %p208_p0, %p87_p1 }
   0x5   : > { %p107_p3 = scmp.lt.s32.totalorder (!%p88_p2), %s204_s7, 1 }
   0x6   : > { %91 = sbr.rel (%p88_p2) target bundleno = 28 (0x1c), region = 24 }
   0xd   : > { %s263_s7 = smov (!%p107_p3, %s204_s7), 1 }
   0xe   : > { %s215_s8 = sshll.u32 %s263_s7, 7  ;;  %s216_s12 = sshll.u32 %s263_s7, 5 }
   0xf   : > { %s111_s11 = scalar_lea.vmem %s260_s0, %s215_s8  ;;  %s116_s15 = scalar_lea.vmem %s261_s1, %s216_s12 }
  0x10   : > { %v117_v0 = vld [vmem:[%s111_s11] sm:$0xff]  ;;  %v118_v4 = vld [vmem:[%s111_s11 + $0x8] sm:$0xff]  ;;  %v119_v9 = vld [vmem:[%s111_s11 + $0x10] sm:$0xff] }
  0x11   : > { %v121_v1 = vld [vmem:[%s111_s11 + $0x20] sm:$0xff]  ;;  %v122_v5 = vld [vmem:[%s111_s11 + $0x28] sm:$0xff]  ;;  %v123_v12 = vld [vmem:[%s111_s11 + $0x30] sm:$0xff] }
  0x12   : > { %v129_v2 = vld [vmem:[%s111_s11 + $0x40] sm:$0xff]  ;;  %v125_v3 = vmax.f32 %v117_v0, %v121_v1  ;;  %v126_v7 = vmax.f32 %v118_v4, %v122_v5  ;;  %v130_v8 = vld [vmem:[%s111_s11 + $0x48] sm:$0xff]  ;;  %v131_v13 = vld [vmem:[%s111_s11 + $0x50] sm:$0xff]  ;;  %v127_v15 = vmax.f32 %v119_v9, %v123_v12 }
  0x13   : > { %v137_v6 = vld [vmem:[%s111_s11 + $0x60] sm:$0xff]  ;;  %v138_v11 = vld [vmem:[%s111_s11 + $0x68] sm:$0xff]  ;;  %v120_v16 = vld [vmem:[%s111_s11 + $0x18] sm:$0xff] }
  0x14   : > { %v133_v10 = vmax.f32 %v125_v3, %v129_v2  ;;  %v134_v14 = vmax.f32 %v126_v7, %v130_v8  ;;  %v124_v17 = vld [vmem:[%s111_s11 + $0x38] sm:$0xff]  ;;  %v139_v20 = vld [vmem:[%s111_s11 + $0x70] sm:$0xff]  ;;  %v135_v23 = vmax.f32 %v127_v15, %v131_v13 }
  0x15   : > { %v132_v18 = vld [vmem:[%s111_s11 + $0x58] sm:$0xff]  ;;  %v128_v21 = vmax.f32 %v120_v16, %v124_v17 }
  0x16   : > { %v141_v19 = vmax.f32 %v133_v10, %v137_v6  ;;  %v142_v22 = vmax.f32 %v134_v14, %v138_v11  ;;  %v140_v24 = vld [vmem:[%s111_s11 + $0x78] sm:$0xff]  ;;  %v143_v26 = vmax.f32 %v135_v23, %v139_v20 }
  0x17   : > { %v136_v25 = vmax.f32 %v128_v21, %v132_v18 }
  0x18   : > { %145 = vst [vmem:[%s116_s15] sm:$0xff] %v141_v19  ;;  %146 = vst [vmem:[%s116_s15 + $0x8] sm:$0xff] %v142_v22 }
  0x19   : > { %v144_v27 = vmax.f32 %v136_v25, %v140_v24  ;;  %147 = vst [vmem:[%s116_s15 + $0x10] sm:$0xff] %v143_v26 }
  0x1b   : > { %148 = vst [vmem:[%s116_s15 + $0x18] sm:$0xff] %v144_v27 }
  0x1c PF: > { %s11_s6 = sadd.s32 1, %s231_s6  }
  0x1d   : > { %p8_p4 = scmp.ge.s32.totalorder %s11_s6, 4  }
  0x1f   :  { %10 = sbr.rel (!%p8_p4) target bundleno = 1 (0x1), region = 54 }

// kernel: neg.9
= control target key start
LH: loop header
LB: loop body
LE: loop exit
PB: predicated region body
PF: predicated region fallthrough
CT: control target
= control target key end

     0   :  { %s40_s0 = inlined_call_operand.vmem [shape: f32[2,4,4], index: 0, kind: input, shape index: {}]   ;;  %s41_s1 = inlined_call_operand.vmem [shape: f32[2,4,4], index: 1, kind: output, shape index: {}]  }
   0x1   :  { %v2_v0 = vld [vmem:[%s40_s0] sm:$0xf]  ;;  %v16_v1 = vld [vmem:[%s40_s0 + $0x4] sm:$0xf] }
   0x2   :  { %v5_v2 = vxor.u32 2147483648, %v2_v0  ;;  %v12_v3 = vxor.u32 2147483648, %v16_v1 }
   0x4   :  { %7 = vst [vmem:[%s41_s1] sm:$0xf] %v5_v2  ;;  %17 = vst [vmem:[%s41_s1 + $0x4] sm:$0xf] %v12_v3 }

// kernel: gcn3d_forward.13
= control target key start
LH: loop header
LB: loop body
LE: loop exit
PB: predicated region body
PF: predicated region fallthrough
CT: control target
= control target key end

     0   :  { %s389_s6 = smov 0   ;;  %s409_s0 = inlined_call_operand.vmem [shape: f32[2,4,3], index: 0, kind: input, shape index: {}]   ;;  %s410_s1 = inlined_call_operand.vmem [shape: f32[2,4,4], index: 1, kind: output, shape index: {}]  }
   0x1 LB: > { %s330_s7 = sadd.s32 4294967295, %s374_s6   ;;  %p334_p0 = scmp.ge.s32.totalorder %s374_s6, 1  ;;  %s374_s6 = sphi %s389_s6, %s11_s6  }
   0x2   : > { %p86_p1 = scmp.lt.s32.totalorder %s374_s6, 3 }
   0x4   : > { %p87_p2 = pnand %p334_p0, %p86_p1 }
   0x5   : > { %p104_p3 = scmp.lt.s32.totalorder (!%p87_p2), %s330_s7, 1  ;;  %v376_v0 = vmov (!%p87_p2), 0.0   ;;  %vm377_vm0 = vmmov (!%p87_p2), 0   ;;  %vm114_vm1 = vcmask (!%p87_p2), 23552   ;;  %vm188_vm2 = vcmask (!%p87_p2), 19456  }
   0x6   : > { %90 = sbr.rel (%p87_p2) target bundleno = 239 (0xef), region = 24  ;;  %347 = vmatprep.subr.mxu0 (!%p87_p2), %v376_v0  ;;  %352 = vmatprep.subr.mxu1 (!%p87_p2), %v376_v0  ;;  %v378_v4 = vmov (!%p87_p2), 1.0   ;;  %v270_v5 = vlaneseq (!%p87_p2)  ;;  %vm275_vm3 = vcmask (!%p87_p2), 27648  }
   0x7   : > { %349 = vmatprep.mubr.msk.f32.mxu0 (!%p87_p2), %vm377_vm0, %v376_v0  ;;  %354 = vmatprep.mubr.msk.f32.mxu1 (!%p87_p2), %vm377_vm0, %v376_v0 }
   0x8   : > { %v271_v6 = vshrl.u32 (!%p87_p2), %v270_v5, 7 }
   0xa   : > { %v272_v7 = vsub.s32 (!%p87_p2), 0, %v271_v6 }
   0xd   : > { %s412_s7 = smov (!%p104_p3, %s330_s7), 1 }
   0xe   : > { %s335_s8 = sshll.u32 %s412_s7, 2 }
   0xf   : > { %s107_s11 = scalar_lea.vmem %s409_s0, %s335_s8  ;;  %s111_s14 = scalar_lea.vmem %s410_s1, %s335_s8 }
  0x10   : > { %v112_v1 = vld [vmem:[%s107_s11] sm:$0xf] }
  0x11   : > { %348 = vmatpush3.xpose.msk.msra.mxu0 %vm114_vm1, %v112_v1  ;;  %v113_v2 = vmul.f32 %v112_v1, %v112_v1 }
  0x13   : > { %353 = vmatpush3.xpose.msk.msra.mxu1 %vm114_vm1, %v113_v2  ;;  %v189_v3 = vsel %vm188_vm2, %v113_v2, 0.0 }
  0x14   : > { %350 = vmatmul.mubr.msk.f32.vlgmr.msra.gmra.mrb[0].mxu0 %vm114_vm1, %v112_v1  ;;  %190 = vadd.xlane.f32.xlu0 %v189_v3 }
  0x16   : > { %355 = vmatmul.mubr.msk.f32.vlgmr.msra.gmra.mrb[0].mxu1 %vm114_vm1, %v378_v4 }
  0xa1   : > { %v191_v9 = vpop.xlane.xlu0 %190 }
  0xe7   : > { %v184_v8 = vpop.f32.mrb[0].mxu0 }
  0xe8   : > { %v268_v10 = vmul.f32 -2.0, %v184_v8  ;;  %v351_v11 = vpop.f32.mrb[1].mxu0 }
  0xe9   : > { %v264_v12 = vpop.f32.mrb[0].mxu1 }
  0xea   : > { %v269_v13 = vadd.f32 %v268_v10, %v191_v9  ;;  %v273_v14 = vrot.slane %v264_v12, %v272_v7  ;;  %v356_v15 = vpop.f32.mrb[1].mxu1 }
  0xec   : > { %v274_v16 = vadd.f32 %v273_v14, %v269_v13 }
  0xee   : > { %276 = vst.msk [vmem:[%s111_s14] sm:$0xf] %vm275_vm3, %v274_v16 }
  0xef PF: > { %s11_s6 = sadd.s32 1, %s374_s6  }
  0xf0   : > { %p8_p4 = scmp.ge.s32.totalorder %s11_s6, 4  }
  0xf2   :  { %10 = sbr.rel (!%p8_p4) target bundleno = 1 (0x1), region = 54 }

// kernel: gcn3d_forward.23
= control target key start
LH: loop header
LB: loop body
LE: loop exit
PB: predicated region body
PF: predicated region fallthrough
CT: control target
= control target key end

     0   :  { %vm479_vm0 = vcmask 1041409   ;;  %s2338_s0 = inlined_call_operand.vmem [shape: f32[2,4,1024], index: 0, kind: input, shape index: {}]   ;;  %s2339_s1 = inlined_call_operand.vmem [shape: f32[1024,256], index: 1, kind: input, shape index: {}]   ;;  %s2340_s2 = inlined_call_operand.vmem [shape: f32[1,256], index: 2, kind: input, shape index: {}]   ;;  %s2341_s3 = inlined_call_operand.vmem [shape: f32[1,256], index: 3, kind: input, shape index: {}]   ;;  %s2342_s4 = inlined_call_operand.vmem [shape: f32[1,256], index: 4, kind: input, shape index: {}]   ;;  %s2343_s5 = inlined_call_operand.vmem [shape: f32[256,128], index: 5, kind: input, shape index: {}]   ;;  %s2344_s6 = inlined_call_operand.vmem [shape: f32[1,128], index: 6, kind: input, shape index: {}]   ;;  %s2345_s7 = inlined_call_operand.hbm [shape: f32[2,128], index: 7, kind: output, shape index: {}]  }
   0x1   :  { %v140_v0 = vld [vmem:[%s2339_s1 + $0x8] sm:$0xff]  ;;  %v142_v1 = vld [vmem:[%s2339_s1 + $0x18] sm:$0xff]  ;;  %v139_v5 = vld [vmem:[%s2339_s1] sm:$0xff] }
   0x2   :  { %v268_v2 = vld [vmem:[%s2339_s1 + $0x408] sm:$0xff]  ;;  %v996_v3 = vpack.c.bf16 %v142_v1, %v140_v0  ;;  %v270_v4 = vld [vmem:[%s2339_s1 + $0x418] sm:$0xff]  ;;  %v141_v6 = vld [vmem:[%s2339_s1 + $0x10] sm:$0xff] }
   0x3   :  { %v1124_v7 = vpack.c.bf16 %v270_v4, %v268_v2  ;;  %v998_v8 = vpack.c.bf16 %v141_v6, %v139_v5  ;;  %v267_v9 = vld [vmem:[%s2339_s1 + $0x400] sm:$0xff]  ;;  %v269_v10 = vld [vmem:[%s2339_s1 + $0x410] sm:$0xff]  ;;  %v144_v11 = vld [vmem:[%s2339_s1 + $0x28] sm:$0xff] }
   0x4   :  { %997 = vmatprep.subr.bf16.mxu1 %v996_v3  ;;  %v1126_v12 = vpack.c.bf16 %v269_v10, %v267_v9  ;;  %v146_v13 = vld [vmem:[%s2339_s1 + $0x38] sm:$0xff]  ;;  %v272_v14 = vld [vmem:[%s2339_s1 + $0x428] sm:$0xff]  ;;  %v143_v18 = vld [vmem:[%s2339_s1 + $0x20] sm:$0xff] }
   0x5   :  { %v274_v15 = vld [vmem:[%s2339_s1 + $0x438] sm:$0xff]  ;;  %1125 = vmatprep.subr.bf16.mxu0 %v1124_v7  ;;  %999 = vmatpush1.bf16.msra.mxu1 %v998_v8  ;;  %v1000_v16 = vpack.c.bf16 %v146_v13, %v144_v11  ;;  %v145_v19 = vld [vmem:[%s2339_s1 + $0x30] sm:$0xff]  ;;  %v271_v20 = vld [vmem:[%s2339_s1 + $0x420] sm:$0xff] }
   0x6   :  { %v1128_v17 = vpack.c.bf16 %v274_v15, %v272_v14  ;;  %1127 = vmatpush1.bf16.msra.mxu0 %v1126_v12  ;;  %v1002_v21 = vpack.c.bf16 %v145_v19, %v143_v18  ;;  %v273_v22 = vld [vmem:[%s2339_s1 + $0x430] sm:$0xff]  ;;  %v148_v23 = vld [vmem:[%s2339_s1 + $0x48] sm:$0xff]  ;;  %v150_v24 = vld [vmem:[%s2339_s1 + $0x58] sm:$0xff] }
   0x7   :  { %1001 = vmatprep.subr.bf16.mxu1 %v1000_v16  ;;  %v1130_v25 = vpack.c.bf16 %v273_v22, %v271_v20  ;;  %v1004_v26 = vpack.c.bf16 %v150_v24, %v148_v23  ;;  %v276_v27 = vld [vmem:[%s2339_s1 + $0x448] sm:$0xff]  ;;  %v278_v28 = vld [vmem:[%s2339_s1 + $0x458] sm:$0xff]  ;;  %v147_v29 = vld [vmem:[%s2339_s1 + $0x40] sm:$0xff] }
   0x8   :  { %1129 = vmatprep.subr.bf16.mxu0 %v1128_v17  ;;  %v1132_v30 = vpack.c.bf16 %v278_v28, %v276_v27  ;;  %v149_v31 = vld [vmem:[%s2339_s1 + $0x50] sm:$0xff]  ;;  %v275_v32 = vld [vmem:[%s2339_s1 + $0x440] sm:$0xff]  ;;  %v152_v35 = vld [vmem:[%s2339_s1 + $0x68] sm:$0xff] }
   0x9   :  { %v277_v33 = vld [vmem:[%s2339_s1 + $0x450] sm:$0xff]  ;;  %1003 = vmatpush1.bf16.msra.mxu1 %v1002_v21  ;;  %v1006_v34 = vpack.c.bf16 %v149_v31, %v147_v29  ;;  %v154_v36 = vld [vmem:[%s2339_s1 + $0x78] sm:$0xff]  ;;  %v280_v37 = vld [vmem:[%s2339_s1 + $0x468] sm:$0xff] }
   0xa   :  { %1131 = vmatpush1.bf16.msra.mxu0 %v1130_v25  ;;  %1005 = vmatprep.subr.bf16.mxu1 %v1004_v26  ;;  %v1134_v38 = vpack.c.bf16 %v277_v33, %v275_v32  ;;  %v1008_v39 = vpack.c.bf16 %v154_v36, %v152_v35  ;;  %v282_v40 = vld [vmem:[%s2339_s1 + $0x478] sm:$0xff]  ;;  %v151_v41 = vld [vmem:[%s2339_s1 + $0x60] sm:$0xff]  ;;  %v153_v42 = vld [vmem:[%s2339_s1 + $0x70] sm:$0xff] }
   0xb   :  { %1133 = vmatprep.subr.bf16.mxu0 %v1132_v30  ;;  %v1136_v43 = vpack.c.bf16 %v282_v40, %v280_v37  ;;  %v279_v44 = vld [vmem:[%s2339_s1 + $0x460] sm:$0xff]  ;;  %v281_v45 = vld [vmem:[%s2339_s1 + $0x470] sm:$0xff]  ;;  %v156_v46 = vld [vmem:[%s2339_s1 + $0x88] sm:$0xff]  ;;  %v1010_v50 = vpack.c.bf16 %v153_v42, %v151_v41 }
   0xc   :  { %v158_v47 = vld [vmem:[%s2339_s1 + $0x98] sm:$0xff]  ;;  %v284_v48 = vld [vmem:[%s2339_s1 + $0x488] sm:$0xff]  ;;  %v1138_v51 = vpack.c.bf16 %v281_v45, %v279_v44  ;;  %v155_v53 = vld [vmem:[%s2339_s1 + $0x80] sm:$0xff] }
   0xd   :  { %v286_v49 = vld [vmem:[%s2339_s1 + $0x498] sm:$0xff]  ;;  %1007 = vmatpush1.bf16.msra.mxu1 %v1006_v34  ;;  %v1012_v52 = vpack.c.bf16 %v158_v47, %v156_v46  ;;  %v157_v54 = vld [vmem:[%s2339_s1 + $0x90] sm:$0xff]  ;;  %v283_v55 = vld [vmem:[%s2339_s1 + $0x480] sm:$0xff] }
   0xe   :  { %1135 = vmatpush1.bf16.msra.mxu0 %v1134_v38  ;;  %1009 = vmatprep.subr.bf16.mxu1 %v1008_v39  ;;  %v1140_v56 = vpack.c.bf16 %v286_v49, %v284_v48  ;;  %v285_v57 = vld [vmem:[%s2339_s1 + $0x490] sm:$0xff]  ;;  %v160_v58 = vld [vmem:[%s2339_s1 + $0xa8] sm:$0xff]  ;;  %v162_v59 = vld [vmem:[%s2339_s1 + $0xb8] sm:$0xff]  ;;  %v1014_v62 = vpack.c.bf16 %v157_v54, %v155_v53 }
   0xf   :  { %1137 = vmatprep.subr.bf16.mxu0 %v1136_v43  ;;  %v288_v60 = vld [vmem:[%s2339_s1 + $0x4a8] sm:$0xff]  ;;  %v290_v61 = vld [vmem:[%s2339_s1 + $0x4b8] sm:$0xff]  ;;  %v1142_v63 = vpack.c.bf16 %v285_v57, %v283_v55  ;;  %v1016_v0 = vpack.c.bf16 %v162_v59, %v160_v58  ;;  %v159_v1 = vld [vmem:[%s2339_s1 + $0xa0] sm:$0xff] }
  0x10   :  { %v161_v2 = vld [vmem:[%s2339_s1 + $0xb0] sm:$0xff]  ;;  %v287_v3 = vld [vmem:[%s2339_s1 + $0x4a0] sm:$0xff]  ;;  %v1144_v4 = vpack.c.bf16 %v290_v61, %v288_v60  ;;  %v164_v6 = vld [vmem:[%s2339_s1 + $0xc8] sm:$0xff] }
  0x11   :  { %1011 = vmatpush1.bf16.msra.mxu1 %v1010_v50  ;;  %v289_v5 = vld [vmem:[%s2339_s1 + $0x4b0] sm:$0xff]  ;;  %v166_v7 = vld [vmem:[%s2339_s1 + $0xd8] sm:$0xff]  ;;  %v292_v8 = vld [vmem:[%s2339_s1 + $0x4c8] sm:$0xff]  ;;  %v1018_v10 = vpack.c.bf16 %v161_v2, %v159_v1 }
  0x12   :  { %1139 = vmatpush1.bf16.msra.mxu0 %v1138_v51  ;;  %1013 = vmatprep.subr.bf16.mxu1 %v1012_v52  ;;  %v294_v9 = vld [vmem:[%s2339_s1 + $0x4d8] sm:$0xff]  ;;  %v1146_v11 = vpack.c.bf16 %v289_v5, %v287_v3  ;;  %v1020_v12 = vpack.c.bf16 %v166_v7, %v164_v6  ;;  %v163_v13 = vld [vmem:[%s2339_s1 + $0xc0] sm:$0xff]  ;;  %v165_v14 = vld [vmem:[%s2339_s1 + $0xd0] sm:$0xff] }
  0x13   :  { %1141 = vmatprep.subr.bf16.mxu0 %v1140_v56  ;;  %v291_v15 = vld [vmem:[%s2339_s1 + $0x4c0] sm:$0xff]  ;;  %v1148_v16 = vpack.c.bf16 %v294_v9, %v292_v8  ;;  %v293_v17 = vld [vmem:[%s2339_s1 + $0x4d0] sm:$0xff]  ;;  %v168_v18 = vld [vmem:[%s2339_s1 + $0xe8] sm:$0xff]  ;;  %v1022_v22 = vpack.c.bf16 %v165_v14, %v163_v13  ;;  %v397_v56 = vlaneseq }
  0x14   :  { %v170_v19 = vld [vmem:[%s2339_s1 + $0xf8] sm:$0xff]  ;;  %v296_v20 = vld [vmem:[%s2339_s1 + $0x4e8] sm:$0xff]  ;;  %v1150_v23 = vpack.c.bf16 %v293_v17, %v291_v15  ;;  %v167_v25 = vld [vmem:[%s2339_s1 + $0xe0] sm:$0xff] }
  0x15   :  { %1015 = vmatpush1.bf16.msra.mxu1 %v1014_v62  ;;  %v298_v21 = vld [vmem:[%s2339_s1 + $0x4f8] sm:$0xff]  ;;  %v1024_v24 = vpack.c.bf16 %v170_v19, %v168_v18  ;;  %v169_v26 = vld [vmem:[%s2339_s1 + $0xf0] sm:$0xff]  ;;  %v295_v27 = vld [vmem:[%s2339_s1 + $0x4e0] sm:$0xff]  ;;  %v1634_v7 = vshrl.u32 %v397_v56, 7 }
  0x16   :  { %1143 = vmatpush1.bf16.msra.mxu0 %v1142_v63  ;;  %1017 = vmatprep.subr.bf16.mxu1 %v1016_v0  ;;  %v1152_v28 = vpack.c.bf16 %v298_v21, %v296_v20  ;;  %v297_v29 = vld [vmem:[%s2339_s1 + $0x4f0] sm:$0xff]  ;;  %v172_v30 = vld [vmem:[%s2339_s1 + $0x108] sm:$0xff]  ;;  %v174_v31 = vld [vmem:[%s2339_s1 + $0x118] sm:$0xff]  ;;  %v1026_v34 = vpack.c.bf16 %v169_v26, %v167_v25 }
  0x17   :  { %1145 = vmatprep.subr.bf16.mxu0 %v1144_v4  ;;  %v300_v32 = vld [vmem:[%s2339_s1 + $0x508] sm:$0xff]  ;;  %v302_v33 = vld [vmem:[%s2339_s1 + $0x518] sm:$0xff]  ;;  %v1154_v35 = vpack.c.bf16 %v297_v29, %v295_v27  ;;  %v1028_v36 = vpack.c.bf16 %v174_v31, %v172_v30  ;;  %v171_v37 = vld [vmem:[%s2339_s1 + $0x100] sm:$0xff] }
  0x18   :  { %v173_v38 = vld [vmem:[%s2339_s1 + $0x110] sm:$0xff]  ;;  %v299_v39 = vld [vmem:[%s2339_s1 + $0x500] sm:$0xff]  ;;  %v1156_v40 = vpack.c.bf16 %v302_v33, %v300_v32  ;;  %v176_v42 = vld [vmem:[%s2339_s1 + $0x128] sm:$0xff] }
  0x19   :  { %1019 = vmatpush1.bf16.msra.mxu1 %v1018_v10  ;;  %v301_v41 = vld [vmem:[%s2339_s1 + $0x510] sm:$0xff]  ;;  %v178_v43 = vld [vmem:[%s2339_s1 + $0x138] sm:$0xff]  ;;  %v304_v44 = vld [vmem:[%s2339_s1 + $0x528] sm:$0xff]  ;;  %v1030_v46 = vpack.c.bf16 %v173_v38, %v171_v37 }
  0x1a   :  { %1147 = vmatpush1.bf16.msra.mxu0 %v1146_v11  ;;  %1021 = vmatprep.subr.bf16.mxu1 %v1020_v12  ;;  %v306_v45 = vld [vmem:[%s2339_s1 + $0x538] sm:$0xff]  ;;  %v1158_v47 = vpack.c.bf16 %v301_v41, %v299_v39  ;;  %v1032_v48 = vpack.c.bf16 %v178_v43, %v176_v42  ;;  %v175_v49 = vld [vmem:[%s2339_s1 + $0x120] sm:$0xff]  ;;  %v177_v50 = vld [vmem:[%s2339_s1 + $0x130] sm:$0xff] }
  0x1b   :  { %1149 = vmatprep.subr.bf16.mxu0 %v1148_v16  ;;  %v303_v51 = vld [vmem:[%s2339_s1 + $0x520] sm:$0xff]  ;;  %v1160_v52 = vpack.c.bf16 %v306_v45, %v304_v44  ;;  %v305_v53 = vld [vmem:[%s2339_s1 + $0x530] sm:$0xff]  ;;  %v180_v54 = vld [vmem:[%s2339_s1 + $0x148] sm:$0xff]  ;;  %v1034_v59 = vpack.c.bf16 %v177_v50, %v175_v49 }
  0x1c   :  { %v182_v55 = vld [vmem:[%s2339_s1 + $0x158] sm:$0xff]  ;;  %v308_v57 = vld [vmem:[%s2339_s1 + $0x548] sm:$0xff]  ;;  %v179_v60 = vld [vmem:[%s2339_s1 + $0x140] sm:$0xff]  ;;  %v1162_v62 = vpack.c.bf16 %v305_v53, %v303_v51 }
  0x1d   :  { %1023 = vmatpush1.bf16.msra.mxu1 %v1022_v22  ;;  %v310_v58 = vld [vmem:[%s2339_s1 + $0x558] sm:$0xff]  ;;  %v181_v61 = vld [vmem:[%s2339_s1 + $0x150] sm:$0xff]  ;;  %v1036_v63 = vpack.c.bf16 %v182_v55, %v180_v54  ;;  %v307_v0 = vld [vmem:[%s2339_s1 + $0x540] sm:$0xff]  ;;  %v1664_v22 = vsub.s32 4, %v1634_v7 }
  0x1e   :  { %1151 = vmatpush1.bf16.msra.mxu0 %v1150_v23  ;;  %1025 = vmatprep.subr.bf16.mxu1 %v1024_v24  ;;  %v309_v1 = vld [vmem:[%s2339_s1 + $0x550] sm:$0xff]  ;;  %v184_v2 = vld [vmem:[%s2339_s1 + $0x168] sm:$0xff]  ;;  %v1164_v3 = vpack.c.bf16 %v310_v58, %v308_v57  ;;  %v186_v4 = vld [vmem:[%s2339_s1 + $0x178] sm:$0xff]  ;;  %v1038_v11 = vpack.c.bf16 %v181_v61, %v179_v60 }
  0x1f   :  { %1153 = vmatprep.subr.bf16.mxu0 %v1152_v28  ;;  %v312_v5 = vld [vmem:[%s2339_s1 + $0x568] sm:$0xff]  ;;  %v314_v6 = vld [vmem:[%s2339_s1 + $0x578] sm:$0xff]  ;;  %v183_v8 = vld [vmem:[%s2339_s1 + $0x160] sm:$0xff]  ;;  %v1166_v15 = vpack.c.bf16 %v309_v1, %v307_v0  ;;  %v1040_v16 = vpack.c.bf16 %v186_v4, %v184_v2 }
  0x20   :  { %v185_v9 = vld [vmem:[%s2339_s1 + $0x170] sm:$0xff]  ;;  %v311_v10 = vld [vmem:[%s2339_s1 + $0x560] sm:$0xff]  ;;  %v188_v13 = vld [vmem:[%s2339_s1 + $0x188] sm:$0xff]  ;;  %v1168_v19 = vpack.c.bf16 %v314_v6, %v312_v5 }
  0x21   :  { %1027 = vmatpush1.bf16.msra.mxu1 %v1026_v34  ;;  %v313_v12 = vld [vmem:[%s2339_s1 + $0x570] sm:$0xff]  ;;  %v190_v14 = vld [vmem:[%s2339_s1 + $0x198] sm:$0xff]  ;;  %v316_v17 = vld [vmem:[%s2339_s1 + $0x588] sm:$0xff]  ;;  %v1042_v20 = vpack.c.bf16 %v185_v9, %v183_v8 }
  0x22   :  { %1155 = vmatpush1.bf16.msra.mxu0 %v1154_v35  ;;  %1029 = vmatprep.subr.bf16.mxu1 %v1028_v36  ;;  %v318_v18 = vld [vmem:[%s2339_s1 + $0x598] sm:$0xff]  ;;  %v27_v21 = vld [vmem:[%s2338_s0] sm:$0xff]  ;;  %v1170_v23 = vpack.c.bf16 %v313_v12, %v311_v10  ;;  %v1044_v24 = vpack.c.bf16 %v190_v14, %v188_v13  ;;  %v189_v26 = vld [vmem:[%s2339_s1 + $0x190] sm:$0xff] }
  0x23   :  { %1157 = vmatprep.subr.bf16.mxu0 %v1156_v40  ;;  %v187_v25 = vld [vmem:[%s2339_s1 + $0x180] sm:$0xff]  ;;  %v936_v28 = vrot.slane %v27_v21, 9  ;;  %v944_v29 = vrot.slane %v27_v21, 10  ;;  %v1172_v30 = vpack.c.bf16 %v318_v18, %v316_v17  ;;  %v952_v34 = vrot.slane %v27_v21, 11  ;;  %v29_v35 = vld [vmem:[%s2338_s0 + $0x10] sm:$0xff]  ;;  %v192_v38 = vld [vmem:[%s2339_s1 + $0x1a8] sm:$0xff] }
  0x24   :  { %v31_v27 = vld [vmem:[%s2338_s0 + $0x20] sm:$0xff]  ;;  %v33_v36 = vld [vmem:[%s2338_s0 + $0x30] sm:$0xff]  ;;  %v194_v39 = vld [vmem:[%s2339_s1 + $0x1b8] sm:$0xff]  ;;  %v938_v41 = vrot.slane %v29_v35, 9  ;;  %v946_v43 = vrot.slane %v29_v35, 10  ;;  %v1046_v54 = vpack.c.bf16 %v189_v26, %v187_v25 }
  0x25   :  { %1031 = vmatpush1.bf16.msra.mxu1 %v1030_v46  ;;  %v315_v31 = vld [vmem:[%s2339_s1 + $0x580] sm:$0xff]  ;;  %v940_v32 = vrot.slane %v31_v27, 9  ;;  %v948_v33 = vrot.slane %v31_v27, 10  ;;  %v317_v37 = vld [vmem:[%s2339_s1 + $0x590] sm:$0xff]  ;;  %v67_v40 = vmax.f32 %v27_v21, %v936_v28  ;;  %v942_v42 = vrot.slane %v33_v36, 9  ;;  %v322_v49 = vld [vmem:[%s2339_s1 + $0x5b8] sm:$0xff] }
  0x26   :  { %1159 = vmatpush1.bf16.msra.mxu0 %v1158_v47  ;;  %1033 = vmatprep.subr.bf16.mxu1 %v1032_v48  ;;  %v956_v45 = vrot.slane %v31_v27, 11  ;;  %v950_v46 = vrot.slane %v33_v36, 10  ;;  %v954_v47 = vrot.slane %v29_v35, 11  ;;  %v320_v48 = vld [vmem:[%s2339_s1 + $0x5a8] sm:$0xff]  ;;  %v69_v51 = vmax.f32 %v29_v35, %v938_v41  ;;  %v191_v57 = vld [vmem:[%s2339_s1 + $0x1a0] sm:$0xff]  ;;  %v321_v61 = vld [vmem:[%s2339_s1 + $0x5b0] sm:$0xff] }
  0x27   :  { %1161 = vmatprep.subr.bf16.mxu0 %v1160_v52  ;;  %v71_v44 = vmax.f32 %v31_v27, %v940_v32  ;;  %v99_v50 = vmax.f32 %v67_v40, %v944_v29  ;;  %v73_v52 = vmax.f32 %v33_v36, %v942_v42  ;;  %v958_v53 = vrot.slane %v33_v36, 11  ;;  %v319_v60 = vld [vmem:[%s2339_s1 + $0x5a0] sm:$0xff]  ;;  %v196_v2 = vld [vmem:[%s2339_s1 + $0x1c8] sm:$0xff]  ;;  %v326_v6 = vld [vmem:[%s2339_s1 + $0x5d8] sm:$0xff] }
  0x28   :  { %v1174_v55 = vpack.c.bf16 %v317_v37, %v315_v31  ;;  %v1048_v56 = vpack.c.bf16 %v194_v39, %v192_v38  ;;  %v1176_v1 = vpack.c.bf16 %v322_v49, %v320_v48  ;;  %v324_v5 = vld [vmem:[%s2339_s1 + $0x5c8] sm:$0xff]  ;;  %v1178_v12 = vpack.c.bf16 %v321_v61, %v319_v60  ;;  %v323_v17 = vld [vmem:[%s2339_s1 + $0x5c0] sm:$0xff]  ;;  %v325_v21 = vld [vmem:[%s2339_s1 + $0x5d0] sm:$0xff] }
  0x29   :  { %1035 = vmatpush1.bf16.msra.mxu1 %v1034_v59  ;;  %v103_v58 = vmax.f32 %v71_v44, %v948_v33  ;;  %v193_v59 = vld [vmem:[%s2339_s1 + $0x1b0] sm:$0xff]  ;;  %v105_v0 = vmax.f32 %v73_v52, %v950_v46  ;;  %v328_v26 = vld [vmem:[%s2339_s1 + $0x5e8] sm:$0xff]  ;;  %v330_v27 = vld [vmem:[%s2339_s1 + $0x5f8] sm:$0xff]  ;;  %v1769_v31 = vsub.s32 0, %v1634_v7  ;;  %v1182_v32 = vpack.c.bf16 %v325_v21, %v323_v17 }
  0x2a   :  { %1163 = vmatpush1.bf16.msra.mxu0 %v1162_v62  ;;  %1037 = vmatprep.subr.bf16.mxu1 %v1036_v63  ;;  %v1711_v62 = vmax.f32 %v99_v50, %v952_v34  ;;  %v101_v63 = vmax.f32 %v69_v51, %v946_v43  ;;  %v201_v34 = vld [vmem:[%s2339_s1 + $0x1f0] sm:$0xff]  ;;  %v327_v35 = vld [vmem:[%s2339_s1 + $0x5e0] sm:$0xff]  ;;  %v1184_v37 = vpack.c.bf16 %v330_v27, %v328_v26  ;;  %v204_v38 = vld [vmem:[%s2339_s1 + $0x208] sm:$0xff] }
  0x2b   :  { %1165 = vmatprep.subr.bf16.mxu0 %v1164_v3  ;;  %v198_v3 = vld [vmem:[%s2339_s1 + $0x1d8] sm:$0xff]  ;;  %v1719_v4 = vmax.f32 %v103_v58, %v956_v45  ;;  %v1731_v10 = vmax.f32 %v105_v0, %v958_v53  ;;  %v329_v36 = vld [vmem:[%s2339_s1 + $0x5f0] sm:$0xff]  ;;  %v332_v40 = vld [vmem:[%s2339_s1 + $0x608] sm:$0xff] }
  0x2c   :  { %v422_v8 = vrot.slane %v1711_v62, %v1664_v22  ;;  %v1729_v9 = vmax.f32 %v101_v63, %v954_v47  ;;  %v1052_v14 = vpack.c.bf16 %v198_v3, %v196_v2  ;;  %v206_v39 = vld [vmem:[%s2339_s1 + $0x218] sm:$0xff]  ;;  %v1186_v43 = vpack.c.bf16 %v329_v36, %v327_v35  ;;  %v203_v47 = vld [vmem:[%s2339_s1 + $0x200] sm:$0xff]  ;;  %v205_v48 = vld [vmem:[%s2339_s1 + $0x210] sm:$0xff] }
  0x2d   :  { %1039 = vmatpush1.bf16.msra.mxu1 %v1038_v11  ;;  %v1050_v11 = vpack.c.bf16 %v193_v59, %v191_v57  ;;  %v454_v13 = vrot.slane %v1719_v4, %v1664_v22  ;;  %v334_v41 = vld [vmem:[%s2339_s1 + $0x618] sm:$0xff]  ;;  %v418_v44 = vrot.slane %v1711_v62, %v1769_v31  ;;  %v450_v45 = vrot.slane %v1719_v4, %v1769_v31  ;;  %v331_v51 = vld [vmem:[%s2339_s1 + $0x600] sm:$0xff]  ;;  %v333_v53 = vld [vmem:[%s2339_s1 + $0x610] sm:$0xff] }
  0x2e   :  { %1167 = vmatpush1.bf16.msra.mxu0 %v1166_v15  ;;  %1041 = vmatprep.subr.bf16.mxu1 %v1040_v16  ;;  %v195_v15 = vld [vmem:[%s2339_s1 + $0x1c0] sm:$0xff]  ;;  %v197_v16 = vld [vmem:[%s2339_s1 + $0x1d0] sm:$0xff]  ;;  %v438_v18 = vrot.slane %v1729_v9, %v1664_v22  ;;  %v1060_v46 = vpack.c.bf16 %v206_v39, %v204_v38  ;;  %v434_v49 = vrot.slane %v1729_v9, %v1769_v31  ;;  %v338_v57 = vld [vmem:[%s2339_s1 + $0x638] sm:$0xff] }
  0x2f   :  { %1169 = vmatprep.subr.bf16.mxu0 %v1168_v19  ;;  %v470_v19 = vrot.slane %v1731_v10, %v1664_v22  ;;  %v481_v25 = vsel %vm479_vm0, %v454_v13, %v422_v8  ;;  %v1054_v29 = vpack.c.bf16 %v197_v16, %v195_v15  ;;  %v466_v50 = vrot.slane %v1731_v10, %v1769_v31  ;;  %v207_v63 = vld [vmem:[%s2339_s1 + $0x220] sm:$0xff]  ;;  %v209_v0 = vld [vmem:[%s2339_s1 + $0x230] sm:$0xff]  ;;  %v212_v4 = vld [vmem:[%s2339_s1 + $0x248] sm:$0xff] }
  0x30   :  { %560 = vmatprep.mubr.f32.mxu1 %v481_v25  ;;  %v1188_v52 = vpack.c.bf16 %v334_v41, %v332_v40  ;;  %v480_v58 = vsel %vm479_vm0, %v450_v45, %v418_v44  ;;  %v1062_v59 = vpack.c.bf16 %v205_v48, %v203_v47  ;;  %v1190_v61 = vpack.c.bf16 %v333_v53, %v331_v51  ;;  %v337_v3 = vld [vmem:[%s2339_s1 + $0x630] sm:$0xff]  ;;  %v342_v8 = vld [vmem:[%s2339_s1 + $0x658] sm:$0xff]  ;;  %v216_v17 = vld [vmem:[%s2339_s1 + $0x268] sm:$0xff] }
  0x31   :  { %1043 = vmatpush1.bf16.msra.mxu1 %v1042_v20  ;;  %v1180_v20 = vpack.c.bf16 %v326_v6, %v324_v5  ;;  %v485_v28 = vsel %vm479_vm0, %v470_v19, %v438_v18  ;;  %v484_v60 = vsel %vm479_vm0, %v466_v50, %v434_v49  ;;  %v214_v5 = vld [vmem:[%s2339_s1 + $0x258] sm:$0xff]  ;;  %v340_v6 = vld [vmem:[%s2339_s1 + $0x648] sm:$0xff]  ;;  %v1066_v9 = vpack.c.bf16 %v209_v0, %v207_v63  ;;  %v213_v13 = vld [vmem:[%s2339_s1 + $0x250] sm:$0xff] }
  0x32   :  { %1171 = vmatpush1.bf16.msra.mxu0 %v1170_v23  ;;  %1045 = vmatprep.subr.bf16.mxu1 %v1044_v24  ;;  %v200_v23 = vld [vmem:[%s2339_s1 + $0x1e8] sm:$0xff]  ;;  %v202_v24 = vld [vmem:[%s2339_s1 + $0x1f8] sm:$0xff]  ;;  %v1196_v15 = vpack.c.bf16 %v342_v8, %v340_v6  ;;  %v341_v16 = vld [vmem:[%s2339_s1 + $0x650] sm:$0xff] }
  0x33   :  { %1173 = vmatprep.subr.bf16.mxu0 %v1172_v30  ;;  %v199_v30 = vld [vmem:[%s2339_s1 + $0x1e0] sm:$0xff]  ;;  %702 = vmatprep.mubr.f32.mxu0 %v485_v28  ;;  %v1056_v33 = vpack.c.bf16 %v202_v24, %v200_v23  ;;  %v218_v18 = vld [vmem:[%s2339_s1 + $0x278] sm:$0xff]  ;;  %v344_v19 = vld [vmem:[%s2339_s1 + $0x668] sm:$0xff] }
  0x34   :  { %v1058_v42 = vpack.c.bf16 %v201_v34, %v199_v30  ;;  %v1072_v24 = vpack.c.bf16 %v218_v18, %v216_v17  ;;  %v215_v25 = vld [vmem:[%s2339_s1 + $0x260] sm:$0xff]  ;;  %v217_v26 = vld [vmem:[%s2339_s1 + $0x270] sm:$0xff]  ;;  %v220_v30 = vld [vmem:[%s2339_s1 + $0x288] sm:$0xff] }
  0x35   :  { %1047 = vmatpush1.bf16.msra.mxu1 %v1046_v54  ;;  %v208_v54 = vld [vmem:[%s2339_s1 + $0x228] sm:$0xff]  ;;  %v343_v27 = vld [vmem:[%s2339_s1 + $0x660] sm:$0xff]  ;;  %v350_v34 = vld [vmem:[%s2339_s1 + $0x698] sm:$0xff]  ;;  %v1074_v35 = vpack.c.bf16 %v217_v26, %v215_v25 }
  0x36   :  { %1175 = vmatpush1.bf16.msra.mxu0 %v1174_v55  ;;  %1049 = vmatprep.subr.bf16.mxu1 %v1048_v56  ;;  %v210_v55 = vld [vmem:[%s2339_s1 + $0x238] sm:$0xff]  ;;  %v336_v56 = vld [vmem:[%s2339_s1 + $0x628] sm:$0xff]  ;;  %v219_v38 = vld [vmem:[%s2339_s1 + $0x280] sm:$0xff] }
  0x37   :  { %1177 = vmatprep.subr.bf16.mxu0 %v1176_v1  ;;  %v1064_v62 = vpack.c.bf16 %v210_v55, %v208_v54  ;;  %v335_v1 = vld [vmem:[%s2339_s1 + $0x620] sm:$0xff]  ;;  %v1192_v2 = vpack.c.bf16 %v338_v57, %v336_v56  ;;  %v221_v39 = vld [vmem:[%s2339_s1 + $0x290] sm:$0xff]  ;;  %v226_v44 = vld [vmem:[%s2339_s1 + $0x2b8] sm:$0xff] }
  0x38   :  { %v1194_v10 = vpack.c.bf16 %v337_v3, %v335_v1  ;;  %v347_v40 = vld [vmem:[%s2339_s1 + $0x680] sm:$0xff]  ;;  %v352_v45 = vld [vmem:[%s2339_s1 + $0x6a8] sm:$0xff]  ;;  %v1078_v48 = vpack.c.bf16 %v221_v39, %v219_v38  ;;  %v225_v49 = vld [vmem:[%s2339_s1 + $0x2b0] sm:$0xff] }
  0x39   :  { %1051 = vmatpush1.bf16.msra.mxu1 %v1050_v11  ;;  %v1068_v11 = vpack.c.bf16 %v214_v5, %v212_v4  ;;  %v223_v47 = vld [vmem:[%s2339_s1 + $0x2a0] sm:$0xff]  ;;  %v353_v51 = vld [vmem:[%s2339_s1 + $0x6b0] sm:$0xff]  ;;  %v228_v54 = vld [vmem:[%s2339_s1 + $0x2c8] sm:$0xff] }
  0x3a   :  { %1179 = vmatpush1.bf16.msra.mxu0 %v1178_v12  ;;  %1053 = vmatprep.subr.bf16.mxu1 %v1052_v14  ;;  %v211_v12 = vld [vmem:[%s2339_s1 + $0x240] sm:$0xff]  ;;  %v230_v55 = vld [vmem:[%s2339_s1 + $0x2d8] sm:$0xff]  ;;  %v356_v56 = vld [vmem:[%s2339_s1 + $0x6c8] sm:$0xff]  ;;  %v1082_v0 = vpack.c.bf16 %v225_v49, %v223_v47 }
  0x3b   :  { %1181 = vmatprep.subr.bf16.mxu0 %v1180_v20  ;;  %v339_v14 = vld [vmem:[%s2339_s1 + $0x640] sm:$0xff]  ;;  %v346_v20 = vld [vmem:[%s2339_s1 + $0x678] sm:$0xff]  ;;  %v1070_v21 = vpack.c.bf16 %v213_v13, %v211_v12  ;;  %v232_v63 = vld [vmem:[%s2339_s1 + $0x2e8] sm:$0xff]  ;;  %v1084_v5 = vpack.c.bf16 %v230_v55, %v228_v54 }
  0x3c   :  { %v1198_v23 = vpack.c.bf16 %v341_v16, %v339_v14  ;;  %v1200_v28 = vpack.c.bf16 %v346_v20, %v344_v19  ;;  %v351_v50 = vld [vmem:[%s2339_s1 + $0x6a0] sm:$0xff]  ;;  %v234_v1 = vld [vmem:[%s2339_s1 + $0x2f8] sm:$0xff]  ;;  %v32_v13 = vld [vmem:[%s2338_s0 + $0x28] sm:$0xff] }
  0x3d   :  { %1055 = vmatpush1.bf16.msra.mxu1 %v1054_v29  ;;  %v345_v29 = vld [vmem:[%s2339_s1 + $0x670] sm:$0xff]  ;;  %v362_v3 = vld [vmem:[%s2339_s1 + $0x6f8] sm:$0xff]  ;;  %v1210_v4 = vpack.c.bf16 %v353_v51, %v351_v50  ;;  %v231_v18 = vld [vmem:[%s2339_s1 + $0x2e0] sm:$0xff]  ;;  %v941_v19 = vrot.slane %v32_v13, 9  ;;  %v949_v20 = vrot.slane %v32_v13, 10 }
  0x3e   :  { %1183 = vmatpush1.bf16.msra.mxu0 %v1182_v32  ;;  %1057 = vmatprep.subr.bf16.mxu1 %v1056_v33  ;;  %v222_v32 = vld [vmem:[%s2339_s1 + $0x298] sm:$0xff]  ;;  %v348_v33 = vld [vmem:[%s2339_s1 + $0x688] sm:$0xff]  ;;  %v1202_v36 = vpack.c.bf16 %v345_v29, %v343_v27  ;;  %v359_v25 = vld [vmem:[%s2339_s1 + $0x6e0] sm:$0xff] }
  0x3f   :  { %1185 = vmatprep.subr.bf16.mxu0 %v1184_v37  ;;  %v1076_v37 = vpack.c.bf16 %v222_v32, %v220_v30  ;;  %v1204_v41 = vpack.c.bf16 %v350_v34, %v348_v33  ;;  %v30_v16 = vld [vmem:[%s2338_s0 + $0x18] sm:$0xff]  ;;  %v361_v26 = vld [vmem:[%s2339_s1 + $0x6f0] sm:$0xff]  ;;  %v236_v32 = vld [vmem:[%s2339_s1 + $0x308] sm:$0xff]  ;;  %v72_v34 = vmax.f32 %v32_v13, %v941_v19 }
  0x40   :  { %v34_v17 = vld [vmem:[%s2338_s0 + $0x38] sm:$0xff]  ;;  %v947_v29 = vrot.slane %v30_v16, 10  ;;  %v364_v38 = vld [vmem:[%s2339_s1 + $0x708] sm:$0xff]  ;;  %v237_v49 = vld [vmem:[%s2339_s1 + $0x310] sm:$0xff] }
  0x41   :  { %1059 = vmatpush1.bf16.msra.mxu1 %v1058_v42  ;;  %v349_v42 = vld [vmem:[%s2339_s1 + $0x690] sm:$0xff]  ;;  %v951_v30 = vrot.slane %v34_v17, 10  ;;  %v238_v33 = vld [vmem:[%s2339_s1 + $0x318] sm:$0xff]  ;;  %v363_v50 = vld [vmem:[%s2339_s1 + $0x700] sm:$0xff] }
  0x42   :  { %1187 = vmatpush1.bf16.msra.mxu0 %v1186_v43  ;;  %1061 = vmatprep.subr.bf16.mxu1 %v1060_v46  ;;  %v224_v43 = vld [vmem:[%s2339_s1 + $0x2a8] sm:$0xff]  ;;  %v354_v46 = vld [vmem:[%s2339_s1 + $0x6b8] sm:$0xff]  ;;  %v1092_v47 = vpack.c.bf16 %v238_v33, %v236_v32  ;;  %v365_v54 = vld [vmem:[%s2339_s1 + $0x710] sm:$0xff] }
  0x43   :  { %1189 = vmatprep.subr.bf16.mxu0 %v1188_v52  ;;  %v1206_v52 = vpack.c.bf16 %v349_v42, %v347_v40  ;;  %v1080_v53 = vpack.c.bf16 %v226_v44, %v224_v43  ;;  %v1208_v57 = vpack.c.bf16 %v354_v46, %v352_v45  ;;  %v366_v39 = vld [vmem:[%s2339_s1 + $0x718] sm:$0xff]  ;;  %v959_v42 = vrot.slane %v34_v17, 11  ;;  %v240_v55 = vld [vmem:[%s2339_s1 + $0x328] sm:$0xff] }
  0x44   :  { %561 = vmatmul.mubr.f32.vlgmr.msra.gmra.mrb[0].mxu1 %v480_v58  ;;  %v358_v58 = vld [vmem:[%s2339_s1 + $0x6d8] sm:$0xff]  ;;  %v1218_v44 = vpack.c.bf16 %v361_v26, %v359_v25  ;;  %v104_v45 = vmax.f32 %v72_v34, %v949_v20 }
  0x45   :  { %1063 = vmatpush1.bf16.msra.mxu1 %v1062_v59  ;;  %703 = vmatmul.mubr.f32.vlgmr.msra.gmra.mrb[0].mxu0 %v484_v60  ;;  %v227_v59 = vld [vmem:[%s2339_s1 + $0x2c0] sm:$0xff]  ;;  %v229_v60 = vld [vmem:[%s2339_s1 + $0x2d0] sm:$0xff]  ;;  %v1212_v6 = vpack.c.bf16 %v358_v58, %v356_v56  ;;  %v242_v56 = vld [vmem:[%s2339_s1 + $0x338] sm:$0xff] }
  0x46   :  { %1191 = vmatpush1.bf16.msra.mxu0 %v1190_v61  ;;  %1065 = vmatprep.subr.bf16.mxu1 %v1064_v62  ;;  %v355_v61 = vld [vmem:[%s2339_s1 + $0x6c0] sm:$0xff]  ;;  %v357_v62 = vld [vmem:[%s2339_s1 + $0x6d0] sm:$0xff]  ;;  %v1086_v8 = vpack.c.bf16 %v229_v60, %v227_v59  ;;  %v368_v59 = vld [vmem:[%s2339_s1 + $0x728] sm:$0xff] }
  0x47   :  { %1193 = vmatprep.subr.bf16.mxu0 %v1192_v2  ;;  %v360_v2 = vld [vmem:[%s2339_s1 + $0x6e8] sm:$0xff]  ;;  %v370_v60 = vld [vmem:[%s2339_s1 + $0x738] sm:$0xff] }
  0x48   :  { %v1216_v12 = vpack.c.bf16 %v362_v3, %v360_v2 }
  0x49   :  { %1067 = vmatpush1.bf16.msra.mxu1 %v1066_v9  ;;  %v1214_v9 = vpack.c.bf16 %v357_v62, %v355_v61 }
  0x4a   :  { %1195 = vmatpush1.bf16.msra.mxu0 %v1194_v10  ;;  %1069 = vmatprep.subr.bf16.mxu1 %v1068_v11  ;;  %v28_v10 = vld [vmem:[%s2338_s0 + $0x8] sm:$0xff]  ;;  %v1088_v11 = vpack.c.bf16 %v234_v1, %v232_v63 }
  0x4b   :  { %1197 = vmatprep.subr.bf16.mxu0 %v1196_v15  ;;  %v937_v14 = vrot.slane %v28_v10, 9  ;;  %v945_v15 = vrot.slane %v28_v10, 10 }
  0x4d   :  { %1071 = vmatpush1.bf16.msra.mxu1 %v1070_v21  ;;  %v953_v21 = vrot.slane %v28_v10, 11  ;;  %v68_v27 = vmax.f32 %v28_v10, %v937_v14 }
  0x4e   :  { %1199 = vmatpush1.bf16.msra.mxu0 %v1198_v23  ;;  %1073 = vmatprep.subr.bf16.mxu1 %v1072_v24  ;;  %v939_v23 = vrot.slane %v30_v16, 9  ;;  %v233_v24 = vld [vmem:[%s2339_s1 + $0x2f0] sm:$0xff] }
  0x4f   :  { %1201 = vmatprep.subr.bf16.mxu0 %v1200_v28  ;;  %v943_v28 = vrot.slane %v34_v17, 9  ;;  %v100_v40 = vmax.f32 %v68_v27, %v945_v15  ;;  %v1090_v43 = vpack.c.bf16 %v233_v24, %v231_v18 }
  0x51   :  { %1075 = vmatpush1.bf16.msra.mxu1 %v1074_v35  ;;  %v957_v35 = vrot.slane %v32_v13, 11  ;;  %v2015_v51 = vmax.f32 %v100_v40, %v953_v21 }
  0x52   :  { %1203 = vmatpush1.bf16.msra.mxu0 %v1202_v36  ;;  %1077 = vmatprep.subr.bf16.mxu1 %v1076_v37  ;;  %v70_v36 = vmax.f32 %v30_v16, %v939_v23  ;;  %v955_v37 = vrot.slane %v30_v16, 11 }
  0x53   :  { %1205 = vmatprep.subr.bf16.mxu0 %v1204_v41  ;;  %v74_v41 = vmax.f32 %v34_v17, %v943_v28  ;;  %v430_v61 = vrot.slane %v2015_v51, %v1664_v22 }
  0x54   :  { %v102_v46 = vmax.f32 %v70_v36, %v947_v29 }
  0x55   :  { %1079 = vmatpush1.bf16.msra.mxu1 %v1078_v48  ;;  %v235_v48 = vld [vmem:[%s2339_s1 + $0x300] sm:$0xff] }
  0x56   :  { %1207 = vmatpush1.bf16.msra.mxu0 %v1206_v52  ;;  %1081 = vmatprep.subr.bf16.mxu1 %v1080_v53  ;;  %v106_v52 = vmax.f32 %v74_v41, %v951_v30  ;;  %v1220_v53 = vpack.c.bf16 %v366_v39, %v364_v38  ;;  %v2028_v58 = vmax.f32 %v102_v46, %v955_v37 }
  0x57   :  { %1209 = vmatprep.subr.bf16.mxu0 %v1208_v57  ;;  %v2026_v57 = vmax.f32 %v104_v45, %v957_v35 }
  0x58   :  { %v2038_v62 = vmax.f32 %v106_v52, %v959_v42 }
  0x59   :  { %1083 = vmatpush1.bf16.msra.mxu1 %v1082_v0 }
  0x5a   :  { %1211 = vmatpush1.bf16.msra.mxu0 %v1210_v4  ;;  %1085 = vmatprep.subr.bf16.mxu1 %v1084_v5 }
  0x5b   :  { %1213 = vmatprep.subr.bf16.mxu0 %v1212_v6 }
  0x5d   :  { %1087 = vmatpush1.bf16.msra.mxu1 %v1086_v8 }
  0x5e   :  { %1215 = vmatpush1.bf16.msra.mxu0 %v1214_v9  ;;  %1089 = vmatprep.subr.bf16.mxu1 %v1088_v11 }
  0x5f   :  { %1217 = vmatprep.subr.bf16.mxu0 %v1216_v12 }
  0x60   :  { %12 = vsyncpa [#allocation3], 0  ;;  %v1094_v63 = vpack.c.bf16 %v237_v49, %v235_v48  ;;  %v462_v0 = vrot.slane %v2026_v57, %v1664_v22  ;;  %v446_v1 = vrot.slane %v2028_v58, %v1664_v22  ;;  %v1222_v2 = vpack.c.bf16 %v365_v54, %v363_v50  ;;  %v239_v4 = vld [vmem:[%s2339_s1 + $0x320] sm:$0xff]  ;;  %v241_v5 = vld [vmem:[%s2339_s1 + $0x330] sm:$0xff] }
  0x61   :  { %1091 = vmatpush1.bf16.msra.mxu1 %v1090_v43  ;;  %v1096_v3 = vpack.c.bf16 %v242_v56, %v240_v55  ;;  %v367_v6 = vld [vmem:[%s2339_s1 + $0x720] sm:$0xff]  ;;  %v478_v8 = vrot.slane %v2038_v62, %v1664_v22  ;;  %v1224_v9 = vpack.c.bf16 %v370_v60, %v368_v59  ;;  %v369_v10 = vld [vmem:[%s2339_s1 + $0x730] sm:$0xff]  ;;  %v244_v11 = vld [vmem:[%s2339_s1 + $0x348] sm:$0xff]  ;;  %v1098_v16 = vpack.c.bf16 %v241_v5, %v239_v4 }
  0x62   :  { %1219 = vmatpush1.bf16.msra.mxu0 %v1218_v44  ;;  %1093 = vmatprep.subr.bf16.mxu1 %v1092_v47  ;;  %v246_v12 = vld [vmem:[%s2339_s1 + $0x358] sm:$0xff]  ;;  %v483_v13 = vsel %vm479_vm0, %v462_v0, %v430_v61  ;;  %v372_v22 = vld [vmem:[%s2339_s1 + $0x748] sm:$0xff]  ;;  %v1226_v17 = vpack.c.bf16 %v369_v10, %v367_v6  ;;  %v243_v19 = vld [vmem:[%s2339_s1 + $0x340] sm:$0xff] }
  0x63   :  { %1221 = vmatprep.subr.bf16.mxu0 %v1220_v53  ;;  %v374_v14 = vld [vmem:[%s2339_s1 + $0x758] sm:$0xff]  ;;  %631 = vmatprep.mubr.f32.mxu1 %v483_v13  ;;  %v487_v15 = vsel %vm479_vm0, %v478_v8, %v446_v1  ;;  %v1100_v18 = vpack.c.bf16 %v246_v12, %v244_v11  ;;  %v245_v20 = vld [vmem:[%s2339_s1 + $0x350] sm:$0xff]  ;;  %v371_v21 = vld [vmem:[%s2339_s1 + $0x740] sm:$0xff] }
  0x64   :  { %773 = vmatprep.mubr.f32.mxu0 %v487_v15  ;;  %v1228_v23 = vpack.c.bf16 %v374_v14, %v372_v22  ;;  %v373_v24 = vld [vmem:[%s2339_s1 + $0x750] sm:$0xff]  ;;  %v248_v25 = vld [vmem:[%s2339_s1 + $0x368] sm:$0xff]  ;;  %v250_v26 = vld [vmem:[%s2339_s1 + $0x378] sm:$0xff]  ;;  %v1102_v29 = vpack.c.bf16 %v245_v20, %v243_v19 }
  0x65   :  { %1095 = vmatpush1.bf16.msra.mxu1 %v1094_v63  ;;  %v376_v27 = vld [vmem:[%s2339_s1 + $0x768] sm:$0xff]  ;;  %v378_v28 = vld [vmem:[%s2339_s1 + $0x778] sm:$0xff]  ;;  %v1230_v30 = vpack.c.bf16 %v373_v24, %v371_v21  ;;  %v1104_v32 = vpack.c.bf16 %v250_v26, %v248_v25  ;;  %v247_v33 = vld [vmem:[%s2339_s1 + $0x360] sm:$0xff] }
  0x66   :  { %1223 = vmatpush1.bf16.msra.mxu0 %v1222_v2  ;;  %1097 = vmatprep.subr.bf16.mxu1 %v1096_v3  ;;  %v249_v34 = vld [vmem:[%s2339_s1 + $0x370] sm:$0xff]  ;;  %v375_v35 = vld [vmem:[%s2339_s1 + $0x760] sm:$0xff]  ;;  %v1232_v36 = vpack.c.bf16 %v378_v28, %v376_v27  ;;  %v252_v38 = vld [vmem:[%s2339_s1 + $0x388] sm:$0xff] }
  0x67   :  { %1225 = vmatprep.subr.bf16.mxu0 %v1224_v9  ;;  %v377_v37 = vld [vmem:[%s2339_s1 + $0x770] sm:$0xff]  ;;  %v254_v39 = vld [vmem:[%s2339_s1 + $0x398] sm:$0xff]  ;;  %v380_v40 = vld [vmem:[%s2339_s1 + $0x788] sm:$0xff]  ;;  %v1106_v42 = vpack.c.bf16 %v249_v34, %v247_v33  ;;  %v458_v33 = vrot.slane %v2026_v57, %v1769_v31  ;;  %v442_v34 = vrot.slane %v2028_v58, %v1769_v31 }
  0x68   :  { %v382_v41 = vld [vmem:[%s2339_s1 + $0x798] sm:$0xff]  ;;  %v1234_v43 = vpack.c.bf16 %v377_v37, %v375_v35  ;;  %v1108_v44 = vpack.c.bf16 %v254_v39, %v252_v38  ;;  %v251_v45 = vld [vmem:[%s2339_s1 + $0x380] sm:$0xff]  ;;  %v253_v46 = vld [vmem:[%s2339_s1 + $0x390] sm:$0xff]  ;;  %v474_v35 = vrot.slane %v2038_v62, %v1769_v31 }
  0x69   :  { %1099 = vmatpush1.bf16.msra.mxu1 %v1098_v16  ;;  %v379_v47 = vld [vmem:[%s2339_s1 + $0x780] sm:$0xff]  ;;  %v1236_v48 = vpack.c.bf16 %v382_v41, %v380_v40  ;;  %v381_v49 = vld [vmem:[%s2339_s1 + $0x790] sm:$0xff]  ;;  %v256_v50 = vld [vmem:[%s2339_s1 + $0x3a8] sm:$0xff]  ;;  %v1110_v55 = vpack.c.bf16 %v253_v46, %v251_v45 }
  0x6a   :  { %1227 = vmatpush1.bf16.msra.mxu0 %v1226_v17  ;;  %1101 = vmatprep.subr.bf16.mxu1 %v1100_v18  ;;  %v258_v52 = vld [vmem:[%s2339_s1 + $0x3b8] sm:$0xff]  ;;  %v384_v53 = vld [vmem:[%s2339_s1 + $0x7a8] sm:$0xff]  ;;  %v1238_v56 = vpack.c.bf16 %v381_v49, %v379_v47  ;;  %v255_v60 = vld [vmem:[%s2339_s1 + $0x3a0] sm:$0xff]  ;;  %v486_v39 = vsel %vm479_vm0, %v474_v35, %v442_v34 }
  0x6b   :  { %1229 = vmatprep.subr.bf16.mxu0 %v1228_v23  ;;  %v386_v54 = vld [vmem:[%s2339_s1 + $0x7b8] sm:$0xff]  ;;  %v1112_v59 = vpack.c.bf16 %v258_v52, %v256_v50  ;;  %v257_v61 = vld [vmem:[%s2339_s1 + $0x3b0] sm:$0xff]  ;;  %v383_v63 = vld [vmem:[%s2339_s1 + $0x7a0] sm:$0xff] }
  0x6c   :  { %v1240_v0 = vpack.c.bf16 %v386_v54, %v384_v53  ;;  %v385_v1 = vld [vmem:[%s2339_s1 + $0x7b0] sm:$0xff]  ;;  %v260_v2 = vld [vmem:[%s2339_s1 + $0x3c8] sm:$0xff]  ;;  %v262_v3 = vld [vmem:[%s2339_s1 + $0x3d8] sm:$0xff]  ;;  %v1114_v6 = vpack.c.bf16 %v257_v61, %v255_v60 }
  0x6d   :  { %1103 = vmatpush1.bf16.msra.mxu1 %v1102_v29  ;;  %v388_v4 = vld [vmem:[%s2339_s1 + $0x7c8] sm:$0xff]  ;;  %v390_v5 = vld [vmem:[%s2339_s1 + $0x7d8] sm:$0xff]  ;;  %v1242_v8 = vpack.c.bf16 %v385_v1, %v383_v63  ;;  %v1116_v9 = vpack.c.bf16 %v262_v3, %v260_v2  ;;  %v259_v10 = vld [vmem:[%s2339_s1 + $0x3c0] sm:$0xff] }
  0x6e   :  { %1231 = vmatpush1.bf16.msra.mxu0 %v1230_v30  ;;  %1105 = vmatprep.subr.bf16.mxu1 %v1104_v32  ;;  %v261_v11 = vld [vmem:[%s2339_s1 + $0x3d0] sm:$0xff]  ;;  %v387_v12 = vld [vmem:[%s2339_s1 + $0x7c0] sm:$0xff]  ;;  %v1244_v13 = vpack.c.bf16 %v390_v5, %v388_v4  ;;  %v264_v14 = vld [vmem:[%s2339_s1 + $0x3e8] sm:$0xff]  ;;  %v426_v32 = vrot.slane %v2015_v51, %v1769_v31 }
  0x6f   :  { %1233 = vmatprep.subr.bf16.mxu0 %v1232_v36  ;;  %v389_v22 = vld [vmem:[%s2339_s1 + $0x7d0] sm:$0xff]  ;;  %v266_v15 = vld [vmem:[%s2339_s1 + $0x3f8] sm:$0xff]  ;;  %v392_v16 = vld [vmem:[%s2339_s1 + $0x7e8] sm:$0xff]  ;;  %v1118_v18 = vpack.c.bf16 %v261_v11, %v259_v10 }
  0x70   :  { %v394_v17 = vld [vmem:[%s2339_s1 + $0x7f8] sm:$0xff]  ;;  %v263_v19 = vld [vmem:[%s2339_s1 + $0x3e0] sm:$0xff]  ;;  %v1246_v20 = vpack.c.bf16 %v389_v22, %v387_v12  ;;  %v1120_v21 = vpack.c.bf16 %v266_v15, %v264_v14  ;;  %v265_v23 = vld [vmem:[%s2339_s1 + $0x3f0] sm:$0xff]  ;;  %v482_v62 = vsel %vm479_vm0, %v458_v33, %v426_v32 }
  0x71   :  { %1107 = vmatpush1.bf16.msra.mxu1 %v1106_v42  ;;  %v391_v24 = vld [vmem:[%s2339_s1 + $0x7e0] sm:$0xff]  ;;  %v393_v25 = vld [vmem:[%s2339_s1 + $0x7f0] sm:$0xff]  ;;  %v1248_v26 = vpack.c.bf16 %v394_v17, %v392_v16  ;;  %v829_v28 = vld [vmem:[%s2343_s5 + $0x88] sm:$0xff]  ;;  %v1122_v29 = vpack.c.bf16 %v265_v23, %v263_v19  ;;  %v403_v23 = vsub.s32 1, %v1634_v7 }
  0x72   :  { %1235 = vmatpush1.bf16.msra.mxu0 %v1234_v43  ;;  %1109 = vmatprep.subr.bf16.mxu1 %v1108_v44  ;;  %v828_v27 = vld [vmem:[%s2343_s5 + $0x80] sm:$0xff]  ;;  %v1250_v30 = vpack.c.bf16 %v393_v25, %v391_v24  ;;  %v813_v51 = vld [vmem:[%s2343_s5 + $0x8] sm:$0xff]  ;;  %v830_v57 = vld [vmem:[%s2343_s5 + $0x90] sm:$0xff] }
  0x73   :  { %1237 = vmatprep.subr.bf16.mxu0 %v1236_v48  ;;  %v1252_v36 = vpack.c.bf16 %v829_v28, %v828_v27  ;;  %v812_v37 = vld [vmem:[%s2343_s5] sm:$0xff]  ;;  %v831_v58 = vld [vmem:[%s2343_s5 + $0x98] sm:$0xff]  ;;  %v814_v41 = vld [vmem:[%s2343_s5 + $0x10] sm:$0xff] }
  0x74   :  { %v1254_v38 = vpack.c.bf16 %v813_v51, %v812_v37  ;;  %v1256_v40 = vpack.c.bf16 %v831_v58, %v830_v57  ;;  %v815_v42 = vld [vmem:[%s2343_s5 + $0x18] sm:$0xff]  ;;  %v832_v43 = vld [vmem:[%s2343_s5 + $0xa0] sm:$0xff]  ;;  %v833_v44 = vld [vmem:[%s2343_s5 + $0xa8] sm:$0xff] }
  0x75   :  { %1111 = vmatpush1.bf16.msra.mxu1 %v1110_v55  ;;  %v1258_v45 = vpack.c.bf16 %v815_v42, %v814_v41  ;;  %v1260_v46 = vpack.c.bf16 %v833_v44, %v832_v43  ;;  %v816_v47 = vld [vmem:[%s2343_s5 + $0x20] sm:$0xff]  ;;  %v817_v48 = vld [vmem:[%s2343_s5 + $0x28] sm:$0xff]  ;;  %v834_v49 = vld [vmem:[%s2343_s5 + $0xb0] sm:$0xff] }
  0x76   :  { %1239 = vmatpush1.bf16.msra.mxu0 %v1238_v56  ;;  %1113 = vmatprep.subr.bf16.mxu1 %v1112_v59  ;;  %v835_v50 = vld [vmem:[%s2343_s5 + $0xb8] sm:$0xff]  ;;  %v1262_v52 = vpack.c.bf16 %v817_v48, %v816_v47  ;;  %v818_v54 = vld [vmem:[%s2343_s5 + $0x30] sm:$0xff]  ;;  %v836_v56 = vld [vmem:[%s2343_s5 + $0xc0] sm:$0xff] }
  0x77   :  { %1241 = vmatprep.subr.bf16.mxu0 %v1240_v0  ;;  %v1264_v53 = vpack.c.bf16 %v835_v50, %v834_v49  ;;  %v819_v55 = vld [vmem:[%s2343_s5 + $0x38] sm:$0xff]  ;;  %v837_v59 = vld [vmem:[%s2343_s5 + $0xc8] sm:$0xff]  ;;  %v820_v63 = vld [vmem:[%s2343_s5 + $0x40] sm:$0xff] }
  0x78   :  { %v1266_v60 = vpack.c.bf16 %v819_v55, %v818_v54  ;;  %v1268_v61 = vpack.c.bf16 %v837_v59, %v836_v56  ;;  %v821_v0 = vld [vmem:[%s2343_s5 + $0x48] sm:$0xff]  ;;  %v838_v2 = vld [vmem:[%s2343_s5 + $0xd0] sm:$0xff]  ;;  %v839_v3 = vld [vmem:[%s2343_s5 + $0xd8] sm:$0xff] }
  0x79   :  { %1115 = vmatpush1.bf16.msra.mxu1 %v1114_v6  ;;  %v1270_v1 = vpack.c.bf16 %v821_v0, %v820_v63  ;;  %v1272_v4 = vpack.c.bf16 %v839_v3, %v838_v2  ;;  %v822_v5 = vld [vmem:[%s2343_s5 + $0x50] sm:$0xff]  ;;  %v823_v6 = vld [vmem:[%s2343_s5 + $0x58] sm:$0xff]  ;;  %v841_v10 = vld [vmem:[%s2343_s5 + $0xe8] sm:$0xff] }
  0x7a   :  { %1243 = vmatpush1.bf16.msra.mxu0 %v1242_v8  ;;  %1117 = vmatprep.subr.bf16.mxu1 %v1116_v9  ;;  %v1274_v8 = vpack.c.bf16 %v823_v6, %v822_v5  ;;  %v840_v9 = vld [vmem:[%s2343_s5 + $0xe0] sm:$0xff]  ;;  %v842_v14 = vld [vmem:[%s2343_s5 + $0xf0] sm:$0xff]  ;;  %v843_v15 = vld [vmem:[%s2343_s5 + $0xf8] sm:$0xff] }
  0x7b   :  { %1245 = vmatprep.subr.bf16.mxu0 %v1244_v13  ;;  %v1276_v11 = vpack.c.bf16 %v841_v10, %v840_v9  ;;  %v824_v12 = vld [vmem:[%s2343_s5 + $0x60] sm:$0xff]  ;;  %v825_v13 = vld [vmem:[%s2343_s5 + $0x68] sm:$0xff]  ;;  %v1280_v16 = vpack.c.bf16 %v843_v15, %v842_v14  ;;  %v826_v17 = vld [vmem:[%s2343_s5 + $0x70] sm:$0xff] }
  0x7c   :  { %v1278_v22 = vpack.c.bf16 %v825_v13, %v824_v12  ;;  %v796_v28 = vld [vmem:[%s2342_s4] sm:$0x3]  ;;  %s1317_s4 = smov [#allocation2]  }
  0x7d   :  { %1119 = vmatpush1.bf16.msra.mxu1 %v1118_v18  ;;  %v827_v18 = vld [vmem:[%s2343_s5 + $0x78] sm:$0xff]  ;;  %v801_v7 = vrot.slane %v796_v28, %v1769_v31  ;;  %v805_v57 = vrot.slane %v796_v28, %v403_v23  ;;  %v960_v44 = vld [vmem:[%s2344_s6] ss:$0 sm:$0xff]  ;;  %s928_s11 = sshll.u32 %s1317_s4, 4  ;;  %s929_s11 = int_to_ptr.vmem [resolvable:$true] %s928_s11 }
  0x7e   :  { %1247 = vmatpush1.bf16.msra.mxu0 %v1246_v20  ;;  %1121 = vmatprep.subr.bf16.mxu1 %v1120_v21  ;;  %v1282_v19 = vpack.c.bf16 %v827_v18, %v826_v17  ;;  %v395_v20 = vld [vmem:[%s2340_s2] sm:$0x3]  ;;  %s1293_s12 = scalar_lea.vmem %s929_s11, 32  ;;  %p1298_p1 = scmp.lt.s32.totalorder %s929_s11, %s929_s11 }
  0x7f   :  { %1249 = vmatprep.subr.bf16.mxu0 %v1248_v26  ;;  %v780_v21 = vld [vmem:[%s2341_s3] sm:$0x3]  ;;  %v400_v24 = vrot.slane %v395_v20, %v1769_v31  ;;  %v404_v26 = vrot.slane %v395_v20, %v403_v23  ;;  %p1294_p0 = scmp.ne.s32.totalorder %s929_s11, %s1293_s12  ;;  %p1299_p2 = scmp.lt.s32.totalorder %s1293_s12, %s1293_s12 }
  0x80   :  { %v782_v25 = vmul.f32 0.999995, %v780_v21 }
  0x81   :  { %1123 = vmatpush1.bf16.msra.mxu1 %v1122_v29  ;;  %p1300_p3 = por %p1299_p2, %p1298_p1 }
  0x82   :  { %1251 = vmatpush1.bf16.msra.mxu0 %v1250_v30  ;;  %1253 = vmatprep.subr.bf16.mxu1 %v1252_v36  ;;  %v787_v32 = vrot.slane %v782_v25, %v1769_v31  ;;  %v791_v36 = vrot.slane %v782_v25, %v403_v23 }
  0x83   :  { %p1301_p4 = pnand %p1300_p3, %p1294_p0 }
  0x84   :  { %632 = vmatmul.mubr.f32.vlgmr.msra.gmra.mrb[0].mxu1 %v482_v62 }
  0x85   :  { %774 = vmatmul.mubr.f32.vlgmr.msra.gmra.mrb[0].mxu0 %v486_v39  ;;  %1255 = vmatpush3.bf16.msra.mxu1 %v1254_v38 }
  0x86   :  { %1257 = vmatprep.subr.bf16.mxu1 %v1256_v40 }
  0x89   :  { %1259 = vmatpush3.bf16.msra.mxu1 %v1258_v45 }
  0x8a   :  { %1261 = vmatprep.subr.bf16.mxu1 %v1260_v46 }
  0x8d   :  { %1263 = vmatpush3.bf16.msra.mxu1 %v1262_v52 }
  0x8e   :  { %1265 = vmatprep.subr.bf16.mxu1 %v1264_v53 }
  0x91   :  { %1267 = vmatpush3.bf16.msra.mxu1 %v1266_v60 }
  0x92   :  { %1269 = vmatprep.subr.bf16.mxu1 %v1268_v61 }
  0x95   :  { %1271 = vmatpush3.bf16.msra.mxu1 %v1270_v1 }
  0x96   :  { %1273 = vmatprep.subr.bf16.mxu1 %v1272_v4 }
  0x99   :  { %1275 = vmatpush3.bf16.msra.mxu1 %v1274_v8 }
  0x9a   :  { %1277 = vmatprep.subr.bf16.mxu1 %v1276_v11 }
  0x9d   :  { %1279 = vmatpush3.bf16.msra.mxu1 %v1278_v22 }
  0x9e   :  { %1281 = vmatprep.subr.bf16.mxu1 %v1280_v16 }
  0xa1   :  { %1283 = vmatpush3.bf16.msra.mxu1 %v1282_v19 }
 0x157   :  { %v633_v27 = vpop.f32.mrb[0].mxu1 }
 0x158   :  { %v1284_v29 = vadd.f32 %v633_v27, %v400_v24  ;;  %v775_v30 = vpop.f32.mrb[0].mxu0  ;;  %v635_v33 = vpop.f32.mrb[1].mxu1 }
 0x159   :  { %v1286_v34 = vadd.f32 %v635_v33, %v404_v26  ;;  %v777_v35 = vpop.f32.mrb[1].mxu0 }
 0x15a   :  { %v1285_v37 = vadd.f32 %v1284_v29, %v775_v30 }
 0x15b   :  { %v1287_v51 = vadd.f32 %v1286_v34, %v777_v35 }
 0x15c   :  { %v794_v58 = vmul.f32 %v1285_v37, %v787_v32 }
 0x15d   :  { %v795_v62 = vmul.f32 %v1287_v51, %v791_v36 }
 0x15e   :  { %v808_v38 = vadd.f32 %v801_v7, %v794_v58 }
 0x15f   :  { %v809_v39 = vadd.f32 %v805_v57, %v795_v62 }
 0x160   :  { %v810_v41 = vmax.f32 %v808_v38, 0.0 }
 0x161   :  { %v811_v40 = vmax.f32 %v809_v39, 0.0 }
 0x163   :  { %915 = vmatprep.mubr.f32.mxu1 %v811_v40 }
 0x164   :  { %916 = vmatmul.mubr.f32.vlgmr.msra.gmra.mrb[2].mxu1 %v810_v41 }
 0x237   :  { %v993_v42 = vpop.f32.mrb[2].mxu1 }
 0x238   :  { %v994_v43 = vpop.f32.mrb[3].mxu1 }
 0x239   :  { %v995_v45 = vadd.f32 %v994_v43, %v993_v42 }
 0x23b   :  { %v918_v31 = vadd.f32 %v995_v45, %v960_v44 }
 0x23d   :  { %921 = vst [vmem:[#allocation2] sm:$0x3] %v918_v31 }
 0x23e   :  { %1304 = shalt.err (!%p1301_p4)
}
 0x23f   :  { %s1305_s15 = scalar_lea.hbm %s2345_s7, 32 }
 0x240   :  { %p1306_p5 = scmp.ne.s32.totalorder %s2345_s7, %s1305_s15  ;;  %p1309_p6 = scmp.lt.u32.totalorder %s1305_s15, %s2345_s7 }
 0x242   :  { %p1311_p7 = pnand %p1309_p6, %p1306_p5 }
 0x244   :  { %1314 = shalt.err (!%p1311_p7)
}
 0x245   :  { %931 = dma.vmem_to_hbm [thread:$0]  %s929_s11, 32, %s2345_s7, [#allocation3]  }
 0x246   :  { %1315 = dma.done.wait [#allocation3], 32  }
 0x247   :  { %1316 = vsyncadd [#allocation3], 4294967264 }
 0x248   :  { %935 = vsyncpa [#allocation3], 1 }

// kernel: gcn3d_forward.22
= control target key start
LH: loop header
LB: loop body
LE: loop exit
PB: predicated region body
PF: predicated region fallthrough
CT: control target
= control target key end

     0   :  { %s3909_s27 = smov 0   ;;  %s7332_s0 = inlined_call_operand.vmem [shape: f32[2,12,3], index: 0, kind: input, shape index: {}]   ;;  %s7333_s1 = inlined_call_operand.vmem [shape: f32[3,2048], index: 1, kind: input, shape index: {}]   ;;  %s7334_s2 = inlined_call_operand.vmem [shape: f32[2,12,256], index: 2, kind: input, shape index: {}]   ;;  %s7335_s3 = inlined_call_operand.vmem [shape: f32[2,4,256], index: 3, kind: input, shape index: {}]   ;;  %s7336_s4 = inlined_call_operand.vmem [shape: f32[256,1024], index: 4, kind: input, shape index: {}]   ;;  %s7337_s5 = inlined_call_operand.vmem [shape: f32[256,2048], index: 5, kind: input, shape index: {}]   ;;  %s7338_s6 = inlined_call_operand.vmem [shape: f32[1,1024], index: 6, kind: input, shape index: {}]   ;;  %s7339_s7 = inlined_call_operand.vmem [shape: f32[1,2048], index: 7, kind: input, shape index: {}]   ;;  %s7340_s8 = inlined_call_operand.vmem [shape: f32[2,4,1024], index: 8, kind: output, shape index: {}]  }
   0x1 LB: > { %s3043_s28 = sadd.s32 4294967295, %s3859_s27   ;;  %p3047_p0 = scmp.ge.s32.totalorder %s3859_s27, 1  ;;  %s3859_s27 = sphi %s3909_s27, %s18_s27  }
   0x2   : > { %p282_p1 = scmp.lt.s32.totalorder %s3859_s27, 3 }
   0x4   : > { %p283_p2 = pnand %p3047_p0, %p282_p1 }
   0x6   : > { %286 = sbr.rel (%p283_p2) target bundleno = 624 (0x270), region = 52 }
   0xd   : > { %v1019_v0 = vld [vmem:[%s7337_s5 + $0x8] sm:$0xff]  ;;  %v1021_v2 = vld [vmem:[%s7337_s5 + $0x18] sm:$0xff]  ;;  %v1018_v5 = vld [vmem:[%s7337_s5] sm:$0xff]  ;;  %v3861_v47 = vmov 2   ;;  %v3862_v51 = vmov 0   ;;  %p4125_p3 = scmp.lt.s32.totalorder %s3043_s28, 1 }
   0xe   : > { %v1035_v1 = vld [vmem:[%s7337_s5 + $0x88] sm:$0xff]  ;;  %v1037_v4 = vld [vmem:[%s7337_s5 + $0x98] sm:$0xff]  ;;  %v1034_v6 = vld [vmem:[%s7337_s5 + $0x80] sm:$0xff]  ;;  %3843 = vset.pattern.permute.xlu1 %v3861_v47  ;;  %3841 = vset.pattern.permute.xlu0 %v3862_v51 }
   0xf   : > { %v3062_v3 = vpack.c.bf16 %v1035_v1, %v1019_v0  ;;  %v3126_v7 = vpack.c.bf16 %v1037_v4, %v1021_v2  ;;  %v3064_v8 = vpack.c.bf16 %v1034_v6, %v1018_v5  ;;  %v1020_v9 = vld [vmem:[%s7337_s5 + $0x10] sm:$0xff]  ;;  %v1051_v11 = vld [vmem:[%s7337_s5 + $0x108] sm:$0xff]  ;;  %v1053_v14 = vld [vmem:[%s7337_s5 + $0x118] sm:$0xff]  ;;  %s7408_s28 = smov (!%p4125_p3, %s3043_s28), 1 }
  0x10   : > { %v1036_v10 = vld [vmem:[%s7337_s5 + $0x90] sm:$0xff]  ;;  %v1067_v13 = vld [vmem:[%s7337_s5 + $0x188] sm:$0xff]  ;;  %v1069_v15 = vld [vmem:[%s7337_s5 + $0x198] sm:$0xff]  ;;  %s3059_s16 = sshll.u32 %s7408_s28, 5  ;;  %s3058_s9 = sshll.u32 %s7408_s28, 4 }
  0x11   : > { %3063 = vmatprep.subr.bf16.mxu0 %v3062_v3  ;;  %v3128_v12 = vpack.c.bf16 %v1036_v10, %v1020_v9  ;;  %3127 = vmatprep.subr.bf16.mxu1 %v3126_v7  ;;  %v3066_v16 = vpack.c.bf16 %v1067_v13, %v1051_v11  ;;  %v3130_v17 = vpack.c.bf16 %v1069_v15, %v1053_v14  ;;  %v1050_v18 = vld [vmem:[%s7337_s5 + $0x100] sm:$0xff]  ;;  %v1052_v20 = vld [vmem:[%s7337_s5 + $0x110] sm:$0xff]  ;;  %v1083_v23 = vld [vmem:[%s7337_s5 + $0x208] sm:$0xff]  ;;  %s4213_s15 = scalar_lea.vmem %s7334_s2, %s3059_s16  ;;  %s4547_s23 = scalar_lea.vmem %s7332_s0, %s3058_s9 }
  0x12   : > { %3065 = vmatpush1.bf16.msra.mxu0 %v3064_v8  ;;  %v1066_v19 = vld [vmem:[%s7337_s5 + $0x180] sm:$0xff]  ;;  %v1068_v22 = vld [vmem:[%s7337_s5 + $0x190] sm:$0xff]  ;;  %v1099_v24 = vld [vmem:[%s7337_s5 + $0x288] sm:$0xff]  ;;  %s3060_s25 = sshll.u32 %s7408_s28, 3  ;;  %s345_s17 = scalar_lea.vmem %s7340_s8, %s3059_s16 }
  0x13   : > { %3129 = vmatpush1.bf16.msra.mxu1 %v3128_v12  ;;  %v3068_v21 = vpack.c.bf16 %v1066_v19, %v1050_v18  ;;  %3067 = vmatprep.subr.bf16.mxu0 %v3066_v16  ;;  %v3132_v25 = vpack.c.bf16 %v1068_v22, %v1052_v20  ;;  %v3070_v26 = vpack.c.bf16 %v1099_v24, %v1083_v23  ;;  %v1085_v27 = vld [vmem:[%s7337_s5 + $0x218] sm:$0xff]  ;;  %v1082_v29 = vld [vmem:[%s7337_s5 + $0x200] sm:$0xff]  ;;  %v1084_v32 = vld [vmem:[%s7337_s5 + $0x210] sm:$0xff]  ;;  %s5856_s18 = scalar_lea.vmem %s7335_s3, %s3060_s25 }
  0x14   : > { %3131 = vmatprep.subr.bf16.mxu1 %v3130_v17  ;;  %v1101_v28 = vld [vmem:[%s7337_s5 + $0x298] sm:$0xff]  ;;  %v1098_v31 = vld [vmem:[%s7337_s5 + $0x280] sm:$0xff]  ;;  %v1100_v33 = vld [vmem:[%s7337_s5 + $0x290] sm:$0xff] }
  0x15   : > { %v3134_v30 = vpack.c.bf16 %v1101_v28, %v1085_v27  ;;  %v3072_v34 = vpack.c.bf16 %v1098_v31, %v1082_v29  ;;  %v1115_v35 = vld [vmem:[%s7337_s5 + $0x308] sm:$0xff]  ;;  %v1117_v37 = vld [vmem:[%s7337_s5 + $0x318] sm:$0xff]  ;;  %v3136_v38 = vpack.c.bf16 %v1100_v33, %v1084_v32  ;;  %v1114_v41 = vld [vmem:[%s7337_s5 + $0x300] sm:$0xff] }
  0x16   : > { %3069 = vmatpush1.bf16.msra.mxu0 %v3068_v21  ;;  %v1131_v36 = vld [vmem:[%s7337_s5 + $0x388] sm:$0xff]  ;;  %v1133_v40 = vld [vmem:[%s7337_s5 + $0x398] sm:$0xff]  ;;  %v1130_v42 = vld [vmem:[%s7337_s5 + $0x380] sm:$0xff] }
  0x17   : > { %3133 = vmatpush1.bf16.msra.mxu1 %v3132_v25  ;;  %3071 = vmatprep.subr.bf16.mxu0 %v3070_v26  ;;  %v3074_v39 = vpack.c.bf16 %v1131_v36, %v1115_v35  ;;  %v3138_v43 = vpack.c.bf16 %v1133_v40, %v1117_v37  ;;  %v1116_v44 = vld [vmem:[%s7337_s5 + $0x310] sm:$0xff]  ;;  %v1147_v46 = vld [vmem:[%s7337_s5 + $0x408] sm:$0xff]  ;;  %v1149_v49 = vld [vmem:[%s7337_s5 + $0x418] sm:$0xff]  ;;  %v3076_v52 = vpack.c.bf16 %v1130_v42, %v1114_v41 }
  0x18   : > { %3135 = vmatprep.subr.bf16.mxu1 %v3134_v30  ;;  %v1132_v45 = vld [vmem:[%s7337_s5 + $0x390] sm:$0xff]  ;;  %v1163_v48 = vld [vmem:[%s7337_s5 + $0x488] sm:$0xff]  ;;  %v1165_v50 = vld [vmem:[%s7337_s5 + $0x498] sm:$0xff] }
  0x19   : > { %v3140_v53 = vpack.c.bf16 %v1132_v45, %v1116_v44  ;;  %v3078_v54 = vpack.c.bf16 %v1163_v48, %v1147_v46  ;;  %v1146_v55 = vld [vmem:[%s7337_s5 + $0x400] sm:$0xff]  ;;  %v1148_v57 = vld [vmem:[%s7337_s5 + $0x410] sm:$0xff]  ;;  %v3142_v58 = vpack.c.bf16 %v1165_v50, %v1149_v49  ;;  %v1179_v60 = vld [vmem:[%s7337_s5 + $0x508] sm:$0xff] }
  0x1a   : > { %3073 = vmatpush1.bf16.msra.mxu0 %v3072_v34  ;;  %v1162_v56 = vld [vmem:[%s7337_s5 + $0x480] sm:$0xff]  ;;  %v1164_v59 = vld [vmem:[%s7337_s5 + $0x490] sm:$0xff]  ;;  %v1195_v61 = vld [vmem:[%s7337_s5 + $0x588] sm:$0xff] }
  0x1b   : > { %3137 = vmatpush1.bf16.msra.mxu1 %v3136_v38  ;;  %3075 = vmatprep.subr.bf16.mxu0 %v3074_v39  ;;  %v1181_v62 = vld [vmem:[%s7337_s5 + $0x518] sm:$0xff]  ;;  %v3080_v0 = vpack.c.bf16 %v1162_v56, %v1146_v55  ;;  %v3144_v1 = vpack.c.bf16 %v1164_v59, %v1148_v57  ;;  %v3082_v2 = vpack.c.bf16 %v1195_v61, %v1179_v60  ;;  %v1178_v3 = vld [vmem:[%s7337_s5 + $0x500] sm:$0xff]  ;;  %v1180_v5 = vld [vmem:[%s7337_s5 + $0x510] sm:$0xff] }
  0x1c   : > { %3139 = vmatprep.subr.bf16.mxu1 %v3138_v43  ;;  %v1197_v63 = vld [vmem:[%s7337_s5 + $0x598] sm:$0xff]  ;;  %v1194_v4 = vld [vmem:[%s7337_s5 + $0x580] sm:$0xff]  ;;  %v1196_v7 = vld [vmem:[%s7337_s5 + $0x590] sm:$0xff] }
  0x1d   : > { %v3146_v6 = vpack.c.bf16 %v1197_v63, %v1181_v62  ;;  %v1211_v8 = vld [vmem:[%s7337_s5 + $0x608] sm:$0xff]  ;;  %v1213_v10 = vld [vmem:[%s7337_s5 + $0x618] sm:$0xff]  ;;  %v3084_v12 = vpack.c.bf16 %v1194_v4, %v1178_v3  ;;  %v3148_v13 = vpack.c.bf16 %v1196_v7, %v1180_v5  ;;  %v1210_v15 = vld [vmem:[%s7337_s5 + $0x600] sm:$0xff] }
  0x1e   : > { %3077 = vmatpush1.bf16.msra.mxu0 %v3076_v52  ;;  %v1227_v9 = vld [vmem:[%s7337_s5 + $0x688] sm:$0xff]  ;;  %v1229_v11 = vld [vmem:[%s7337_s5 + $0x698] sm:$0xff]  ;;  %v1226_v16 = vld [vmem:[%s7337_s5 + $0x680] sm:$0xff] }
  0x1f   : > { %3141 = vmatpush1.bf16.msra.mxu1 %v3140_v53  ;;  %3079 = vmatprep.subr.bf16.mxu0 %v3078_v54  ;;  %v3086_v14 = vpack.c.bf16 %v1227_v9, %v1211_v8  ;;  %v1212_v17 = vld [vmem:[%s7337_s5 + $0x610] sm:$0xff]  ;;  %v3150_v18 = vpack.c.bf16 %v1229_v11, %v1213_v10  ;;  %v1243_v20 = vld [vmem:[%s7337_s5 + $0x708] sm:$0xff]  ;;  %v1245_v22 = vld [vmem:[%s7337_s5 + $0x718] sm:$0xff]  ;;  %v3088_v24 = vpack.c.bf16 %v1226_v16, %v1210_v15 }
  0x20   : > { %3143 = vmatprep.subr.bf16.mxu1 %v3142_v58  ;;  %v1228_v19 = vld [vmem:[%s7337_s5 + $0x690] sm:$0xff]  ;;  %v1259_v21 = vld [vmem:[%s7337_s5 + $0x788] sm:$0xff]  ;;  %v1261_v23 = vld [vmem:[%s7337_s5 + $0x798] sm:$0xff] }
  0x21   : > { %v3152_v25 = vpack.c.bf16 %v1228_v19, %v1212_v17  ;;  %v3090_v26 = vpack.c.bf16 %v1259_v21, %v1243_v20  ;;  %v1242_v27 = vld [vmem:[%s7337_s5 + $0x700] sm:$0xff]  ;;  %v1244_v29 = vld [vmem:[%s7337_s5 + $0x710] sm:$0xff]  ;;  %v3154_v30 = vpack.c.bf16 %v1261_v23, %v1245_v22  ;;  %v1275_v32 = vld [vmem:[%s7337_s5 + $0x808] sm:$0xff] }
  0x22   : > { %3081 = vmatpush1.bf16.msra.mxu0 %v3080_v0  ;;  %v1258_v28 = vld [vmem:[%s7337_s5 + $0x780] sm:$0xff]  ;;  %v1260_v31 = vld [vmem:[%s7337_s5 + $0x790] sm:$0xff]  ;;  %v1291_v33 = vld [vmem:[%s7337_s5 + $0x888] sm:$0xff] }
  0x23   : > { %3145 = vmatpush1.bf16.msra.mxu1 %v3144_v1  ;;  %3083 = vmatprep.subr.bf16.mxu0 %v3082_v2  ;;  %v1277_v34 = vld [vmem:[%s7337_s5 + $0x818] sm:$0xff]  ;;  %v3092_v36 = vpack.c.bf16 %v1258_v28, %v1242_v27  ;;  %v3156_v37 = vpack.c.bf16 %v1260_v31, %v1244_v29  ;;  %v3094_v38 = vpack.c.bf16 %v1291_v33, %v1275_v32  ;;  %v1274_v39 = vld [vmem:[%s7337_s5 + $0x800] sm:$0xff]  ;;  %v1276_v41 = vld [vmem:[%s7337_s5 + $0x810] sm:$0xff] }
  0x24   : > { %3147 = vmatprep.subr.bf16.mxu1 %v3146_v6  ;;  %v1293_v35 = vld [vmem:[%s7337_s5 + $0x898] sm:$0xff]  ;;  %v1290_v40 = vld [vmem:[%s7337_s5 + $0x880] sm:$0xff]  ;;  %v1292_v43 = vld [vmem:[%s7337_s5 + $0x890] sm:$0xff] }
  0x25   : > { %v3158_v42 = vpack.c.bf16 %v1293_v35, %v1277_v34  ;;  %v1307_v44 = vld [vmem:[%s7337_s5 + $0x908] sm:$0xff]  ;;  %v1309_v46 = vld [vmem:[%s7337_s5 + $0x918] sm:$0xff]  ;;  %v3096_v49 = vpack.c.bf16 %v1290_v40, %v1274_v39  ;;  %v3160_v50 = vpack.c.bf16 %v1292_v43, %v1276_v41  ;;  %v1306_v53 = vld [vmem:[%s7337_s5 + $0x900] sm:$0xff] }
  0x26   : > { %3085 = vmatpush1.bf16.msra.mxu0 %v3084_v12  ;;  %v1323_v45 = vld [vmem:[%s7337_s5 + $0x988] sm:$0xff]  ;;  %v1325_v48 = vld [vmem:[%s7337_s5 + $0x998] sm:$0xff]  ;;  %v1322_v54 = vld [vmem:[%s7337_s5 + $0x980] sm:$0xff] }
  0x27   : > { %3149 = vmatpush1.bf16.msra.mxu1 %v3148_v13  ;;  %3087 = vmatprep.subr.bf16.mxu0 %v3086_v14  ;;  %v3098_v52 = vpack.c.bf16 %v1323_v45, %v1307_v44  ;;  %v1308_v55 = vld [vmem:[%s7337_s5 + $0x910] sm:$0xff]  ;;  %v3162_v56 = vpack.c.bf16 %v1325_v48, %v1309_v46  ;;  %v1339_v58 = vld [vmem:[%s7337_s5 + $0xa08] sm:$0xff]  ;;  %v1341_v60 = vld [vmem:[%s7337_s5 + $0xa18] sm:$0xff]  ;;  %v3100_v62 = vpack.c.bf16 %v1322_v54, %v1306_v53 }
  0x28   : > { %3151 = vmatprep.subr.bf16.mxu1 %v3150_v18  ;;  %v1324_v57 = vld [vmem:[%s7337_s5 + $0x990] sm:$0xff]  ;;  %v1355_v59 = vld [vmem:[%s7337_s5 + $0xa88] sm:$0xff]  ;;  %v1357_v61 = vld [vmem:[%s7337_s5 + $0xa98] sm:$0xff] }
  0x29   : > { %v3164_v63 = vpack.c.bf16 %v1324_v57, %v1308_v55  ;;  %v3102_v0 = vpack.c.bf16 %v1355_v59, %v1339_v58  ;;  %v1338_v1 = vld [vmem:[%s7337_s5 + $0xa00] sm:$0xff]  ;;  %v1340_v3 = vld [vmem:[%s7337_s5 + $0xa10] sm:$0xff]  ;;  %v3166_v4 = vpack.c.bf16 %v1357_v61, %v1341_v60  ;;  %v1371_v6 = vld [vmem:[%s7337_s5 + $0xb08] sm:$0xff] }
  0x2a   : > { %3089 = vmatpush1.bf16.msra.mxu0 %v3088_v24  ;;  %v1354_v2 = vld [vmem:[%s7337_s5 + $0xa80] sm:$0xff]  ;;  %v1356_v5 = vld [vmem:[%s7337_s5 + $0xa90] sm:$0xff]  ;;  %v1387_v7 = vld [vmem:[%s7337_s5 + $0xb88] sm:$0xff] }
  0x2b   : > { %3153 = vmatpush1.bf16.msra.mxu1 %v3152_v25  ;;  %3091 = vmatprep.subr.bf16.mxu0 %v3090_v26  ;;  %v1373_v8 = vld [vmem:[%s7337_s5 + $0xb18] sm:$0xff]  ;;  %v3104_v10 = vpack.c.bf16 %v1354_v2, %v1338_v1  ;;  %v1370_v11 = vld [vmem:[%s7337_s5 + $0xb00] sm:$0xff]  ;;  %v3168_v12 = vpack.c.bf16 %v1356_v5, %v1340_v3  ;;  %v3106_v13 = vpack.c.bf16 %v1387_v7, %v1371_v6  ;;  %v1372_v15 = vld [vmem:[%s7337_s5 + $0xb10] sm:$0xff] }
  0x2c   : > { %3155 = vmatprep.subr.bf16.mxu1 %v3154_v30  ;;  %v1389_v9 = vld [vmem:[%s7337_s5 + $0xb98] sm:$0xff]  ;;  %v1386_v14 = vld [vmem:[%s7337_s5 + $0xb80] sm:$0xff]  ;;  %v1388_v16 = vld [vmem:[%s7337_s5 + $0xb90] sm:$0xff] }
  0x2d   : > { %v3170_v17 = vpack.c.bf16 %v1389_v9, %v1373_v8  ;;  %v1403_v18 = vld [vmem:[%s7337_s5 + $0xc08] sm:$0xff]  ;;  %v1405_v21 = vld [vmem:[%s7337_s5 + $0xc18] sm:$0xff]  ;;  %v3108_v23 = vpack.c.bf16 %v1386_v14, %v1370_v11  ;;  %v3172_v24 = vpack.c.bf16 %v1388_v16, %v1372_v15  ;;  %v1402_v26 = vld [vmem:[%s7337_s5 + $0xc00] sm:$0xff] }
  0x2e   : > { %3093 = vmatpush1.bf16.msra.mxu0 %v3092_v36  ;;  %v1419_v19 = vld [vmem:[%s7337_s5 + $0xc88] sm:$0xff]  ;;  %v1421_v22 = vld [vmem:[%s7337_s5 + $0xc98] sm:$0xff]  ;;  %v1418_v27 = vld [vmem:[%s7337_s5 + $0xc80] sm:$0xff] }
  0x2f   : > { %3157 = vmatpush1.bf16.msra.mxu1 %v3156_v37  ;;  %3095 = vmatprep.subr.bf16.mxu0 %v3094_v38  ;;  %v4234_v20 = vld [vmem:[%s4213_s15 + $0x8] sm:$0xff]  ;;  %v3110_v25 = vpack.c.bf16 %v1419_v19, %v1403_v18  ;;  %v1404_v28 = vld [vmem:[%s7337_s5 + $0xc10] sm:$0xff]  ;;  %v3174_v29 = vpack.c.bf16 %v1421_v22, %v1405_v21  ;;  %v1437_v33 = vld [vmem:[%s7337_s5 + $0xd18] sm:$0xff]  ;;  %v3112_v35 = vpack.c.bf16 %v1418_v27, %v1402_v26 }
  0x30   : > { %3159 = vmatprep.subr.bf16.mxu1 %v3158_v42  ;;  %1678 = vmatprep.mubr.f32.mxu0 %v4234_v20  ;;  %v1420_v30 = vld [vmem:[%s7337_s5 + $0xc90] sm:$0xff]  ;;  %v1435_v31 = vld [vmem:[%s7337_s5 + $0xd08] sm:$0xff]  ;;  %v1453_v34 = vld [vmem:[%s7337_s5 + $0xd98] sm:$0xff] }
  0x31   : > { %1755 = vmatprep.mubr.f32.mxu1 %v4234_v20  ;;  %v1451_v32 = vld [vmem:[%s7337_s5 + $0xd88] sm:$0xff]  ;;  %v3176_v36 = vpack.c.bf16 %v1420_v30, %v1404_v28  ;;  %v1434_v38 = vld [vmem:[%s7337_s5 + $0xd00] sm:$0xff]  ;;  %v1436_v40 = vld [vmem:[%s7337_s5 + $0xd10] sm:$0xff]  ;;  %v3178_v41 = vpack.c.bf16 %v1453_v34, %v1437_v33 }
  0x32   : > { %3097 = vmatpush1.bf16.msra.mxu0 %v3096_v49  ;;  %v3114_v37 = vpack.c.bf16 %v1451_v32, %v1435_v31  ;;  %v1450_v39 = vld [vmem:[%s7337_s5 + $0xd80] sm:$0xff]  ;;  %v1452_v42 = vld [vmem:[%s7337_s5 + $0xd90] sm:$0xff]  ;;  %v1467_v43 = vld [vmem:[%s7337_s5 + $0xe08] sm:$0xff] }
  0x33   : > { %3161 = vmatpush1.bf16.msra.mxu1 %v3160_v50  ;;  %3099 = vmatprep.subr.bf16.mxu0 %v3098_v52  ;;  %v1483_v44 = vld [vmem:[%s7337_s5 + $0xe88] sm:$0xff]  ;;  %v1469_v45 = vld [vmem:[%s7337_s5 + $0xe18] sm:$0xff]  ;;  %v3116_v48 = vpack.c.bf16 %v1450_v39, %v1434_v38  ;;  %v3180_v49 = vpack.c.bf16 %v1452_v42, %v1436_v40  ;;  %v1466_v52 = vld [vmem:[%s7337_s5 + $0xe00] sm:$0xff] }
  0x34   : > { %3163 = vmatprep.subr.bf16.mxu1 %v3162_v56  ;;  %v1485_v46 = vld [vmem:[%s7337_s5 + $0xe98] sm:$0xff]  ;;  %v3118_v50 = vpack.c.bf16 %v1483_v44, %v1467_v43  ;;  %v1482_v53 = vld [vmem:[%s7337_s5 + $0xe80] sm:$0xff]  ;;  %v1468_v54 = vld [vmem:[%s7337_s5 + $0xe10] sm:$0xff] }
  0x35   : > { %v3182_v55 = vpack.c.bf16 %v1485_v46, %v1469_v45  ;;  %v1484_v56 = vld [vmem:[%s7337_s5 + $0xe90] sm:$0xff]  ;;  %v1499_v57 = vld [vmem:[%s7337_s5 + $0xf08] sm:$0xff]  ;;  %v1501_v59 = vld [vmem:[%s7337_s5 + $0xf18] sm:$0xff]  ;;  %v3120_v61 = vpack.c.bf16 %v1482_v53, %v1466_v52 }
  0x36   : > { %3101 = vmatpush1.bf16.msra.mxu0 %v3100_v62  ;;  %v1515_v58 = vld [vmem:[%s7337_s5 + $0xf88] sm:$0xff]  ;;  %v1517_v60 = vld [vmem:[%s7337_s5 + $0xf98] sm:$0xff]  ;;  %v3184_v62 = vpack.c.bf16 %v1484_v56, %v1468_v54  ;;  %v1514_v1 = vld [vmem:[%s7337_s5 + $0xf80] sm:$0xff] }
  0x37   : > { %3165 = vmatpush1.bf16.msra.mxu1 %v3164_v63  ;;  %3103 = vmatprep.subr.bf16.mxu0 %v3102_v0  ;;  %v3122_v63 = vpack.c.bf16 %v1515_v58, %v1499_v57  ;;  %v1498_v0 = vld [vmem:[%s7337_s5 + $0xf00] sm:$0xff]  ;;  %v1500_v2 = vld [vmem:[%s7337_s5 + $0xf10] sm:$0xff]  ;;  %v3186_v3 = vpack.c.bf16 %v1517_v60, %v1501_v59  ;;  %v1023_v5 = vld [vmem:[%s7337_s5 + $0x28] sm:$0xff] }
  0x38   : > { %3167 = vmatprep.subr.bf16.mxu1 %v3166_v4  ;;  %v1516_v4 = vld [vmem:[%s7337_s5 + $0xf90] sm:$0xff]  ;;  %v1039_v6 = vld [vmem:[%s7337_s5 + $0xa8] sm:$0xff]  ;;  %v1025_v7 = vld [vmem:[%s7337_s5 + $0x38] sm:$0xff]  ;;  %v3124_v9 = vpack.c.bf16 %v1514_v1, %v1498_v0 }
  0x39   : > { %v1041_v8 = vld [vmem:[%s7337_s5 + $0xb8] sm:$0xff]  ;;  %v3190_v11 = vpack.c.bf16 %v1039_v6, %v1023_v5  ;;  %v1024_v15 = vld [vmem:[%s7337_s5 + $0x30] sm:$0xff]  ;;  %v1055_v18 = vld [vmem:[%s7337_s5 + $0x128] sm:$0xff] }
  0x3a   : > { %3105 = vmatpush1.bf16.msra.mxu0 %v3104_v10  ;;  %v3188_v10 = vpack.c.bf16 %v1516_v4, %v1500_v2  ;;  %v3254_v14 = vpack.c.bf16 %v1041_v8, %v1025_v7  ;;  %v1040_v16 = vld [vmem:[%s7337_s5 + $0xb0] sm:$0xff]  ;;  %v1071_v19 = vld [vmem:[%s7337_s5 + $0x1a8] sm:$0xff]  ;;  %v4362_v22 = vld [vmem:[%s4213_s15 + $0x18] sm:$0xf] }
  0x3b   : > { %3169 = vmatpush1.bf16.msra.mxu1 %v3168_v12  ;;  %3107 = vmatprep.subr.bf16.mxu0 %v3106_v13  ;;  %v1022_v12 = vld [vmem:[%s7337_s5 + $0x20] sm:$0xff]  ;;  %v1056_v28 = vld [vmem:[%s7337_s5 + $0x130] sm:$0xff]  ;;  %v1087_v31 = vld [vmem:[%s7337_s5 + $0x228] sm:$0xff] }
  0x3c   : > { %3171 = vmatprep.subr.bf16.mxu1 %v3170_v17  ;;  %v1038_v13 = vld [vmem:[%s7337_s5 + $0xa0] sm:$0xff]  ;;  %v1072_v30 = vld [vmem:[%s7337_s5 + $0x1b0] sm:$0xff]  ;;  %v1103_v32 = vld [vmem:[%s7337_s5 + $0x2a8] sm:$0xff] }
  0x3d   : > { %v4353_v17 = vld [vmem:[%s4213_s15] sm:$0xff]  ;;  %v3192_v21 = vpack.c.bf16 %v1038_v13, %v1022_v12  ;;  %v1089_v34 = vld [vmem:[%s7337_s5 + $0x238] sm:$0xff]  ;;  %v3260_v38 = vpack.c.bf16 %v1072_v30, %v1056_v28  ;;  %v3198_v39 = vpack.c.bf16 %v1103_v32, %v1087_v31  ;;  %v1088_v42 = vld [vmem:[%s7337_s5 + $0x230] sm:$0xff] }
  0x3e   : > { %3109 = vmatpush1.bf16.msra.mxu0 %v3108_v23  ;;  %v1057_v23 = vld [vmem:[%s7337_s5 + $0x138] sm:$0xff]  ;;  %v1054_v26 = vld [vmem:[%s7337_s5 + $0x120] sm:$0xff]  ;;  %v1104_v44 = vld [vmem:[%s7337_s5 + $0x2b0] sm:$0xff] }
  0x3f   : > { %3173 = vmatpush1.bf16.msra.mxu1 %v3172_v24  ;;  %3111 = vmatprep.subr.bf16.mxu0 %v3110_v25  ;;  %v1073_v24 = vld [vmem:[%s7337_s5 + $0x1b8] sm:$0xff]  ;;  %v3256_v25 = vpack.c.bf16 %v1040_v16, %v1024_v15  ;;  %v1070_v27 = vld [vmem:[%s7337_s5 + $0x1a0] sm:$0xff]  ;;  %v1119_v45 = vld [vmem:[%s7337_s5 + $0x328] sm:$0xff]  ;;  %v3264_v52 = vpack.c.bf16 %v1104_v44, %v1088_v42 }
  0x40   : > { %3175 = vmatprep.subr.bf16.mxu1 %v3174_v29  ;;  %v3194_v29 = vpack.c.bf16 %v1071_v19, %v1055_v18  ;;  %v3258_v33 = vpack.c.bf16 %v1073_v24, %v1057_v23  ;;  %v1086_v40 = vld [vmem:[%s7337_s5 + $0x220] sm:$0xff]  ;;  %v1135_v46 = vld [vmem:[%s7337_s5 + $0x3a8] sm:$0xff]  ;;  %v1120_v56 = vld [vmem:[%s7337_s5 + $0x330] sm:$0xff] }
  0x41   : > { %v3202_v53 = vpack.c.bf16 %v1135_v46, %v1119_v45  ;;  %v1118_v54 = vld [vmem:[%s7337_s5 + $0x320] sm:$0xff]  ;;  %v1136_v58 = vld [vmem:[%s7337_s5 + $0x3b0] sm:$0xff]  ;;  %v1151_v59 = vld [vmem:[%s7337_s5 + $0x428] sm:$0xff] }
  0x42   : > { %3113 = vmatpush1.bf16.msra.mxu0 %v3112_v35  ;;  %v1105_v35 = vld [vmem:[%s7337_s5 + $0x2b8] sm:$0xff]  ;;  %v1167_v60 = vld [vmem:[%s7337_s5 + $0x4a8] sm:$0xff]  ;;  %v3268_v0 = vpack.c.bf16 %v1136_v58, %v1120_v56  ;;  %v1150_v2 = vld [vmem:[%s7337_s5 + $0x420] sm:$0xff] }
  0x43   : > { %3177 = vmatpush1.bf16.msra.mxu1 %v3176_v36  ;;  %3115 = vmatprep.subr.bf16.mxu0 %v3114_v37  ;;  %v4397_v36 = vld [vmem:[%s4213_s15 + $0x10] sm:$0xf]  ;;  %v3196_v37 = vpack.c.bf16 %v1070_v27, %v1054_v26  ;;  %v3262_v43 = vpack.c.bf16 %v1105_v35, %v1089_v34  ;;  %v3206_v1 = vpack.c.bf16 %v1167_v60, %v1151_v59  ;;  %v1183_v7 = vld [vmem:[%s7337_s5 + $0x528] sm:$0xff]  ;;  %v1198_v15 = vld [vmem:[%s7337_s5 + $0x5a0] sm:$0xff] }
  0x44   : > { %3179 = vmatprep.subr.bf16.mxu1 %v3178_v41  ;;  %v1102_v41 = vld [vmem:[%s7337_s5 + $0x2a0] sm:$0xff]  ;;  %v1152_v4 = vld [vmem:[%s7337_s5 + $0x430] sm:$0xff]  ;;  %v1199_v8 = vld [vmem:[%s7337_s5 + $0x5a8] sm:$0xff] }
  0x45   : > { %v1168_v6 = vld [vmem:[%s7337_s5 + $0x4b0] sm:$0xff]  ;;  %v3210_v13 = vpack.c.bf16 %v1199_v8, %v1183_v7  ;;  %v1231_v23 = vld [vmem:[%s7337_s5 + $0x6a8] sm:$0xff]  ;;  %v1217_v24 = vld [vmem:[%s7337_s5 + $0x638] sm:$0xff] }
  0x46   : > { %3117 = vmatpush1.bf16.msra.mxu0 %v3116_v48  ;;  %v1121_v48 = vld [vmem:[%s7337_s5 + $0x338] sm:$0xff]  ;;  %v3272_v12 = vpack.c.bf16 %v1168_v6, %v1152_v4  ;;  %v1184_v16 = vld [vmem:[%s7337_s5 + $0x530] sm:$0xff]  ;;  %v1230_v30 = vld [vmem:[%s7337_s5 + $0x6a0] sm:$0xff] }
  0x47   : > { %3181 = vmatpush1.bf16.msra.mxu1 %v3180_v49  ;;  %3119 = vmatprep.subr.bf16.mxu0 %v3118_v50  ;;  %v1137_v49 = vld [vmem:[%s7337_s5 + $0x3b8] sm:$0xff]  ;;  %v3200_v50 = vpack.c.bf16 %v1102_v41, %v1086_v40  ;;  %v1200_v19 = vld [vmem:[%s7337_s5 + $0x5b0] sm:$0xff]  ;;  %v1247_v34 = vld [vmem:[%s7337_s5 + $0x728] sm:$0xff] }
  0x48   : > { %3183 = vmatprep.subr.bf16.mxu1 %v3182_v55  ;;  %v1134_v55 = vld [vmem:[%s7337_s5 + $0x3a0] sm:$0xff]  ;;  %v3266_v57 = vpack.c.bf16 %v1137_v49, %v1121_v48  ;;  %v3276_v27 = vpack.c.bf16 %v1200_v19, %v1184_v16  ;;  %v1216_v31 = vld [vmem:[%s7337_s5 + $0x630] sm:$0xff]  ;;  %v1263_v35 = vld [vmem:[%s7337_s5 + $0x7a8] sm:$0xff] }
  0x49   : > { %v3218_v41 = vpack.c.bf16 %v1263_v35, %v1247_v34  ;;  %v1246_v42 = vld [vmem:[%s7337_s5 + $0x720] sm:$0xff]  ;;  %v1248_v44 = vld [vmem:[%s7337_s5 + $0x730] sm:$0xff]  ;;  %v1279_v48 = vld [vmem:[%s7337_s5 + $0x828] sm:$0xff] }
  0x4a   : > { %3121 = vmatpush1.bf16.msra.mxu0 %v3120_v61  ;;  %v1153_v61 = vld [vmem:[%s7337_s5 + $0x438] sm:$0xff]  ;;  %v1264_v46 = vld [vmem:[%s7337_s5 + $0x7b0] sm:$0xff]  ;;  %v1295_v49 = vld [vmem:[%s7337_s5 + $0x8a8] sm:$0xff] }
  0x4b   : > { %3185 = vmatpush1.bf16.msra.mxu1 %v3184_v62  ;;  %3123 = vmatprep.subr.bf16.mxu0 %v3122_v63  ;;  %v1169_v62 = vld [vmem:[%s7337_s5 + $0x4b8] sm:$0xff]  ;;  %v3204_v63 = vpack.c.bf16 %v1134_v55, %v1118_v54  ;;  %v1278_v54 = vld [vmem:[%s7337_s5 + $0x820] sm:$0xff]  ;;  %v3284_v55 = vpack.c.bf16 %v1264_v46, %v1248_v44  ;;  %v3222_v56 = vpack.c.bf16 %v1295_v49, %v1279_v48  ;;  %v1280_v58 = vld [vmem:[%s7337_s5 + $0x830] sm:$0xff] }
  0x4c   : > { %3187 = vmatprep.subr.bf16.mxu1 %v3186_v3  ;;  %v1166_v3 = vld [vmem:[%s7337_s5 + $0x4a0] sm:$0xff]  ;;  %v3270_v5 = vpack.c.bf16 %v1169_v62, %v1153_v61  ;;  %v1296_v61 = vld [vmem:[%s7337_s5 + $0x8b0] sm:$0xff]  ;;  %v1311_v62 = vld [vmem:[%s7337_s5 + $0x928] sm:$0xff] }
  0x4d   : > { %v346_v59 = vld [vmem:[%s4547_s23] sm:$0xff]  ;;  %v3288_v4 = vpack.c.bf16 %v1296_v61, %v1280_v58  ;;  %v1312_v7 = vld [vmem:[%s7337_s5 + $0x930] sm:$0xff]  ;;  %v347_v8 = vld [vmem:[%s4547_s23 + $0x8] sm:$0xf] }
  0x4e   : > { %3125 = vmatpush1.bf16.msra.mxu0 %v3124_v9  ;;  %v1185_v9 = vld [vmem:[%s7337_s5 + $0x538] sm:$0xff]  ;;  %767 = vperm.xlu1 %3843, %v346_v59   ;;  %v1326_v6 = vld [vmem:[%s7337_s5 + $0x9a0] sm:$0xff]  ;;  %v1376_v35 = vld [vmem:[%s7337_s5 + $0xb30] sm:$0xff] }
  0x4f   : > { %3189 = vmatpush1.bf16.msra.mxu1 %v3188_v10  ;;  %3191 = vmatprep.subr.bf16.mxu0 %v3190_v11  ;;  %v1201_v10 = vld [vmem:[%s7337_s5 + $0x5b8] sm:$0xff]  ;;  %v3208_v11 = vpack.c.bf16 %v1166_v3, %v1150_v2  ;;  %v1310_v3 = vld [vmem:[%s7337_s5 + $0x920] sm:$0xff]  ;;  %v1408_v48 = vld [vmem:[%s7337_s5 + $0xc30] sm:$0xff] }
  0x50   : > { %3255 = vmatprep.subr.bf16.mxu1 %v3254_v14  ;;  %v1182_v14 = vld [vmem:[%s7337_s5 + $0x520] sm:$0xff]  ;;  %v3274_v18 = vpack.c.bf16 %v1201_v10, %v1185_v9  ;;  %358 = vperm.xlu0 %3841, %v346_v59   ;;  %v1328_v10 = vld [vmem:[%s7337_s5 + $0x9b0] sm:$0xff]  ;;  %v3228_v16 = vpack.c.bf16 %v1326_v6, %v1310_v3  ;;  %v1489_v3 = vld [vmem:[%s7337_s5 + $0xeb8] sm:$0xff] }
  0x51   : > { %1679 = vmatmul.mubr.f32.vlgmr.msra.gmra.mrb[0].mxu0 %v4353_v17  ;;  %v3212_v26 = vpack.c.bf16 %v1198_v15, %v1182_v14  ;;  %v1361_v14 = vld [vmem:[%s7337_s5 + $0xab8] sm:$0xff]  ;;  %v3863_v15 = vmov 1   ;;  %v1390_v34 = vld [vmem:[%s7337_s5 + $0xba0] sm:$0xff]  ;;  %v1440_v61 = vld [vmem:[%s7337_s5 + $0xd30] sm:$0xff] }
  0x52   : > { %1756 = vmatmul.mubr.f32.vlgmr.msra.gmra.mrb[0].mxu1 %v4353_v17  ;;  %3193 = vmatpush1.bf16.msra.mxu0 %v3192_v21  ;;  %v1215_v21 = vld [vmem:[%s7337_s5 + $0x628] sm:$0xff]  ;;  %v1406_v46 = vld [vmem:[%s7337_s5 + $0xc20] sm:$0xff] }
  0x53   : > { %3257 = vmatpush1.bf16.msra.mxu1 %v3256_v25  ;;  %1684 = vmatprep.mubr.f32.mxu0 %v4362_v22  ;;  %v1233_v25 = vld [vmem:[%s7337_s5 + $0x6b8] sm:$0xff]  ;;  %v3214_v28 = vpack.c.bf16 %v1231_v23, %v1215_v21  ;;  %v1358_v21 = vld [vmem:[%s7337_s5 + $0xaa0] sm:$0xff]  ;;  %v1344_v23 = vld [vmem:[%s7337_s5 + $0xa30] sm:$0xff] }
  0x54   : > { %1761 = vmatprep.mubr.f32.mxu1 %v4362_v22  ;;  %3195 = vmatprep.subr.bf16.mxu0 %v3194_v29  ;;  %v1214_v29 = vld [vmem:[%s7337_s5 + $0x620] sm:$0xff]  ;;  %v3278_v32 = vpack.c.bf16 %v1233_v25, %v1217_v24  ;;  %v1360_v25 = vld [vmem:[%s7337_s5 + $0xab0] sm:$0xff] }
  0x55   : > { %1685 = vmatmul.mubr.f32.gmra.mrb[2].mxu0 %v4397_v36  ;;  %3259 = vmatprep.subr.bf16.mxu1 %v3258_v33  ;;  %v1232_v33 = vld [vmem:[%s7337_s5 + $0x6b0] sm:$0xff] }
  0x56   : > { %1762 = vmatmul.mubr.f32.gmra.mrb[2].mxu1 %v4397_v36  ;;  %3197 = vmatpush1.bf16.msra.mxu0 %v3196_v37  ;;  %v1249_v37 = vld [vmem:[%s7337_s5 + $0x738] sm:$0xff]  ;;  %v3280_v40 = vpack.c.bf16 %v1232_v33, %v1216_v31  ;;  %v3296_v31 = vpack.c.bf16 %v1360_v25, %v1344_v23  ;;  %v1374_v33 = vld [vmem:[%s7337_s5 + $0xb20] sm:$0xff]  ;;  %v1504_v23 = vld [vmem:[%s7337_s5 + $0xf30] sm:$0xff] }
  0x57   : > { %3261 = vmatpush1.bf16.msra.mxu1 %v3260_v38  ;;  %3199 = vmatprep.subr.bf16.mxu0 %v3198_v39  ;;  %v1265_v38 = vld [vmem:[%s7337_s5 + $0x7b8] sm:$0xff]  ;;  %v3216_v39 = vpack.c.bf16 %v1230_v30, %v1214_v29  ;;  %v1520_v25 = vld [vmem:[%s7337_s5 + $0xfb0] sm:$0xff] }
  0x58   : > { %3263 = vmatprep.subr.bf16.mxu1 %v3262_v43  ;;  %1832 = vmatprep.mubr.f32.mxu0 %v4234_v20  ;;  %v1262_v43 = vld [vmem:[%s7337_s5 + $0x7a0] sm:$0xff]  ;;  %v3282_v45 = vpack.c.bf16 %v1265_v38, %v1249_v37  ;;  %v1393_v29 = vld [vmem:[%s7337_s5 + $0xbb8] sm:$0xff]  ;;  %v1392_v38 = vld [vmem:[%s7337_s5 + $0xbb0] sm:$0xff] }
  0x59   : > { %1909 = vmatprep.mubr.f32.mxu1 %v4234_v20  ;;  %3844 = vset.pattern.permute.xlu1 %v3862_v51  ;;  %v1342_v51 = vld [vmem:[%s7337_s5 + $0xa20] sm:$0xff]  ;;  %v3300_v44 = vpack.c.bf16 %v1392_v38, %v1376_v35  ;;  %v1044_v38 = vld [vmem:[%s7337_s5 + $0xd0] sm:$0xff] }
  0x5a   : > { %3201 = vmatpush1.bf16.msra.mxu0 %v3200_v50  ;;  %v1281_v50 = vld [vmem:[%s7337_s5 + $0x838] sm:$0xff]  ;;  %363 = vperm.xlu1 %3844, %v347_v8   ;;  %v3232_v30 = vpack.c.bf16 %v1358_v21, %v1342_v51  ;;  %v1502_v51 = vld [vmem:[%s7337_s5 + $0xf20] sm:$0xff] }
  0x5b   : > { %3265 = vmatpush1.bf16.msra.mxu1 %v3264_v52  ;;  %3203 = vmatprep.subr.bf16.mxu0 %v3202_v53  ;;  %v1297_v52 = vld [vmem:[%s7337_s5 + $0x8b8] sm:$0xff]  ;;  %v3220_v53 = vpack.c.bf16 %v1262_v43, %v1246_v42  ;;  %v3236_v43 = vpack.c.bf16 %v1390_v34, %v1374_v33  ;;  %v1518_v21 = vld [vmem:[%s7337_s5 + $0xfa0] sm:$0xff] }
  0x5c   : > { %3267 = vmatprep.subr.bf16.mxu1 %v3266_v57  ;;  %v1294_v57 = vld [vmem:[%s7337_s5 + $0x8a0] sm:$0xff]  ;;  %v3286_v60 = vpack.c.bf16 %v1297_v52, %v1281_v50  ;;  %3842 = vset.pattern.permute.xlu0 %v3863_v15  ;;  %v1425_v42 = vld [vmem:[%s7337_s5 + $0xcb8] sm:$0xff]  ;;  %v1424_v50 = vld [vmem:[%s7337_s5 + $0xcb0] sm:$0xff] }
  0x5d   : > { %v3224_v2 = vpack.c.bf16 %v1294_v57, %v1278_v54  ;;  %551 = vperm.xlu0 %3842, %v346_v59   ;;  %v1439_v52 = vld [vmem:[%s7337_s5 + $0xd28] sm:$0xff]  ;;  %v1441_v54 = vld [vmem:[%s7337_s5 + $0xd38] sm:$0xff]  ;;  %v3304_v57 = vpack.c.bf16 %v1424_v50, %v1408_v48  ;;  %v1438_v59 = vld [vmem:[%s7337_s5 + $0xd20] sm:$0xff] }
  0x5e   : > { %3205 = vmatpush1.bf16.msra.mxu0 %v3204_v63  ;;  %v1327_v63 = vld [vmem:[%s7337_s5 + $0x9a8] sm:$0xff]  ;;  %3845 = vset.pattern.permute.xlu1 %v3863_v15  ;;  %v1521_v15 = vld [vmem:[%s7337_s5 + $0xfb8] sm:$0xff]  ;;  %v1026_v33 = vld [vmem:[%s7337_s5 + $0x40] sm:$0xff] }
  0x5f   : > { %3269 = vmatpush1.bf16.msra.mxu1 %v3268_v0  ;;  %3207 = vmatprep.subr.bf16.mxu0 %v3206_v1  ;;  %v1313_v0 = vld [vmem:[%s7337_s5 + $0x938] sm:$0xff]  ;;  %v1042_v34 = vld [vmem:[%s7337_s5 + $0xc0] sm:$0xff]  ;;  %v1091_v50 = vld [vmem:[%s7337_s5 + $0x248] sm:$0xff] }
  0x60   : > { %3271 = vmatprep.subr.bf16.mxu1 %v3270_v5  ;;  %v1329_v1 = vld [vmem:[%s7337_s5 + $0x9b8] sm:$0xff]  ;;  %v3226_v5 = vpack.c.bf16 %v1327_v63, %v1311_v62  ;;  %555 = vperm.xlu1 %3845, %v347_v8   ;;  %v1456_v63 = vld [vmem:[%s7337_s5 + $0xdb0] sm:$0xff] }
  0x61   : > { %v3290_v9 = vpack.c.bf16 %v1329_v1, %v1313_v0  ;;  %3846 = vset.pattern.permute.xlu0 %v3861_v47  ;;  %v1422_v47 = vld [vmem:[%s7337_s5 + $0xca0] sm:$0xff]  ;;  %v1471_v0 = vld [vmem:[%s7337_s5 + $0xe28] sm:$0xff] }
  0x62   : > { %3209 = vmatpush1.bf16.msra.mxu0 %v3208_v11  ;;  %v1343_v11 = vld [vmem:[%s7337_s5 + $0xa28] sm:$0xff]  ;;  %771 = vperm.xlu0 %3846, %v347_v8   ;;  %v1486_v8 = vld [vmem:[%s7337_s5 + $0xea0] sm:$0xff] }
  0x63   : > { %3273 = vmatpush1.bf16.msra.mxu1 %v3272_v12  ;;  %3211 = vmatprep.subr.bf16.mxu0 %v3210_v13  ;;  %v1359_v12 = vld [vmem:[%s7337_s5 + $0xaa8] sm:$0xff]  ;;  %v1345_v13 = vld [vmem:[%s7337_s5 + $0xa38] sm:$0xff] }
  0x64   : > { %3275 = vmatprep.subr.bf16.mxu1 %v3274_v18  ;;  %v3292_v18 = vpack.c.bf16 %v1328_v10, %v1312_v7  ;;  %v3230_v19 = vpack.c.bf16 %v1359_v12, %v1343_v11  ;;  %v3294_v24 = vpack.c.bf16 %v1361_v14, %v1345_v13  ;;  %v1487_v1 = vld [vmem:[%s7337_s5 + $0xea8] sm:$0xff]  ;;  %v1470_v7 = vld [vmem:[%s7337_s5 + $0xe20] sm:$0xff]  ;;  %v1488_v11 = vld [vmem:[%s7337_s5 + $0xeb0] sm:$0xff] }
  0x65   : > { %v3246_v6 = vpack.c.bf16 %v1487_v1, %v1471_v0  ;;  %v1503_v12 = vld [vmem:[%s7337_s5 + $0xf28] sm:$0xff]  ;;  %v1505_v14 = vld [vmem:[%s7337_s5 + $0xf38] sm:$0xff] }
  0x66   : > { %3213 = vmatpush1.bf16.msra.mxu0 %v3212_v26  ;;  %v1375_v26 = vld [vmem:[%s7337_s5 + $0xb28] sm:$0xff]  ;;  %v1141_v1 = vld [vmem:[%s7337_s5 + $0x3d8] sm:$0xff] }
  0x67   : > { %3277 = vmatpush1.bf16.msra.mxu1 %v3276_v27  ;;  %3215 = vmatprep.subr.bf16.mxu0 %v3214_v28  ;;  %v1391_v27 = vld [vmem:[%s7337_s5 + $0xba8] sm:$0xff]  ;;  %v1377_v28 = vld [vmem:[%s7337_s5 + $0xb38] sm:$0xff] }
  0x68   : > { %3279 = vmatprep.subr.bf16.mxu1 %v3278_v32  ;;  %v3234_v32 = vpack.c.bf16 %v1391_v27, %v1375_v26  ;;  %v3298_v37 = vpack.c.bf16 %v1393_v29, %v1377_v28  ;;  %v1519_v13 = vld [vmem:[%s7337_s5 + $0xfa8] sm:$0xff]  ;;  %v1029_v28 = vld [vmem:[%s7337_s5 + $0x58] sm:$0xff] }
  0x69   : > { %v1027_v26 = vld [vmem:[%s7337_s5 + $0x48] sm:$0xff]  ;;  %v1045_v29 = vld [vmem:[%s7337_s5 + $0xd8] sm:$0xff] }
  0x6a   : > { %3217 = vmatpush1.bf16.msra.mxu0 %v3216_v39  ;;  %v1407_v39 = vld [vmem:[%s7337_s5 + $0xc28] sm:$0xff]  ;;  %v3382_v35 = vpack.c.bf16 %v1045_v29, %v1029_v28  ;;  %v1186_v29 = vld [vmem:[%s7337_s5 + $0x540] sm:$0xff] }
  0x6b   : > { %3281 = vmatpush1.bf16.msra.mxu1 %v3280_v40  ;;  %3219 = vmatprep.subr.bf16.mxu0 %v3218_v41  ;;  %v1423_v40 = vld [vmem:[%s7337_s5 + $0xca8] sm:$0xff]  ;;  %v1409_v41 = vld [vmem:[%s7337_s5 + $0xc38] sm:$0xff] }
  0x6c   : > { %3283 = vmatprep.subr.bf16.mxu1 %v3282_v45  ;;  %v3238_v45 = vpack.c.bf16 %v1423_v40, %v1407_v39  ;;  %v3302_v49 = vpack.c.bf16 %v1425_v42, %v1409_v41  ;;  %v1043_v27 = vld [vmem:[%s7337_s5 + $0xc8] sm:$0xff]  ;;  %v3320_v41 = vpack.c.bf16 %v1042_v34, %v1026_v33  ;;  %v1061_v42 = vld [vmem:[%s7337_s5 + $0x158] sm:$0xff]  ;;  %v1204_v33 = vld [vmem:[%s7337_s5 + $0x5d0] sm:$0xff] }
  0x6d   : > { %v1059_v39 = vld [vmem:[%s7337_s5 + $0x148] sm:$0xff] }
  0x6e   : > { %3221 = vmatpush1.bf16.msra.mxu0 %v3220_v53  ;;  %v1455_v53 = vld [vmem:[%s7337_s5 + $0xda8] sm:$0xff] }
  0x6f   : > { %3285 = vmatpush1.bf16.msra.mxu1 %v3284_v55  ;;  %3223 = vmatprep.subr.bf16.mxu0 %v3222_v56  ;;  %v1457_v55 = vld [vmem:[%s7337_s5 + $0xdb8] sm:$0xff]  ;;  %v3240_v56 = vpack.c.bf16 %v1422_v47, %v1406_v46  ;;  %v3242_v58 = vpack.c.bf16 %v1455_v53, %v1439_v52  ;;  %v1075_v40 = vld [vmem:[%s7337_s5 + $0x1c8] sm:$0xff]  ;;  %v1074_v46 = vld [vmem:[%s7337_s5 + $0x1c0] sm:$0xff] }
  0x70   : > { %3287 = vmatprep.subr.bf16.mxu1 %v3286_v60  ;;  %v1454_v60 = vld [vmem:[%s7337_s5 + $0xda0] sm:$0xff]  ;;  %v3306_v62 = vpack.c.bf16 %v1457_v55, %v1441_v54  ;;  %v1060_v47 = vld [vmem:[%s7337_s5 + $0x150] sm:$0xff]  ;;  %v3322_v48 = vpack.c.bf16 %v1075_v40, %v1059_v39  ;;  %v1107_v52 = vld [vmem:[%s7337_s5 + $0x2c8] sm:$0xff] }
  0x71   : > { %v1093_v54 = vld [vmem:[%s7337_s5 + $0x258] sm:$0xff]  ;;  %v1139_v0 = vld [vmem:[%s7337_s5 + $0x3c8] sm:$0xff] }
  0x72   : > { %3225 = vmatpush1.bf16.msra.mxu0 %v3224_v2  ;;  %v1473_v2 = vld [vmem:[%s7337_s5 + $0xe38] sm:$0xff]  ;;  %v1219_v34 = vld [vmem:[%s7337_s5 + $0x648] sm:$0xff] }
  0x73   : > { %3289 = vmatpush1.bf16.msra.mxu1 %v3288_v4  ;;  %3227 = vmatprep.subr.bf16.mxu0 %v3226_v5  ;;  %v3244_v4 = vpack.c.bf16 %v1454_v60, %v1438_v59  ;;  %v3308_v5 = vpack.c.bf16 %v1456_v63, %v1440_v61  ;;  %v3310_v10 = vpack.c.bf16 %v1489_v3, %v1473_v2  ;;  %v1109_v55 = vld [vmem:[%s7337_s5 + $0x2d8] sm:$0xff]  ;;  %v1090_v59 = vld [vmem:[%s7337_s5 + $0x240] sm:$0xff]  ;;  %v1092_v61 = vld [vmem:[%s7337_s5 + $0x250] sm:$0xff] }
  0x74   : > { %3291 = vmatprep.subr.bf16.mxu1 %v3290_v9  ;;  %v1472_v9 = vld [vmem:[%s7337_s5 + $0xe30] sm:$0xff]  ;;  %v1106_v60 = vld [vmem:[%s7337_s5 + $0x2c0] sm:$0xff]  ;;  %v1123_v63 = vld [vmem:[%s7337_s5 + $0x348] sm:$0xff] }
  0x75   : > { %v3328_v2 = vpack.c.bf16 %v1106_v60, %v1090_v59  ;;  %v1268_v59 = vld [vmem:[%s7337_s5 + $0x7d0] sm:$0xff]  ;;  %v1283_v60 = vld [vmem:[%s7337_s5 + $0x848] sm:$0xff] }
  0x76   : > { %3229 = vmatpush1.bf16.msra.mxu0 %v3228_v16  ;;  %v3248_v16 = vpack.c.bf16 %v1486_v8, %v1470_v7  ;;  %v1124_v7 = vld [vmem:[%s7337_s5 + $0x350] sm:$0xff] }
  0x77   : > { %3293 = vmatpush1.bf16.msra.mxu1 %v3292_v18  ;;  %3231 = vmatprep.subr.bf16.mxu0 %v3230_v19  ;;  %v3312_v18 = vpack.c.bf16 %v1488_v11, %v1472_v9  ;;  %v3250_v19 = vpack.c.bf16 %v1519_v13, %v1503_v12  ;;  %v1140_v8 = vld [vmem:[%s7337_s5 + $0x3d0] sm:$0xff]  ;;  %v1155_v9 = vld [vmem:[%s7337_s5 + $0x448] sm:$0xff]  ;;  %v1157_v11 = vld [vmem:[%s7337_s5 + $0x458] sm:$0xff] }
  0x78   : > { %3295 = vmatprep.subr.bf16.mxu1 %v3294_v24  ;;  %v3314_v24 = vpack.c.bf16 %v1521_v15, %v1505_v14  ;;  %v1173_v12 = vld [vmem:[%s7337_s5 + $0x4d8] sm:$0xff]  ;;  %v3396_v14 = vpack.c.bf16 %v1140_v8, %v1124_v7  ;;  %v1331_v7 = vld [vmem:[%s7337_s5 + $0x9c8] sm:$0xff] }
  0x79   : > { %v1333_v8 = vld [vmem:[%s7337_s5 + $0x9d8] sm:$0xff] }
  0x7a   : > { %3233 = vmatpush1.bf16.msra.mxu0 %v3232_v30  ;;  %v3252_v30 = vpack.c.bf16 %v1518_v21, %v1502_v51  ;;  %v1172_v51 = vld [vmem:[%s7337_s5 + $0x4d0] sm:$0xff]  ;;  %v1187_v21 = vld [vmem:[%s7337_s5 + $0x548] sm:$0xff] }
  0x7b   : > { %3297 = vmatpush1.bf16.msra.mxu1 %v3296_v31  ;;  %3235 = vmatprep.subr.bf16.mxu0 %v3234_v32  ;;  %v3316_v31 = vpack.c.bf16 %v1520_v25, %v1504_v23  ;;  %v3318_v32 = vpack.c.bf16 %v1043_v27, %v1027_v26  ;;  %v1203_v23 = vld [vmem:[%s7337_s5 + $0x5c8] sm:$0xff]  ;;  %v1205_v25 = vld [vmem:[%s7337_s5 + $0x5d8] sm:$0xff] }
  0x7c   : > { %3299 = vmatprep.subr.bf16.mxu1 %v3298_v37  ;;  %v1028_v37 = vld [vmem:[%s7337_s5 + $0x50] sm:$0xff]  ;;  %v3338_v28 = vpack.c.bf16 %v1203_v23, %v1187_v21 }
  0x7e   : > { %3237 = vmatpush1.bf16.msra.mxu0 %v3236_v43  ;;  %v1077_v43 = vld [vmem:[%s7337_s5 + $0x1d8] sm:$0xff] }
  0x7f   : > { %3301 = vmatpush1.bf16.msra.mxu1 %v3300_v44  ;;  %3239 = vmatprep.subr.bf16.mxu0 %v3238_v45  ;;  %v3384_v44 = vpack.c.bf16 %v1044_v38, %v1028_v37  ;;  %v1058_v45 = vld [vmem:[%s7337_s5 + $0x140] sm:$0xff]  ;;  %v3386_v53 = vpack.c.bf16 %v1077_v43, %v1061_v42  ;;  %v1221_v37 = vld [vmem:[%s7337_s5 + $0x658] sm:$0xff] }
  0x80   : > { %3303 = vmatprep.subr.bf16.mxu1 %v3302_v49  ;;  %v1076_v49 = vld [vmem:[%s7337_s5 + $0x1d0] sm:$0xff]  ;;  %v1237_v38 = vld [vmem:[%s7337_s5 + $0x6d8] sm:$0xff]  ;;  %v1218_v42 = vld [vmem:[%s7337_s5 + $0x640] sm:$0xff] }
  0x81   : > { %v1234_v43 = vld [vmem:[%s7337_s5 + $0x6c0] sm:$0xff] }
  0x82   : > { %3241 = vmatpush1.bf16.msra.mxu0 %v3240_v56  ;;  %v3324_v56 = vpack.c.bf16 %v1074_v46, %v1058_v45  ;;  %v3406_v45 = vpack.c.bf16 %v1237_v38, %v1221_v37  ;;  %v1236_v46 = vld [vmem:[%s7337_s5 + $0x6d0] sm:$0xff]  ;;  %v1378_v38 = vld [vmem:[%s7337_s5 + $0xb40] sm:$0xff] }
  0x83   : > { %3305 = vmatpush1.bf16.msra.mxu1 %v3304_v57  ;;  %3243 = vmatprep.subr.bf16.mxu0 %v3242_v58  ;;  %v3388_v57 = vpack.c.bf16 %v1076_v49, %v1060_v47  ;;  %v3326_v58 = vpack.c.bf16 %v1107_v52, %v1091_v50  ;;  %v1251_v47 = vld [vmem:[%s7337_s5 + $0x748] sm:$0xff]  ;;  %v1253_v49 = vld [vmem:[%s7337_s5 + $0x758] sm:$0xff]  ;;  %v3344_v52 = vpack.c.bf16 %v1234_v43, %v1218_v42  ;;  %v1396_v42 = vld [vmem:[%s7337_s5 + $0xbd0] sm:$0xff] }
  0x84   : > { %3307 = vmatprep.subr.bf16.mxu1 %v3306_v62  ;;  %v1108_v62 = vld [vmem:[%s7337_s5 + $0x2d0] sm:$0xff]  ;;  %v1269_v50 = vld [vmem:[%s7337_s5 + $0x7d8] sm:$0xff]  ;;  %v1411_v43 = vld [vmem:[%s7337_s5 + $0xc48] sm:$0xff] }
  0x85   : > { %v3392_v3 = vpack.c.bf16 %v1108_v62, %v1092_v61  ;;  %v1299_v61 = vld [vmem:[%s7337_s5 + $0x8c8] sm:$0xff]  ;;  %v1301_v62 = vld [vmem:[%s7337_s5 + $0x8d8] sm:$0xff] }
  0x86   : > { %3245 = vmatpush1.bf16.msra.mxu0 %v3244_v4  ;;  %v3330_v4 = vpack.c.bf16 %v1139_v0, %v1123_v63 }
  0x87   : > { %3309 = vmatpush1.bf16.msra.mxu1 %v3308_v5  ;;  %3247 = vmatprep.subr.bf16.mxu0 %v3246_v6  ;;  %v1122_v5 = vld [vmem:[%s7337_s5 + $0x340] sm:$0xff] }
  0x88   : > { %3311 = vmatprep.subr.bf16.mxu1 %v3310_v10  ;;  %v1138_v6 = vld [vmem:[%s7337_s5 + $0x3c0] sm:$0xff]  ;;  %v1171_v10 = vld [vmem:[%s7337_s5 + $0x4c8] sm:$0xff] }
  0x89   : > { %v3332_v13 = vpack.c.bf16 %v1138_v6, %v1122_v5  ;;  %v3334_v15 = vpack.c.bf16 %v1171_v10, %v1155_v9  ;;  %v1300_v5 = vld [vmem:[%s7337_s5 + $0x8d0] sm:$0xff]  ;;  %v1315_v6 = vld [vmem:[%s7337_s5 + $0x948] sm:$0xff] }
  0x8a   : > { %3249 = vmatpush1.bf16.msra.mxu0 %v3248_v16  ;;  %v1154_v16 = vld [vmem:[%s7337_s5 + $0x440] sm:$0xff] }
  0x8b   : > { %3313 = vmatpush1.bf16.msra.mxu1 %v3312_v18  ;;  %3251 = vmatprep.subr.bf16.mxu0 %v3250_v19  ;;  %v1170_v18 = vld [vmem:[%s7337_s5 + $0x4c0] sm:$0xff]  ;;  %v1156_v19 = vld [vmem:[%s7337_s5 + $0x450] sm:$0xff] }
  0x8c   : > { %3315 = vmatprep.subr.bf16.mxu1 %v3314_v24  ;;  %v1189_v24 = vld [vmem:[%s7337_s5 + $0x558] sm:$0xff]  ;;  %v3336_v26 = vpack.c.bf16 %v1170_v18, %v1154_v16  ;;  %v3400_v27 = vpack.c.bf16 %v1172_v51, %v1156_v19  ;;  %v1332_v16 = vld [vmem:[%s7337_s5 + $0x9d0] sm:$0xff]  ;;  %v1347_v18 = vld [vmem:[%s7337_s5 + $0xa48] sm:$0xff] }
  0x8d   : > { %v1363_v19 = vld [vmem:[%s7337_s5 + $0xac8] sm:$0xff]  ;;  %v1365_v51 = vld [vmem:[%s7337_s5 + $0xad8] sm:$0xff] }
  0x8e   : > { %3253 = vmatpush1.bf16.msra.mxu0 %v3252_v30  ;;  %v1202_v30 = vld [vmem:[%s7337_s5 + $0x5c0] sm:$0xff] }
  0x8f   : > { %3317 = vmatpush1.bf16.msra.mxu1 %v3316_v31  ;;  %3319 = vmatprep.subr.bf16.mxu0 %v3318_v32  ;;  %v1188_v31 = vld [vmem:[%s7337_s5 + $0x550] sm:$0xff]  ;;  %v3402_v32 = vpack.c.bf16 %v1205_v25, %v1189_v24  ;;  %v3340_v39 = vpack.c.bf16 %v1202_v30, %v1186_v29  ;;  %v3358_v24 = vpack.c.bf16 %v1363_v19, %v1347_v18  ;;  %v1346_v25 = vld [vmem:[%s7337_s5 + $0xa40] sm:$0xff]  ;;  %v1379_v30 = vld [vmem:[%s7337_s5 + $0xb48] sm:$0xff] }
  0x90   : > { %3383 = vmatprep.subr.bf16.mxu1 %v3382_v35  ;;  %v1235_v35 = vld [vmem:[%s7337_s5 + $0x6c8] sm:$0xff]  ;;  %v3404_v40 = vpack.c.bf16 %v1204_v33, %v1188_v31  ;;  %v1364_v29 = vld [vmem:[%s7337_s5 + $0xad0] sm:$0xff]  ;;  %v1397_v33 = vld [vmem:[%s7337_s5 + $0xbd8] sm:$0xff] }
  0x91   : > { %1833 = vmatmul.mubr.f32.vlgmr.msra.gmra.mrb[4].mxu0 %v4353_v17  ;;  %v1395_v31 = vld [vmem:[%s7337_s5 + $0xbc8] sm:$0xff] }
  0x92   : > { %1910 = vmatmul.mubr.f32.vlgmr.msra.gmra.mrb[4].mxu1 %v4353_v17  ;;  %3321 = vmatpush1.bf16.msra.mxu0 %v3320_v41  ;;  %v3390_v17 = vpack.c.bf16 %v1109_v55, %v1093_v54  ;;  %v3342_v41 = vpack.c.bf16 %v1235_v35, %v1219_v34  ;;  %v1250_v55 = vld [vmem:[%s7337_s5 + $0x740] sm:$0xff]  ;;  %v3362_v37 = vpack.c.bf16 %v1395_v31, %v1379_v30 }
  0x93   : > { %3385 = vmatpush1.bf16.msra.mxu1 %v3384_v44  ;;  %1838 = vmatprep.mubr.f32.mxu0 %v4362_v22  ;;  %v1220_v44 = vld [vmem:[%s7337_s5 + $0x650] sm:$0xff] }
  0x94   : > { %1915 = vmatprep.mubr.f32.mxu1 %v4362_v22  ;;  %3323 = vmatprep.subr.bf16.mxu0 %v3322_v48  ;;  %v1125_v22 = vld [vmem:[%s7337_s5 + $0x358] sm:$0xff]  ;;  %v1267_v48 = vld [vmem:[%s7337_s5 + $0x7c8] sm:$0xff] }
  0x95   : > { %1839 = vmatmul.mubr.f32.gmra.mrb[6].mxu0 %v4397_v36  ;;  %3387 = vmatprep.subr.bf16.mxu1 %v3386_v53  ;;  %v3408_v53 = vpack.c.bf16 %v1236_v46, %v1220_v44  ;;  %v3346_v54 = vpack.c.bf16 %v1267_v48, %v1251_v47  ;;  %v1427_v44 = vld [vmem:[%s7337_s5 + $0xcc8] sm:$0xff]  ;;  %v1429_v46 = vld [vmem:[%s7337_s5 + $0xcd8] sm:$0xff] }
  0x96   : > { %1916 = vmatmul.mubr.f32.gmra.mrb[6].mxu1 %v4397_v36  ;;  %3325 = vmatpush1.bf16.msra.mxu0 %v3324_v56  ;;  %v3394_v36 = vpack.c.bf16 %v1141_v1, %v1125_v22  ;;  %v1266_v56 = vld [vmem:[%s7337_s5 + $0x7c0] sm:$0xff]  ;;  %v3350_v22 = vpack.c.bf16 %v1299_v61, %v1283_v60 }
  0x97   : > { %3389 = vmatpush1.bf16.msra.mxu1 %v3388_v57  ;;  %3327 = vmatprep.subr.bf16.mxu0 %v3326_v58  ;;  %v1252_v57 = vld [vmem:[%s7337_s5 + $0x750] sm:$0xff]  ;;  %v3410_v58 = vpack.c.bf16 %v1269_v50, %v1253_v49  ;;  %v3348_v63 = vpack.c.bf16 %v1266_v56, %v1250_v55  ;;  %v1282_v1 = vld [vmem:[%s7337_s5 + $0x840] sm:$0xff]  ;;  %v3366_v49 = vpack.c.bf16 %v1427_v44, %v1411_v43  ;;  %v1443_v56 = vld [vmem:[%s7337_s5 + $0xd48] sm:$0xff] }
  0x98   : > { %3391 = vmatprep.subr.bf16.mxu1 %v3390_v17  ;;  %1986 = vmatprep.mubr.f32.mxu0 %v4234_v20  ;;  %v1285_v17 = vld [vmem:[%s7337_s5 + $0x858] sm:$0xff]  ;;  %v3412_v0 = vpack.c.bf16 %v1268_v59, %v1252_v57  ;;  %v1410_v50 = vld [vmem:[%s7337_s5 + $0xc40] sm:$0xff]  ;;  %v1428_v55 = vld [vmem:[%s7337_s5 + $0xcd0] sm:$0xff] }
  0x99   : > { %2063 = vmatprep.mubr.f32.mxu1 %v4234_v20  ;;  %v3398_v20 = vpack.c.bf16 %v1173_v12, %v1157_v11  ;;  %v3354_v11 = vpack.c.bf16 %v1331_v7, %v1315_v6  ;;  %v1314_v12 = vld [vmem:[%s7337_s5 + $0x940] sm:$0xff]  ;;  %v1459_v57 = vld [vmem:[%s7337_s5 + $0xdc8] sm:$0xff]  ;;  %v1461_v59 = vld [vmem:[%s7337_s5 + $0xdd8] sm:$0xff] }
  0x9a   : > { %3329 = vmatpush1.bf16.msra.mxu0 %v3328_v2  ;;  %v1298_v2 = vld [vmem:[%s7337_s5 + $0x8c0] sm:$0xff]  ;;  %v1081_v43 = vld [vmem:[%s7337_s5 + $0x1f8] sm:$0xff] }
  0x9b   : > { %3393 = vmatpush1.bf16.msra.mxu1 %v3392_v3  ;;  %3331 = vmatprep.subr.bf16.mxu0 %v3330_v4  ;;  %v1284_v3 = vld [vmem:[%s7337_s5 + $0x850] sm:$0xff]  ;;  %v3414_v4 = vpack.c.bf16 %v1301_v62, %v1285_v17  ;;  %v3352_v9 = vpack.c.bf16 %v1298_v2, %v1282_v1  ;;  %v3370_v17 = vpack.c.bf16 %v1459_v57, %v1443_v56  ;;  %v1442_v62 = vld [vmem:[%s7337_s5 + $0xd40] sm:$0xff]  ;;  %v1475_v2 = vld [vmem:[%s7337_s5 + $0xe48] sm:$0xff] }
  0x9c   : > { %3395 = vmatprep.subr.bf16.mxu1 %v3394_v36  ;;  %v1317_v36 = vld [vmem:[%s7337_s5 + $0x958] sm:$0xff]  ;;  %v3416_v10 = vpack.c.bf16 %v1300_v5, %v1284_v3  ;;  %v1460_v1 = vld [vmem:[%s7337_s5 + $0xdd0] sm:$0xff]  ;;  %v1491_v3 = vld [vmem:[%s7337_s5 + $0xec8] sm:$0xff] }
  0x9d   : > { %v1493_v5 = vld [vmem:[%s7337_s5 + $0xed8] sm:$0xff] }
  0x9e   : > { %3333 = vmatpush1.bf16.msra.mxu0 %v3332_v13  ;;  %v1330_v13 = vld [vmem:[%s7337_s5 + $0x9c0] sm:$0xff]  ;;  %v1113_v56 = vld [vmem:[%s7337_s5 + $0x2f8] sm:$0xff] }
  0x9f   : > { %3397 = vmatpush1.bf16.msra.mxu1 %v3396_v14  ;;  %3335 = vmatprep.subr.bf16.mxu0 %v3334_v15  ;;  %v1316_v14 = vld [vmem:[%s7337_s5 + $0x950] sm:$0xff]  ;;  %v3418_v15 = vpack.c.bf16 %v1333_v8, %v1317_v36  ;;  %v3356_v21 = vpack.c.bf16 %v1330_v13, %v1314_v12  ;;  %v3374_v36 = vpack.c.bf16 %v1491_v3, %v1475_v2  ;;  %v1474_v8 = vld [vmem:[%s7337_s5 + $0xe40] sm:$0xff]  ;;  %v1507_v13 = vld [vmem:[%s7337_s5 + $0xf48] sm:$0xff] }
  0xa0   : > { %3399 = vmatprep.subr.bf16.mxu1 %v3398_v20  ;;  %v1349_v20 = vld [vmem:[%s7337_s5 + $0xa58] sm:$0xff]  ;;  %v3420_v23 = vpack.c.bf16 %v1332_v16, %v1316_v14  ;;  %v1492_v12 = vld [vmem:[%s7337_s5 + $0xed0] sm:$0xff]  ;;  %v1523_v14 = vld [vmem:[%s7337_s5 + $0xfc8] sm:$0xff] }
  0xa1   : > { %v1525_v16 = vld [vmem:[%s7337_s5 + $0xfd8] sm:$0xff]  ;;  %v5220_v2 = vld [vmem:[%s4213_s15 + $0x10] sm:$0xf] }
  0xa2   : > { %3337 = vmatpush1.bf16.msra.mxu0 %v3336_v26  ;;  %v1362_v26 = vld [vmem:[%s7337_s5 + $0xac0] sm:$0xff]  ;;  %v1129_v3 = vld [vmem:[%s7337_s5 + $0x378] sm:$0xff] }
  0xa3   : > { %3401 = vmatpush1.bf16.msra.mxu1 %v3400_v27  ;;  %3339 = vmatprep.subr.bf16.mxu0 %v3338_v28  ;;  %v1348_v27 = vld [vmem:[%s7337_s5 + $0xa50] sm:$0xff]  ;;  %v3422_v28 = vpack.c.bf16 %v1365_v51, %v1349_v20  ;;  %v3360_v34 = vpack.c.bf16 %v1362_v26, %v1346_v25  ;;  %v3378_v20 = vpack.c.bf16 %v1523_v14, %v1507_v13  ;;  %v1506_v51 = vld [vmem:[%s7337_s5 + $0xf40] sm:$0xff]  ;;  %v1031_v26 = vld [vmem:[%s7337_s5 + $0x68] sm:$0xff] }
  0xa4   : > { %3403 = vmatprep.subr.bf16.mxu1 %v3402_v32  ;;  %v1381_v32 = vld [vmem:[%s7337_s5 + $0xb58] sm:$0xff]  ;;  %v3424_v35 = vpack.c.bf16 %v1364_v29, %v1348_v27  ;;  %v1524_v25 = vld [vmem:[%s7337_s5 + $0xfd0] sm:$0xff]  ;;  %v1047_v27 = vld [vmem:[%s7337_s5 + $0xe8] sm:$0xff] }
  0xa5   : > { %v1049_v29 = vld [vmem:[%s7337_s5 + $0xf8] sm:$0xff]  ;;  %v1175_v13 = vld [vmem:[%s7337_s5 + $0x4e8] sm:$0xff] }
  0xa6   : > { %3341 = vmatpush1.bf16.msra.mxu0 %v3340_v39  ;;  %v1394_v39 = vld [vmem:[%s7337_s5 + $0xbc0] sm:$0xff]  ;;  %v3851_v14 = vld [vmem:[%s4213_s15 + $0x8] sm:$0xff] }
  0xa7   : > { %3405 = vmatpush1.bf16.msra.mxu1 %v3404_v40  ;;  %3343 = vmatprep.subr.bf16.mxu0 %v3342_v41  ;;  %v1380_v40 = vld [vmem:[%s7337_s5 + $0xb50] sm:$0xff]  ;;  %v3426_v41 = vpack.c.bf16 %v1397_v33, %v1381_v32  ;;  %v3364_v47 = vpack.c.bf16 %v1394_v39, %v1378_v38  ;;  %v3446_v32 = vpack.c.bf16 %v1047_v27, %v1031_v26  ;;  %v1030_v33 = vld [vmem:[%s7337_s5 + $0x60] sm:$0xff]  ;;  %v1063_v39 = vld [vmem:[%s7337_s5 + $0x168] sm:$0xff] }
  0xa8   : > { %3407 = vmatprep.subr.bf16.mxu1 %v3406_v45  ;;  %v1413_v45 = vld [vmem:[%s7337_s5 + $0xc58] sm:$0xff]  ;;  %v3428_v48 = vpack.c.bf16 %v1396_v42, %v1380_v40  ;;  %v1048_v38 = vld [vmem:[%s7337_s5 + $0xf0] sm:$0xff]  ;;  %v1079_v40 = vld [vmem:[%s7337_s5 + $0x1e8] sm:$0xff] }
  0xa9   : > { %v1065_v42 = vld [vmem:[%s7337_s5 + $0x178] sm:$0xff]  ;;  %v1191_v26 = vld [vmem:[%s7337_s5 + $0x568] sm:$0xff] }
  0xaa   : > { %3345 = vmatpush1.bf16.msra.mxu0 %v3344_v52  ;;  %v1426_v52 = vld [vmem:[%s7337_s5 + $0xcc0] sm:$0xff]  ;;  %v1207_v27 = vld [vmem:[%s7337_s5 + $0x5e8] sm:$0xff] }
  0xab   : > { %3409 = vmatpush1.bf16.msra.mxu1 %v3408_v53  ;;  %3347 = vmatprep.subr.bf16.mxu0 %v3346_v54  ;;  %v1412_v53 = vld [vmem:[%s7337_s5 + $0xc50] sm:$0xff]  ;;  %v3430_v54 = vpack.c.bf16 %v1429_v46, %v1413_v45  ;;  %v3368_v60 = vpack.c.bf16 %v1426_v52, %v1410_v50  ;;  %v1062_v45 = vld [vmem:[%s7337_s5 + $0x160] sm:$0xff]  ;;  %v1095_v50 = vld [vmem:[%s7337_s5 + $0x268] sm:$0xff] }
  0xac   : > { %3411 = vmatprep.subr.bf16.mxu1 %v3410_v58  ;;  %v1445_v58 = vld [vmem:[%s7337_s5 + $0xd58] sm:$0xff]  ;;  %v3432_v61 = vpack.c.bf16 %v1428_v55, %v1412_v53  ;;  %v1078_v46 = vld [vmem:[%s7337_s5 + $0x1e0] sm:$0xff]  ;;  %v1111_v52 = vld [vmem:[%s7337_s5 + $0x2e8] sm:$0xff] }
  0xad   : > { %v5186_v53 = vld [vmem:[%s4213_s15] sm:$0xff]  ;;  %v1097_v55 = vld [vmem:[%s7337_s5 + $0x278] sm:$0xff]  ;;  %v3452_v57 = vpack.c.bf16 %v1078_v46, %v1062_v45 }
  0xae   : > { %3349 = vmatpush1.bf16.msra.mxu0 %v3348_v63  ;;  %v1458_v63 = vld [vmem:[%s7337_s5 + $0xdc0] sm:$0xff] }
  0xaf   : > { %3413 = vmatpush1.bf16.msra.mxu1 %v3412_v0  ;;  %3351 = vmatprep.subr.bf16.mxu0 %v3350_v22  ;;  %v1444_v0 = vld [vmem:[%s7337_s5 + $0xd50] sm:$0xff]  ;;  %v3434_v22 = vpack.c.bf16 %v1461_v59, %v1445_v58  ;;  %v3372_v6 = vpack.c.bf16 %v1458_v63, %v1442_v62  ;;  %v5197_v58 = vld [vmem:[%s4213_s15 + $0x18] sm:$0xf]  ;;  %v3518_v63 = vpack.c.bf16 %v1113_v56, %v1097_v55  ;;  %v1222_v46 = vld [vmem:[%s7337_s5 + $0x660] sm:$0xff] }
  0xb0   : > { %3415 = vmatprep.subr.bf16.mxu1 %v3414_v4  ;;  %v1477_v4 = vld [vmem:[%s7337_s5 + $0xe58] sm:$0xff]  ;;  %v3436_v7 = vpack.c.bf16 %v1460_v1, %v1444_v0  ;;  %v1096_v62 = vld [vmem:[%s7337_s5 + $0x270] sm:$0xff]  ;;  %v1143_v1 = vld [vmem:[%s7337_s5 + $0x3e8] sm:$0xff] }
  0xb1   : > { %v1112_v0 = vld [vmem:[%s7337_s5 + $0x2f0] sm:$0xff]  ;;  %v1257_v55 = vld [vmem:[%s7337_s5 + $0x778] sm:$0xff] }
  0xb2   : > { %3353 = vmatpush1.bf16.msra.mxu0 %v3352_v9  ;;  %v1490_v9 = vld [vmem:[%s7337_s5 + $0xec0] sm:$0xff]  ;;  %v1273_v56 = vld [vmem:[%s7337_s5 + $0x7f8] sm:$0xff] }
  0xb3   : > { %3417 = vmatpush1.bf16.msra.mxu1 %v3416_v10  ;;  %3355 = vmatprep.subr.bf16.mxu0 %v3354_v11  ;;  %v1476_v10 = vld [vmem:[%s7337_s5 + $0xe50] sm:$0xff]  ;;  %v3438_v11 = vpack.c.bf16 %v1493_v5, %v1477_v4  ;;  %v3376_v18 = vpack.c.bf16 %v1490_v9, %v1474_v8  ;;  %v1145_v4 = vld [vmem:[%s7337_s5 + $0x3f8] sm:$0xff]  ;;  %v1142_v8 = vld [vmem:[%s7337_s5 + $0x3e0] sm:$0xff] }
  0xb4   : > { %3419 = vmatprep.subr.bf16.mxu1 %v3418_v15  ;;  %v1509_v15 = vld [vmem:[%s7337_s5 + $0xf58] sm:$0xff]  ;;  %v3440_v19 = vpack.c.bf16 %v1492_v12, %v1476_v10  ;;  %v1128_v9 = vld [vmem:[%s7337_s5 + $0x370] sm:$0xff]  ;;  %v3522_v10 = vpack.c.bf16 %v1145_v4, %v1129_v3  ;;  %v1159_v12 = vld [vmem:[%s7337_s5 + $0x468] sm:$0xff] }
  0xb5   : > { %v1289_v3 = vld [vmem:[%s7337_s5 + $0x878] sm:$0xff] }
  0xb6   : > { %3357 = vmatpush1.bf16.msra.mxu0 %v3356_v21  ;;  %v1522_v21 = vld [vmem:[%s7337_s5 + $0xfc0] sm:$0xff]  ;;  %v1305_v4 = vld [vmem:[%s7337_s5 + $0x8f8] sm:$0xff] }
  0xb7   : > { %3421 = vmatpush1.bf16.msra.mxu1 %v3420_v23  ;;  %3359 = vmatprep.subr.bf16.mxu0 %v3358_v24  ;;  %v1508_v23 = vld [vmem:[%s7337_s5 + $0xf50] sm:$0xff]  ;;  %v3442_v24 = vpack.c.bf16 %v1525_v16, %v1509_v15  ;;  %v3380_v30 = vpack.c.bf16 %v1522_v21, %v1506_v51  ;;  %v1161_v15 = vld [vmem:[%s7337_s5 + $0x478] sm:$0xff]  ;;  %v1158_v51 = vld [vmem:[%s7337_s5 + $0x460] sm:$0xff] }
  0xb8   : > { %3423 = vmatprep.subr.bf16.mxu1 %v3422_v28  ;;  %v1033_v28 = vld [vmem:[%s7337_s5 + $0x78] sm:$0xff]  ;;  %v3444_v31 = vpack.c.bf16 %v1524_v25, %v1508_v23  ;;  %v1174_v21 = vld [vmem:[%s7337_s5 + $0x4e0] sm:$0xff]  ;;  %v1160_v23 = vld [vmem:[%s7337_s5 + $0x470] sm:$0xff] }
  0xb9   : > { %v1177_v16 = vld [vmem:[%s7337_s5 + $0x4f8] sm:$0xff]  ;;  %v1176_v25 = vld [vmem:[%s7337_s5 + $0x4f0] sm:$0xff] }
  0xba   : > { %3361 = vmatpush1.bf16.msra.mxu0 %v3360_v34  ;;  %v1046_v34 = vld [vmem:[%s7337_s5 + $0xe0] sm:$0xff] }
  0xbb   : > { %3425 = vmatpush1.bf16.msra.mxu1 %v3424_v35  ;;  %3363 = vmatprep.subr.bf16.mxu0 %v3362_v37  ;;  %v3510_v35 = vpack.c.bf16 %v1049_v29, %v1033_v28  ;;  %v1032_v37 = vld [vmem:[%s7337_s5 + $0x70] sm:$0xff]  ;;  %v1193_v28 = vld [vmem:[%s7337_s5 + $0x578] sm:$0xff] }
  0xbc   : > { %3427 = vmatprep.subr.bf16.mxu1 %v3426_v41  ;;  %v3448_v41 = vpack.c.bf16 %v1046_v34, %v1030_v33  ;;  %v3512_v44 = vpack.c.bf16 %v1048_v38, %v1032_v37  ;;  %v1209_v29 = vld [vmem:[%s7337_s5 + $0x5f8] sm:$0xff]  ;;  %v1190_v33 = vld [vmem:[%s7337_s5 + $0x560] sm:$0xff]  ;;  %v1208_v38 = vld [vmem:[%s7337_s5 + $0x5f0] sm:$0xff] }
  0xbd   : > { %v1206_v34 = vld [vmem:[%s7337_s5 + $0x5e0] sm:$0xff]  ;;  %v3530_v37 = vpack.c.bf16 %v1209_v29, %v1193_v28  ;;  %v1369_v28 = vld [vmem:[%s7337_s5 + $0xaf8] sm:$0xff] }
  0xbe   : > { %3365 = vmatpush1.bf16.msra.mxu0 %v3364_v47  ;;  %v1064_v47 = vld [vmem:[%s7337_s5 + $0x170] sm:$0xff] }
  0xbf   : > { %3429 = vmatpush1.bf16.msra.mxu1 %v3428_v48  ;;  %3367 = vmatprep.subr.bf16.mxu0 %v3366_v49  ;;  %v3450_v48 = vpack.c.bf16 %v1079_v40, %v1063_v39  ;;  %v1080_v49 = vld [vmem:[%s7337_s5 + $0x1f0] sm:$0xff]  ;;  %v1223_v39 = vld [vmem:[%s7337_s5 + $0x668] sm:$0xff] }
  0xc0   : > { %3431 = vmatprep.subr.bf16.mxu1 %v3430_v54  ;;  %v3514_v54 = vpack.c.bf16 %v1081_v43, %v1065_v42  ;;  %v3516_v59 = vpack.c.bf16 %v1080_v49, %v1064_v47  ;;  %v1239_v40 = vld [vmem:[%s7337_s5 + $0x6e8] sm:$0xff]  ;;  %v1241_v42 = vld [vmem:[%s7337_s5 + $0x6f8] sm:$0xff]  ;;  %v3468_v43 = vpack.c.bf16 %v1206_v34, %v1190_v33  ;;  %v1238_v47 = vld [vmem:[%s7337_s5 + $0x6e0] sm:$0xff] }
  0xc1   : > { %v3470_v45 = vpack.c.bf16 %v1239_v40, %v1223_v39  ;;  %v1366_v33 = vld [vmem:[%s7337_s5 + $0xae0] sm:$0xff]  ;;  %v1352_v34 = vld [vmem:[%s7337_s5 + $0xa70] sm:$0xff]  ;;  %v1399_v39 = vld [vmem:[%s7337_s5 + $0xbe8] sm:$0xff] }
  0xc2   : > { %3369 = vmatpush1.bf16.msra.mxu0 %v3368_v60  ;;  %v3454_v60 = vpack.c.bf16 %v1111_v52, %v1095_v50  ;;  %v1240_v50 = vld [vmem:[%s7337_s5 + $0x6f0] sm:$0xff]  ;;  %v1255_v52 = vld [vmem:[%s7337_s5 + $0x768] sm:$0xff]  ;;  %v1385_v40 = vld [vmem:[%s7337_s5 + $0xb78] sm:$0xff] }
  0xc3   : > { %3433 = vmatpush1.bf16.msra.mxu1 %v3432_v61  ;;  %3371 = vmatprep.subr.bf16.mxu0 %v3370_v17  ;;  %v1094_v61 = vld [vmem:[%s7337_s5 + $0x260] sm:$0xff] }
  0xc4   : > { %3435 = vmatprep.subr.bf16.mxu1 %v3434_v22  ;;  %v1110_v17 = vld [vmem:[%s7337_s5 + $0x2e0] sm:$0xff]  ;;  %v1127_v22 = vld [vmem:[%s7337_s5 + $0x368] sm:$0xff] }
  0xc5   : > { %v3456_v5 = vpack.c.bf16 %v1110_v17, %v1094_v61  ;;  %v1254_v61 = vld [vmem:[%s7337_s5 + $0x760] sm:$0xff] }
  0xc6   : > { %3373 = vmatpush1.bf16.msra.mxu0 %v3372_v6  ;;  %v3520_v6 = vpack.c.bf16 %v1112_v0, %v1096_v62  ;;  %v1270_v17 = vld [vmem:[%s7337_s5 + $0x7e0] sm:$0xff]  ;;  %v1256_v62 = vld [vmem:[%s7337_s5 + $0x770] sm:$0xff] }
  0xc7   : > { %3437 = vmatpush1.bf16.msra.mxu1 %v3436_v7  ;;  %3375 = vmatprep.subr.bf16.mxu0 %v3374_v36  ;;  %v3458_v7 = vpack.c.bf16 %v1143_v1, %v1127_v22  ;;  %v1126_v36 = vld [vmem:[%s7337_s5 + $0x360] sm:$0xff]  ;;  %v1272_v0 = vld [vmem:[%s7337_s5 + $0x7f0] sm:$0xff]  ;;  %v1287_v22 = vld [vmem:[%s7337_s5 + $0x868] sm:$0xff] }
  0xc8   : > { %3439 = vmatprep.subr.bf16.mxu1 %v3438_v11  ;;  %v1144_v11 = vld [vmem:[%s7337_s5 + $0x3f0] sm:$0xff]  ;;  %v1303_v1 = vld [vmem:[%s7337_s5 + $0x8e8] sm:$0xff] }
  0xca   : > { %3377 = vmatpush1.bf16.msra.mxu0 %v3376_v18  ;;  %v3460_v18 = vpack.c.bf16 %v1142_v8, %v1126_v36  ;;  %v1286_v36 = vld [vmem:[%s7337_s5 + $0x860] sm:$0xff] }
  0xcb   : > { %3441 = vmatpush1.bf16.msra.mxu1 %v3440_v19  ;;  %3379 = vmatprep.subr.bf16.mxu0 %v3378_v20  ;;  %v3524_v19 = vpack.c.bf16 %v1144_v11, %v1128_v9  ;;  %v3462_v20 = vpack.c.bf16 %v1175_v13, %v1159_v12  ;;  %v1302_v8 = vld [vmem:[%s7337_s5 + $0x8e0] sm:$0xff]  ;;  %v1288_v9 = vld [vmem:[%s7337_s5 + $0x870] sm:$0xff]  ;;  %v1319_v12 = vld [vmem:[%s7337_s5 + $0x968] sm:$0xff] }
  0xcc   : > { %3443 = vmatprep.subr.bf16.mxu1 %v3442_v24  ;;  %v3526_v24 = vpack.c.bf16 %v1177_v16, %v1161_v15  ;;  %v1304_v11 = vld [vmem:[%s7337_s5 + $0x8f0] sm:$0xff]  ;;  %v1335_v13 = vld [vmem:[%s7337_s5 + $0x9e8] sm:$0xff]  ;;  %v1337_v15 = vld [vmem:[%s7337_s5 + $0x9f8] sm:$0xff]  ;;  %v3480_v16 = vpack.c.bf16 %v1302_v8, %v1286_v36 }
  0xcd   : > { %v1462_v8 = vld [vmem:[%s7337_s5 + $0xde0] sm:$0xff] }
  0xce   : > { %3381 = vmatpush1.bf16.msra.mxu0 %v3380_v30  ;;  %v3464_v30 = vpack.c.bf16 %v1174_v21, %v1158_v51  ;;  %v1334_v51 = vld [vmem:[%s7337_s5 + $0x9e0] sm:$0xff]  ;;  %v1320_v21 = vld [vmem:[%s7337_s5 + $0x970] sm:$0xff] }
  0xcf   : > { %3445 = vmatpush1.bf16.msra.mxu1 %v3444_v31  ;;  %3447 = vmatprep.subr.bf16.mxu0 %v3446_v32  ;;  %v3528_v31 = vpack.c.bf16 %v1176_v25, %v1160_v23  ;;  %v3466_v32 = vpack.c.bf16 %v1207_v27, %v1191_v26  ;;  %v1351_v25 = vld [vmem:[%s7337_s5 + $0xa68] sm:$0xff]  ;;  %v1353_v27 = vld [vmem:[%s7337_s5 + $0xa78] sm:$0xff] }
  0xd0   : > { %3511 = vmatprep.subr.bf16.mxu1 %v3510_v35  ;;  %v1192_v35 = vld [vmem:[%s7337_s5 + $0x570] sm:$0xff]  ;;  %v1367_v26 = vld [vmem:[%s7337_s5 + $0xae8] sm:$0xff] }
  0xd1   : > { %1987 = vmatmul.mubr.f32.vlgmr.msra.gmra.mrb[8].mxu0 %v5186_v53 }
  0xd2   : > { %2064 = vmatmul.mubr.f32.vlgmr.msra.gmra.mrb[8].mxu1 %v5186_v53  ;;  %3449 = vmatpush1.bf16.msra.mxu0 %v3448_v41  ;;  %v1225_v41 = vld [vmem:[%s7337_s5 + $0x678] sm:$0xff] }
  0xd3   : > { %3513 = vmatpush1.bf16.msra.mxu1 %v3512_v44  ;;  %1992 = vmatprep.mubr.f32.mxu0 %v5197_v58  ;;  %v3532_v44 = vpack.c.bf16 %v1208_v38, %v1192_v35  ;;  %v3534_v49 = vpack.c.bf16 %v1241_v42, %v1225_v41  ;;  %v3550_v35 = vpack.c.bf16 %v1369_v28, %v1353_v27  ;;  %v1383_v38 = vld [vmem:[%s7337_s5 + $0xb68] sm:$0xff]  ;;  %v1401_v41 = vld [vmem:[%s7337_s5 + $0xbf8] sm:$0xff] }
  0xd4   : > { %2069 = vmatprep.mubr.f32.mxu1 %v5197_v58  ;;  %3451 = vmatprep.subr.bf16.mxu0 %v3450_v48  ;;  %v1224_v48 = vld [vmem:[%s7337_s5 + $0x670] sm:$0xff]  ;;  %v5530_v27 = vld [vmem:[%s7337_s5 + $0xf78] sm:$0xff] }
  0xd5   : > { %1993 = vmatmul.mubr.f32.gmra.mrb[10].mxu0 %v5220_v2  ;;  %3515 = vmatprep.subr.bf16.mxu1 %v3514_v54  ;;  %v1271_v54 = vld [vmem:[%s7337_s5 + $0x7e8] sm:$0xff]  ;;  %v5535_v28 = vld [vmem:[%s7337_s5 + $0xff8] sm:$0xff] }
  0xd6   : > { %2070 = vmatmul.mubr.f32.gmra.mrb[10].mxu1 %v5220_v2  ;;  %3453 = vmatpush1.bf16.msra.mxu0 %v3452_v57  ;;  %v3472_v57 = vpack.c.bf16 %v1238_v47, %v1222_v46  ;;  %v1398_v46 = vld [vmem:[%s7337_s5 + $0xbe0] sm:$0xff]  ;;  %v1384_v47 = vld [vmem:[%s7337_s5 + $0xb70] sm:$0xff] }
  0xd7   : > { %3517 = vmatpush1.bf16.msra.mxu1 %v3516_v59  ;;  %3455 = vmatprep.subr.bf16.mxu0 %v3454_v60  ;;  %v3536_v59 = vpack.c.bf16 %v1240_v50, %v1224_v48  ;;  %v3474_v60 = vpack.c.bf16 %v1271_v54, %v1255_v52  ;;  %v3554_v48 = vpack.c.bf16 %v1401_v41, %v1385_v40  ;;  %v1415_v50 = vld [vmem:[%s7337_s5 + $0xc68] sm:$0xff]  ;;  %v1417_v54 = vld [vmem:[%s7337_s5 + $0xc78] sm:$0xff]  ;;  %v5585_v40 = vld [vmem:[%s7336_s4 + $0x40] sm:$0xff] }
  0xd8   : > { %3519 = vmatprep.subr.bf16.mxu1 %v3518_v63  ;;  %2140 = vmatprep.mubr.f32.mxu0 %v3851_v14  ;;  %v3538_v63 = vpack.c.bf16 %v1273_v56, %v1257_v55  ;;  %v1431_v52 = vld [vmem:[%s7337_s5 + $0xce8] sm:$0xff]  ;;  %v1433_v55 = vld [vmem:[%s7337_s5 + $0xcf8] sm:$0xff]  ;;  %v5590_v41 = vld [vmem:[%s7336_s4 + $0x10] sm:$0xff] }
  0xd9   : > { %2217 = vmatprep.mubr.f32.mxu1 %v3851_v14  ;;  %v1321_v14 = vld [vmem:[%s7337_s5 + $0x978] sm:$0xff] }
  0xda   : > { %3457 = vmatpush1.bf16.msra.mxu0 %v3456_v5  ;;  %v3476_v5 = vpack.c.bf16 %v1270_v17, %v1254_v61  ;;  %v3546_v23 = vpack.c.bf16 %v1337_v15, %v1321_v14  ;;  %v1430_v61 = vld [vmem:[%s7337_s5 + $0xce0] sm:$0xff]  ;;  %v1416_v17 = vld [vmem:[%s7337_s5 + $0xc70] sm:$0xff]  ;;  %v1481_v14 = vld [vmem:[%s7337_s5 + $0xe78] sm:$0xff] }
  0xdb   : > { %3521 = vmatpush1.bf16.msra.mxu1 %v3520_v6  ;;  %3459 = vmatprep.subr.bf16.mxu0 %v3458_v7  ;;  %v3540_v6 = vpack.c.bf16 %v1272_v0, %v1256_v62  ;;  %v3478_v7 = vpack.c.bf16 %v1303_v1, %v1287_v22  ;;  %v3558_v62 = vpack.c.bf16 %v1433_v55, %v1417_v54  ;;  %v1447_v0 = vld [vmem:[%s7337_s5 + $0xd68] sm:$0xff]  ;;  %v1449_v1 = vld [vmem:[%s7337_s5 + $0xd78] sm:$0xff] }
  0xdc   : > { %3523 = vmatprep.subr.bf16.mxu1 %v3522_v10  ;;  %v3542_v10 = vpack.c.bf16 %v1305_v4, %v1289_v3  ;;  %v1463_v22 = vld [vmem:[%s7337_s5 + $0xde8] sm:$0xff]  ;;  %v1465_v3 = vld [vmem:[%s7337_s5 + $0xdf8] sm:$0xff] }
  0xdd   : > { %v3498_v36 = vpack.c.bf16 %v1463_v22, %v1447_v0  ;;  %v1497_v15 = vld [vmem:[%s7337_s5 + $0xef8] sm:$0xff]  ;;  %v5642_v54 = vld [vmem:[%s7336_s4 + $0x108] sm:$0xff]  ;;  %v5682_v0 = vld [vmem:[%s7336_s4 + $0x110] sm:$0xff] }
  0xde   : > { %3461 = vmatpush1.bf16.msra.mxu0 %v3460_v18  ;;  %v3544_v18 = vpack.c.bf16 %v1304_v11, %v1288_v9  ;;  %v1448_v9 = vld [vmem:[%s7337_s5 + $0xd70] sm:$0xff]  ;;  %v3562_v11 = vpack.c.bf16 %v1465_v3, %v1449_v1  ;;  %v5647_v55 = vld [vmem:[%s7336_s4 + $0x148] sm:$0xff] }
  0xdf   : > { %3525 = vmatpush1.bf16.msra.mxu1 %v3524_v19  ;;  %3463 = vmatprep.subr.bf16.mxu0 %v3462_v20  ;;  %v3482_v19 = vpack.c.bf16 %v1335_v13, %v1319_v12  ;;  %v1318_v20 = vld [vmem:[%s7337_s5 + $0x960] sm:$0xff]  ;;  %v1479_v12 = vld [vmem:[%s7337_s5 + $0xe68] sm:$0xff]  ;;  %v5687_v22 = vld [vmem:[%s7336_s4 + $0x150] sm:$0xff] }
  0xe0   : > { %3527 = vmatprep.subr.bf16.mxu1 %v3526_v24  ;;  %v1336_v24 = vld [vmem:[%s7337_s5 + $0x9f0] sm:$0xff]  ;;  %v3484_v29 = vpack.c.bf16 %v1334_v51, %v1318_v20  ;;  %v1495_v13 = vld [vmem:[%s7337_s5 + $0xee8] sm:$0xff] }
  0xe1   : > { %v5508_v20 = vld [vmem:[%s7337_s5 + $0xe70] sm:$0xff]  ;;  %v5692_v1 = vld [vmem:[%s7336_s4 + $0x188] sm:$0xff] }
  0xe2   : > { %3465 = vmatpush1.bf16.msra.mxu0 %v3464_v30  ;;  %v3548_v30 = vpack.c.bf16 %v1336_v24, %v1320_v21  ;;  %v5513_v51 = vld [vmem:[%s7337_s5 + $0xef0] sm:$0xff]  ;;  %v5518_v21 = vld [vmem:[%s7337_s5 + $0xf68] sm:$0xff] }
  0xe3   : > { %3529 = vmatpush1.bf16.msra.mxu1 %v3528_v31  ;;  %3467 = vmatprep.subr.bf16.mxu0 %v3466_v32  ;;  %v3486_v31 = vpack.c.bf16 %v1367_v26, %v1351_v25  ;;  %v1350_v32 = vld [vmem:[%s7337_s5 + $0xa60] sm:$0xff]  ;;  %v3502_v26 = vpack.c.bf16 %v1495_v13, %v1479_v12  ;;  %v5697_v3 = vld [vmem:[%s7336_s4 + $0x1c8] sm:$0xff] }
  0xe4   : > { %3531 = vmatprep.subr.bf16.mxu1 %v3530_v37  ;;  %v1368_v37 = vld [vmem:[%s7337_s5 + $0xaf0] sm:$0xff]  ;;  %v3488_v42 = vpack.c.bf16 %v1366_v33, %v1350_v32  ;;  %v3566_v33 = vpack.c.bf16 %v1497_v15, %v1481_v14 }
  0xe5   : > { %v5555_v32 = vld [vmem:[%s7337_s5 + $0xff0] sm:$0xff] }
  0xe6   : > { %3469 = vmatpush1.bf16.msra.mxu0 %v3468_v43  ;;  %v3552_v43 = vpack.c.bf16 %v1368_v37, %v1352_v34  ;;  %v5560_v34 = vld [vmem:[%s7336_s4 + $0x8] sm:$0xff]  ;;  %v5570_v37 = vld [vmem:[%s7336_s4 + $0x18] sm:$0xff] }
  0xe7   : > { %3533 = vmatpush1.bf16.msra.mxu1 %v3532_v44  ;;  %3471 = vmatprep.subr.bf16.mxu0 %v3470_v45  ;;  %v3490_v44 = vpack.c.bf16 %v1399_v39, %v1383_v38  ;;  %v1382_v45 = vld [vmem:[%s7337_s5 + $0xb60] sm:$0xff]  ;;  %v5575_v38 = vld [vmem:[%s7336_s4 + $0x58] sm:$0xff] }
  0xe8   : > { %3535 = vmatprep.subr.bf16.mxu1 %v3534_v49  ;;  %v1400_v49 = vld [vmem:[%s7337_s5 + $0xbf0] sm:$0xff]  ;;  %v3492_v56 = vpack.c.bf16 %v1398_v46, %v1382_v45  ;;  %v5580_v39 = vld [vmem:[%s7336_s4] sm:$0xff]  ;;  %v5610_v45 = vld [vmem:[%s7336_s4 + $0x98] sm:$0xff]  ;;  %v3638_v13 = vpack.c.bf16 %v5575_v38, %v5570_v37  ;;  %v5802_v37 = vpop.permute.xlu1 %767 }
  0xe9   : > { %v5615_v46 = vld [vmem:[%s7336_s4 + $0xd8] sm:$0xff]  ;;  %v3576_v14 = vpack.c.bf16 %v5585_v40, %v5580_v39  ;;  %v5829_v40 = vld [vmem:[%s7336_s4 + $0x210] sm:$0xff]  ;;  %v5843_v39 = vld [vmem:[%s7339_s7] sm:$0xff] }
  0xea   : > { %3473 = vmatpush1.bf16.msra.mxu0 %v3472_v57  ;;  %v3556_v57 = vpack.c.bf16 %v1400_v49, %v1384_v47  ;;  %v5620_v47 = vld [vmem:[%s7336_s4 + $0x80] sm:$0xff]  ;;  %v5630_v49 = vld [vmem:[%s7336_s4 + $0x90] sm:$0xff]  ;;  %7358 = vst [vmem:[#allocation5_spill] sm:$0xff] %v5829_v40 }
  0xeb   : > { %3537 = vmatpush1.bf16.msra.mxu1 %v3536_v59  ;;  %3475 = vmatprep.subr.bf16.mxu0 %v3474_v60  ;;  %v3494_v59 = vpack.c.bf16 %v1431_v52, %v1415_v50  ;;  %v1414_v60 = vld [vmem:[%s7337_s5 + $0xc60] sm:$0xff]  ;;  %v5635_v50 = vld [vmem:[%s7336_s4 + $0xd0] sm:$0xff] }
  0xec   : > { %3539 = vmatprep.subr.bf16.mxu1 %v3538_v63  ;;  %v1432_v63 = vld [vmem:[%s7337_s5 + $0xcf0] sm:$0xff]  ;;  %v3496_v4 = vpack.c.bf16 %v1430_v61, %v1414_v60  ;;  %v5667_v60 = vld [vmem:[%s7336_s4 + $0x140] sm:$0xff] }
  0xed   : > { %v5834_v38 = vld [vmem:[%s7336_s4 + $0x250] sm:$0xff]  ;;  %v5886_v40 = vld [vmem:[%s5856_s18] sm:$0xff] }
  0xee   : > { %3477 = vmatpush1.bf16.msra.mxu0 %v3476_v5  ;;  %v1446_v5 = vld [vmem:[%s7337_s5 + $0xd60] sm:$0xff] }
  0xef   : > { %3541 = vmatpush1.bf16.msra.mxu1 %v3540_v6  ;;  %3479 = vmatprep.subr.bf16.mxu0 %v3478_v7  ;;  %v374_v6 = vlaneseq  ;;  %v3560_v7 = vpack.c.bf16 %v1432_v63, %v1416_v17 }
  0xf0   : > { %3543 = vmatprep.subr.bf16.mxu1 %v3542_v10  ;;  %v1464_v10 = vld [vmem:[%s7337_s5 + $0xdf0] sm:$0xff] }
  0xf1   : > { %v5525_v24 = vshrl.u32 %v374_v6, 7  ;;  %v3564_v25 = vpack.c.bf16 %v1464_v10, %v1448_v9  ;;  %v3570_v6 = vpack.c.bf16 %v5535_v28, %v5530_v27  ;;  %v5719_v9 = vld [vmem:[%s7336_s4 + $0x1d8] sm:$0xff]  ;;  %v5724_v10 = vld [vmem:[%s7336_s4 + $0x180] sm:$0xff] }
  0xf2   : > { %3481 = vmatpush1.bf16.msra.mxu0 %v3480_v16  ;;  %v5498_v16 = vld [vmem:[%s7337_s5 + $0xe60] sm:$0xff] }
  0xf3   : > { %3545 = vmatpush1.bf16.msra.mxu1 %v3544_v18  ;;  %3483 = vmatprep.subr.bf16.mxu0 %v3482_v19  ;;  %v5503_v18 = vld [vmem:[%s7337_s5 + $0xee0] sm:$0xff]  ;;  %v3500_v19 = vpack.c.bf16 %v1462_v8, %v1446_v5  ;;  %7355 = vst [vmem:[#allocation2_spill] sm:$0xff] %v5525_v24  ;;  %v5670_v61 = vsub.s32 0, %v5525_v24  ;;  %v5673_v17 = vsub.s32 1, %v5525_v24  ;;  %v5703_v5 = vsub.s32 5, %v5525_v24  ;;  %v5714_v8 = vld [vmem:[%s7336_s4 + $0x198] sm:$0xff] }
  0xf4   : > { %3547 = vmatprep.subr.bf16.mxu1 %v3546_v23  ;;  %v5523_v23 = vld [vmem:[%s7337_s5 + $0xfe8] sm:$0xff]  ;;  %v3504_v52 = vpack.c.bf16 %v5503_v18, %v5498_v16  ;;  %v5740_v16 = vld [vmem:[%s7336_s4 + $0x1c0] sm:$0xff]  ;;  %v5745_v18 = vld [vmem:[%s7336_s4 + $0x190] sm:$0xff] }
  0xf5   : > { %v3506_v63 = vpack.c.bf16 %v5523_v23, %v5518_v21  ;;  %7357 = vst [vmem:[#allocation4_spill] sm:$0xff] %v5703_v5  ;;  %v5773_v27 = vld [vmem:[%s7333_s1] sm:$0x77] }
  0xf6   : > { %3485 = vmatpush1.bf16.msra.mxu0 %v3484_v29  ;;  %v5540_v29 = vld [vmem:[%s7337_s5 + $0xf60] sm:$0xff]  ;;  %v565_v21 = vrot.slane %v5773_v27, %v5703_v5 }
  0xf7   : > { %3549 = vmatpush1.bf16.msra.mxu1 %v3548_v30  ;;  %3487 = vmatprep.subr.bf16.mxu0 %v3486_v31  ;;  %v5545_v30 = vld [vmem:[%s7337_s5 + $0xfe0] sm:$0xff]  ;;  %v5550_v31 = vld [vmem:[%s7337_s5 + $0xf70] sm:$0xff] }
  0xf8   : > { %3551 = vmatprep.subr.bf16.mxu1 %v3550_v35  ;;  %v5565_v35 = vld [vmem:[%s7336_s4 + $0x48] sm:$0xff] }
  0xf9   : > { %v3574_v12 = vpack.c.bf16 %v5565_v35, %v5560_v34  ;;  %v5797_v34 = vsub.s32 6, %v5525_v24  ;;  %v377_v35 = vrot.slane %v5773_v27, %v5670_v61 }
  0xfa   : > { %3489 = vmatpush1.bf16.msra.mxu0 %v3488_v42  ;;  %v5595_v42 = vld [vmem:[%s7336_s4 + $0x50] sm:$0xff] }
  0xfb   : > { %3553 = vmatpush1.bf16.msra.mxu1 %v3552_v43  ;;  %3491 = vmatprep.subr.bf16.mxu0 %v3490_v44  ;;  %v5600_v43 = vld [vmem:[%s7336_s4 + $0x88] sm:$0xff]  ;;  %v5876_v15 = vrot.slane %v377_v35, %v5670_v61 }
  0xfc   : > { %3555 = vmatprep.subr.bf16.mxu1 %v3554_v48  ;;  %v5605_v44 = vld [vmem:[%s7336_s4 + $0xc8] sm:$0xff]  ;;  %v5625_v48 = vld [vmem:[%s7336_s4 + $0xc0] sm:$0xff] }
  0xfe   : > { %3493 = vmatpush1.bf16.msra.mxu0 %v3492_v56  ;;  %v5652_v56 = vld [vmem:[%s7336_s4 + $0x118] sm:$0xff] }
  0xff   : > { %3557 = vmatpush1.bf16.msra.mxu1 %v3556_v57  ;;  %3495 = vmatprep.subr.bf16.mxu0 %v3494_v59  ;;  %v5657_v57 = vld [vmem:[%s7336_s4 + $0x158] sm:$0xff]  ;;  %v5662_v59 = vld [vmem:[%s7336_s4 + $0x100] sm:$0xff] }
 0x100   : > { %3559 = vmatprep.subr.bf16.mxu1 %v3558_v62  ;;  %v3568_v62 = vpack.c.bf16 %v5513_v51, %v5508_v20 }
 0x102   : > { %3497 = vmatpush1.bf16.msra.mxu0 %v3496_v4  ;;  %v5700_v4 = vsub.s32 4, %v5525_v24 }
 0x103   : > { %3561 = vmatpush1.bf16.msra.mxu1 %v3560_v7  ;;  %3499 = vmatprep.subr.bf16.mxu0 %v3498_v36  ;;  %v3508_v7 = vpack.c.bf16 %v5545_v30, %v5540_v29  ;;  %v3572_v36 = vpack.c.bf16 %v5555_v32, %v5550_v31  ;;  %v5784_v31 = vld [vmem:[%s7336_s4 + $0x218] sm:$0xff]  ;;  %v561_v30 = vrot.slane %v5773_v27, %v5673_v17 }
 0x104   : > { %3563 = vmatprep.subr.bf16.mxu1 %v3562_v11  ;;  %7356 = vst [vmem:[#allocation3_spill] sm:$0xff] %v5700_v4  ;;  %v5727_v11 = vsub.s32 2, %v5525_v24  ;;  %v5789_v32 = vld [vmem:[%s7336_s4 + $0x258] sm:$0xff] }
 0x106   : > { %3501 = vmatpush1.bf16.msra.mxu0 %v3500_v19  ;;  %v5750_v19 = vld [vmem:[%s7336_s4 + $0x1d0] sm:$0xff]  ;;  %v777_v29 = vrot.slane %v5773_v27, %v5727_v11 }
 0x107   : > { %3565 = vmatpush1.bf16.msra.mxu1 %v3564_v25  ;;  %3503 = vmatprep.subr.bf16.mxu0 %v3502_v26  ;;  %v5763_v25 = vld [vmem:[%s7336_s4 + $0x208] sm:$0xff] }
 0x108   : > { %3567 = vmatprep.subr.bf16.mxu1 %v3566_v33  ;;  %v5768_v26 = vld [vmem:[%s7336_s4 + $0x248] sm:$0xff] }
 0x109   : > { %v5794_v33 = vld [vmem:[%s7333_s1 + $0x8] sm:$0x77] }
 0x10a   : > { %3505 = vmatpush1.bf16.msra.mxu0 %v3504_v52  ;;  %v5813_v52 = vld [vmem:[%s7336_s4 + $0x200] sm:$0xff]  ;;  %v385_v28 = vrot.slane %v5794_v33, %v5670_v61  ;;  %v569_v23 = vrot.slane %v5794_v33, %v5673_v17  ;;  %v389_v51 = vrot.slane %v5794_v33, %v5700_v4  ;;  %v573_v20 = vrot.slane %v5794_v33, %v5703_v5 }
 0x10b   : > { %3569 = vmatpush1.bf16.msra.mxu1 %v3568_v62  ;;  %3507 = vmatprep.subr.bf16.mxu0 %v3506_v63  ;;  %v5818_v62 = vld [vmem:[%s7336_s4 + $0x240] sm:$0xff]  ;;  %v5820_v63 = vpop.permute.xlu0 %358 }
 0x10c   : > { %3571 = vmatprep.subr.bf16.mxu1 %v3570_v6  ;;  %v381_v6 = vrot.slane %v5773_v27, %v5700_v4  ;;  %v465_v35 = vrot.slane %v385_v28, %v5670_v61  ;;  %v7360_v4 = vpack.c.bf16 %v5595_v42, %v5590_v41  ;;  %v789_v42 = vrot.slane %v5794_v33, %v5797_v34 }
 0x10d   : > { %v5921_v28 = vcombine.high %v5886_v40, %v5886_v40 }
 0x10e   : > { %3509 = vmatpush1.bf16.msra.mxu0 %v3508_v7  ;;  %v785_v7 = vrot.slane %v5794_v33, %v5727_v11  ;;  %v7364_v33 = vpack.c.bf16 %v5625_v48, %v5620_v47  ;;  %v7365_v47 = vpack.c.bf16 %v5635_v50, %v5630_v49  ;;  %v7366_v48 = vpack.c.bf16 %v5647_v55, %v5642_v54 }
 0x10f   : > { %3573 = vmatpush1.bf16.msra.mxu1 %v3572_v36  ;;  %3575 = vmatprep.subr.bf16.mxu0 %v3574_v12  ;;  %v5870_v36 = vrot.slane %v5843_v39, %v5670_v61  ;;  %v781_v12 = vrot.slane %v5773_v27, %v5797_v34  ;;  %v5889_v27 = vpop.permute.xlu1 %363  ;;  %v5900_v5 = vpop.permute.xlu0 %551  ;;  %v5968_v49 = vrot.slane %v5843_v39, %v5673_v17 }
 0x110   : > { %3639 = vmatprep.subr.bf16.mxu1 %v3638_v13  ;;  %v5879_v13 = vrot.slane %v561_v30, %v5673_v17  ;;  %v649_v30 = vrot.slane %v569_v23, %v5673_v17  ;;  %v7361_v23 = vpack.c.bf16 %v5605_v44, %v5600_v43  ;;  %v518_v43 = vmul.f32 %v5876_v15, %v5820_v63 }
 0x111   : > { %7359 = vst [vmem:[#allocation6_spill] sm:$0xff] %v5870_v36  ;;  %2141 = vmatmul.mubr.f32.vlgmr.msra.gmra.mrb[12].mxu0 %v5186_v53  ;;  %v5892_v36 = vrot.slane %v777_v29, %v5727_v11  ;;  %v645_v29 = vrot.slane %v565_v21, %v5673_v17  ;;  %v5912_v41 = vrot.slane %v781_v12, %v5727_v11 }
 0x112   : > { %2218 = vmatmul.mubr.f32.vlgmr.msra.gmra.mrb[12].mxu1 %v5186_v53  ;;  %3577 = vmatpush1.bf16.msra.mxu0 %v3576_v14  ;;  %v5903_v53 = vrot.slane %v785_v7, %v5727_v11  ;;  %v461_v14 = vrot.slane %v381_v6, %v5670_v61  ;;  %v469_v44 = vrot.slane %v389_v51, %v5670_v61 }
 0x113   : > { %3641 = vmatpush1.bf16.msra.mxu1 %v7360_v4  ;;  %2146 = vmatprep.mubr.f32.mxu0 %v5197_v58  ;;  %v5917_v4 = vsub.s32 3, %v5525_v24  ;;  %v653_v21 = vrot.slane %v573_v20, %v5673_v17  ;;  %v702_v6 = vmul.f32 %v5879_v13, %v5900_v5  ;;  %v520_v7 = vmul.f32 %v465_v35, %v5820_v63  ;;  %v5995_v24 = vld [vmem:[%s7336_s4 + $0x298] sm:$0xff] }
 0x114   : > { %2223 = vmatprep.mubr.f32.mxu1 %v5197_v58  ;;  %3579 = vmatprep.subr.bf16.mxu0 %v7361_v23  ;;  %v7363_v58 = vpack.c.bf16 %v5615_v46, %v5610_v45  ;;  %v704_v45 = vmul.f32 %v649_v30, %v5900_v5  ;;  %v5942_v46 = vld [vmem:[%s7336_s4 + $0x288] sm:$0xff]  ;;  %v5957_v20 = vrot.slane %v5843_v39, %v5727_v11 }
 0x115   : > { %7362 = vst [vmem:[#allocation7_spill] sm:$0xff] %v5917_v4  ;;  %2147 = vmatmul.mubr.f32.gmra.mrb[14].mxu0 %v5220_v2  ;;  %v519_v51 = vmul.f32 %v461_v14, %v5820_v63  ;;  %v703_v12 = vmul.f32 %v645_v29, %v5900_v5  ;;  %v7367_v23 = vpack.c.bf16 %v5657_v57, %v5652_v56 }
 0x116   : > { %3643 = vmatprep.subr.bf16.mxu1 %v7363_v58  ;;  %2224 = vmatmul.mubr.f32.gmra.mrb[14].mxu1 %v5220_v2  ;;  %v5947_v2 = vld [vmem:[%s7336_s4 + $0x2c8] sm:$0xff]  ;;  %v5964_v58 = vpop.permute.xlu1 %555  ;;  %v5971_v50 = vrot.slane %v789_v42, %v5727_v11  ;;  %v5975_v54 = vrot.slane %v5843_v39, %v5917_v4  ;;  %v918_v55 = vmul.f32 %v5892_v36, %v5802_v37 }
 0x117   : > { %3581 = vmatpush1.bf16.msra.mxu0 %v7364_v33  ;;  %3645 = vmatpush1.bf16.msra.mxu1 %v7365_v47  ;;  %v521_v56 = vmul.f32 %v469_v44, %v5820_v63  ;;  %v705_v57 = vmul.f32 %v653_v21, %v5900_v5  ;;  %v7368_v42 = vpack.c.bf16 %v5667_v60, %v5662_v59 }
 0x118   : > { %3583 = vmatprep.subr.bf16.mxu0 %v7366_v48  ;;  %3647 = vmatprep.subr.bf16.mxu1 %v7367_v23  ;;  %v734_v47 = vadd.f32 %v702_v6, %v518_v43  ;;  %v736_v48 = vadd.f32 %v704_v45, %v520_v7  ;;  %v920_v23 = vmul.f32 %v5903_v53, %v5802_v37  ;;  %v6006_v43 = vld [vmem:[%s7336_s4 + $0x2d8] sm:$0xff]  ;;  %v6011_v6 = vld [vmem:[%s7336_s4 + $0x280] sm:$0xff]  ;;  %v6025_v7 = vpop.permute.xlu0 %771  ;;  %v6030_v45 = vld [vmem:[%s7336_s4 + $0x290] sm:$0xff] }
 0x119   : > { %2716 = vmatprep.mubr.f32.mxu0 %v5921_v28  ;;  %2787 = vmatprep.mubr.f32.mxu1 %v5921_v28  ;;  %v919_v4 = vmul.f32 %v5912_v41, %v5802_v37  ;;  %v7369_v33 = vpack.c.bf16 %v5687_v22, %v5682_v0  ;;  %v7370_v59 = vpack.c.bf16 %v5697_v3, %v5692_v1  ;;  %v6016_v0 = vld [vmem:[%s7336_s4 + $0x2c0] sm:$0xff] }
 0x11a   : > { %v735_v60 = vadd.f32 %v703_v12, %v519_v51  ;;  %v534_v22 = vmul.f32 %v5876_v15, %v5889_v27  ;;  %v718_v1 = vmul.f32 %v5879_v13, %v5964_v58  ;;  %v7371_v3 = vpack.c.bf16 %v5719_v9, %v5714_v8  ;;  %v6035_v51 = vld [vmem:[%s7336_s4 + $0x2d0] sm:$0xff] }
 0x11b   : > { %3585 = vmatpush1.bf16.msra.mxu0 %v7368_v42  ;;  %3649 = vmatpush1.bf16.msra.mxu1 %v7369_v33  ;;  %v536_v15 = vmul.f32 %v465_v35, %v5889_v27  ;;  %v720_v13 = vmul.f32 %v649_v30, %v5964_v58  ;;  %v535_v12 = vmul.f32 %v461_v14, %v5889_v27  ;;  %v6053_v35 = vld [vmem:[%s7336_s4 + $0x348] sm:$0xff]  ;;  %v6058_v30 = vld [vmem:[%s7336_s4 + $0x318] sm:$0xff] }
 0x11c   : > { %3587 = vmatprep.subr.bf16.mxu0 %v7370_v59  ;;  %3651 = vmatprep.subr.bf16.mxu1 %v7371_v3  ;;  %v719_v8 = vmul.f32 %v645_v29, %v5964_v58  ;;  %v737_v9 = vadd.f32 %v705_v57, %v521_v56  ;;  %v921_v33 = vmul.f32 %v5971_v50, %v5802_v37  ;;  %v6048_v3 = vld [vmem:[%s7336_s4 + $0x308] sm:$0xff]  ;;  %v6074_v57 = vld [vmem:[%s7336_s4 + $0x358] sm:$0xff] }
 0x11d   : > { %v537_v42 = vmul.f32 %v469_v44, %v5889_v27  ;;  %v721_v59 = vmul.f32 %v653_v21, %v5964_v58  ;;  %v7372_v14 = vpack.c.bf16 %v5740_v16, %v5724_v10  ;;  %v6063_v29 = vadd.f32 %v918_v55, %v734_v47  ;;  %v6079_v10 = vld [vmem:[%s7336_s4 + $0x300] sm:$0xff] }
 0x11e   : > { %v6065_v44 = vadd.f32 %v920_v23, %v736_v48  ;;  %v3658_v21 = vpack.c.bf16 %v6006_v43, %v5995_v24  ;;  %v3596_v56 = vpack.c.bf16 %v6016_v0, %v6011_v6  ;;  %v6084_v16 = vld [vmem:[%s7336_s4 + $0x340] sm:$0xff]  ;;  %v7373_v24 = vpack.c.bf16 %v5750_v19, %v5745_v18  ;;  %v6099_v43 = vld [vmem:[%s7336_s4 + $0x310] sm:$0xff]  ;;  %v6109_v19 = vld [vmem:[%s7336_s4 + $0x388] sm:$0xff] }
 0x11f   : > { %3589 = vmatpush1.bf16.msra.mxu0 %v7372_v14  ;;  %v7374_v55 = vpack.c.bf16 %v5768_v26, %v5763_v25  ;;  %v6092_v47 = vadd.f32 %v919_v4, %v735_v60  ;;  %v750_v48 = vadd.f32 %v718_v1, %v534_v22  ;;  %v934_v23 = vmul.f32 %v5892_v36, %v6025_v7  ;;  %v6104_v18 = vld [vmem:[%s7336_s4 + $0x350] sm:$0xff]  ;;  %v6121_v6 = vld [vmem:[%s7336_s4 + $0x3c8] sm:$0xff]  ;;  %v6126_v0 = vld [vmem:[%s7336_s4 + $0x398] sm:$0xff] }
 0x120   : > { %3653 = vmatpush1.bf16.msra.mxu1 %v7373_v24  ;;  %v7375_v25 = vpack.c.bf16 %v5789_v32, %v5784_v31  ;;  %v752_v26 = vadd.f32 %v720_v13, %v536_v15  ;;  %v936_v36 = vmul.f32 %v5903_v53, %v6025_v7  ;;  %v751_v4 = vadd.f32 %v719_v8, %v535_v12  ;;  %v6131_v31 = vld [vmem:[%s7336_s4 + $0x3d8] sm:$0xff]  ;;  %v7380_v24 = vld [vmem:[#allocation6_spill] sm:$0xff] }
 0x121   : > { %3591 = vmatprep.subr.bf16.mxu0 %v7374_v55  ;;  %v935_v60 = vmul.f32 %v5912_v41, %v6025_v7  ;;  %v953_v32 = vadd.f32 %v921_v33, %v737_v9  ;;  %v3660_v53 = vpack.c.bf16 %v6035_v51, %v6030_v45  ;;  %v753_v41 = vadd.f32 %v721_v59, %v537_v42  ;;  %v7377_v51 = vld [vmem:[#allocation5_spill] sm:$0xff] }
 0x122   : > { %3655 = vmatprep.subr.bf16.mxu1 %v7375_v25  ;;  %v937_v22 = vmul.f32 %v5971_v50, %v6025_v7  ;;  %v7376_v1 = vpack.c.bf16 %v5818_v62, %v5813_v52  ;;  %v3598_v15 = vpack.c.bf16 %v6053_v35, %v6048_v3  ;;  %v3662_v13 = vpack.c.bf16 %v6074_v57, %v6058_v30  ;;  %v6151_v50 = vld [vmem:[%s7336_s4 + $0x380] sm:$0xff]  ;;  %v6161_v62 = vld [vmem:[%s7336_s4 + $0x390] sm:$0xff] }
 0x123   : > { %v3600_v12 = vpack.c.bf16 %v6084_v16, %v6079_v10  ;;  %v3664_v45 = vpack.c.bf16 %v6104_v18, %v6099_v43  ;;  %v6156_v52 = vld [vmem:[%s7336_s4 + $0x3c0] sm:$0xff]  ;;  %v7378_v8 = vpack.c.bf16 %v5834_v38, %v7377_v51  ;;  %v982_v9 = vmax.f32 %v6063_v29, 0.0  ;;  %v6177_v35 = vld [vmem:[%s7336_s4 + $0x3d0] sm:$0xff]  ;;  %v6182_v38 = vld [vmem:[%s7336_s4 + $0x408] sm:$0xff] }
 0x124   : > { %3593 = vmatpush1.bf16.msra.mxu0 %v7376_v1  ;;  %v7379_v33 = vpack.c.bf16 %v5947_v2, %v5942_v46  ;;  %v966_v42 = vadd.f32 %v934_v23, %v750_v48  ;;  %v3602_v59 = vpack.c.bf16 %v6121_v6, %v6109_v19  ;;  %v3666_v3 = vpack.c.bf16 %v6131_v31, %v6126_v0  ;;  %v6187_v46 = vld [vmem:[%s7336_s4 + $0x448] sm:$0xff]  ;;  %v1680_v2 = vpop.f32.mrb[0].mxu0  ;;  %v6194_v10 = vld [vmem:[%s7336_s4 + $0x418] sm:$0xff] }
 0x125   : > { %3657 = vmatpush1.bf16.msra.mxu1 %v7378_v8  ;;  %v984_v30 = vmax.f32 %v6065_v44, 0.0  ;;  %v983_v14 = vmax.f32 %v6092_v47, 0.0  ;;  %v968_v29 = vadd.f32 %v936_v36, %v752_v26  ;;  %v967_v57 = vadd.f32 %v935_v60, %v751_v4  ;;  %v6199_v16 = vld [vmem:[%s7336_s4 + $0x458] sm:$0xff]  ;;  %v1757_v48 = vpop.f32.mrb[0].mxu1  ;;  %v1682_v23 = vpop.f32.mrb[1].mxu0 }
 0x126   : > { %3595 = vmatprep.subr.bf16.mxu0 %v7379_v33  ;;  %3659 = vmatprep.subr.bf16.mxu1 %v3658_v21  ;;  %v1681_v55 = vadd.f32 %v1680_v2, %v7380_v24  ;;  %v985_v44 = vmax.f32 %v953_v32, 0.0  ;;  %v969_v43 = vadd.f32 %v937_v22, %v753_v41  ;;  %v3604_v21 = vpack.c.bf16 %v6156_v52, %v6151_v50  ;;  %v1759_v19 = vpop.f32.mrb[1].mxu1 }
 0x127   : > { %v1758_v47 = vadd.f32 %v1757_v48, %v5957_v20  ;;  %v1683_v18 = vadd.f32 %v1682_v23, %v5968_v49  ;;  %v3668_v25 = vpack.c.bf16 %v6177_v35, %v6161_v62  ;;  %v3606_v26 = vpack.c.bf16 %v6187_v46, %v6182_v38  ;;  %v2479_v46 = vld [vmem:[%s7336_s4 + $0x400] sm:$0xff] }
 0x128   : > { %3597 = vmatpush1.bf16.msra.mxu0 %v3596_v56  ;;  %v2230_v36 = vmul.f32 %v1681_v55, %v982_v9  ;;  %v1760_v4 = vadd.f32 %v1759_v19, %v5975_v54  ;;  %v998_v60 = vmax.f32 %v966_v42, 0.0  ;;  %v3670_v6 = vpack.c.bf16 %v6199_v16, %v6194_v10  ;;  %v1686_v32 = vpop.f32.mrb[2].mxu0  ;;  %v2506_v16 = vld [vmem:[%s7336_s4 + $0x4d8] sm:$0xff]  ;;  %v6646_v55 = vld [vmem:[%s7336_s4 + $0x1b0] sm:$0xff] }
 0x129   : > { %3661 = vmatpush1.bf16.msra.mxu1 %v3660_v53  ;;  %3599 = vmatprep.subr.bf16.mxu0 %v3598_v15  ;;  %v2232_v0 = vmul.f32 %v1758_v47, %v984_v30  ;;  %v2231_v31 = vmul.f32 %v1683_v18, %v983_v14  ;;  %v1000_v41 = vmax.f32 %v968_v29, 0.0  ;;  %v999_v56 = vmax.f32 %v967_v57, 0.0  ;;  %v1763_v52 = vpop.f32.mrb[2].mxu1  ;;  %v1688_v62 = vpop.f32.mrb[3].mxu0  ;;  %v2504_v14 = vld [vmem:[%s7336_s4 + $0x4c8] sm:$0xff]  ;;  %v2495_v47 = vld [vmem:[%s7336_s4 + $0x480] sm:$0xff] }
 0x12a   : > { %3663 = vmatprep.subr.bf16.mxu1 %v3662_v13  ;;  %v2278_v22 = vrot.slane %v2230_v36, 4  ;;  %v2233_v1 = vmul.f32 %v1760_v4, %v985_v44  ;;  %v1687_v50 = vadd.f32 %v1686_v32, %v7380_v24  ;;  %v1001_v51 = vmax.f32 %v969_v43, 0.0  ;;  %v1765_v33 = vpop.f32.mrb[3].mxu1  ;;  %v2503_v18 = vld [vmem:[%s7336_s4 + $0x4c0] sm:$0xff]  ;;  %v2514_v4 = vld [vmem:[%s7336_s4 + $0x518] sm:$0xff]  ;;  %v6651_v24 = vld [vmem:[%s7336_s4 + $0x1f0] sm:$0xff] }
 0x12b   : > { %v2280_v8 = vrot.slane %v2232_v0, 4  ;;  %v2279_v53 = vrot.slane %v2231_v31, 4  ;;  %v1764_v15 = vadd.f32 %v1763_v52, %v5957_v20  ;;  %v1689_v9 = vadd.f32 %v1688_v62, %v5968_v49  ;;  %v2487_v20 = vld [vmem:[%s7336_s4 + $0x440] sm:$0xff]  ;;  %v2481_v49 = vld [vmem:[%s7336_s4 + $0x410] sm:$0xff]  ;;  %v2536_v52 = vld [vmem:[%s7336_s4 + $0x5c8] sm:$0xff] }
 0x12c   : > { %3601 = vmatpush1.bf16.msra.mxu0 %v3600_v12  ;;  %v6216_v42 = vmax.f32 %v2230_v36, %v2278_v22  ;;  %v2281_v35 = vrot.slane %v2233_v1, 4  ;;  %v6218_v38 = vmul.f32 %v1687_v50, %v998_v60  ;;  %v1766_v13 = vadd.f32 %v1765_v33, %v5975_v54  ;;  %v2520_v36 = vld [vmem:[%s7336_s4 + $0x548] sm:$0xff]  ;;  %v2522_v60 = vld [vmem:[%s7336_s4 + $0x558] sm:$0xff]  ;;  %v2511_v32 = vld [vmem:[%s7336_s4 + $0x500] sm:$0xff] }
 0x12d   : > { %3665 = vmatpush1.bf16.msra.mxu1 %v3664_v45  ;;  %3603 = vmatprep.subr.bf16.mxu0 %v3602_v59  ;;  %v6230_v12 = vmax.f32 %v2232_v0, %v2280_v8  ;;  %v6232_v2 = vmax.f32 %v2231_v31, %v2279_v53  ;;  %v6234_v30 = vmul.f32 %v1764_v15, %v1000_v41  ;;  %v2489_v45 = vld [vmem:[%s7336_s4 + $0x450] sm:$0xff]  ;;  %v2496_v59 = vld [vmem:[%s7336_s4 + $0x488] sm:$0xff]  ;;  %v2519_v41 = vld [vmem:[%s7336_s4 + $0x540] sm:$0xff] }
 0x12e   : > { %v6236_v54 = vmul.f32 %v1689_v9, %v999_v56  ;;  %3667 = vmatprep.subr.bf16.mxu1 %v3666_v3  ;;  %v6247_v29 = vmax.f32 %v2233_v1, %v2281_v35  ;;  %v6251_v10 = vmul.f32 %v1766_v13, %v1001_v51  ;;  %v2498_v3 = vld [vmem:[%s7336_s4 + $0x498] sm:$0xff]  ;;  %v3608_v48 = vpack.c.bf16 %v2487_v20, %v2479_v46  ;;  %v2513_v56 = vld [vmem:[%s7336_s4 + $0x510] sm:$0xff]  ;;  %v2528_v50 = vld [vmem:[%s7336_s4 + $0x588] sm:$0xff] }
 0x12f   : > { %7381 = vst [vmem:[#allocation5_spill] sm:$0xff] %v6232_v2  ;;  %v3672_v44 = vpack.c.bf16 %v2489_v45, %v2481_v49  ;;  %v3610_v43 = vpack.c.bf16 %v2504_v14, %v2496_v59  ;;  %v3674_v19 = vpack.c.bf16 %v2506_v16, %v2498_v3  ;;  %v3678_v22 = vpack.c.bf16 %v2522_v60, %v2514_v4  ;;  %v2521_v1 = vld [vmem:[%s7336_s4 + $0x550] sm:$0xff]  ;;  %v2530_v62 = vld [vmem:[%s7336_s4 + $0x598] sm:$0xff]  ;;  %v2527_v9 = vld [vmem:[%s7336_s4 + $0x580] sm:$0xff] }
 0x130   : > { %7382 = vst [vmem:[#allocation6_spill] sm:$0xff] %v6236_v54  ;;  %7383 = vst [vmem:[#allocation8_spill] sm:$0xff] %v6247_v29  ;;  %3605 = vmatpush1.bf16.msra.mxu0 %v3604_v21  ;;  %v2497_v21 = vld [vmem:[%s7336_s4 + $0x490] sm:$0xff]  ;;  %v2538_v51 = vld [vmem:[%s7336_s4 + $0x5d8] sm:$0xff]  ;;  %v3616_v8 = vpack.c.bf16 %v2519_v41, %v2511_v32  ;;  %v3680_v53 = vpack.c.bf16 %v2521_v1, %v2513_v56  ;;  %v3618_v15 = vpack.c.bf16 %v2536_v52, %v2528_v50 }
 0x131   : > { %7384 = vst [vmem:[#allocation9_spill] sm:$0xff] %v6251_v10  ;;  %3669 = vmatpush1.bf16.msra.mxu1 %v3668_v25  ;;  %3607 = vmatprep.subr.bf16.mxu0 %v3606_v26  ;;  %v2505_v25 = vld [vmem:[%s7336_s4 + $0x4d0] sm:$0xff]  ;;  %v2512_v26 = vld [vmem:[%s7336_s4 + $0x508] sm:$0xff]  ;;  %v2535_v33 = vld [vmem:[%s7336_s4 + $0x5c0] sm:$0xff]  ;;  %v3682_v13 = vpack.c.bf16 %v2538_v51, %v2530_v62 }
 0x132   : > { %3671 = vmatprep.subr.bf16.mxu1 %v3670_v6  ;;  %v3612_v6 = vpack.c.bf16 %v2503_v18, %v2495_v47  ;;  %v3676_v0 = vpack.c.bf16 %v2505_v25, %v2497_v21  ;;  %v3614_v31 = vpack.c.bf16 %v2520_v36, %v2512_v26  ;;  %v2529_v35 = vld [vmem:[%s7336_s4 + $0x590] sm:$0xff]  ;;  %v2544_v20 = vld [vmem:[%s7336_s4 + $0x608] sm:$0xff]  ;;  %v2546_v45 = vld [vmem:[%s7336_s4 + $0x618] sm:$0xff]  ;;  %v3620_v14 = vpack.c.bf16 %v2535_v33, %v2527_v9 }
 0x133   : > { %v2537_v46 = vld [vmem:[%s7336_s4 + $0x5d0] sm:$0xff]  ;;  %v2552_v49 = vld [vmem:[%s7336_s4 + $0x648] sm:$0xff]  ;;  %v2554_v59 = vld [vmem:[%s7336_s4 + $0x658] sm:$0xff] }
 0x134   : > { %3609 = vmatpush1.bf16.msra.mxu0 %v3608_v48  ;;  %v3684_v3 = vpack.c.bf16 %v2537_v46, %v2529_v35  ;;  %v3622_v16 = vpack.c.bf16 %v2552_v49, %v2544_v20  ;;  %v2543_v48 = vld [vmem:[%s7336_s4 + $0x600] sm:$0xff]  ;;  %v3686_v47 = vpack.c.bf16 %v2554_v59, %v2546_v45  ;;  %v2553_v18 = vld [vmem:[%s7336_s4 + $0x650] sm:$0xff]  ;;  %v2560_v21 = vld [vmem:[%s7336_s4 + $0x688] sm:$0xff] }
 0x135   : > { %3673 = vmatpush1.bf16.msra.mxu1 %v3672_v44  ;;  %3611 = vmatprep.subr.bf16.mxu0 %v3610_v43  ;;  %v2551_v44 = vld [vmem:[%s7336_s4 + $0x640] sm:$0xff]  ;;  %v2545_v43 = vld [vmem:[%s7336_s4 + $0x610] sm:$0xff]  ;;  %v2562_v25 = vld [vmem:[%s7336_s4 + $0x698] sm:$0xff] }
 0x136   : > { %3675 = vmatprep.subr.bf16.mxu1 %v3674_v19  ;;  %v2568_v19 = vld [vmem:[%s7336_s4 + $0x6c8] sm:$0xff]  ;;  %v2570_v26 = vld [vmem:[%s7336_s4 + $0x6d8] sm:$0xff]  ;;  %v3624_v36 = vpack.c.bf16 %v2551_v44, %v2543_v48  ;;  %v3688_v4 = vpack.c.bf16 %v2553_v18, %v2545_v43  ;;  %v2569_v41 = vld [vmem:[%s7336_s4 + $0x6d0] sm:$0xff] }
 0x137   : > { %v3626_v60 = vpack.c.bf16 %v2568_v19, %v2560_v21  ;;  %v3690_v32 = vpack.c.bf16 %v2570_v26, %v2562_v25  ;;  %v2576_v56 = vld [vmem:[%s7336_s4 + $0x708] sm:$0xff]  ;;  %v2578_v1 = vld [vmem:[%s7336_s4 + $0x718] sm:$0xff]  ;;  %v2575_v52 = vld [vmem:[%s7336_s4 + $0x700] sm:$0xff] }
 0x138   : > { %3613 = vmatpush1.bf16.msra.mxu0 %v3612_v6  ;;  %v2559_v6 = vld [vmem:[%s7336_s4 + $0x680] sm:$0xff]  ;;  %v2586_v50 = vld [vmem:[%s7336_s4 + $0x758] sm:$0xff]  ;;  %v2592_v33 = vld [vmem:[%s7336_s4 + $0x788] sm:$0xff] }
 0x139   : > { %3677 = vmatpush1.bf16.msra.mxu1 %v3676_v0  ;;  %3615 = vmatprep.subr.bf16.mxu0 %v3614_v31  ;;  %v2567_v0 = vld [vmem:[%s7336_s4 + $0x6c0] sm:$0xff]  ;;  %v2561_v31 = vld [vmem:[%s7336_s4 + $0x690] sm:$0xff]  ;;  %v2600_v35 = vld [vmem:[%s7336_s4 + $0x7c8] sm:$0xff]  ;;  %v3694_v46 = vpack.c.bf16 %v2586_v50, %v2578_v1 }
 0x13a   : > { %3679 = vmatprep.subr.bf16.mxu1 %v3678_v22  ;;  %v2584_v22 = vld [vmem:[%s7336_s4 + $0x748] sm:$0xff]  ;;  %v3628_v62 = vpack.c.bf16 %v2567_v0, %v2559_v6  ;;  %v2583_v51 = vld [vmem:[%s7336_s4 + $0x740] sm:$0xff]  ;;  %v2602_v20 = vld [vmem:[%s7336_s4 + $0x7d8] sm:$0xff] }
 0x13b   : > { %v3630_v9 = vpack.c.bf16 %v2584_v22, %v2576_v56  ;;  %v6412_v49 = vld [vmem:[%s7336_s4 + $0x780] sm:$0xff]  ;;  %v6420_v59 = vld [vmem:[%s7336_s4 + $0x790] sm:$0xff]  ;;  %v6440_v48 = vld [vmem:[%s7336_s4 + $0x38] sm:$0xff]  ;;  %v3632_v18 = vpack.c.bf16 %v2583_v51, %v2575_v52 }
 0x13c   : > { %3617 = vmatpush1.bf16.msra.mxu0 %v3616_v8  ;;  %v2577_v8 = vld [vmem:[%s7336_s4 + $0x710] sm:$0xff]  ;;  %v2599_v45 = vld [vmem:[%s7336_s4 + $0x7c0] sm:$0xff]  ;;  %v6445_v44 = vld [vmem:[%s7336_s4 + $0x78] sm:$0xff] }
 0x13d   : > { %3681 = vmatpush1.bf16.msra.mxu1 %v3680_v53  ;;  %3619 = vmatprep.subr.bf16.mxu0 %v3618_v15  ;;  %v2585_v53 = vld [vmem:[%s7336_s4 + $0x750] sm:$0xff]  ;;  %v3692_v15 = vpack.c.bf16 %v2569_v41, %v2561_v31  ;;  %v6450_v43 = vld [vmem:[%s7336_s4 + $0x20] sm:$0xff]  ;;  %v6470_v25 = vld [vmem:[%s7336_s4 + $0xa8] sm:$0xff]  ;;  %v3636_v1 = vpack.c.bf16 %v2599_v45, %v6412_v49 }
 0x13e   : > { %3683 = vmatprep.subr.bf16.mxu1 %v3682_v13  ;;  %v2594_v13 = vld [vmem:[%s7336_s4 + $0x798] sm:$0xff]  ;;  %v6460_v21 = vld [vmem:[%s7336_s4 + $0x30] sm:$0xff]  ;;  %v6475_v26 = vld [vmem:[%s7336_s4 + $0xe8] sm:$0xff] }
 0x13f   : > { %v6465_v19 = vld [vmem:[%s7336_s4 + $0x70] sm:$0xff]  ;;  %v6485_v6 = vld [vmem:[%s7336_s4 + $0xf8] sm:$0xff]  ;;  %v6490_v0 = vld [vmem:[%s7336_s4 + $0xa0] sm:$0xff]  ;;  %v3706_v49 = vpack.c.bf16 %v6475_v26, %v6470_v25 }
 0x140   : > { %3621 = vmatpush1.bf16.msra.mxu0 %v3620_v14  ;;  %v6425_v14 = vld [vmem:[%s7336_s4 + $0x7d0] sm:$0xff]  ;;  %v6495_v31 = vld [vmem:[%s7336_s4 + $0xe0] sm:$0xff]  ;;  %v6510_v22 = vld [vmem:[%s7336_s4 + $0x128] sm:$0xff] }
 0x141   : > { %3685 = vmatpush1.bf16.msra.mxu1 %v3684_v3  ;;  %3623 = vmatprep.subr.bf16.mxu0 %v3622_v16  ;;  %v6430_v3 = vld [vmem:[%s7336_s4 + $0x28] sm:$0xff]  ;;  %v6500_v41 = vld [vmem:[%s7336_s4 + $0xb0] sm:$0xff]  ;;  %v6521_v52 = vld [vmem:[%s7336_s4 + $0x138] sm:$0xff] }
 0x142   : > { %3687 = vmatprep.subr.bf16.mxu1 %v3686_v47  ;;  %v6435_v16 = vld [vmem:[%s7336_s4 + $0x68] sm:$0xff]  ;;  %v6455_v47 = vld [vmem:[%s7336_s4 + $0x60] sm:$0xff]  ;;  %v6505_v56 = vld [vmem:[%s7336_s4 + $0xf0] sm:$0xff] }
 0x143   : > { %v6516_v50 = vld [vmem:[%s7336_s4 + $0x168] sm:$0xff]  ;;  %v6604_v25 = vld [vmem:[%s7336_s4 + $0x1f8] sm:$0xff]  ;;  %v7387_v29 = vpack.c.bf16 %v6505_v56, %v6500_v41 }
 0x144   : > { %3625 = vmatpush1.bf16.msra.mxu0 %v3624_v36  ;;  %v6480_v36 = vld [vmem:[%s7336_s4 + $0xb8] sm:$0xff]  ;;  %v7385_v51 = vld [vmem:[#allocation3_spill] sm:$0xff] }
 0x145   : > { %3689 = vmatpush1.bf16.msra.mxu1 %v3688_v4  ;;  %3627 = vmatprep.subr.bf16.mxu0 %v3626_v60  ;;  %v3696_v4 = vpack.c.bf16 %v2585_v53, %v2577_v8  ;;  %v3634_v60 = vpack.c.bf16 %v2600_v35, %v2592_v33  ;;  %v6530_v8 = vrot.slane %v5843_v39, %v7385_v51  ;;  %v6543_v35 = vld [vmem:[%s7336_s4 + $0x178] sm:$0xff] }
 0x146   : > { %3691 = vmatprep.subr.bf16.mxu1 %v3690_v32  ;;  %v3698_v32 = vpack.c.bf16 %v2602_v20, %v2594_v13  ;;  %v3700_v53 = vpack.c.bf16 %v6425_v14, %v6420_v59  ;;  %v3704_v33 = vpack.c.bf16 %v6455_v47, %v6450_v43  ;;  %v6548_v13 = vld [vmem:[%s7336_s4 + $0x120] sm:$0xff]  ;;  %v3768_v20 = vpack.c.bf16 %v6465_v19, %v6460_v21  ;;  %v6569_v14 = vld [vmem:[%s7336_s4 + $0x130] sm:$0xff]  ;;  %v6588_v43 = vld [vmem:[%s7336_s4 + $0x1e8] sm:$0xff] }
 0x147   : > { %v3770_v45 = vpack.c.bf16 %v6485_v6, %v6480_v36  ;;  %v6564_v59 = vld [vmem:[%s7336_s4 + $0x160] sm:$0xff]  ;;  %v3710_v21 = vpack.c.bf16 %v6516_v50, %v6510_v22  ;;  %v6599_v19 = vld [vmem:[%s7336_s4 + $0x1b8] sm:$0xff] }
 0x148   : > { %3629 = vmatpush1.bf16.msra.mxu0 %v3628_v62  ;;  %v6526_v62 = vld [vmem:[%s7333_s1 + $0x10] sm:$0x77] }
 0x149   : > { %3693 = vmatpush1.bf16.msra.mxu1 %v3692_v15  ;;  %3631 = vmatprep.subr.bf16.mxu0 %v3630_v9  ;;  %v3702_v15 = vpack.c.bf16 %v6435_v16, %v6430_v3  ;;  %v3766_v9 = vpack.c.bf16 %v6445_v44, %v6440_v48  ;;  %v6574_v3 = vld [vmem:[%s7336_s4 + $0x170] sm:$0xff]  ;;  %v3708_v16 = vpack.c.bf16 %v6495_v31, %v6490_v0  ;;  %v6583_v44 = vld [vmem:[%s7336_s4 + $0x1a8] sm:$0xff] }
 0x14a   : > { %3695 = vmatprep.subr.bf16.mxu1 %v3694_v46  ;;  %v6553_v46 = vld [vmem:[%s7333_s1 + $0x18] sm:$0x77]  ;;  %v393_v47 = vrot.slane %v6526_v62, %v5670_v61  ;;  %v7386_v31 = vld [vmem:[#allocation4_spill] sm:$0xff]  ;;  %v797_v0 = vrot.slane %v6526_v62, %v5797_v34 }
 0x14b   : > { %v401_v26 = vrot.slane %v6553_v46, %v5670_v61  ;;  %v585_v36 = vrot.slane %v6553_v46, %v5673_v17  ;;  %v589_v50 = vrot.slane %v6553_v46, %v7386_v31  ;;  %v805_v6 = vrot.slane %v6553_v46, %v5797_v34 }
 0x14c   : > { %3633 = vmatpush1.bf16.msra.mxu0 %v3632_v18  ;;  %v577_v18 = vrot.slane %v6526_v62, %v5673_v17  ;;  %v877_v48 = vrot.slane %v797_v0, %v5727_v11 }
 0x14d   : > { %3697 = vmatpush1.bf16.msra.mxu1 %v3696_v4  ;;  %3635 = vmatprep.subr.bf16.mxu0 %v3634_v60  ;;  %v397_v4 = vrot.slane %v6526_v62, %v7385_v51  ;;  %v3774_v60 = vpack.c.bf16 %v6543_v35, %v6521_v52  ;;  %v6631_v35 = vld [vmem:[%s7336_s4 + $0x1a0] sm:$0xff]  ;;  %v481_v57 = vrot.slane %v401_v26, %v5670_v61 }
 0x14e   : > { %3699 = vmatprep.subr.bf16.mxu1 %v3698_v32  ;;  %v581_v32 = vrot.slane %v6526_v62, %v7386_v31  ;;  %v657_v23 = vrot.slane %v577_v18, %v5673_v17  ;;  %v801_v18 = vrot.slane %v6553_v46, %v5727_v11  ;;  %v6702_v10 = vrot.slane %v805_v6, %v5727_v11 }
 0x14f   : > { %v477_v52 = vrot.slane %v397_v4, %v5670_v61  ;;  %v669_v4 = vrot.slane %v589_v50, %v5673_v17 }
 0x150   : > { %3637 = vmatpush1.bf16.msra.mxu0 %v3636_v1  ;;  %v405_v1 = vrot.slane %v6553_v46, %v7385_v51  ;;  %v661_v22 = vrot.slane %v581_v32, %v5673_v17  ;;  %v706_v32 = vmul.f32 %v657_v23, %v5900_v5  ;;  %v722_v2 = vmul.f32 %v657_v23, %v5964_v58  ;;  %v2427_v23 = vld [vmem:[%s7336_s4 + $0x260] sm:$0xff] }
 0x151   : > { %3701 = vmatpush1.bf16.msra.mxu1 %v3700_v53  ;;  %3703 = vmatprep.subr.bf16.mxu0 %v3702_v15  ;;  %v6636_v53 = vld [vmem:[%s7336_s4 + $0x1e0] sm:$0xff]  ;;  %v473_v15 = vrot.slane %v393_v47, %v5670_v61  ;;  %v665_v47 = vrot.slane %v585_v36, %v5673_v17 }
 0x152   : > { %3767 = vmatprep.subr.bf16.mxu1 %v3766_v9  ;;  %v793_v9 = vrot.slane %v6526_v62, %v5727_v11  ;;  %v485_v36 = vrot.slane %v405_v1, %v5670_v61  ;;  %v6673_v62 = vld [vmem:[%s7336_s4 + $0x228] sm:$0xff]  ;;  %v524_v1 = vmul.f32 %v481_v57, %v5820_v63  ;;  %v707_v26 = vmul.f32 %v661_v22, %v5900_v5 }
 0x153   : > { %2717 = vmatmul.mubr.f32.vlgmr.msra.gmra.mrb[16].mxu0 %v5886_v40  ;;  %v522_v46 = vmul.f32 %v473_v15, %v5820_v63  ;;  %v708_v50 = vmul.f32 %v665_v47, %v5900_v5  ;;  %v538_v6 = vmul.f32 %v473_v15, %v5889_v27  ;;  %v6733_v15 = vld [vmem:[%s7336_s4 + $0x230] sm:$0xff] }
 0x154   : > { %2788 = vmatmul.mubr.f32.vlgmr.msra.gmra.mrb[16].mxu1 %v5886_v40  ;;  %3705 = vmatpush1.bf16.msra.mxu0 %v3704_v33  ;;  %v6678_v33 = vld [vmem:[%s7336_s4 + $0x268] sm:$0xff]  ;;  %v523_v40 = vmul.f32 %v477_v52, %v5820_v63 }
 0x155   : > { %3769 = vmatpush1.bf16.msra.mxu1 %v3768_v20  ;;  %3707 = vmatprep.subr.bf16.mxu0 %v3706_v49  ;;  %v873_v20 = vrot.slane %v793_v9, %v5727_v11  ;;  %v6686_v49 = vld [vmem:[%s7336_s4 + $0x238] sm:$0xff]  ;;  %v881_v9 = vrot.slane %v801_v18, %v5727_v11  ;;  %v3718_v18 = vpack.c.bf16 %v6678_v33, %v6673_v62  ;;  %v6738_v33 = vld [vmem:[%s7336_s4 + $0x270] sm:$0xff] }
 0x156   : > { %3771 = vmatprep.subr.bf16.mxu1 %v3770_v45  ;;  %2858 = vmatprep.mubr.f32.mxu0 %v5921_v28  ;;  %v6691_v45 = vld [vmem:[%s7336_s4 + $0x278] sm:$0xff]  ;;  %v738_v41 = vadd.f32 %v706_v32, %v522_v46  ;;  %v7388_v62 = vpack.c.bf16 %v6564_v59, %v6548_v13  ;;  %v923_v46 = vmul.f32 %v877_v48, %v5802_v37  ;;  %v7391_v32 = vld [vmem:[#allocation2_spill] sm:$0xff] }
 0x157   : > { %2929 = vmatprep.mubr.f32.mxu1 %v5921_v28  ;;  %v525_v28 = vmul.f32 %v485_v36, %v5820_v63  ;;  %v3782_v54 = vpack.c.bf16 %v6691_v45, %v6686_v49  ;;  %v922_v0 = vmul.f32 %v873_v20, %v5802_v37  ;;  %v924_v56 = vmul.f32 %v881_v9, %v5802_v37 }
 0x158   : > { %3709 = vmatpush1.bf16.msra.mxu0 %v3708_v16  ;;  %v709_v16 = vmul.f32 %v669_v4, %v5900_v5  ;;  %v925_v13 = vmul.f32 %v6702_v10, %v5802_v37  ;;  %v7389_v59 = vpack.c.bf16 %v6574_v3, %v6569_v14  ;;  %v7390_v49 = vpack.c.bf16 %v6588_v43, %v6583_v44 }
 0x159   : > { %3773 = vmatpush1.bf16.msra.mxu1 %v7387_v29  ;;  %3711 = vmatprep.subr.bf16.mxu0 %v3710_v21  ;;  %v6719_v29 = vld [vmem:[%s7336_s4 + $0x220] sm:$0xff]  ;;  %v540_v21 = vmul.f32 %v481_v57, %v5889_v27  ;;  %v740_v57 = vadd.f32 %v708_v50, %v524_v1  ;;  %v539_v1 = vmul.f32 %v477_v52, %v5889_v27 }
 0x15a   : > { %3775 = vmatprep.subr.bf16.mxu1 %v3774_v60  ;;  %v724_v60 = vmul.f32 %v665_v47, %v5964_v58  ;;  %v739_v47 = vadd.f32 %v707_v26, %v523_v40  ;;  %v741_v45 = vadd.f32 %v709_v16, %v525_v28  ;;  %v2436_v26 = vld [vmem:[%s7336_s4 + $0x2a8] sm:$0xff]  ;;  %v723_v14 = vmul.f32 %v661_v22, %v5964_v58  ;;  %v2438_v22 = vld [vmem:[%s7336_s4 + $0x2b8] sm:$0xff] }
 0x15b   : > { %v2444_v40 = vld [vmem:[%s7336_s4 + $0x2e8] sm:$0xff]  ;;  %v7392_v3 = vpack.c.bf16 %v6604_v25, %v6599_v19  ;;  %v754_v44 = vadd.f32 %v722_v2, %v538_v6  ;;  %v938_v43 = vmul.f32 %v873_v20, %v6025_v7  ;;  %v541_v50 = vmul.f32 %v485_v36, %v5889_v27  ;;  %v2446_v19 = vld [vmem:[%s7336_s4 + $0x2f8] sm:$0xff] }
 0x15c   : > { %3713 = vmatpush1.bf16.msra.mxu0 %v7388_v62  ;;  %v6750_v62 = vsub.s32 7, %v7391_v32  ;;  %v725_v28 = vmul.f32 %v669_v4, %v5964_v58  ;;  %v3720_v16 = vpack.c.bf16 %v2427_v23, %v6719_v29  ;;  %v756_v2 = vadd.f32 %v724_v60, %v540_v21  ;;  %v2435_v29 = vld [vmem:[%s7336_s4 + $0x2a0] sm:$0xff]  ;;  %v2452_v60 = vld [vmem:[%s7336_s4 + $0x328] sm:$0xff] }
 0x15d   : > { %3777 = vmatpush1.bf16.msra.mxu1 %v7389_v59  ;;  %3715 = vmatprep.subr.bf16.mxu0 %v7390_v49  ;;  %v3784_v59 = vpack.c.bf16 %v6738_v33, %v6733_v15  ;;  %v940_v25 = vmul.f32 %v881_v9, %v6025_v7  ;;  %v7393_v52 = vpack.c.bf16 %v6636_v53, %v6631_v35  ;;  %v2443_v21 = vld [vmem:[%s7336_s4 + $0x2e0] sm:$0xff]  ;;  %v6794_v35 = vld [vmem:[%s7336_s4 + $0x2b0] sm:$0xff]  ;;  %v2462_v33 = vld [vmem:[%s7336_s4 + $0x378] sm:$0xff] }
 0x15e   : > { %3779 = vmatprep.subr.bf16.mxu1 %v7392_v3  ;;  %v6779_v36 = vadd.f32 %v922_v0, %v738_v41  ;;  %v6781_v4 = vadd.f32 %v924_v56, %v740_v57  ;;  %v6783_v20 = vadd.f32 %v923_v46, %v739_v47  ;;  %v3722_v6 = vpack.c.bf16 %v2444_v40, %v2436_v26  ;;  %v6804_v0 = vld [vmem:[%s7336_s4 + $0x2f0] sm:$0xff]  ;;  %v6826_v57 = vld [vmem:[%s7336_s4 + $0x320] sm:$0xff]  ;;  %v6874_v3 = vld [vmem:[%s7336_s4 + $0x3b8] sm:$0xff] }
 0x15f   : > { %v7394_v53 = vpack.c.bf16 %v6651_v24, %v6646_v55  ;;  %v6799_v9 = vadd.f32 %v925_v13, %v741_v45  ;;  %v755_v41 = vadd.f32 %v723_v14, %v539_v1  ;;  %v939_v56 = vmul.f32 %v877_v48, %v6025_v7  ;;  %v2460_v24 = vld [vmem:[%s7336_s4 + $0x368] sm:$0xff]  ;;  %v2454_v48 = vld [vmem:[%s7336_s4 + $0x338] sm:$0xff]  ;;  %v6845_v13 = vld [vmem:[%s7336_s4 + $0x360] sm:$0xff] }
 0x160   : > { %3717 = vmatpush1.bf16.msra.mxu0 %v7393_v52  ;;  %v3786_v55 = vpack.c.bf16 %v2446_v19, %v2438_v22  ;;  %v757_v23 = vadd.f32 %v725_v28, %v541_v50  ;;  %v941_v15 = vmul.f32 %v6702_v10, %v6025_v7  ;;  %v6834_v10 = vrot.slane %v5843_v39, %v7386_v31  ;;  %v6850_v49 = vld [vmem:[%s7336_s4 + $0x330] sm:$0xff]  ;;  %v6864_v1 = vld [vmem:[%s7336_s4 + $0x3a8] sm:$0xff]  ;;  %v6888_v22 = vld [vmem:[%s7336_s4 + $0x3a0] sm:$0xff] }
 0x161   : > { %3781 = vmatpush1.bf16.msra.mxu1 %v7394_v53  ;;  %3719 = vmatprep.subr.bf16.mxu0 %v3718_v18  ;;  %v6813_v18 = vadd.f32 %v938_v43, %v754_v44  ;;  %v6838_v47 = vrot.slane %v5843_v39, %v6750_v62  ;;  %v6840_v46 = vadd.f32 %v940_v25, %v756_v2  ;;  %v6855_v45 = vld [vmem:[%s7336_s4 + $0x370] sm:$0xff]  ;;  %v988_v32 = vmax.f32 %v6781_v4, 0.0  ;;  %v6869_v14 = vld [vmem:[%s7336_s4 + $0x3e8] sm:$0xff] }
 0x162   : > { %3783 = vmatprep.subr.bf16.mxu1 %v3782_v54  ;;  %v6830_v54 = vrot.slane %v5843_v39, %v5797_v34  ;;  %v986_v39 = vmax.f32 %v6779_v36, 0.0  ;;  %v3724_v26 = vpack.c.bf16 %v2443_v21, %v2435_v29  ;;  %v3788_v40 = vpack.c.bf16 %v6804_v0, %v6794_v35  ;;  %v6903_v4 = vld [vmem:[%s7336_s4 + $0x3b0] sm:$0xff]  ;;  %v2484_v0 = vld [vmem:[%s7336_s4 + $0x428] sm:$0xff] }
 0x163   : > { %v987_v44 = vmax.f32 %v6783_v20, 0.0  ;;  %v989_v43 = vmax.f32 %v6799_v9, 0.0  ;;  %v6878_v50 = vadd.f32 %v939_v56, %v755_v41  ;;  %v3726_v28 = vpack.c.bf16 %v2460_v24, %v2452_v60  ;;  %v6908_v20 = vld [vmem:[%s7336_s4 + $0x3f0] sm:$0xff]  ;;  %v2492_v41 = vld [vmem:[%s7336_s4 + $0x468] sm:$0xff] }
 0x164   : > { %3721 = vmatpush1.bf16.msra.mxu0 %v3720_v16  ;;  %v6883_v16 = vld [vmem:[%s7336_s4 + $0x3f8] sm:$0xff]  ;;  %v1834_v19 = vpop.f32.mrb[4].mxu0  ;;  %v1002_v2 = vmax.f32 %v6813_v18, 0.0  ;;  %v6896_v25 = vadd.f32 %v941_v15, %v757_v23  ;;  %v3790_v52 = vpack.c.bf16 %v2462_v33, %v2454_v48  ;;  %v3728_v36 = vpack.c.bf16 %v6845_v13, %v6826_v57 }
 0x165   : > { %3785 = vmatpush1.bf16.msra.mxu1 %v3784_v59  ;;  %3723 = vmatprep.subr.bf16.mxu0 %v3722_v6  ;;  %v6893_v59 = vld [vmem:[%s7336_s4 + $0x3e0] sm:$0xff]  ;;  %v1835_v6 = vadd.f32 %v1834_v19, %v6530_v8  ;;  %v1911_v29 = vpop.f32.mrb[4].mxu1  ;;  %v1836_v21 = vpop.f32.mrb[5].mxu0  ;;  %v1004_v35 = vmax.f32 %v6840_v46, 0.0  ;;  %v3792_v53 = vpack.c.bf16 %v6855_v45, %v6850_v49  ;;  %v3730_v9 = vpack.c.bf16 %v6869_v14, %v6864_v1  ;;  %v2486_v23 = vld [vmem:[%s7336_s4 + $0x438] sm:$0xff] }
 0x166   : > { %3787 = vmatprep.subr.bf16.mxu1 %v3786_v55  ;;  %v1912_v56 = vadd.f32 %v1911_v29, %v6830_v54  ;;  %v1837_v60 = vadd.f32 %v1836_v21, %v6834_v10  ;;  %v1913_v24 = vpop.f32.mrb[5].mxu1  ;;  %v3794_v55 = vpack.c.bf16 %v6883_v16, %v6874_v3  ;;  %v3732_v18 = vpack.c.bf16 %v6893_v59, %v6888_v22  ;;  %v2494_v15 = vld [vmem:[%s7336_s4 + $0x478] sm:$0xff]  ;;  %v2508_v29 = vld [vmem:[%s7336_s4 + $0x4e8] sm:$0xff] }
 0x167   : > { %v2234_v48 = vmul.f32 %v1835_v6, %v986_v39  ;;  %v1914_v33 = vadd.f32 %v1913_v24, %v6838_v47  ;;  %v1003_v57 = vmax.f32 %v6878_v50, 0.0  ;;  %v3796_v46 = vpack.c.bf16 %v6908_v20, %v6903_v4  ;;  %v2493_v20 = vld [vmem:[%s7336_s4 + $0x470] sm:$0xff]  ;;  %v2500_v6 = vld [vmem:[%s7336_s4 + $0x4a8] sm:$0xff] }
 0x168   : > { %3725 = vmatpush1.bf16.msra.mxu0 %v3724_v26  ;;  %v2236_v13 = vmul.f32 %v1912_v56, %v988_v32  ;;  %v2235_v49 = vmul.f32 %v1837_v60, %v987_v44  ;;  %v1840_v45 = vpop.f32.mrb[6].mxu0  ;;  %v1005_v26 = vmax.f32 %v6896_v25, 0.0  ;;  %v3734_v1 = vpack.c.bf16 %v2492_v41, %v2484_v0  ;;  %v2510_v0 = vld [vmem:[%s7336_s4 + $0x4f8] sm:$0xff] }
 0x169   : > { %3789 = vmatpush1.bf16.msra.mxu1 %v3788_v40  ;;  %3727 = vmatprep.subr.bf16.mxu0 %v3726_v28  ;;  %v2282_v14 = vrot.slane %v2234_v48, 4  ;;  %v2237_v3 = vmul.f32 %v1914_v33, %v989_v43  ;;  %v1841_v39 = vadd.f32 %v1840_v45, %v6530_v8  ;;  %v1917_v16 = vpop.f32.mrb[6].mxu1  ;;  %v1842_v22 = vpop.f32.mrb[7].mxu0  ;;  %v3798_v40 = vpack.c.bf16 %v2494_v15, %v2486_v23  ;;  %v2483_v8 = vld [vmem:[%s7336_s4 + $0x420] sm:$0xff]  ;;  %v2526_v45 = vld [vmem:[%s7336_s4 + $0x578] sm:$0xff] }
 0x16a   : > { %3791 = vmatprep.subr.bf16.mxu1 %v3790_v52  ;;  %v2284_v59 = vrot.slane %v2236_v13, 4  ;;  %v2283_v50 = vrot.slane %v2235_v49, 4  ;;  %v1918_v28 = vadd.f32 %v1917_v16, %v6830_v54  ;;  %v1843_v19 = vadd.f32 %v1842_v22, %v6834_v10  ;;  %v1919_v32 = vpop.f32.mrb[7].mxu1  ;;  %v2491_v54 = vld [vmem:[%s7336_s4 + $0x460] sm:$0xff]  ;;  %v2485_v10 = vld [vmem:[%s7336_s4 + $0x430] sm:$0xff] }
 0x16b   : > { %v6942_v44 = vmax.f32 %v2234_v48, %v2282_v14  ;;  %v2285_v25 = vrot.slane %v2237_v3, 4  ;;  %v6944_v52 = vmul.f32 %v1841_v39, %v1002_v2  ;;  %v1920_v43 = vadd.f32 %v1919_v32, %v6838_v47  ;;  %v2499_v15 = vld [vmem:[%s7336_s4 + $0x4a0] sm:$0xff]  ;;  %v2517_v16 = vld [vmem:[%s7336_s4 + $0x530] sm:$0xff] }
 0x16c   : > { %3729 = vmatpush1.bf16.msra.mxu0 %v3728_v36  ;;  %v6956_v36 = vmax.f32 %v2236_v13, %v2284_v59  ;;  %v6958_v2 = vmax.f32 %v2235_v49, %v2283_v50  ;;  %v6960_v4 = vmul.f32 %v1918_v28, %v1004_v35  ;;  %v6962_v47 = vmul.f32 %v1843_v19, %v1003_v57  ;;  %v2507_v48 = vld [vmem:[%s7336_s4 + $0x4e0] sm:$0xff]  ;;  %v2509_v57 = vld [vmem:[%s7336_s4 + $0x4f0] sm:$0xff]  ;;  %v2524_v13 = vld [vmem:[%s7336_s4 + $0x568] sm:$0xff] }
 0x16d   : > { %3793 = vmatpush1.bf16.msra.mxu1 %v3792_v53  ;;  %3731 = vmatprep.subr.bf16.mxu0 %v3730_v9  ;;  %v6973_v21 = vmax.f32 %v2237_v3, %v2285_v25  ;;  %v2330_v35 = vmax.f32 %v6942_v44, %v6944_v52  ;;  %v6977_v53 = vmul.f32 %v1920_v43, %v1005_v26  ;;  %v2502_v9 = vld [vmem:[%s7336_s4 + $0x4b8] sm:$0xff]  ;;  %v2515_v3 = vld [vmem:[%s7336_s4 + $0x520] sm:$0xff]  ;;  %v2532_v59 = vld [vmem:[%s7336_s4 + $0x5a8] sm:$0xff] }
 0x16e   : > { %3795 = vmatprep.subr.bf16.mxu1 %v3794_v55  ;;  %v3736_v60 = vpack.c.bf16 %v2491_v54, %v2483_v8  ;;  %v3800_v55 = vpack.c.bf16 %v2493_v20, %v2485_v10  ;;  %v3738_v23 = vpack.c.bf16 %v2508_v29, %v2500_v6  ;;  %v3802_v33 = vpack.c.bf16 %v2510_v0, %v2502_v9  ;;  %v2518_v49 = vld [vmem:[%s7336_s4 + $0x538] sm:$0xff]  ;;  %v2523_v39 = vld [vmem:[%s7336_s4 + $0x560] sm:$0xff]  ;;  %v2540_v50 = vld [vmem:[%s7336_s4 + $0x5e8] sm:$0xff] }
 0x16f   : > { %v3740_v26 = vpack.c.bf16 %v2507_v48, %v2499_v15  ;;  %v3806_v22 = vpack.c.bf16 %v2526_v45, %v2518_v49  ;;  %v2534_v28 = vld [vmem:[%s7336_s4 + $0x5b8] sm:$0xff]  ;;  %v3744_v32 = vpack.c.bf16 %v2523_v39, %v2515_v3  ;;  %v3746_v43 = vpack.c.bf16 %v2540_v50, %v2532_v59  ;;  %v2531_v8 = vld [vmem:[%s7336_s4 + $0x5a0] sm:$0xff]  ;;  %v2533_v10 = vld [vmem:[%s7336_s4 + $0x5b0] sm:$0xff] }
 0x170   : > { %3733 = vmatpush1.bf16.msra.mxu0 %v3732_v18  ;;  %v2501_v18 = vld [vmem:[%s7336_s4 + $0x4b0] sm:$0xff]  ;;  %v2542_v19 = vld [vmem:[%s7336_s4 + $0x5f8] sm:$0xff]  ;;  %v2539_v54 = vld [vmem:[%s7336_s4 + $0x5e0] sm:$0xff] }
 0x171   : > { %3797 = vmatpush1.bf16.msra.mxu1 %v3796_v46  ;;  %3735 = vmatprep.subr.bf16.mxu0 %v3734_v1  ;;  %v2516_v46 = vld [vmem:[%s7336_s4 + $0x528] sm:$0xff]  ;;  %v3804_v1 = vpack.c.bf16 %v2509_v57, %v2501_v18  ;;  %v3810_v20 = vpack.c.bf16 %v2542_v19, %v2534_v28  ;;  %v2541_v6 = vld [vmem:[%s7336_s4 + $0x5f0] sm:$0xff]  ;;  %v2550_v0 = vld [vmem:[%s7336_s4 + $0x638] sm:$0xff] }
 0x172   : > { %3799 = vmatprep.subr.bf16.mxu1 %v3798_v40  ;;  %v3742_v14 = vpack.c.bf16 %v2524_v13, %v2516_v46  ;;  %v2525_v40 = vld [vmem:[%s7336_s4 + $0x570] sm:$0xff]  ;;  %v2548_v29 = vld [vmem:[%s7336_s4 + $0x628] sm:$0xff]  ;;  %v2547_v48 = vld [vmem:[%s7336_s4 + $0x620] sm:$0xff] }
 0x173   : > { %v3808_v25 = vpack.c.bf16 %v2525_v40, %v2517_v16  ;;  %v2556_v9 = vld [vmem:[%s7336_s4 + $0x668] sm:$0xff]  ;;  %v2555_v18 = vld [vmem:[%s7336_s4 + $0x660] sm:$0xff]  ;;  %v2557_v46 = vld [vmem:[%s7336_s4 + $0x670] sm:$0xff] }
 0x174   : > { %3737 = vmatpush1.bf16.msra.mxu0 %v3736_v60  ;;  %v2558_v60 = vld [vmem:[%s7336_s4 + $0x678] sm:$0xff]  ;;  %v3750_v15 = vpack.c.bf16 %v2556_v9, %v2548_v29  ;;  %v2564_v13 = vld [vmem:[%s7336_s4 + $0x6a8] sm:$0xff]  ;;  %v2563_v39 = vld [vmem:[%s7336_s4 + $0x6a0] sm:$0xff] }
 0x175   : > { %3801 = vmatpush1.bf16.msra.mxu1 %v3800_v55  ;;  %3739 = vmatprep.subr.bf16.mxu0 %v3738_v23  ;;  %v3748_v55 = vpack.c.bf16 %v2539_v54, %v2531_v8  ;;  %v3812_v23 = vpack.c.bf16 %v2541_v6, %v2533_v10  ;;  %v3814_v57 = vpack.c.bf16 %v2558_v60, %v2550_v0  ;;  %v2572_v49 = vld [vmem:[%s7336_s4 + $0x6e8] sm:$0xff]  ;;  %v2566_v45 = vld [vmem:[%s7336_s4 + $0x6b8] sm:$0xff]  ;;  %v2571_v16 = vld [vmem:[%s7336_s4 + $0x6e0] sm:$0xff] }
 0x176   : > { %3803 = vmatprep.subr.bf16.mxu1 %v3802_v33  ;;  %v2549_v33 = vld [vmem:[%s7336_s4 + $0x630] sm:$0xff]  ;;  %v3754_v3 = vpack.c.bf16 %v2572_v49, %v2564_v13  ;;  %v2580_v50 = vld [vmem:[%s7336_s4 + $0x728] sm:$0xff]  ;;  %v2582_v19 = vld [vmem:[%s7336_s4 + $0x738] sm:$0xff] }
 0x177   : > { %v2573_v59 = vld [vmem:[%s7336_s4 + $0x6f0] sm:$0xff]  ;;  %v2588_v28 = vld [vmem:[%s7336_s4 + $0x768] sm:$0xff]  ;;  %v2579_v54 = vld [vmem:[%s7336_s4 + $0x720] sm:$0xff] }
 0x178   : > { %3741 = vmatpush1.bf16.msra.mxu0 %v3740_v26  ;;  %v2574_v26 = vld [vmem:[%s7336_s4 + $0x6f8] sm:$0xff]  ;;  %v3758_v8 = vpack.c.bf16 %v2588_v28, %v2580_v50  ;;  %v2587_v10 = vld [vmem:[%s7336_s4 + $0x760] sm:$0xff]  ;;  %v2589_v29 = vld [vmem:[%s7336_s4 + $0x770] sm:$0xff] }
 0x179   : > { %3805 = vmatpush1.bf16.msra.mxu1 %v3804_v1  ;;  %3743 = vmatprep.subr.bf16.mxu0 %v3742_v14  ;;  %v3752_v1 = vpack.c.bf16 %v2555_v18, %v2547_v48  ;;  %v3816_v14 = vpack.c.bf16 %v2557_v46, %v2549_v33  ;;  %v3818_v40 = vpack.c.bf16 %v2574_v26, %v2566_v45  ;;  %v2596_v9 = vld [vmem:[%s7336_s4 + $0x7a8] sm:$0xff]  ;;  %v2598_v60 = vld [vmem:[%s7336_s4 + $0x7b8] sm:$0xff]  ;;  %v2595_v18 = vld [vmem:[%s7336_s4 + $0x7a0] sm:$0xff] }
 0x17a   : > { %3807 = vmatprep.subr.bf16.mxu1 %v3806_v22  ;;  %v2565_v22 = vld [vmem:[%s7336_s4 + $0x6b0] sm:$0xff]  ;;  %v2604_v0 = vld [vmem:[%s7336_s4 + $0x7e8] sm:$0xff]  ;;  %v2603_v33 = vld [vmem:[%s7336_s4 + $0x7e0] sm:$0xff] }
 0x17b   : > { %v3762_v48 = vpack.c.bf16 %v2604_v0, %v2596_v9  ;;  %v2597_v46 = vld [vmem:[%s7336_s4 + $0x7b0] sm:$0xff]  ;;  %v3764_v49 = vpack.c.bf16 %v2603_v33, %v2595_v18  ;;  %v352_v45 = vld [vmem:[%s7333_s1 + $0x20] sm:$0x77] }
 0x17c   : > { %3745 = vmatpush1.bf16.msra.mxu0 %v3744_v32  ;;  %v2590_v32 = vld [vmem:[%s7336_s4 + $0x778] sm:$0xff]  ;;  %v2605_v13 = vld [vmem:[%s7336_s4 + $0x7f0] sm:$0xff]  ;;  %v3852_v50 = vld [vmem:[%s5856_s18] sm:$0xff] }
 0x17d   : > { %3809 = vmatpush1.bf16.msra.mxu1 %v3808_v25  ;;  %3747 = vmatprep.subr.bf16.mxu0 %v3746_v43  ;;  %v3756_v25 = vpack.c.bf16 %v2571_v16, %v2563_v39  ;;  %v3820_v43 = vpack.c.bf16 %v2573_v59, %v2565_v22  ;;  %v3822_v6 = vpack.c.bf16 %v2590_v32, %v2582_v19 }
 0x17e   : > { %3811 = vmatprep.subr.bf16.mxu1 %v3810_v20  ;;  %v2581_v20 = vld [vmem:[%s7336_s4 + $0x730] sm:$0xff]  ;;  %v3828_v26 = vpack.c.bf16 %v2605_v13, %v2597_v46  ;;  %v413_v22 = vrot.slane %v352_v45, %v7385_v51  ;;  %v809_v59 = vrot.slane %v352_v45, %v5727_v11 }
 0x180   : > { %3749 = vmatpush1.bf16.msra.mxu0 %v3748_v55  ;;  %v2606_v55 = vld [vmem:[%s7336_s4 + $0x7f8] sm:$0xff] }
 0x181   : > { %3813 = vmatpush1.bf16.msra.mxu1 %v3812_v23  ;;  %3751 = vmatprep.subr.bf16.mxu0 %v3750_v15  ;;  %v3760_v23 = vpack.c.bf16 %v2587_v10, %v2579_v54  ;;  %v3824_v15 = vpack.c.bf16 %v2589_v29, %v2581_v20  ;;  %v493_v10 = vrot.slane %v413_v22, %v5670_v61 }
 0x182   : > { %3815 = vmatprep.subr.bf16.mxu1 %v3814_v57  ;;  %v3826_v57 = vpack.c.bf16 %v2606_v55, %v2598_v60  ;;  %v889_v29 = vrot.slane %v809_v59, %v5727_v11 }
 0x183   : > { %v527_v33 = vmul.f32 %v493_v10, %v5820_v63 }
 0x184   : > { %3753 = vmatpush1.bf16.msra.mxu0 %v3752_v1  ;;  %v353_v1 = vld [vmem:[%s7333_s1 + $0x28] sm:$0x77] }
 0x185   : > { %3817 = vmatpush1.bf16.msra.mxu1 %v3816_v14  ;;  %3755 = vmatprep.subr.bf16.mxu0 %v3754_v3  ;;  %v409_v14 = vrot.slane %v352_v45, %v5670_v61  ;;  %v593_v3 = vrot.slane %v352_v45, %v5673_v17  ;;  %v417_v39 = vrot.slane %v353_v1, %v5670_v61 }
 0x186   : > { %3819 = vmatprep.subr.bf16.mxu1 %v3818_v40  ;;  %v601_v16 = vrot.slane %v353_v1, %v5673_v17  ;;  %v597_v40 = vrot.slane %v352_v45, %v7386_v31  ;;  %v421_v19 = vrot.slane %v353_v1, %v7385_v51  ;;  %v605_v32 = vrot.slane %v353_v1, %v7386_v31 }
 0x187   : > { %v489_v28 = vrot.slane %v409_v14, %v5670_v61  ;;  %v817_v54 = vrot.slane %v353_v1, %v5727_v11  ;;  %v821_v55 = vrot.slane %v353_v1, %v5797_v34  ;;  %v926_v1 = vmul.f32 %v889_v29, %v5802_v37 }
 0x188   : > { %3757 = vmatpush1.bf16.msra.mxu0 %v3756_v25  ;;  %v673_v25 = vrot.slane %v593_v3, %v5673_v17  ;;  %v677_v20 = vrot.slane %v597_v40, %v5673_v17  ;;  %v501_v0 = vrot.slane %v421_v19, %v5670_v61  ;;  %v685_v60 = vrot.slane %v605_v32, %v5673_v17 }
 0x189   : > { %3821 = vmatpush1.bf16.msra.mxu1 %v3820_v43  ;;  %3759 = vmatprep.subr.bf16.mxu0 %v3758_v8  ;;  %v497_v43 = vrot.slane %v417_v39, %v5670_v61  ;;  %v681_v8 = vrot.slane %v601_v16, %v5673_v17  ;;  %v526_v9 = vmul.f32 %v489_v28, %v5820_v63 }
 0x18a   : > { %3823 = vmatprep.subr.bf16.mxu1 %v3822_v6  ;;  %v813_v6 = vrot.slane %v352_v45, %v5797_v34  ;;  %v897_v18 = vrot.slane %v817_v54, %v5727_v11  ;;  %v529_v13 = vmul.f32 %v501_v0, %v5820_v63  ;;  %v901_v45 = vrot.slane %v821_v55, %v5727_v11 }
 0x18b   : > { %v542_v22 = vmul.f32 %v489_v28, %v5889_v27  ;;  %v726_v40 = vmul.f32 %v673_v25, %v5964_v58  ;;  %v544_v59 = vmul.f32 %v497_v43, %v5889_v27  ;;  %v543_v19 = vmul.f32 %v493_v10, %v5889_v27  ;;  %v7201_v28 = vld [vmem:[%s7339_s7 + $0x8] sm:$0xff] }
 0x18c   : > { %3761 = vmatpush1.bf16.msra.mxu0 %v3760_v23  ;;  %v710_v23 = vmul.f32 %v673_v25, %v5900_v5  ;;  %v893_v46 = vrot.slane %v813_v6, %v5727_v11  ;;  %v928_v3 = vmul.f32 %v897_v18, %v5802_v37  ;;  %v727_v32 = vmul.f32 %v677_v20, %v5964_v58 }
 0x18d   : > { %3825 = vmatpush1.bf16.msra.mxu1 %v3824_v15  ;;  %3763 = vmatprep.subr.bf16.mxu0 %v3762_v48  ;;  %v528_v15 = vmul.f32 %v497_v43, %v5820_v63  ;;  %v712_v48 = vmul.f32 %v681_v8, %v5900_v5  ;;  %v929_v6 = vmul.f32 %v901_v45, %v5802_v37 }
 0x18e   : > { %3827 = vmatprep.subr.bf16.mxu1 %v3826_v57  ;;  %v711_v57 = vmul.f32 %v677_v20, %v5900_v5  ;;  %v927_v16 = vmul.f32 %v893_v46, %v5802_v37  ;;  %v729_v55 = vmul.f32 %v685_v60, %v5964_v58  ;;  %v942_v10 = vmul.f32 %v889_v29, %v6025_v7 }
 0x18f   : > { %v744_v14 = vadd.f32 %v712_v48, %v528_v15  ;;  %v944_v20 = vmul.f32 %v897_v18, %v6025_v7  ;;  %v759_v48 = vadd.f32 %v727_v32, %v543_v19 }
 0x190   : > { %3765 = vmatpush1.bf16.msra.mxu0 %v3764_v49  ;;  %v713_v49 = vmul.f32 %v685_v60, %v5900_v5  ;;  %v743_v39 = vadd.f32 %v711_v57, %v527_v33  ;;  %v943_v33 = vmul.f32 %v893_v46, %v6025_v7 }
 0x191   : > { %3829 = vmatpush1.bf16.msra.mxu1 %v3828_v26  ;;  %v742_v26 = vadd.f32 %v710_v23, %v526_v9  ;;  %v545_v9 = vmul.f32 %v501_v0, %v5889_v27  ;;  %v960_v25 = vadd.f32 %v928_v3, %v744_v14  ;;  %v1569_v0 = vrot.slane %v7201_v28, %v5670_v61 }
 0x192   : > { %v745_v54 = vadd.f32 %v713_v49, %v529_v13  ;;  %v959_v43 = vadd.f32 %v927_v16, %v743_v39  ;;  %v945_v13 = vmul.f32 %v901_v45, %v6025_v7  ;;  %v1577_v49 = vrot.slane %v7201_v28, %v5727_v11 }
 0x193   : > { %2859 = vmatmul.mubr.f32.vlgmr.msra.gmra.mrb[18].mxu0 %v3852_v50  ;;  %v958_v23 = vadd.f32 %v926_v1, %v742_v26  ;;  %v761_v57 = vadd.f32 %v729_v55, %v545_v9  ;;  %v1573_v26 = vrot.slane %v7201_v28, %v5673_v17  ;;  %v7395_v1 = vld [vmem:[#allocation7_spill] sm:$0xff]  ;;  %v992_v46 = vmax.f32 %v960_v25, 0.0 }
 0x194   : > { %2930 = vmatmul.mubr.f32.vlgmr.msra.gmra.mrb[18].mxu1 %v3852_v50  ;;  %v728_v50 = vmul.f32 %v681_v8, %v5964_v58  ;;  %v758_v8 = vadd.f32 %v726_v40, %v542_v22  ;;  %v961_v60 = vadd.f32 %v929_v6, %v745_v54  ;;  %v1581_v18 = vrot.slane %v7201_v28, %v7395_v1 }
 0x195   : > { %v990_v29 = vmax.f32 %v958_v23, 0.0  ;;  %v991_v39 = vmax.f32 %v959_v43, 0.0  ;;  %v975_v22 = vadd.f32 %v943_v33, %v759_v48  ;;  %v977_v19 = vadd.f32 %v945_v13, %v761_v57 }
 0x196   : > { %v760_v15 = vadd.f32 %v728_v50, %v544_v59  ;;  %v974_v14 = vadd.f32 %v942_v10, %v758_v8  ;;  %v993_v45 = vmax.f32 %v961_v60, 0.0 }
 0x197   : > { %v1007_v10 = vmax.f32 %v975_v22, 0.0  ;;  %v1009_v33 = vmax.f32 %v977_v19, 0.0  ;;  %v7396_v19 = vmax.f32 %v6216_v42, %v6218_v38  ;;  %v354_v42 = vld [vmem:[%s7333_s1 + $0x30] sm:$0x77]  ;;  %v355_v38 = vld [vmem:[%s7333_s1 + $0x38] sm:$0x77] }
 0x198   : > { %v976_v16 = vadd.f32 %v944_v20, %v760_v15  ;;  %v1006_v23 = vmax.f32 %v974_v14, 0.0 }
 0x19a   : > { %v1008_v8 = vmax.f32 %v976_v16, 0.0 }
 0x1a4   : > { %v1988_v3 = vpop.f32.mrb[8].mxu0 }
 0x1a5   : > { %v1989_v40 = vadd.f32 %v1988_v3, %v1569_v0  ;;  %v2065_v59 = vpop.f32.mrb[8].mxu1  ;;  %v1990_v50 = vpop.f32.mrb[9].mxu0 }
 0x1a6   : > { %v2066_v32 = vadd.f32 %v2065_v59, %v1577_v49  ;;  %v1991_v54 = vadd.f32 %v1990_v50, %v1573_v26  ;;  %v2067_v6 = vpop.f32.mrb[9].mxu1 }
 0x1a7   : > { %v2238_v9 = vmul.f32 %v1989_v40, %v990_v29  ;;  %v2068_v55 = vadd.f32 %v2067_v6, %v1581_v18 }
 0x1a8   : > { %v2240_v24 = vmul.f32 %v2066_v32, %v992_v46  ;;  %v2239_v56 = vmul.f32 %v1991_v54, %v991_v39  ;;  %v1994_v41 = vpop.f32.mrb[10].mxu0 }
 0x1a9   : > { %v2286_v25 = vrot.slane %v2238_v9, 4  ;;  %v2241_v43 = vmul.f32 %v2068_v55, %v993_v45  ;;  %v1995_v15 = vadd.f32 %v1994_v41, %v1569_v0  ;;  %v2071_v20 = vpop.f32.mrb[10].mxu1  ;;  %v1996_v48 = vpop.f32.mrb[11].mxu0 }
 0x1aa   : > { %v2288_v3 = vrot.slane %v2240_v24, 4  ;;  %v2287_v60 = vrot.slane %v2239_v56, 4  ;;  %v2072_v57 = vadd.f32 %v2071_v20, %v1577_v49  ;;  %v1997_v13 = vadd.f32 %v1996_v48, %v1573_v26  ;;  %v2073_v59 = vpop.f32.mrb[11].mxu1 }
 0x1ab   : > { %v2318_v50 = vmax.f32 %v2238_v9, %v2286_v25  ;;  %v2289_v29 = vrot.slane %v2241_v43, 4  ;;  %v2254_v40 = vmul.f32 %v1995_v15, %v1006_v23  ;;  %v2074_v14 = vadd.f32 %v2073_v59, %v1581_v18  ;;  %v7401_v23 = vld [vmem:[#allocation8_spill] sm:$0xff] }
 0x1ac   : > { %v2320_v46 = vmax.f32 %v2240_v24, %v2288_v3  ;;  %v2319_v39 = vmax.f32 %v2239_v56, %v2287_v60  ;;  %v2256_v32 = vmul.f32 %v2072_v57, %v1008_v8  ;;  %v2255_v16 = vmul.f32 %v1997_v13, %v1007_v10  ;;  %v7398_v24 = vld [vmem:[#allocation5_spill] sm:$0xff]  ;;  %v7399_v56 = vld [vmem:[#allocation6_spill] sm:$0xff] }
 0x1ad   : > { %v2321_v22 = vmax.f32 %v2241_v43, %v2289_v29  ;;  %v2334_v54 = vmax.f32 %v2318_v50, %v2254_v40  ;;  %v2257_v45 = vmul.f32 %v2074_v14, %v1009_v33  ;;  %v7397_v26 = vmax.f32 %v6230_v12, %v6234_v30  ;;  %v7402_v8 = vld [vmem:[#allocation9_spill] sm:$0xff] }
 0x1ae   : > { %v2336_v41 = vmax.f32 %v2320_v46, %v2256_v32  ;;  %v2335_v0 = vmax.f32 %v2319_v39, %v2255_v16  ;;  %v7400_v18 = vmax.f32 %v7398_v24, %v7399_v56  ;;  %v7403_v10 = vmax.f32 %v7401_v23, %v7402_v8 }
 0x1af   : > { %v2337_v6 = vmax.f32 %v2321_v22, %v2257_v45  ;;  %v7218_v49 = vadd.f32 %v2334_v54, %v7396_v19  ;;  %v425_v12 = vrot.slane %v354_v42, %v5670_v61  ;;  %v609_v30 = vrot.slane %v354_v42, %v5673_v17 }
 0x1b0   : > { %v7223_v9 = vadd.f32 %v2336_v41, %v7397_v26  ;;  %v7228_v55 = vadd.f32 %v2335_v0, %v7400_v18  ;;  %v433_v43 = vrot.slane %v355_v38, %v5670_v61  ;;  %v617_v15 = vrot.slane %v355_v38, %v5673_v17 }
 0x1b1   : > { %v7233_v25 = vadd.f32 %v2337_v6, %v7403_v10  ;;  %v429_v20 = vrot.slane %v354_v42, %v7385_v51  ;;  %v613_v48 = vrot.slane %v354_v42, %v7386_v31  ;;  %v825_v33 = vrot.slane %v354_v42, %v5727_v11 }
 0x1b2   : > { %v505_v3 = vrot.slane %v425_v12, %v5670_v61  ;;  %v437_v60 = vrot.slane %v355_v38, %v7385_v51  ;;  %v621_v57 = vrot.slane %v355_v38, %v7386_v31  ;;  %v689_v13 = vrot.slane %v609_v30, %v5673_v17 }
 0x1b3   : > { %v513_v59 = vrot.slane %v433_v43, %v5670_v61  ;;  %v697_v50 = vrot.slane %v617_v15, %v5673_v17  ;;  %v833_v29 = vrot.slane %v355_v38, %v5727_v11  ;;  %v509_v40 = vrot.slane %v429_v20, %v5670_v61 }
 0x1b4   : > { %v693_v14 = vrot.slane %v613_v48, %v5673_v17  ;;  %v829_v46 = vrot.slane %v354_v42, %v5797_v34  ;;  %v905_v39 = vrot.slane %v825_v33, %v5727_v11  ;;  %v530_v32 = vmul.f32 %v505_v3, %v5820_v63 }
 0x1b5   : > { %v517_v16 = vrot.slane %v437_v60, %v5670_v61  ;;  %v701_v22 = vrot.slane %v621_v57, %v5673_v17  ;;  %v837_v54 = vrot.slane %v355_v38, %v5797_v34  ;;  %v714_v45 = vmul.f32 %v689_v13, %v5900_v5 }
 0x1b6   : > { %v532_v41 = vmul.f32 %v513_v59, %v5820_v63  ;;  %v716_v0 = vmul.f32 %v697_v50, %v5900_v5  ;;  %v913_v6 = vrot.slane %v833_v29, %v5727_v11  ;;  %v531_v19 = vmul.f32 %v509_v40, %v5820_v63 }
 0x1b7   : > { %v715_v26 = vmul.f32 %v693_v14, %v5900_v5  ;;  %v909_v24 = vrot.slane %v829_v46, %v5727_v11  ;;  %v533_v56 = vmul.f32 %v517_v16, %v5820_v63  ;;  %v717_v18 = vmul.f32 %v701_v22, %v5900_v5 }
 0x1b8   : > { %v917_v23 = vrot.slane %v837_v54, %v5727_v11  ;;  %v746_v8 = vadd.f32 %v714_v45, %v530_v32  ;;  %v930_v10 = vmul.f32 %v905_v39, %v5802_v37  ;;  %v748_v42 = vadd.f32 %v716_v0, %v532_v41 }
 0x1b9   : > { %v932_v38 = vmul.f32 %v913_v6, %v5802_v37  ;;  %v747_v12 = vadd.f32 %v715_v26, %v531_v19  ;;  %v931_v30 = vmul.f32 %v909_v24, %v5802_v37  ;;  %v546_v43 = vmul.f32 %v505_v3, %v5889_v27 }
 0x1ba   : > { %v730_v15 = vmul.f32 %v689_v13, %v5964_v58  ;;  %v548_v20 = vmul.f32 %v513_v59, %v5889_v27  ;;  %v732_v63 = vmul.f32 %v697_v50, %v5964_v58  ;;  %v547_v5 = vmul.f32 %v509_v40, %v5889_v27 }
 0x1bb   : > { %v731_v48 = vmul.f32 %v693_v14, %v5964_v58  ;;  %v749_v33 = vadd.f32 %v717_v18, %v533_v56  ;;  %v933_v60 = vmul.f32 %v917_v23, %v5802_v37  ;;  %v549_v57 = vmul.f32 %v517_v16, %v5889_v27 }
 0x1bc   : > { %v733_v29 = vmul.f32 %v701_v22, %v5964_v58  ;;  %v962_v46 = vadd.f32 %v930_v10, %v746_v8  ;;  %v964_v32 = vadd.f32 %v932_v38, %v748_v42  ;;  %v963_v3 = vadd.f32 %v931_v30, %v747_v12 }
 0x1bd   : > { %v762_v54 = vadd.f32 %v730_v15, %v546_v43  ;;  %v946_v13 = vmul.f32 %v905_v39, %v6025_v7  ;;  %v764_v59 = vadd.f32 %v732_v63, %v548_v20  ;;  %v948_v50 = vmul.f32 %v913_v6, %v6025_v7 }
 0x1be   : > { %v763_v45 = vadd.f32 %v731_v48, %v547_v5  ;;  %v947_v40 = vmul.f32 %v909_v24, %v6025_v7  ;;  %v1585_v14 = vrot.slane %v7201_v28, %v7385_v51  ;;  %v965_v37 = vadd.f32 %v933_v60, %v749_v33 }
 0x1bf   : > { %v765_v41 = vadd.f32 %v733_v29, %v549_v57  ;;  %v949_v27 = vmul.f32 %v917_v23, %v6025_v7  ;;  %v1593_v58 = vrot.slane %v7201_v28, %v5797_v34  ;;  %v1589_v16 = vrot.slane %v7201_v28, %v7386_v31 }
 0x1c0   : > { %v994_v39 = vmax.f32 %v962_v46, 0.0  ;;  %v1597_v22 = vrot.slane %v7201_v28, %v6750_v62  ;;  %v978_v0 = vadd.f32 %v946_v13, %v762_v54  ;;  %v996_v19 = vmax.f32 %v964_v32, 0.0 }
 0x1c1   : > { %v995_v26 = vmax.f32 %v963_v3, 0.0  ;;  %v980_v24 = vadd.f32 %v948_v50, %v764_v59  ;;  %v979_v56 = vadd.f32 %v947_v40, %v763_v45  ;;  %v997_v7 = vmax.f32 %v965_v37, 0.0 }
 0x1c2   : > { %v981_v23 = vadd.f32 %v949_v27, %v765_v41  ;;  %v1010_v15 = vmax.f32 %v978_v0, 0.0 }
 0x1c3   : > { %v1012_v5 = vmax.f32 %v980_v24, 0.0  ;;  %v1011_v48 = vmax.f32 %v979_v56, 0.0 }
 0x1c4   : > { %v1013_v32 = vmax.f32 %v981_v23, 0.0 }
 0x1e4   : > { %v2142_v6 = vpop.f32.mrb[12].mxu0 }
 0x1e5   : > { %v2143_v18 = vadd.f32 %v2142_v6, %v1585_v14  ;;  %v2219_v8 = vpop.f32.mrb[12].mxu1  ;;  %v2144_v10 = vpop.f32.mrb[13].mxu0 }
 0x1e6   : > { %v2220_v42 = vadd.f32 %v2219_v8, %v1593_v58  ;;  %v2145_v38 = vadd.f32 %v2144_v10, %v1589_v16  ;;  %v2221_v12 = vpop.f32.mrb[13].mxu1 }
 0x1e7   : > { %v2242_v30 = vmul.f32 %v2143_v18, %v994_v39  ;;  %v2222_v43 = vadd.f32 %v2221_v12, %v1597_v22 }
 0x1e8   : > { %v2244_v20 = vmul.f32 %v2220_v42, %v996_v19  ;;  %v2243_v63 = vmul.f32 %v2145_v38, %v995_v26  ;;  %v2148_v28 = vpop.f32.mrb[14].mxu0  ;;  %v2607_v42 = vld [vmem:[%s7338_s6] sm:$0xff] }
 0x1e9   : > { %v2290_v33 = vrot.slane %v2242_v30, 4  ;;  %v2245_v60 = vmul.f32 %v2222_v43, %v997_v7  ;;  %v2149_v57 = vadd.f32 %v2148_v28, %v1585_v14  ;;  %v2225_v29 = vpop.f32.mrb[14].mxu1  ;;  %v2150_v46 = vpop.f32.mrb[15].mxu0  ;;  %v7406_v7 = vmax.f32 %v6973_v21, %v6977_v53 }
 0x1ea   : > { %v2292_v3 = vrot.slane %v2244_v20, 4  ;;  %v2291_v54 = vrot.slane %v2243_v63, 4  ;;  %v2226_v13 = vadd.f32 %v2225_v29, %v1593_v58  ;;  %v2151_v59 = vadd.f32 %v2150_v46, %v1589_v16  ;;  %v2227_v50 = vpop.f32.mrb[15].mxu1 }
 0x1eb   : > { %v2322_v45 = vmax.f32 %v2242_v30, %v2290_v33  ;;  %v2293_v40 = vrot.slane %v2245_v60, 4  ;;  %v2258_v37 = vmul.f32 %v2149_v57, %v1010_v15  ;;  %v2228_v41 = vadd.f32 %v2227_v50, %v1597_v22 }
 0x1ec   : > { %v2324_v27 = vmax.f32 %v2244_v20, %v2292_v3  ;;  %v2323_v39 = vmax.f32 %v2243_v63, %v2291_v54  ;;  %v2260_v0 = vmul.f32 %v2226_v13, %v1012_v5  ;;  %v2259_v6 = vmul.f32 %v2151_v59, %v1011_v48 }
 0x1ed   : > { %v2325_v19 = vmax.f32 %v2245_v60, %v2293_v40  ;;  %v2338_v26 = vmax.f32 %v2322_v45, %v2258_v37  ;;  %v2261_v24 = vmul.f32 %v2228_v41, %v1013_v32  ;;  %v7404_v16 = vmax.f32 %v6956_v36, %v6960_v4 }
 0x1ee   : > { %v2340_v14 = vmax.f32 %v2324_v27, %v2260_v0  ;;  %v2339_v56 = vmax.f32 %v2323_v39, %v2259_v6  ;;  %v7405_v22 = vmax.f32 %v6958_v2, %v6962_v47  ;;  %v2612_v44 = vrot.slane %v2607_v42, %v5670_v61 }
 0x1ef   : > { %v2341_v18 = vmax.f32 %v2325_v19, %v2261_v24  ;;  %v2346_v58 = vadd.f32 %v2338_v26, %v2330_v35  ;;  %v2620_v52 = vrot.slane %v2607_v42, %v5727_v11  ;;  %v2616_v36 = vrot.slane %v2607_v42, %v5673_v17 }
 0x1f0   : > { %v2348_v8 = vadd.f32 %v2340_v14, %v7404_v16  ;;  %v2347_v10 = vadd.f32 %v2339_v56, %v7405_v22  ;;  %v2624_v4 = vrot.slane %v2607_v42, %v7395_v1  ;;  %v2628_v20 = vrot.slane %v2607_v42, %v7385_v51 }
 0x1f1   : > { %v2349_v23 = vadd.f32 %v2341_v18, %v7406_v7  ;;  %v2632_v63 = vrot.slane %v2607_v42, %v7386_v31 }
 0x226   : > { %v2718_v35 = vpop.f32.mrb[16].mxu0 }
 0x227   : > { %v2719_v2 = vadd.f32 %v2718_v35, %v2612_v44  ;;  %v2789_v47 = vpop.f32.mrb[16].mxu1  ;;  %v2720_v38 = vpop.f32.mrb[17].mxu0 }
 0x228   : > { %v2790_v12 = vadd.f32 %v2789_v47, %v2620_v52  ;;  %v2721_v21 = vadd.f32 %v2720_v38, %v2616_v36  ;;  %v2791_v53 = vpop.f32.mrb[17].mxu1 }
 0x229   : > { %v2936_v30 = vadd.f32 %v2719_v2, %v7218_v49  ;;  %v2792_v43 = vadd.f32 %v2791_v53, %v2624_v4  ;;  %v2636_v49 = vrot.slane %v2607_v42, %v5797_v34 }
 0x22a   : > { %v2938_v15 = vadd.f32 %v2790_v12, %v7223_v9  ;;  %v2937_v61 = vadd.f32 %v2721_v21, %v7228_v55  ;;  %v2640_v9 = vrot.slane %v2607_v42, %v6750_v62 }
 0x22b   : > { %v2939_v17 = vadd.f32 %v2792_v43, %v7233_v25 }
 0x22c   : > { %v2952_v11 = vcombine.low %v2936_v30, %v2937_v61 }
 0x22d   : > { %v2953_v1 = vcombine.low %v2938_v15, %v2939_v17 }
 0x22e   : > { %2960 = vst [vmem:[%s345_s17] sm:$0xff] %v2952_v11 }
 0x22f   : > { %2961 = vst [vmem:[%s345_s17 + $0x8] sm:$0xff] %v2953_v1 }
 0x266   : > { %v2860_v55 = vpop.f32.mrb[18].mxu0 }
 0x267   : > { %v2861_v28 = vadd.f32 %v2860_v55, %v2628_v20  ;;  %v2931_v5 = vpop.f32.mrb[18].mxu1  ;;  %v2862_v48 = vpop.f32.mrb[19].mxu0 }
 0x268   : > { %v2932_v33 = vadd.f32 %v2931_v5, %v2636_v49  ;;  %v2863_v60 = vadd.f32 %v2862_v48, %v2632_v63  ;;  %v2933_v57 = vpop.f32.mrb[19].mxu1 }
 0x269   : > { %v2940_v25 = vadd.f32 %v2861_v28, %v2346_v58  ;;  %v2934_v29 = vadd.f32 %v2933_v57, %v2640_v9 }
 0x26a   : > { %v2942_v46 = vadd.f32 %v2932_v33, %v2348_v8  ;;  %v2941_v32 = vadd.f32 %v2863_v60, %v2347_v10 }
 0x26b   : > { %v2943_v3 = vadd.f32 %v2934_v29, %v2349_v23 }
 0x26c   : > { %v2954_v54 = vcombine.low %v2940_v25, %v2941_v32 }
 0x26d   : > { %v2955_v51 = vcombine.low %v2942_v46, %v2943_v3 }
 0x26e   : > { %2962 = vst [vmem:[%s345_s17 + $0x10] sm:$0xff] %v2954_v54 }
 0x26f   : > { %2963 = vst [vmem:[%s345_s17 + $0x18] sm:$0xff] %v2955_v51 }
 0x270 PF: > { %s18_s27 = sadd.s32 1, %s3859_s27  }
 0x271   : > { %p15_p4 = scmp.ge.s32.totalorder %s18_s27, 4  }
 0x273   :  { %17 = sbr.rel (!%p15_p4) target bundleno = 1 (0x1), region = 88 }

</bundles_post_ra>
